<compile_context>
chip_gen: v6e
topology: v6e:2x2x1
jax: 0.10.0
libtpu: 0.0.40
codegen_flags: <defaults>
</compile_context>

<pallas_src>
import jax
import jax.numpy as jnp
from jax import lax
from jax.experimental import pallas as pl
from jax.experimental.pallas import tpu as pltpu

LANE = 128
SUBLANE = 8


def _round_up(x, m):
    return (x + m - 1) // m * m


def _border_zero_idx(s, n):
    """Padded-plane positions (per phase plane, along one spatial axis) that
    the 3x3 conv taps read but the interior store never writes -> must be 0.

    Returns (zero_positions_per_phase, padded_extent)."""
    pad = 2 if s == 1 else 1
    zeros = []
    for p in range(s):                       # plane phase index
        a = (p - 1) % s                      # input phase stored in this plane
        off = (a + 1) // s                   # interior offset inside the plane
        interior = set(range(off, off + n))
        read = set()
        for k in range(3):                   # 3x3 tap offsets along this axis
            if k % s == p:
                read |= set(range(k // s, k // s + n))
        zeros.append(sorted(read - interior))
    return zeros, n + pad


# ---------------------------------------------------------------------------
# Fused block kernel (block_batch images per grid step)
# ---------------------------------------------------------------------------

def _make_block_kernel(s, bb, Ho, Wo, Cin_p, Cmid_p, Cout_p,
                       Hp1, Wp1, Hp2, Wp2, zrow1, zcol1):
    """Fused PreactBasicBlock kernel for fixed stride / static shapes.

    Ref layout:
      x_ref : (bb*s*s, Ho, Wo, Cin_p) bf16   phase-decomposed input
              x_ref[img*s*s + a*s + b, i, j, :] == x[img, s*i+a, s*j+b, :]
      w1_ref: (9, Cin_p, Cmid_p)  bf16       conv1 taps (ky*3+kx, cin, cout)
      w2_ref: (9, Cmid_p, Cout_p) bf16       conv2 taps
      wd_ref: (Cin_p, Cout_p)     bf16       1x1 downsample
      s1/b1 : (1, Cin_p)  f32                folded bn1 affine
      s2/b2 : (1, Cmid_p) f32                folded bn2 affine
      o_ref : (bb, Ho, Wo, Cout_p) bf16
    Scratch (bf16, persists across grid steps):
      h1_ref: (bb*s*s, Hp1, Wp1, Cin_p)      zero-padded relu(bn1(x)) phases
      h2_ref: (bb, Hp2, Wp2, Cmid_p)         zero-padded relu(bn2(conv1))
    """
    M = Ho * Wo
    f32 = jnp.float32
    bf16 = jnp.bfloat16

    def kernel(x_ref, w1_ref, w2_ref, wd_ref, s1_ref, b1_ref, s2_ref, b2_ref,
               o_ref, h1_ref, h2_ref):
        s1, b1 = s1_ref[...], b1_ref[...]
        s2, b2 = s2_ref[...], b2_ref[...]

        for img in range(bb):
            base = img * s * s

            # --- zero only the padded-border cells the taps actually read ---
            for py in range(s):
                for px in range(s):
                    p = base + py * s + px
                    for r in zrow1[py]:
                        h1_ref[p, r:r + 1, :, :] = jnp.zeros((1, Wp1, Cin_p), bf16)
                    for c in zcol1[px]:
                        h1_ref[p, :, c:c + 1, :] = jnp.zeros((Hp1, 1, Cin_p), bf16)
            for r in (0, Ho + 1):
                h2_ref[img, r:r + 1, :, :] = jnp.zeros((1, Wp2, Cmid_p), bf16)
            for c in (0, Wo + 1):
                h2_ref[img, :, c:c + 1, :] = jnp.zeros((Hp2, 1, Cmid_p), bf16)

            # --- stage 1: h1 = relu(bn1(x)); single bf16 store per phase ----
            for a in range(s):
                for b in range(s):
                    py, oy = (a + 1) % s, (a + 1) // s
                    px, ox = (b + 1) % s, (b + 1) // s
                    xi = x_ref[base + a * s + b]            # (Ho,Wo,Cin_p) bf16
                    h1 = jnp.maximum(xi.astype(f32) * s1 + b1, 0.0)
                    h1_ref[base + py * s + px, oy:oy + Ho, ox:ox + Wo, :] = (
                        h1.astype(bf16))

            # --- stage 2: conv1 = sum of 9 MXU taps (value accumulation) ----
            acc1 = None
            for ky in range(3):
                for kx in range(3):
                    ph = (ky % s) * s + (kx % s)
                    dy, dx = ky // s, kx // s
                    win = h1_ref[base + ph, dy:dy + Ho, dx:dx + Wo, :]
                    d = jnp.dot(win.reshape(M, Cin_p), w1_ref[ky * 3 + kx],
                                preferred_element_type=f32)
                    acc1 = d if acc1 is None else acc1 + d

            # --- stage 3: h2 = relu(bn2(conv1)); single bf16 store ----------
            h2 = jnp.maximum(acc1 * s2 + b2, 0.0)
            h2_ref[img, 1:Ho + 1, 1:Wo + 1, :] = (
                h2.reshape(Ho, Wo, Cmid_p).astype(bf16))

            # --- stage 4: conv2 taps + 1x1 residual; single output store ----
            # residual: 1x1 stride-s conv of raw x == phase-(0,0) plane @ wd
            acc2 = jnp.dot(x_ref[base].reshape(M, Cin_p), wd_ref[...],
                           preferred_element_type=f32)
            for ky in range(3):
                for kx in range(3):
                    win = h2_ref[img, ky:ky + Ho, kx:kx + Wo, :]
                    acc2 = acc2 + jnp.dot(win.reshape(M, Cmid_p),
                                          w2_ref[ky * 3 + kx],
                                          preferred_element_type=f32)
            o_ref[img] = acc2.reshape(Ho, Wo, Cout_p).astype(o_ref.dtype)

    return kernel


# ---------------------------------------------------------------------------
# BN folding + wrapper (NCHW in / NCHW out, like the PyTorch module)
# ---------------------------------------------------------------------------

def fold_bn(gamma, beta, running_mean, running_var, eps=1e-5):
    scale = gamma / jnp.sqrt(running_var + eps)
    bias = beta - running_mean * scale
    return scale, bias


def preact_basic_block(x_nchw, params, stride, block_batch=1):
    N, Cin, H, W = x_nchw.shape
    planes = params["conv1_w"].shape[0]
    s = int(stride)
    bb = int(block_batch)
    assert H % s == 0 and W % s == 0, "spatial dims must be divisible by stride"
    assert N % bb == 0, "batch must be divisible by block_batch"
    Ho, Wo = H // s, W // s

    Cin_p = _round_up(Cin, LANE)
    Cmid_p = _round_up(planes, LANE)
    Cout_p = Cmid_p

    # Folded (eval-mode) BN affines, zero-padded along channels.
    s1, b1 = fold_bn(params["bn1_gamma"], params["bn1_beta"],
                     params["bn1_mean"], params["bn1_var"])
    s2, b2 = fold_bn(params["bn2_gamma"], params["bn2_beta"],
                     params["bn2_mean"], params["bn2_var"])

    def pad_vec(v, n):
        return jnp.pad(v.astype(jnp.float32), (0, n - v.shape[0])).reshape(1, n)

    s1p, b1p = pad_vec(s1, Cin_p), pad_vec(b1, Cin_p)
    s2p, b2p = pad_vec(s2, Cmid_p), pad_vec(b2, Cmid_p)

    def conv_w(w, ci_p, co_p):              # (O, I, 3, 3) -> (9, ci_p, co_p) bf16
        O, I = w.shape[0], w.shape[1]
        w = jnp.transpose(w, (2, 3, 1, 0))  # (3, 3, I, O)
        w = jnp.pad(w, ((0, 0), (0, 0), (0, ci_p - I), (0, co_p - O)))
        return w.reshape(9, ci_p, co_p).astype(jnp.bfloat16)

    w1 = conv_w(params["conv1_w"], Cin_p, Cmid_p)
    w2 = conv_w(params["conv2_w"], Cmid_p, Cout_p)
    wd = jnp.pad(jnp.transpose(params["down_w"][:, :, 0, 0], (1, 0)),
                 ((0, Cin_p - Cin), (0, Cout_p - planes))).astype(jnp.bfloat16)

    # NCHW -> NHWC, channel-pad to lane width, phase-decompose by the stride
    # (space-to-depth) so all in-kernel window accesses are unit-stride, and
    # cast to bf16 (halves activation HBM traffic).
    xh = jnp.transpose(x_nchw, (0, 2, 3, 1)).astype(jnp.float32)
    xh = jnp.pad(xh, ((0, 0), (0, 0), (0, 0), (0, Cin_p - Cin)))
    xp = xh.reshape(N, Ho, s, Wo, s, Cin_p)
    xp = jnp.transpose(xp, (0, 2, 4, 1, 3, 5))
    xp = xp.reshape(N * s * s, Ho, Wo, Cin_p).astype(jnp.bfloat16)

    zrow1, Hp1 = _border_zero_idx(s, Ho)
    zcol1, Wp1 = _border_zero_idx(s, Wo)
    Wp1 = _round_up(Wp1, SUBLANE)           # sublane-aligned scratch plane width
    Hp2, Wp2 = Ho + 2, _round_up(Wo + 2, SUBLANE)

    kernel = _make_block_kernel(s, bb, Ho, Wo, Cin_p, Cmid_p, Cout_p,
                                Hp1, Wp1, Hp2, Wp2, zrow1, zcol1)

    out = pl.pallas_call(
        kernel,
        out_shape=jax.ShapeDtypeStruct((N, Ho, Wo, Cout_p), jnp.bfloat16),
        grid=(N // bb,),
        in_specs=[
            pl.BlockSpec((bb * s * s, Ho, Wo, Cin_p), lambda n: (n, 0, 0, 0)),
            pl.BlockSpec((9, Cin_p, Cmid_p), lambda n: (0, 0, 0)),
            pl.BlockSpec((9, Cmid_p, Cout_p), lambda n: (0, 0, 0)),
            pl.BlockSpec((Cin_p, Cout_p), lambda n: (0, 0)),
            pl.BlockSpec((1, Cin_p), lambda n: (0, 0)),
            pl.BlockSpec((1, Cin_p), lambda n: (0, 0)),
            pl.BlockSpec((1, Cmid_p), lambda n: (0, 0)),
            pl.BlockSpec((1, Cmid_p), lambda n: (0, 0)),
        ],
        out_specs=pl.BlockSpec((bb, Ho, Wo, Cout_p), lambda n: (n, 0, 0, 0)),
        scratch_shapes=[
            pltpu.VMEM((bb * s * s, Hp1, Wp1, Cin_p), jnp.bfloat16),  # padded h1
            pltpu.VMEM((bb, Hp2, Wp2, Cmid_p), jnp.bfloat16),         # padded h2
        ],
        compiler_params=pltpu.CompilerParams(
            dimension_semantics=("parallel",),      # v7x: 2 TCs split the batch
            vmem_limit_bytes=32 * 1024 * 1024),
    )(xp, w1, w2, wd, s1p, b1p, s2p, b2p)

    # Drop lane padding, back to the module's NCHW / f32 interface.
    out = out[..., :planes].astype(jnp.float32)
    return jnp.transpose(out, (0, 3, 1, 2))


# ---------------------------------------------------------------------------
# Pure-JAX reference (mirrors PyTorch NCHW conv semantics, f32)
# ---------------------------------------------------------------------------

def reference(x_nchw, params, stride):
    dn = ("NCHW", "OIHW", "NCHW")
    s1, b1 = fold_bn(params["bn1_gamma"], params["bn1_beta"],
                     params["bn1_mean"], params["bn1_var"])
    h = jax.nn.relu(x_nchw * s1.reshape(1, -1, 1, 1) + b1.reshape(1, -1, 1, 1))
    c1 = lax.conv_general_dilated(h, params["conv1_w"], (stride, stride),
                                  ((1, 1), (1, 1)), dimension_numbers=dn)
    s2, b2 = fold_bn(params["bn2_gamma"], params["bn2_beta"],
                     params["bn2_mean"], params["bn2_var"])
    h2 = jax.nn.relu(c1 * s2.reshape(1, -1, 1, 1) + b2.reshape(1, -1, 1, 1))
    c2 = lax.conv_general_dilated(h2, params["conv2_w"], (1, 1),
                                  ((1, 1), (1, 1)), dimension_numbers=dn)
    idn = lax.conv_general_dilated(x_nchw, params["down_w"], (stride, stride),
                                   ((0, 0), (0, 0)), dimension_numbers=dn)
    return c2 + idn


# ---------------------------------------------------------------------------
# Main
# ---------------------------------------------------------------------------

def make_params(key, inplanes, planes):
    ks = jax.random.split(key, 11)
    return {
        "bn1_gamma": jax.random.uniform(ks[0], (inplanes,), jnp.float32, 0.5, 1.5),
        "bn1_beta":  0.1 * jax.random.normal(ks[1], (inplanes,), jnp.float32),
        "bn1_mean":  0.1 * jax.random.normal(ks[2], (inplanes,), jnp.float32),
        "bn1_var":   jax.random.uniform(ks[3], (inplanes,), jnp.float32, 0.5, 1.5),
        "conv1_w":   0.1 * jax.random.normal(ks[4], (planes, inplanes, 3, 3), jnp.float32),
        "bn2_gamma": jax.random.uniform(ks[5], (planes,), jnp.float32, 0.5, 1.5),
        "bn2_beta":  0.1 * jax.random.normal(ks[6], (planes,), jnp.float32),
        "bn2_mean":  0.1 * jax.random.normal(ks[7], (planes,), jnp.float32),
        "bn2_var":   jax.random.uniform(ks[8], (planes,), jnp.float32, 0.5, 1.5),
        "conv2_w":   0.1 * jax.random.normal(ks[9], (planes, planes, 3, 3), jnp.float32),
        "down_w":    0.1 * jax.random.normal(ks[10], (planes, inplanes, 1, 1), jnp.float32),
    }


if __name__ == "__main__":
    key = jax.random.PRNGKey(0)
    kx, kp = jax.random.split(key)

    N, inplanes, planes, H, W = 2, 4, 8, 16, 16
    x = jax.random.normal(kx, (N, inplanes, H, W), jnp.float32)   # NCHW like PyTorch
    params = make_params(kp, inplanes, planes)

    block = jax.jit(preact_basic_block, static_argnames=("stride",))

    for stride in (1, 2):
        out = jax.block_until_ready(block(x, params, stride=stride))
        ref = jax.block_until_ready(reference(x, params, stride))
        assert out.shape == ref.shape, (out.shape, ref.shape)
        max_err = float(jnp.max(jnp.abs(out - ref)))
        # bf16 input / weights / intermediate activations / output with f32
        # accumulation -> loosened tolerance vs the pure-f32 reference.
        assert jnp.allclose(out, ref, atol=1e-1, rtol=5e-2), (
            f"stride={stride} max err {max_err}")

    print("KERNEL_OK")
</pallas_src>

<mosaic_0001>
module attributes {stable_mosaic.version = 11 : i64} {
  func.func @kernel(%arg0: i32, %arg1: memref<1x16x16x128xbf16, #tpu.memory_space<vmem>>, %arg2: memref<9x128x128xbf16, #tpu.memory_space<vmem>>, %arg3: memref<9x128x128xbf16, #tpu.memory_space<vmem>>, %arg4: memref<128x128xbf16, #tpu.memory_space<vmem>>, %arg5: memref<1x128xf32, #tpu.memory_space<vmem>>, %arg6: memref<1x128xf32, #tpu.memory_space<vmem>>, %arg7: memref<1x128xf32, #tpu.memory_space<vmem>>, %arg8: memref<1x128xf32, #tpu.memory_space<vmem>>, %arg9: memref<1x16x16x128xbf16, #tpu.memory_space<vmem>>, %arg10: memref<1x18x24x128xbf16, #tpu.memory_space<vmem>>, %arg11: memref<1x18x24x128xbf16, #tpu.memory_space<vmem>>) attributes {dimension_semantics = [#tpu.dimension_semantics<parallel>], iteration_bounds = array<i64: 2>, scalar_prefetch = 0 : i64, scratch_operands = 2 : i64, tpu.core_type = #tpu.core_type<tc>, window_params = [{transform_indices = @transform_0, window_bounds = array<i64: 1, 16, 16, 128>}, {pipeline_mode = #tpu.pipeline_mode<synchronous>, transform_indices = @transform_1, window_bounds = array<i64: 9, 128, 128>}, {pipeline_mode = #tpu.pipeline_mode<synchronous>, transform_indices = @transform_2, window_bounds = array<i64: 9, 128, 128>}, {pipeline_mode = #tpu.pipeline_mode<synchronous>, transform_indices = @transform_3, window_bounds = array<i64: 128, 128>}, {pipeline_mode = #tpu.pipeline_mode<synchronous>, transform_indices = @transform_4, window_bounds = array<i64: 1, 128>}, {pipeline_mode = #tpu.pipeline_mode<synchronous>, transform_indices = @transform_5, window_bounds = array<i64: 1, 128>}, {pipeline_mode = #tpu.pipeline_mode<synchronous>, transform_indices = @transform_6, window_bounds = array<i64: 1, 128>}, {pipeline_mode = #tpu.pipeline_mode<synchronous>, transform_indices = @transform_7, window_bounds = array<i64: 1, 128>}, {transform_indices = @transform_8, window_bounds = array<i64: 1, 16, 16, 128>}]} {
    %c0 = arith.constant 0 : index
    %c0_0 = arith.constant 0 : index
    %0 = vector.load %arg5[%c0, %c0_0] : memref<1x128xf32, #tpu.memory_space<vmem>>, vector<1x128xf32>
    %c0_1 = arith.constant 0 : index
    %c0_2 = arith.constant 0 : index
    %1 = vector.load %arg6[%c0_1, %c0_2] : memref<1x128xf32, #tpu.memory_space<vmem>>, vector<1x128xf32>
    %c0_3 = arith.constant 0 : index
    %c0_4 = arith.constant 0 : index
    %2 = vector.load %arg7[%c0_3, %c0_4] : memref<1x128xf32, #tpu.memory_space<vmem>>, vector<1x128xf32>
    %c0_5 = arith.constant 0 : index
    %c0_6 = arith.constant 0 : index
    %3 = vector.load %arg8[%c0_5, %c0_6] : memref<1x128xf32, #tpu.memory_space<vmem>>, vector<1x128xf32>
    %cst = arith.constant 0.000000e+00 : bf16
    %4 = vector.broadcast %cst : bf16 to vector<1x24x128xbf16>
    %c0_7 = arith.constant 0 : index
    %c0_8 = arith.constant 0 : index
    %c0_9 = arith.constant 0 : index
    %c0_10 = arith.constant 0 : index
    %5 = vector.load %arg10[%c0_7, %c0_8, %c0_9, %c0_10] : memref<1x18x24x128xbf16, #tpu.memory_space<vmem>>, vector<1x1x24x128xbf16>
    %6 = vector.shape_cast %5 : vector<1x1x24x128xbf16> to vector<1x24x128xbf16>
    %7 = vector.shape_cast %4 : vector<1x24x128xbf16> to vector<1x1x24x128xbf16>
    tpu.vector_store %arg10[%c0_7, %c0_8, %c0_9, %c0_10], %7 {strides = array<i32>} : memref<1x18x24x128xbf16, #tpu.memory_space<vmem>>, vector<1x1x24x128xbf16>,
    %cst_11 = arith.constant 0.000000e+00 : bf16
    %8 = vector.broadcast %cst_11 : bf16 to vector<1x24x128xbf16>
    %c0_12 = arith.constant 0 : index
    %c17 = arith.constant 17 : index
    %c0_13 = arith.constant 0 : index
    %c0_14 = arith.constant 0 : index
    %9 = vector.load %arg10[%c0_12, %c17, %c0_13, %c0_14] : memref<1x18x24x128xbf16, #tpu.memory_space<vmem>>, vector<1x1x24x128xbf16>
    %10 = vector.shape_cast %9 : vector<1x1x24x128xbf16> to vector<1x24x128xbf16>
    %11 = vector.shape_cast %8 : vector<1x24x128xbf16> to vector<1x1x24x128xbf16>
    tpu.vector_store %arg10[%c0_12, %c17, %c0_13, %c0_14], %11 {strides = array<i32>} : memref<1x18x24x128xbf16, #tpu.memory_space<vmem>>, vector<1x1x24x128xbf16>,
    %cst_15 = arith.constant 0.000000e+00 : bf16
    %12 = vector.broadcast %cst_15 : bf16 to vector<18x1x128xbf16>
    %c0_16 = arith.constant 0 : index
    %c0_17 = arith.constant 0 : index
    %c0_18 = arith.constant 0 : index
    %c0_19 = arith.constant 0 : index
    %13 = vector.load %arg10[%c0_16, %c0_17, %c0_18, %c0_19] : memref<1x18x24x128xbf16, #tpu.memory_space<vmem>>, vector<1x18x1x128xbf16>
    %14 = vector.shape_cast %13 : vector<1x18x1x128xbf16> to vector<18x1x128xbf16>
    %15 = vector.shape_cast %12 : vector<18x1x128xbf16> to vector<1x18x1x128xbf16>
    tpu.vector_store %arg10[%c0_16, %c0_17, %c0_18, %c0_19], %15 {strides = array<i32>} : memref<1x18x24x128xbf16, #tpu.memory_space<vmem>>, vector<1x18x1x128xbf16>,
    %cst_20 = arith.constant 0.000000e+00 : bf16
    %16 = vector.broadcast %cst_20 : bf16 to vector<18x1x128xbf16>
    %c0_21 = arith.constant 0 : index
    %c0_22 = arith.constant 0 : index
    %c17_23 = arith.constant 17 : index
    %c0_24 = arith.constant 0 : index
    %17 = vector.load %arg10[%c0_21, %c0_22, %c17_23, %c0_24] : memref<1x18x24x128xbf16, #tpu.memory_space<vmem>>, vector<1x18x1x128xbf16>
    %18 = vector.shape_cast %17 : vector<1x18x1x128xbf16> to vector<18x1x128xbf16>
    %19 = vector.shape_cast %16 : vector<18x1x128xbf16> to vector<1x18x1x128xbf16>
    tpu.vector_store %arg10[%c0_21, %c0_22, %c17_23, %c0_24], %19 {strides = array<i32>} : memref<1x18x24x128xbf16, #tpu.memory_space<vmem>>, vector<1x18x1x128xbf16>,
    %cst_25 = arith.constant 0.000000e+00 : bf16
    %20 = vector.broadcast %cst_25 : bf16 to vector<1x24x128xbf16>
    %c0_26 = arith.constant 0 : index
    %c0_27 = arith.constant 0 : index
    %c0_28 = arith.constant 0 : index
    %c0_29 = arith.constant 0 : index
    %21 = vector.load %arg11[%c0_26, %c0_27, %c0_28, %c0_29] : memref<1x18x24x128xbf16, #tpu.memory_space<vmem>>, vector<1x1x24x128xbf16>
    %22 = vector.shape_cast %21 : vector<1x1x24x128xbf16> to vector<1x24x128xbf16>
    %23 = vector.shape_cast %20 : vector<1x24x128xbf16> to vector<1x1x24x128xbf16>
    tpu.vector_store %arg11[%c0_26, %c0_27, %c0_28, %c0_29], %23 {strides = array<i32>} : memref<1x18x24x128xbf16, #tpu.memory_space<vmem>>, vector<1x1x24x128xbf16>,
    %cst_30 = arith.constant 0.000000e+00 : bf16
    %24 = vector.broadcast %cst_30 : bf16 to vector<1x24x128xbf16>
    %c0_31 = arith.constant 0 : index
    %c17_32 = arith.constant 17 : index
    %c0_33 = arith.constant 0 : index
    %c0_34 = arith.constant 0 : index
    %25 = vector.load %arg11[%c0_31, %c17_32, %c0_33, %c0_34] : memref<1x18x24x128xbf16, #tpu.memory_space<vmem>>, vector<1x1x24x128xbf16>
    %26 = vector.shape_cast %25 : vector<1x1x24x128xbf16> to vector<1x24x128xbf16>
    %27 = vector.shape_cast %24 : vector<1x24x128xbf16> to vector<1x1x24x128xbf16>
    tpu.vector_store %arg11[%c0_31, %c17_32, %c0_33, %c0_34], %27 {strides = array<i32>} : memref<1x18x24x128xbf16, #tpu.memory_space<vmem>>, vector<1x1x24x128xbf16>,
    %cst_35 = arith.constant 0.000000e+00 : bf16
    %28 = vector.broadcast %cst_35 : bf16 to vector<18x1x128xbf16>
    %c0_36 = arith.constant 0 : index
    %c0_37 = arith.constant 0 : index
    %c0_38 = arith.constant 0 : index
    %c0_39 = arith.constant 0 : index
    %29 = vector.load %arg11[%c0_36, %c0_37, %c0_38, %c0_39] : memref<1x18x24x128xbf16, #tpu.memory_space<vmem>>, vector<1x18x1x128xbf16>
    %30 = vector.shape_cast %29 : vector<1x18x1x128xbf16> to vector<18x1x128xbf16>
    %31 = vector.shape_cast %28 : vector<18x1x128xbf16> to vector<1x18x1x128xbf16>
    tpu.vector_store %arg11[%c0_36, %c0_37, %c0_38, %c0_39], %31 {strides = array<i32>} : memref<1x18x24x128xbf16, #tpu.memory_space<vmem>>, vector<1x18x1x128xbf16>,
    %cst_40 = arith.constant 0.000000e+00 : bf16
    %32 = vector.broadcast %cst_40 : bf16 to vector<18x1x128xbf16>
    %c0_41 = arith.constant 0 : index
    %c0_42 = arith.constant 0 : index
    %c17_43 = arith.constant 17 : index
    %c0_44 = arith.constant 0 : index
    %33 = vector.load %arg11[%c0_41, %c0_42, %c17_43, %c0_44] : memref<1x18x24x128xbf16, #tpu.memory_space<vmem>>, vector<1x18x1x128xbf16>
    %34 = vector.shape_cast %33 : vector<1x18x1x128xbf16> to vector<18x1x128xbf16>
    %35 = vector.shape_cast %32 : vector<18x1x128xbf16> to vector<1x18x1x128xbf16>
    tpu.vector_store %arg11[%c0_41, %c0_42, %c17_43, %c0_44], %35 {strides = array<i32>} : memref<1x18x24x128xbf16, #tpu.memory_space<vmem>>, vector<1x18x1x128xbf16>,
    %c0_45 = arith.constant 0 : index
    %c0_46 = arith.constant 0 : index
    %c0_47 = arith.constant 0 : index
    %c0_48 = arith.constant 0 : index
    %36 = vector.load %arg1[%c0_45, %c0_46, %c0_47, %c0_48] : memref<1x16x16x128xbf16, #tpu.memory_space<vmem>>, vector<1x16x16x128xbf16>
    %37 = vector.shape_cast %36 : vector<1x16x16x128xbf16> to vector<16x16x128xbf16>
    %38 = arith.extf %37 : vector<16x16x128xbf16> to vector<16x16x128xf32>
    %39 = vector.shape_cast %0 : vector<1x128xf32> to vector<1x1x128xf32>
    %40 = vector.broadcast %39 : vector<1x1x128xf32> to vector<16x16x128xf32>
    %41 = arith.mulf %38, %40 : vector<16x16x128xf32>
    %42 = vector.shape_cast %1 : vector<1x128xf32> to vector<1x1x128xf32>
    %43 = vector.broadcast %42 : vector<1x1x128xf32> to vector<16x16x128xf32>
    %44 = arith.addf %41, %43 : vector<16x16x128xf32>
    %cst_49 = arith.constant 0.000000e+00 : f32
    %45 = vector.broadcast %cst_49 : f32 to vector<16x16x128xf32>
    %46 = arith.maximumf %44, %45 : vector<16x16x128xf32>
    %47 = arith.truncf %46 : vector<16x16x128xf32> to vector<16x16x128xbf16>
    %c0_50 = arith.constant 0 : index
    %c1 = arith.constant 1 : index
    %c1_51 = arith.constant 1 : index
    %c0_52 = arith.constant 0 : index
    %48 = vector.load %arg10[%c0_50, %c1, %c1_51, %c0_52] : memref<1x18x24x128xbf16, #tpu.memory_space<vmem>>, vector<1x16x16x128xbf16>
    %49 = vector.shape_cast %48 : vector<1x16x16x128xbf16> to vector<16x16x128xbf16>
    %50 = vector.shape_cast %47 : vector<16x16x128xbf16> to vector<1x16x16x128xbf16>
    tpu.vector_store %arg10[%c0_50, %c1, %c1_51, %c0_52], %50 {strides = array<i32>} : memref<1x18x24x128xbf16, #tpu.memory_space<vmem>>, vector<1x16x16x128xbf16>,
    %c0_53 = arith.constant 0 : index
    %c0_54 = arith.constant 0 : index
    %c0_55 = arith.constant 0 : index
    %c0_56 = arith.constant 0 : index
    %51 = vector.load %arg10[%c0_53, %c0_54, %c0_55, %c0_56] : memref<1x18x24x128xbf16, #tpu.memory_space<vmem>>, vector<1x16x16x128xbf16>
    %52 = vector.shape_cast %51 : vector<1x16x16x128xbf16> to vector<16x16x128xbf16>
    %53 = vector.shape_cast %52 : vector<16x16x128xbf16> to vector<256x128xbf16>
    %c0_57 = arith.constant 0 : index
    %c0_58 = arith.constant 0 : index
    %c0_59 = arith.constant 0 : index
    %54 = vector.load %arg2[%c0_57, %c0_58, %c0_59] : memref<9x128x128xbf16, #tpu.memory_space<vmem>>, vector<1x128x128xbf16>
    %55 = vector.shape_cast %54 : vector<1x128x128xbf16> to vector<128x128xbf16>
    %cst_60 = arith.constant dense<0.000000e+00> : vector<256x128xf32>
    %56 = tpu.matmul %53, %55, %cst_60 {dimension_numbers = #tpu.dot_dimension_numbers<[1], [0], [0], [1], [0, 0, 1, 1], [], []>} : vector<256x128xbf16>, vector<128x128xbf16>, vector<256x128xf32> -> vector<256x128xf32>
    %c0_61 = arith.constant 0 : index
    %c0_62 = arith.constant 0 : index
    %c1_63 = arith.constant 1 : index
    %c0_64 = arith.constant 0 : index
    %57 = vector.load %arg10[%c0_61, %c0_62, %c1_63, %c0_64] : memref<1x18x24x128xbf16, #tpu.memory_space<vmem>>, vector<1x16x16x128xbf16>
    %58 = vector.shape_cast %57 : vector<1x16x16x128xbf16> to vector<16x16x128xbf16>
    %59 = vector.shape_cast %58 : vector<16x16x128xbf16> to vector<256x128xbf16>
    %c1_65 = arith.constant 1 : index
    %c0_66 = arith.constant 0 : index
    %c0_67 = arith.constant 0 : index
    %60 = vector.load %arg2[%c1_65, %c0_66, %c0_67] : memref<9x128x128xbf16, #tpu.memory_space<vmem>>, vector<1x128x128xbf16>
    %61 = vector.shape_cast %60 : vector<1x128x128xbf16> to vector<128x128xbf16>
    %cst_68 = arith.constant dense<0.000000e+00> : vector<256x128xf32>
    %62 = tpu.matmul %59, %61, %cst_68 {dimension_numbers = #tpu.dot_dimension_numbers<[1], [0], [0], [1], [0, 0, 1, 1], [], []>} : vector<256x128xbf16>, vector<128x128xbf16>, vector<256x128xf32> -> vector<256x128xf32>
    %63 = arith.addf %56, %62 : vector<256x128xf32>
    %c0_69 = arith.constant 0 : index
    %c0_70 = arith.constant 0 : index
    %c2 = arith.constant 2 : index
    %c0_71 = arith.constant 0 : index
    %64 = vector.load %arg10[%c0_69, %c0_70, %c2, %c0_71] : memref<1x18x24x128xbf16, #tpu.memory_space<vmem>>, vector<1x16x16x128xbf16>
    %65 = vector.shape_cast %64 : vector<1x16x16x128xbf16> to vector<16x16x128xbf16>
    %66 = vector.shape_cast %65 : vector<16x16x128xbf16> to vector<256x128xbf16>
    %c2_72 = arith.constant 2 : index
    %c0_73 = arith.constant 0 : index
    %c0_74 = arith.constant 0 : index
    %67 = vector.load %arg2[%c2_72, %c0_73, %c0_74] : memref<9x128x128xbf16, #tpu.memory_space<vmem>>, vector<1x128x128xbf16>
    %68 = vector.shape_cast %67 : vector<1x128x128xbf16> to vector<128x128xbf16>
    %cst_75 = arith.constant dense<0.000000e+00> : vector<256x128xf32>
    %69 = tpu.matmul %66, %68, %cst_75 {dimension_numbers = #tpu.dot_dimension_numbers<[1], [0], [0], [1], [0, 0, 1, 1], [], []>} : vector<256x128xbf16>, vector<128x128xbf16>, vector<256x128xf32> -> vector<256x128xf32>
    %70 = arith.addf %63, %69 : vector<256x128xf32>
    %c0_76 = arith.constant 0 : index
    %c1_77 = arith.constant 1 : index
    %c0_78 = arith.constant 0 : index
    %c0_79 = arith.constant 0 : index
    %71 = vector.load %arg10[%c0_76, %c1_77, %c0_78, %c0_79] : memref<1x18x24x128xbf16, #tpu.memory_space<vmem>>, vector<1x16x16x128xbf16>
    %72 = vector.shape_cast %71 : vector<1x16x16x128xbf16> to vector<16x16x128xbf16>
    %73 = vector.shape_cast %72 : vector<16x16x128xbf16> to vector<256x128xbf16>
    %c3 = arith.constant 3 : index
    %c0_80 = arith.constant 0 : index
    %c0_81 = arith.constant 0 : index
    %74 = vector.load %arg2[%c3, %c0_80, %c0_81] : memref<9x128x128xbf16, #tpu.memory_space<vmem>>, vector<1x128x128xbf16>
    %75 = vector.shape_cast %74 : vector<1x128x128xbf16> to vector<128x128xbf16>
    %cst_82 = arith.constant dense<0.000000e+00> : vector<256x128xf32>
    %76 = tpu.matmul %73, %75, %cst_82 {dimension_numbers = #tpu.dot_dimension_numbers<[1], [0], [0], [1], [0, 0, 1, 1], [], []>} : vector<256x128xbf16>, vector<128x128xbf16>, vector<256x128xf32> -> vector<256x128xf32>
    %77 = arith.addf %70, %76 : vector<256x128xf32>
    %c0_83 = arith.constant 0 : index
    %c1_84 = arith.constant 1 : index
    %c1_85 = arith.constant 1 : index
    %c0_86 = arith.constant 0 : index
    %78 = vector.load %arg10[%c0_83, %c1_84, %c1_85, %c0_86] : memref<1x18x24x128xbf16, #tpu.memory_space<vmem>>, vector<1x16x16x128xbf16>
    %79 = vector.shape_cast %78 : vector<1x16x16x128xbf16> to vector<16x16x128xbf16>
    %80 = vector.shape_cast %79 : vector<16x16x128xbf16> to vector<256x128xbf16>
    %c4 = arith.constant 4 : index
    %c0_87 = arith.constant 0 : index
    %c0_88 = arith.constant 0 : index
    %81 = vector.load %arg2[%c4, %c0_87, %c0_88] : memref<9x128x128xbf16, #tpu.memory_space<vmem>>, vector<1x128x128xbf16>
    %82 = vector.shape_cast %81 : vector<1x128x128xbf16> to vector<128x128xbf16>
    %cst_89 = arith.constant dense<0.000000e+00> : vector<256x128xf32>
    %83 = tpu.matmul %80, %82, %cst_89 {dimension_numbers = #tpu.dot_dimension_numbers<[1], [0], [0], [1], [0, 0, 1, 1], [], []>} : vector<256x128xbf16>, vector<128x128xbf16>, vector<256x128xf32> -> vector<256x128xf32>
    %84 = arith.addf %77, %83 : vector<256x128xf32>
    %c0_90 = arith.constant 0 : index
    %c1_91 = arith.constant 1 : index
    %c2_92 = arith.constant 2 : index
    %c0_93 = arith.constant 0 : index
    %85 = vector.load %arg10[%c0_90, %c1_91, %c2_92, %c0_93] : memref<1x18x24x128xbf16, #tpu.memory_space<vmem>>, vector<1x16x16x128xbf16>
    %86 = vector.shape_cast %85 : vector<1x16x16x128xbf16> to vector<16x16x128xbf16>
    %87 = vector.shape_cast %86 : vector<16x16x128xbf16> to vector<256x128xbf16>
    %c5 = arith.constant 5 : index
    %c0_94 = arith.constant 0 : index
    %c0_95 = arith.constant 0 : index
    %88 = vector.load %arg2[%c5, %c0_94, %c0_95] : memref<9x128x128xbf16, #tpu.memory_space<vmem>>, vector<1x128x128xbf16>
    %89 = vector.shape_cast %88 : vector<1x128x128xbf16> to vector<128x128xbf16>
    %cst_96 = arith.constant dense<0.000000e+00> : vector<256x128xf32>
    %90 = tpu.matmul %87, %89, %cst_96 {dimension_numbers = #tpu.dot_dimension_numbers<[1], [0], [0], [1], [0, 0, 1, 1], [], []>} : vector<256x128xbf16>, vector<128x128xbf16>, vector<256x128xf32> -> vector<256x128xf32>
    %91 = arith.addf %84, %90 : vector<256x128xf32>
    %c0_97 = arith.constant 0 : index
    %c2_98 = arith.constant 2 : index
    %c0_99 = arith.constant 0 : index
    %c0_100 = arith.constant 0 : index
    %92 = vector.load %arg10[%c0_97, %c2_98, %c0_99, %c0_100] : memref<1x18x24x128xbf16, #tpu.memory_space<vmem>>, vector<1x16x16x128xbf16>
    %93 = vector.shape_cast %92 : vector<1x16x16x128xbf16> to vector<16x16x128xbf16>
    %94 = vector.shape_cast %93 : vector<16x16x128xbf16> to vector<256x128xbf16>
    %c6 = arith.constant 6 : index
    %c0_101 = arith.constant 0 : index
    %c0_102 = arith.constant 0 : index
    %95 = vector.load %arg2[%c6, %c0_101, %c0_102] : memref<9x128x128xbf16, #tpu.memory_space<vmem>>, vector<1x128x128xbf16>
    %96 = vector.shape_cast %95 : vector<1x128x128xbf16> to vector<128x128xbf16>
    %cst_103 = arith.constant dense<0.000000e+00> : vector<256x128xf32>
    %97 = tpu.matmul %94, %96, %cst_103 {dimension_numbers = #tpu.dot_dimension_numbers<[1], [0], [0], [1], [0, 0, 1, 1], [], []>} : vector<256x128xbf16>, vector<128x128xbf16>, vector<256x128xf32> -> vector<256x128xf32>
    %98 = arith.addf %91, %97 : vector<256x128xf32>
    %c0_104 = arith.constant 0 : index
    %c2_105 = arith.constant 2 : index
    %c1_106 = arith.constant 1 : index
    %c0_107 = arith.constant 0 : index
    %99 = vector.load %arg10[%c0_104, %c2_105, %c1_106, %c0_107] : memref<1x18x24x128xbf16, #tpu.memory_space<vmem>>, vector<1x16x16x128xbf16>
    %100 = vector.shape_cast %99 : vector<1x16x16x128xbf16> to vector<16x16x128xbf16>
    %101 = vector.shape_cast %100 : vector<16x16x128xbf16> to vector<256x128xbf16>
    %c7 = arith.constant 7 : index
    %c0_108 = arith.constant 0 : index
    %c0_109 = arith.constant 0 : index
    %102 = vector.load %arg2[%c7, %c0_108, %c0_109] : memref<9x128x128xbf16, #tpu.memory_space<vmem>>, vector<1x128x128xbf16>
    %103 = vector.shape_cast %102 : vector<1x128x128xbf16> to vector<128x128xbf16>
    %cst_110 = arith.constant dense<0.000000e+00> : vector<256x128xf32>
    %104 = tpu.matmul %101, %103, %cst_110 {dimension_numbers = #tpu.dot_dimension_numbers<[1], [0], [0], [1], [0, 0, 1, 1], [], []>} : vector<256x128xbf16>, vector<128x128xbf16>, vector<256x128xf32> -> vector<256x128xf32>
    %105 = arith.addf %98, %104 : vector<256x128xf32>
    %c0_111 = arith.constant 0 : index
    %c2_112 = arith.constant 2 : index
    %c2_113 = arith.constant 2 : index
    %c0_114 = arith.constant 0 : index
    %106 = vector.load %arg10[%c0_111, %c2_112, %c2_113, %c0_114] : memref<1x18x24x128xbf16, #tpu.memory_space<vmem>>, vector<1x16x16x128xbf16>
    %107 = vector.shape_cast %106 : vector<1x16x16x128xbf16> to vector<16x16x128xbf16>
    %108 = vector.shape_cast %107 : vector<16x16x128xbf16> to vector<256x128xbf16>
    %c8 = arith.constant 8 : index
    %c0_115 = arith.constant 0 : index
    %c0_116 = arith.constant 0 : index
    %109 = vector.load %arg2[%c8, %c0_115, %c0_116] : memref<9x128x128xbf16, #tpu.memory_space<vmem>>, vector<1x128x128xbf16>
    %110 = vector.shape_cast %109 : vector<1x128x128xbf16> to vector<128x128xbf16>
    %cst_117 = arith.constant dense<0.000000e+00> : vector<256x128xf32>
    %111 = tpu.matmul %108, %110, %cst_117 {dimension_numbers = #tpu.dot_dimension_numbers<[1], [0], [0], [1], [0, 0, 1, 1], [], []>} : vector<256x128xbf16>, vector<128x128xbf16>, vector<256x128xf32> -> vector<256x128xf32>
    %112 = arith.addf %105, %111 : vector<256x128xf32>
    %113 = vector.broadcast %2 : vector<1x128xf32> to vector<256x128xf32>
    %114 = arith.mulf %112, %113 : vector<256x128xf32>
    %115 = vector.broadcast %3 : vector<1x128xf32> to vector<256x128xf32>
    %116 = arith.addf %114, %115 : vector<256x128xf32>
    %cst_118 = arith.constant 0.000000e+00 : f32
    %117 = vector.broadcast %cst_118 : f32 to vector<256x128xf32>
    %118 = arith.maximumf %116, %117 : vector<256x128xf32>
    %119 = vector.shape_cast %118 : vector<256x128xf32> to vector<16x16x128xf32>
    %120 = arith.truncf %119 : vector<16x16x128xf32> to vector<16x16x128xbf16>
    %c0_119 = arith.constant 0 : index
    %c1_120 = arith.constant 1 : index
    %c1_121 = arith.constant 1 : index
    %c0_122 = arith.constant 0 : index
    %121 = vector.load %arg11[%c0_119, %c1_120, %c1_121, %c0_122] : memref<1x18x24x128xbf16, #tpu.memory_space<vmem>>, vector<1x16x16x128xbf16>
    %122 = vector.shape_cast %121 : vector<1x16x16x128xbf16> to vector<16x16x128xbf16>
    %123 = vector.shape_cast %120 : vector<16x16x128xbf16> to vector<1x16x16x128xbf16>
    tpu.vector_store %arg11[%c0_119, %c1_120, %c1_121, %c0_122], %123 {strides = array<i32>} : memref<1x18x24x128xbf16, #tpu.memory_space<vmem>>, vector<1x16x16x128xbf16>,
    %c0_123 = arith.constant 0 : index
    %c0_124 = arith.constant 0 : index
    %c0_125 = arith.constant 0 : index
    %c0_126 = arith.constant 0 : index
    %124 = vector.load %arg1[%c0_123, %c0_124, %c0_125, %c0_126] : memref<1x16x16x128xbf16, #tpu.memory_space<vmem>>, vector<1x16x16x128xbf16>
    %125 = vector.shape_cast %124 : vector<1x16x16x128xbf16> to vector<16x16x128xbf16>
    %126 = vector.shape_cast %125 : vector<16x16x128xbf16> to vector<256x128xbf16>
    %c0_127 = arith.constant 0 : index
    %c0_128 = arith.constant 0 : index
    %127 = vector.load %arg4[%c0_127, %c0_128] : memref<128x128xbf16, #tpu.memory_space<vmem>>, vector<128x128xbf16>
    %cst_129 = arith.constant dense<0.000000e+00> : vector<256x128xf32>
    %128 = tpu.matmul %126, %127, %cst_129 {dimension_numbers = #tpu.dot_dimension_numbers<[1], [0], [0], [1], [0, 0, 1, 1], [], []>} : vector<256x128xbf16>, vector<128x128xbf16>, vector<256x128xf32> -> vector<256x128xf32>
    %c0_130 = arith.constant 0 : index
    %c0_131 = arith.constant 0 : index
    %c0_132 = arith.constant 0 : index
    %c0_133 = arith.constant 0 : index
    %129 = vector.load %arg11[%c0_130, %c0_131, %c0_132, %c0_133] : memref<1x18x24x128xbf16, #tpu.memory_space<vmem>>, vector<1x16x16x128xbf16>
    %130 = vector.shape_cast %129 : vector<1x16x16x128xbf16> to vector<16x16x128xbf16>
    %131 = vector.shape_cast %130 : vector<16x16x128xbf16> to vector<256x128xbf16>
    %c0_134 = arith.constant 0 : index
    %c0_135 = arith.constant 0 : index
    %c0_136 = arith.constant 0 : index
    %132 = vector.load %arg3[%c0_134, %c0_135, %c0_136] : memref<9x128x128xbf16, #tpu.memory_space<vmem>>, vector<1x128x128xbf16>
    %133 = vector.shape_cast %132 : vector<1x128x128xbf16> to vector<128x128xbf16>
    %cst_137 = arith.constant dense<0.000000e+00> : vector<256x128xf32>
    %134 = tpu.matmul %131, %133, %cst_137 {dimension_numbers = #tpu.dot_dimension_numbers<[1], [0], [0], [1], [0, 0, 1, 1], [], []>} : vector<256x128xbf16>, vector<128x128xbf16>, vector<256x128xf32> -> vector<256x128xf32>
    %135 = arith.addf %128, %134 : vector<256x128xf32>
    %c0_138 = arith.constant 0 : index
    %c0_139 = arith.constant 0 : index
    %c1_140 = arith.constant 1 : index
    %c0_141 = arith.constant 0 : index
    %136 = vector.load %arg11[%c0_138, %c0_139, %c1_140, %c0_141] : memref<1x18x24x128xbf16, #tpu.memory_space<vmem>>, vector<1x16x16x128xbf16>
    %137 = vector.shape_cast %136 : vector<1x16x16x128xbf16> to vector<16x16x128xbf16>
    %138 = vector.shape_cast %137 : vector<16x16x128xbf16> to vector<256x128xbf16>
    %c1_142 = arith.constant 1 : index
    %c0_143 = arith.constant 0 : index
    %c0_144 = arith.constant 0 : index
    %139 = vector.load %arg3[%c1_142, %c0_143, %c0_144] : memref<9x128x128xbf16, #tpu.memory_space<vmem>>, vector<1x128x128xbf16>
    %140 = vector.shape_cast %139 : vector<1x128x128xbf16> to vector<128x128xbf16>
    %cst_145 = arith.constant dense<0.000000e+00> : vector<256x128xf32>
    %141 = tpu.matmul %138, %140, %cst_145 {dimension_numbers = #tpu.dot_dimension_numbers<[1], [0], [0], [1], [0, 0, 1, 1], [], []>} : vector<256x128xbf16>, vector<128x128xbf16>, vector<256x128xf32> -> vector<256x128xf32>
    %142 = arith.addf %135, %141 : vector<256x128xf32>
    %c0_146 = arith.constant 0 : index
    %c0_147 = arith.constant 0 : index
    %c2_148 = arith.constant 2 : index
    %c0_149 = arith.constant 0 : index
    %143 = vector.load %arg11[%c0_146, %c0_147, %c2_148, %c0_149] : memref<1x18x24x128xbf16, #tpu.memory_space<vmem>>, vector<1x16x16x128xbf16>
    %144 = vector.shape_cast %143 : vector<1x16x16x128xbf16> to vector<16x16x128xbf16>
    %145 = vector.shape_cast %144 : vector<16x16x128xbf16> to vector<256x128xbf16>
    %c2_150 = arith.constant 2 : index
    %c0_151 = arith.constant 0 : index
    %c0_152 = arith.constant 0 : index
    %146 = vector.load %arg3[%c2_150, %c0_151, %c0_152] : memref<9x128x128xbf16, #tpu.memory_space<vmem>>, vector<1x128x128xbf16>
    %147 = vector.shape_cast %146 : vector<1x128x128xbf16> to vector<128x128xbf16>
    %cst_153 = arith.constant dense<0.000000e+00> : vector<256x128xf32>
    %148 = tpu.matmul %145, %147, %cst_153 {dimension_numbers = #tpu.dot_dimension_numbers<[1], [0], [0], [1], [0, 0, 1, 1], [], []>} : vector<256x128xbf16>, vector<128x128xbf16>, vector<256x128xf32> -> vector<256x128xf32>
    %149 = arith.addf %142, %148 : vector<256x128xf32>
    %c0_154 = arith.constant 0 : index
    %c1_155 = arith.constant 1 : index
    %c0_156 = arith.constant 0 : index
    %c0_157 = arith.constant 0 : index
    %150 = vector.load %arg11[%c0_154, %c1_155, %c0_156, %c0_157] : memref<1x18x24x128xbf16, #tpu.memory_space<vmem>>, vector<1x16x16x128xbf16>
    %151 = vector.shape_cast %150 : vector<1x16x16x128xbf16> to vector<16x16x128xbf16>
    %152 = vector.shape_cast %151 : vector<16x16x128xbf16> to vector<256x128xbf16>
    %c3_158 = arith.constant 3 : index
    %c0_159 = arith.constant 0 : index
    %c0_160 = arith.constant 0 : index
    %153 = vector.load %arg3[%c3_158, %c0_159, %c0_160] : memref<9x128x128xbf16, #tpu.memory_space<vmem>>, vector<1x128x128xbf16>
    %154 = vector.shape_cast %153 : vector<1x128x128xbf16> to vector<128x128xbf16>
    %cst_161 = arith.constant dense<0.000000e+00> : vector<256x128xf32>
    %155 = tpu.matmul %152, %154, %cst_161 {dimension_numbers = #tpu.dot_dimension_numbers<[1], [0], [0], [1], [0, 0, 1, 1], [], []>} : vector<256x128xbf16>, vector<128x128xbf16>, vector<256x128xf32> -> vector<256x128xf32>
    %156 = arith.addf %149, %155 : vector<256x128xf32>
    %c0_162 = arith.constant 0 : index
    %c1_163 = arith.constant 1 : index
    %c1_164 = arith.constant 1 : index
    %c0_165 = arith.constant 0 : index
    %157 = vector.load %arg11[%c0_162, %c1_163, %c1_164, %c0_165] : memref<1x18x24x128xbf16, #tpu.memory_space<vmem>>, vector<1x16x16x128xbf16>
    %158 = vector.shape_cast %157 : vector<1x16x16x128xbf16> to vector<16x16x128xbf16>
    %159 = vector.shape_cast %158 : vector<16x16x128xbf16> to vector<256x128xbf16>
    %c4_166 = arith.constant 4 : index
    %c0_167 = arith.constant 0 : index
    %c0_168 = arith.constant 0 : index
    %160 = vector.load %arg3[%c4_166, %c0_167, %c0_168] : memref<9x128x128xbf16, #tpu.memory_space<vmem>>, vector<1x128x128xbf16>
    %161 = vector.shape_cast %160 : vector<1x128x128xbf16> to vector<128x128xbf16>
    %cst_169 = arith.constant dense<0.000000e+00> : vector<256x128xf32>
    %162 = tpu.matmul %159, %161, %cst_169 {dimension_numbers = #tpu.dot_dimension_numbers<[1], [0], [0], [1], [0, 0, 1, 1], [], []>} : vector<256x128xbf16>, vector<128x128xbf16>, vector<256x128xf32> -> vector<256x128xf32>
    %163 = arith.addf %156, %162 : vector<256x128xf32>
    %c0_170 = arith.constant 0 : index
    %c1_171 = arith.constant 1 : index
    %c2_172 = arith.constant 2 : index
    %c0_173 = arith.constant 0 : index
    %164 = vector.load %arg11[%c0_170, %c1_171, %c2_172, %c0_173] : memref<1x18x24x128xbf16, #tpu.memory_space<vmem>>, vector<1x16x16x128xbf16>
    %165 = vector.shape_cast %164 : vector<1x16x16x128xbf16> to vector<16x16x128xbf16>
    %166 = vector.shape_cast %165 : vector<16x16x128xbf16> to vector<256x128xbf16>
    %c5_174 = arith.constant 5 : index
    %c0_175 = arith.constant 0 : index
    %c0_176 = arith.constant 0 : index
    %167 = vector.load %arg3[%c5_174, %c0_175, %c0_176] : memref<9x128x128xbf16, #tpu.memory_space<vmem>>, vector<1x128x128xbf16>
    %168 = vector.shape_cast %167 : vector<1x128x128xbf16> to vector<128x128xbf16>
    %cst_177 = arith.constant dense<0.000000e+00> : vector<256x128xf32>
    %169 = tpu.matmul %166, %168, %cst_177 {dimension_numbers = #tpu.dot_dimension_numbers<[1], [0], [0], [1], [0, 0, 1, 1], [], []>} : vector<256x128xbf16>, vector<128x128xbf16>, vector<256x128xf32> -> vector<256x128xf32>
    %170 = arith.addf %163, %169 : vector<256x128xf32>
    %c0_178 = arith.constant 0 : index
    %c2_179 = arith.constant 2 : index
    %c0_180 = arith.constant 0 : index
    %c0_181 = arith.constant 0 : index
    %171 = vector.load %arg11[%c0_178, %c2_179, %c0_180, %c0_181] : memref<1x18x24x128xbf16, #tpu.memory_space<vmem>>, vector<1x16x16x128xbf16>
    %172 = vector.shape_cast %171 : vector<1x16x16x128xbf16> to vector<16x16x128xbf16>
    %173 = vector.shape_cast %172 : vector<16x16x128xbf16> to vector<256x128xbf16>
    %c6_182 = arith.constant 6 : index
    %c0_183 = arith.constant 0 : index
    %c0_184 = arith.constant 0 : index
    %174 = vector.load %arg3[%c6_182, %c0_183, %c0_184] : memref<9x128x128xbf16, #tpu.memory_space<vmem>>, vector<1x128x128xbf16>
    %175 = vector.shape_cast %174 : vector<1x128x128xbf16> to vector<128x128xbf16>
    %cst_185 = arith.constant dense<0.000000e+00> : vector<256x128xf32>
    %176 = tpu.matmul %173, %175, %cst_185 {dimension_numbers = #tpu.dot_dimension_numbers<[1], [0], [0], [1], [0, 0, 1, 1], [], []>} : vector<256x128xbf16>, vector<128x128xbf16>, vector<256x128xf32> -> vector<256x128xf32>
    %177 = arith.addf %170, %176 : vector<256x128xf32>
    %c0_186 = arith.constant 0 : index
    %c2_187 = arith.constant 2 : index
    %c1_188 = arith.constant 1 : index
    %c0_189 = arith.constant 0 : index
    %178 = vector.load %arg11[%c0_186, %c2_187, %c1_188, %c0_189] : memref<1x18x24x128xbf16, #tpu.memory_space<vmem>>, vector<1x16x16x128xbf16>
    %179 = vector.shape_cast %178 : vector<1x16x16x128xbf16> to vector<16x16x128xbf16>
    %180 = vector.shape_cast %179 : vector<16x16x128xbf16> to vector<256x128xbf16>
    %c7_190 = arith.constant 7 : index
    %c0_191 = arith.constant 0 : index
    %c0_192 = arith.constant 0 : index
    %181 = vector.load %arg3[%c7_190, %c0_191, %c0_192] : memref<9x128x128xbf16, #tpu.memory_space<vmem>>, vector<1x128x128xbf16>
    %182 = vector.shape_cast %181 : vector<1x128x128xbf16> to vector<128x128xbf16>
    %cst_193 = arith.constant dense<0.000000e+00> : vector<256x128xf32>
    %183 = tpu.matmul %180, %182, %cst_193 {dimension_numbers = #tpu.dot_dimension_numbers<[1], [0], [0], [1], [0, 0, 1, 1], [], []>} : vector<256x128xbf16>, vector<128x128xbf16>, vector<256x128xf32> -> vector<256x128xf32>
    %184 = arith.addf %177, %183 : vector<256x128xf32>
    %c0_194 = arith.constant 0 : index
    %c2_195 = arith.constant 2 : index
    %c2_196 = arith.constant 2 : index
    %c0_197 = arith.constant 0 : index
    %185 = vector.load %arg11[%c0_194, %c2_195, %c2_196, %c0_197] : memref<1x18x24x128xbf16, #tpu.memory_space<vmem>>, vector<1x16x16x128xbf16>
    %186 = vector.shape_cast %185 : vector<1x16x16x128xbf16> to vector<16x16x128xbf16>
    %187 = vector.shape_cast %186 : vector<16x16x128xbf16> to vector<256x128xbf16>
    %c8_198 = arith.constant 8 : index
    %c0_199 = arith.constant 0 : index
    %c0_200 = arith.constant 0 : index
    %188 = vector.load %arg3[%c8_198, %c0_199, %c0_200] : memref<9x128x128xbf16, #tpu.memory_space<vmem>>, vector<1x128x128xbf16>
    %189 = vector.shape_cast %188 : vector<1x128x128xbf16> to vector<128x128xbf16>
    %cst_201 = arith.constant dense<0.000000e+00> : vector<256x128xf32>
    %190 = tpu.matmul %187, %189, %cst_201 {dimension_numbers = #tpu.dot_dimension_numbers<[1], [0], [0], [1], [0, 0, 1, 1], [], []>} : vector<256x128xbf16>, vector<128x128xbf16>, vector<256x128xf32> -> vector<256x128xf32>
    %191 = arith.addf %184, %190 : vector<256x128xf32>
    %192 = vector.shape_cast %191 : vector<256x128xf32> to vector<16x16x128xf32>
    %193 = arith.truncf %192 : vector<16x16x128xf32> to vector<16x16x128xbf16>
    %c0_202 = arith.constant 0 : index
    %c0_203 = arith.constant 0 : index
    %c0_204 = arith.constant 0 : index
    %c0_205 = arith.constant 0 : index
    %194 = vector.load %arg9[%c0_202, %c0_203, %c0_204, %c0_205] : memref<1x16x16x128xbf16, #tpu.memory_space<vmem>>, vector<1x16x16x128xbf16>
    %195 = vector.shape_cast %194 : vector<1x16x16x128xbf16> to vector<16x16x128xbf16>
    %196 = vector.shape_cast %193 : vector<16x16x128xbf16> to vector<1x16x16x128xbf16>
    tpu.vector_store %arg9[%c0_202, %c0_203, %c0_204, %c0_205], %196 {strides = array<i32>} : memref<1x16x16x128xbf16, #tpu.memory_space<vmem>>, vector<1x16x16x128xbf16>,
    return
  }
  func.func @transform_0(%arg0: i32) -> (i32, i32, i32, i32) {
    %c0_i32 = arith.constant 0 : i32
    %c0_i32_0 = arith.constant 0 : i32
    %c0_i32_1 = arith.constant 0 : i32
    %c0_i32_2 = arith.constant 0 : i32
    return %arg0, %c0_i32, %c0_i32_0, %c0_i32_1 : i32, i32, i32, i32
  }
  func.func @transform_1(%arg0: i32) -> (i32, i32, i32) {
    %c0_i32 = arith.constant 0 : i32
    %c0_i32_0 = arith.constant 0 : i32
    %c0_i32_1 = arith.constant 0 : i32
    %c0_i32_2 = arith.constant 0 : i32
    return %c0_i32, %c0_i32_0, %c0_i32_1 : i32, i32, i32
  }
  func.func @transform_2(%arg0: i32) -> (i32, i32, i32) {
    %c0_i32 = arith.constant 0 : i32
    %c0_i32_0 = arith.constant 0 : i32
    %c0_i32_1 = arith.constant 0 : i32
    %c0_i32_2 = arith.constant 0 : i32
    return %c0_i32, %c0_i32_0, %c0_i32_1 : i32, i32, i32
  }
  func.func @transform_3(%arg0: i32) -> (i32, i32) {
    %c0_i32 = arith.constant 0 : i32
    %c0_i32_0 = arith.constant 0 : i32
    %c0_i32_1 = arith.constant 0 : i32
    return %c0_i32, %c0_i32_0 : i32, i32
  }
  func.func @transform_4(%arg0: i32) -> (i32, i32) {
    %c0_i32 = arith.constant 0 : i32
    %c0_i32_0 = arith.constant 0 : i32
    %c0_i32_1 = arith.constant 0 : i32
    return %c0_i32, %c0_i32_0 : i32, i32
  }
  func.func @transform_5(%arg0: i32) -> (i32, i32) {
    %c0_i32 = arith.constant 0 : i32
    %c0_i32_0 = arith.constant 0 : i32
    %c0_i32_1 = arith.constant 0 : i32
    return %c0_i32, %c0_i32_0 : i32, i32
  }
  func.func @transform_6(%arg0: i32) -> (i32, i32) {
    %c0_i32 = arith.constant 0 : i32
    %c0_i32_0 = arith.constant 0 : i32
    %c0_i32_1 = arith.constant 0 : i32
    return %c0_i32, %c0_i32_0 : i32, i32
  }
  func.func @transform_7(%arg0: i32) -> (i32, i32) {
    %c0_i32 = arith.constant 0 : i32
    %c0_i32_0 = arith.constant 0 : i32
    %c0_i32_1 = arith.constant 0 : i32
    return %c0_i32, %c0_i32_0 : i32, i32
  }
  func.func @transform_8(%arg0: i32) -> (i32, i32, i32, i32) {
    %c0_i32 = arith.constant 0 : i32
    %c0_i32_0 = arith.constant 0 : i32
    %c0_i32_1 = arith.constant 0 : i32
    %c0_i32_2 = arith.constant 0 : i32
    return %arg0, %c0_i32, %c0_i32_0, %c0_i32_1 : i32, i32, i32, i32
  }
}

</mosaic_0001>

<bundles_post_ra>
// kernel: preact_basic_block.1
= control target key start
LH: loop header
LB: loop body
LE: loop exit
PB: predicated region body
PF: predicated region fallthrough
CT: control target
= control target key end

     0   :  { %s15143_s27 = smov 0   ;;  %s20619_s0 = inlined_call_operand.vmem [shape: bf16[2,16,16,128], index: 0, kind: input, shape index: {}]   ;;  %s20620_s1 = inlined_call_operand.vmem [shape: bf16[9,128,128], index: 1, kind: input, shape index: {}]   ;;  %s20621_s2 = inlined_call_operand.vmem [shape: bf16[9,128,128], index: 2, kind: input, shape index: {}]   ;;  %s20622_s3 = inlined_call_operand.vmem [shape: bf16[128,128], index: 3, kind: input, shape index: {}]   ;;  %s20623_s4 = inlined_call_operand.vmem [shape: f32[1,128], index: 4, kind: input, shape index: {}]   ;;  %s20624_s5 = inlined_call_operand.vmem [shape: f32[1,128], index: 5, kind: input, shape index: {}]   ;;  %s20625_s6 = inlined_call_operand.vmem [shape: f32[1,128], index: 6, kind: input, shape index: {}]   ;;  %s20626_s7 = inlined_call_operand.vmem [shape: f32[1,128], index: 7, kind: input, shape index: {}]   ;;  %s20627_s8 = inlined_call_operand.vmem [shape: bf16[2,16,16,128], index: 8, kind: output, shape index: {}]  }
   0x1 LB: > { %s12146_s28 = sadd.s32 4294967295, %s15095_s27   ;;  %p12150_p0 = scmp.ge.s32.totalorder %s15095_s27, 1  ;;  %s15095_s27 = sphi %s15143_s27, %s18_s27  }
   0x2   : > { %p262_p1 = scmp.lt.s32.totalorder %s15095_s27, 3 }
   0x4   : > { %p263_p2 = pnand %p12150_p0, %p262_p1 }
   0x6   : > { %266 = sbr.rel (%p263_p2) target bundleno = 1279 (0x4ff), region = 52 }
   0xb   : > { %v14730_v0 = vld [vmem:[%s20620_s1 + $0x78] sm:$0xff]   ;;  %v14731_v1 = vld [vmem:[%s20620_s1 + $0x70] sm:$0xff]   ;;  %v15097_v2 = vmov 0   ;;  %p296_p3 = scmp.lt.s32.totalorder %s12146_s28, 1  ;;  %v14732_v3 = vld [vmem:[%s20620_s1 + $0x68] sm:$0xff]   ;;  %vm318_vm0 = vcmask 1040384  }
   0xc   : > { %311 = vst [vmem:[#allocation2] sm:$0xf] %v15097_v2  ;;  %312 = vst [vmem:[#allocation2 + $0x4] sm:$0xf] %v15097_v2  ;;  %13793 = vmatprep.subr.bf16.mxu0 %v14730_v0  ;;  %14705 = vmatprep.subr.bf16.mxu1 %v14730_v0  ;;  %v14733_v4 = vld [vmem:[%s20620_s1 + $0x60] sm:$0xff]   ;;  %v20713_v6 = vmov 0 }
   0xd   : > { %313 = vst [vmem:[#allocation2 + $0x8] sm:$0xf] %v15097_v2  ;;  %315 = vst [vmem:[#allocation2 + $0xcc] sm:$0xf] %v15097_v2  ;;  %13794 = vmatpush3.bf16.msra.mxu0 %v14730_v0  ;;  %14713 = vmatpush3.bf16.msra.mxu1 %v14730_v0  ;;  %s21457_s28 = smov (!%p296_p3, %s12146_s28), 1  ;;  %v20716_v10 = vmov 0 }
   0xe   : > { %316 = vst [vmem:[#allocation2 + $0xd0] sm:$0xf] %v15097_v2  ;;  %317 = vst [vmem:[#allocation2 + $0xd4] sm:$0xf] %v15097_v2  ;;  %13795 = vmatprep.subr.bf16.mxu0 %v14731_v1  ;;  %14706 = vmatprep.subr.bf16.mxu1 %v14731_v1  ;;  %s13065_s13 = sshll.u32 %s21457_s28, 7  ;;  %v14734_v14 = vld [vmem:[%s20620_s1 + $0x58] sm:$0xff]  }
   0xf   : > { %431 = vst [vmem:[#allocation3] sm:$0xf] %v15097_v2  ;;  %432 = vst [vmem:[#allocation3 + $0x4] sm:$0xf] %v15097_v2  ;;  %s15171_s18 = scalar_lea.vmem %s20619_s0, %s13065_s13  ;;  %vm319_vm1 = vsmask.f32 256  ;;  %s20506_s10 = scalar_lea.vmem %s20627_s8, %s13065_s13 }
  0x10   : > { %433 = vst [vmem:[#allocation3 + $0x8] sm:$0xf] %v15097_v2  ;;  %435 = vst [vmem:[#allocation3 + $0xcc] sm:$0xf] %v15097_v2  ;;  %vm375_vm2 = vsmask.f32 7938 }
  0x11   : > { %436 = vst [vmem:[#allocation3 + $0xd0] sm:$0xf] %v15097_v2  ;;  %437 = vst [vmem:[#allocation3 + $0xd4] sm:$0xf] %v15097_v2  ;;  %13796 = vmatpush3.bf16.msra.mxu0 %v14731_v1  ;;  %14714 = vmatpush3.bf16.msra.mxu1 %v14731_v1  ;;  %vm1315_vm5 = vsmask.f32 3328 }
  0x12   : > { %13797 = vmatprep.subr.bf16.mxu0 %v14732_v3  ;;  %14707 = vmatprep.subr.bf16.mxu1 %v14732_v3  ;;  %vm15175_vm3 = vmand %vm318_vm0, %vm319_vm1  ;;  %v13164_v13 = vld [vmem:[%s15171_s18] sm:$0xff]   ;;  %v324_v22 = vld [vmem:[#allocation2 + $0xc] sm:$0x1]  ;;  %vm1137_vm6 = vcmask 1043456   ;;  %vm1316_vm7 = vsmask.f32 7440 }
  0x13   : > { %v321_v5 = vld [vmem:[#allocation2] sm:$0x1]  ;;  %v20714_v6 = vsel %vm15175_vm3, 4294967295, %v20713_v6  ;;  %v1252_v8 = vld [vmem:[#allocation2 + $0x4] sm:$0xf]  ;;  %vm15183_vm4 = vmand %vm318_vm0, %vm375_vm2  ;;  %v13165_v18 = vunpack.c.l.bf16 %v13164_v13  ;;  %v13166_v19 = vunpack.c.h.bf16 %v13164_v13  ;;  %v325_v24 = vsel %vm15175_vm3, 0, %v324_v22 }
  0x14   : > { %20715 = vst [vmem:[#allocation4_spill] sm:$0xff] %v20714_v6  ;;  %v377_v7 = vld [vmem:[#allocation2 + $0x8] sm:$0x1]  ;;  %v322_v9 = vsel %vm15175_vm3, 0, %v321_v5  ;;  %v20717_v10 = vsel %vm15183_vm4, 4294967295, %v20716_v10  ;;  %v1328_v11 = vshll.u32 %v1252_v8, 16  ;;  %vm15241_vm9 = vmor %vm1315_vm5, %vm1316_vm7 }
  0x15   : > { %20718 = vst [vmem:[#allocation5_spill] sm:$0xff] %v20717_v10  ;;  %v1332_v12 = vshrl.u32 %v1252_v8, 16  ;;  %13798 = vmatpush3.bf16.msra.mxu0 %v14732_v3  ;;  %14715 = vmatpush3.bf16.msra.mxu1 %v14732_v3  ;;  %323 = vst [vmem:[#allocation2] sm:$0x1] %v322_v9  ;;  %v378_v15 = vsel %vm15183_vm4, 0, %v377_v7  ;;  %v13313_v33 = vld [vmem:[%s15171_s18 + $0x38] sm:$0xff]  }
  0x16   : > { %v15196_v16 = vld [vmem:[%s20623_s4] ss:$0 sm:$0xff]  ;;  %13799 = vmatprep.subr.bf16.mxu0 %v14733_v4  ;;  %14708 = vmatprep.subr.bf16.mxu1 %v14733_v4  ;;  %379 = vst [vmem:[#allocation2 + $0x8] sm:$0x1] %v378_v15  ;;  %v15203_v20 = vrot.slane %v1328_v11, 5  ;;  %v14735_v34 = vld [vmem:[%s20620_s1 + $0x50] sm:$0xff]   ;;  %v13193_v37 = vunpack.c.l.bf16 %v13313_v33  ;;  %v13194_v38 = vunpack.c.h.bf16 %v13313_v33  ;;  %vm15253_vm10 = vmand %vm1137_vm6, %vm375_vm2 }
  0x17   : > { %v15201_v17 = vld [vmem:[%s20624_s5] ss:$0 sm:$0xff]  ;;  %v1334_v21 = vrot.slane %v1332_v12, 4  ;;  %v380_v23 = vld [vmem:[#allocation2 + $0x14] sm:$0x1]  ;;  %v616_v26 = vmul.f32 %v13165_v18, %v15196_v16  ;;  %v617_v27 = vmul.f32 %v13166_v19, %v15196_v16  ;;  %v14736_v45 = vld [vmem:[%s20620_s1 + $0x48] sm:$0xff]  }
  0x18   : > { %v381_v25 = vsel %vm15183_vm4, 0, %v380_v23  ;;  %v345_v28 = vld [vmem:[#allocation2 + $0x60] sm:$0x1]  ;;  %v401_v29 = vld [vmem:[#allocation2 + $0x68] sm:$0x1]  ;;  %v630_v41 = vmul.f32 %v13193_v37, %v15196_v16  ;;  %v631_v42 = vmul.f32 %v13194_v38, %v15196_v16  ;;  %v20719_v59 = vmov 0 }
  0x19   : > { %v1335_v30 = vor.u32 %v1334_v21, %v15203_v20  ;;  %326 = vst [vmem:[#allocation2 + $0xc] sm:$0x1] %v325_v24  ;;  %382 = vst [vmem:[#allocation2 + $0x14] sm:$0x1] %v381_v25  ;;  %v346_v31 = vsel %vm15175_vm3, 0, %v345_v28  ;;  %v402_v32 = vsel %vm15183_vm4, 0, %v401_v29  ;;  %13800 = vmatpush3.bf16.msra.mxu0 %v14733_v4  ;;  %14716 = vmatpush3.bf16.msra.mxu1 %v14733_v4 }
  0x1a   : > { %v654_v35 = vadd.f32 %v15201_v17, %v616_v26  ;;  %v655_v36 = vadd.f32 %v15201_v17, %v617_v27  ;;  %347 = vst [vmem:[#allocation2 + $0x60] sm:$0x1] %v346_v31  ;;  %403 = vst [vmem:[#allocation2 + $0x68] sm:$0x1] %v402_v32  ;;  %13801 = vmatprep.subr.bf16.mxu0 %v14734_v14  ;;  %14709 = vmatprep.subr.bf16.mxu1 %v14734_v14  ;;  %vm814_vm8 = vsmask.f32 4368 }
  0x1b   : > { %v348_v43 = vld [vmem:[#allocation2 + $0x6c] sm:$0x1]  ;;  %v404_v44 = vld [vmem:[#allocation2 + $0x74] sm:$0x1]  ;;  %v15227_v47 = vrot.slane %v1335_v30, 4  ;;  %v668_v56 = vadd.f32 %v15201_v17, %v630_v41  ;;  %v669_v57 = vadd.f32 %v15201_v17, %v631_v42  ;;  %v13314_v58 = vld [vmem:[%s15171_s18 + $0x40] sm:$0xff]  }
  0x1c   : > { %v686_v39 = vmax.f32 %v654_v35, 0.0  ;;  %v687_v40 = vmax.f32 %v655_v36, 0.0  ;;  %v1251_v46 = vld [vmem:[#allocation2] sm:$0xf]  ;;  %v349_v48 = vsel %vm15175_vm3, 0, %v348_v43  ;;  %v405_v49 = vsel %vm15183_vm4, 0, %v404_v44  ;;  %vm15259_vm11 = vmor %vm319_vm1, %vm814_vm8 }
  0x1d   : > { %13802 = vmatpush3.bf16.msra.mxu0 %v14734_v14  ;;  %14717 = vmatpush3.bf16.msra.mxu1 %v14734_v14  ;;  %v15233_v50 = vld [vmem:[#allocation2 + $0x8] sm:$0x1]  ;;  %v1319_v51 = vshrl.u32 %v1251_v46, 16  ;;  %v1322_v52 = vshll.u32 %v1251_v46, 16  ;;  %350 = vst [vmem:[#allocation2 + $0x6c] sm:$0x1] %v349_v48  ;;  %v13197_v9 = vunpack.c.l.bf16 %v13314_v58  ;;  %v13198_v18 = vunpack.c.h.bf16 %v13314_v58 }
  0x1e   : > { %v13067_v53 = vpack.c.bf16 %v686_v39, %v686_v39  ;;  %v13068_v54 = vpack.c.bf16 %v687_v40, %v687_v40  ;;  %406 = vst [vmem:[#allocation2 + $0x74] sm:$0x1] %v405_v49  ;;  %13803 = vmatprep.subr.bf16.mxu0 %v14735_v34  ;;  %14710 = vmatprep.subr.bf16.mxu1 %v14735_v34  ;;  %v1338_v55 = vshll.u32 %v15233_v50, 16  ;;  %v20720_v59 = vsel %vm15241_vm9, 4294967295, %v20719_v59  ;;  %v14737_v4 = vld [vmem:[%s20620_s1 + $0x40] sm:$0xff]   ;;  %v15271_v35 = vld [vmem:[%s20620_s1 + $0x38] sm:$0xff]  }
  0x1f   : > { %20721 = vst [vmem:[#allocation6_spill] sm:$0xff] %v20720_v59  ;;  %v1321_v60 = vrot.slane %v1319_v51, 4  ;;  %v1324_v61 = vrot.slane %v1322_v52, 5  ;;  %v700_v3 = vmax.f32 %v668_v56, 0.0  ;;  %v701_v8 = vmax.f32 %v669_v57, 0.0  ;;  %v13307_v37 = vld [vmem:[%s15171_s18 + $0x8] sm:$0xff]  }
  0x20   : > { %v817_v62 = vshrl.u32 %v13067_v53, 16  ;;  %v820_v63 = vshll.u32 %v13067_v53, 16  ;;  %v1340_v0 = vrot.slane %v1338_v55, 5  ;;  %v825_v1 = vshrl.u32 %v13068_v54, 16  ;;  %v1139_v14 = vld [vmem:[#allocation2 + $0xc] sm:$0xf] }
  0x21   : > { %v828_v2 = vshll.u32 %v13068_v54, 16  ;;  %13804 = vmatpush3.bf16.msra.mxu0 %v14735_v34  ;;  %14718 = vmatpush3.bf16.msra.mxu1 %v14735_v34  ;;  %v1325_v5 = vor.u32 %v1324_v61, %v1321_v60  ;;  %v20722_v13 = vmov 0  ;;  %v13081_v15 = vpack.c.bf16 %v700_v3, %v700_v3  ;;  %v1143_v24 = vld [vmem:[#allocation2 + $0x14] sm:$0x1]  ;;  %v327_v30 = vld [vmem:[#allocation2 + $0x18] sm:$0x1] }
  0x22   : > { %v819_v7 = vrot.slane %v817_v62, 7  ;;  %13805 = vmatprep.subr.bf16.mxu0 %v14736_v45  ;;  %14711 = vmatprep.subr.bf16.mxu1 %v14736_v45  ;;  %v1341_v11 = vsel %vm15241_vm9, %v15227_v47, %v1340_v0  ;;  %v827_v12 = vrot.slane %v825_v1, 7  ;;  %v20723_v13 = vsel %vm15253_vm10, 4294967295, %v20722_v13  ;;  %v383_v36 = vld [vmem:[#allocation2 + $0x20] sm:$0x1]  ;;  %v15281_v43 = vld [vmem:[%s20620_s1 + $0xb8] sm:$0xff]  }
  0x23   : > { %20724 = vst [vmem:[#allocation7_spill] sm:$0xff] %v20723_v13  ;;  %v1326_v19 = vrot.slane %v1325_v5, 4  ;;  %v20725_v21 = vmov 0  ;;  %v13082_v25 = vpack.c.bf16 %v701_v8, %v701_v8  ;;  %v936_v28 = vshrl.u32 %v13081_v15, 16  ;;  %v1188_v41 = vld [vmem:[#allocation2 + $0x60] sm:$0xf] }
  0x24   : > { %v20726_v21 = vsel %vm15259_vm11, 4294967295, %v20725_v21  ;;  %v822_v22 = vor.u32 %v820_v63, %v819_v7  ;;  %v823_v23 = vrot.slane %v819_v7, 4  ;;  %v830_v26 = vor.u32 %v828_v2, %v827_v12  ;;  %v1192_v42 = vld [vmem:[#allocation2 + $0x68] sm:$0x1]  ;;  %v330_v48 = vld [vmem:[#allocation2 + $0x24] sm:$0x1] }
  0x25   : > { %20727 = vst [vmem:[#allocation8_spill] sm:$0xff] %v20726_v21  ;;  %v832_v27 = vrot.slane %v827_v12, 4  ;;  %v939_v29 = vshll.u32 %v13081_v15, 16  ;;  %13806 = vmatpush3.bf16.msra.mxu0 %v14736_v45  ;;  %14719 = vmatpush3.bf16.msra.mxu1 %v14736_v45  ;;  %v1331_v31 = vsel %vm15241_vm9, %v1326_v19, %v15203_v20  ;;  %v944_v33 = vshrl.u32 %v13082_v25, 16  ;;  %v386_v58 = vld [vmem:[#allocation2 + $0x2c] sm:$0x1] }
  0x26   : > { %v1140_v32 = vsel %vm15253_vm10, %v822_v22, %v1139_v14  ;;  %v947_v34 = vshll.u32 %v13082_v25, 16  ;;  %13807 = vmatprep.subr.bf16.mxu0 %v14737_v4  ;;  %14712 = vmatprep.subr.bf16.mxu1 %v14737_v4  ;;  %v12205_v38 = vcombine.low %v1331_v31, %v1341_v11  ;;  %v831_v39 = vsel %vm15259_vm11, %v823_v23, %v830_v26  ;;  %v13308_v0 = vld [vmem:[%s15171_s18 + $0x10] sm:$0xff]   ;;  %v351_v1 = vld [vmem:[#allocation2 + $0x78] sm:$0x1] }
  0x27   : > { %1141 = vst [vmem:[#allocation2 + $0xc] sm:$0xf] %v1140_v32  ;;  %v1144_v20 = vsel %vm15175_vm3, %v832_v27, %v1143_v24  ;;  %v938_v40 = vrot.slane %v936_v28, 7  ;;  %1142 = vst [vmem:[#allocation2 + $0x10] sm:$0xf] %v831_v39  ;;  %v946_v44 = vrot.slane %v944_v33, 7  ;;  %v632_v45 = vmul.f32 %v13197_v9, %v15196_v16 }
  0x28   : > { %1145 = vst [vmem:[#allocation2 + $0x14] sm:$0x1] %v1144_v20  ;;  %v633_v46 = vmul.f32 %v13198_v18, %v15196_v16  ;;  %v328_v47 = vsel %vm15175_vm3, 0, %v327_v30  ;;  %13809 = vmatprep.mubr.bf16.mxu0 %v12205_v38  ;;  %v384_v52 = vsel %vm15183_vm4, 0, %v383_v36  ;;  %v13169_v53 = vunpack.c.l.bf16 %v13307_v37 }
  0x29   : > { %v941_v49 = vor.u32 %v939_v29, %v938_v40  ;;  %v942_v51 = vrot.slane %v938_v40, 4  ;;  %329 = vst [vmem:[#allocation2 + $0x18] sm:$0x1] %v328_v47  ;;  %13808 = vmatpush3.bf16.msra.mxu0 %v14737_v4  ;;  %14720 = vmatpush3.bf16.msra.mxu1 %v14737_v4  ;;  %v949_v54 = vor.u32 %v947_v34, %v946_v44  ;;  %v951_v55 = vrot.slane %v946_v44, 4 }
  0x2a   : > { %v670_v56 = vadd.f32 %v15201_v17, %v632_v45  ;;  %v671_v57 = vadd.f32 %v15201_v17, %v633_v46  ;;  %385 = vst [vmem:[#allocation2 + $0x20] sm:$0x1] %v384_v52  ;;  %13841 = vmatprep.subr.bf16.mxu1 %v15271_v35  ;;  %13889 = vmatprep.subr.bf16.mxu0 %v15281_v43  ;;  %v13170_v61 = vunpack.c.h.bf16 %v13307_v37  ;;  %v331_v63 = vsel %vm15175_vm3, 0, %v330_v48 }
  0x2b   : > { %v1189_v60 = vsel %vm15253_vm10, %v941_v49, %v1188_v41  ;;  %v618_v62 = vmul.f32 %v13169_v53, %v15196_v16  ;;  %v950_v2 = vsel %vm15259_vm11, %v942_v51, %v949_v54  ;;  %v1193_v3 = vsel %vm15175_vm3, %v951_v55, %v1192_v42  ;;  %332 = vst [vmem:[#allocation2 + $0x24] sm:$0x1] %v331_v63 }
  0x2c   : > { %1190 = vst [vmem:[#allocation2 + $0x60] sm:$0xf] %v1189_v60  ;;  %v702_v4 = vmax.f32 %v670_v56, 0.0  ;;  %v703_v5 = vmax.f32 %v671_v57, 0.0  ;;  %v2353_v7 = vrot.slane %v15233_v50, 5  ;;  %v619_v8 = vmul.f32 %v13170_v61, %v15196_v16 }
  0x2d   : > { %1191 = vst [vmem:[#allocation2 + $0x64] sm:$0xf] %v950_v2  ;;  %1194 = vst [vmem:[#allocation2 + $0x68] sm:$0x1] %v1193_v3  ;;  %v15306_v9 = vadd.f32 %v15201_v17, %v618_v62  ;;  %v387_v11 = vsel %vm15183_vm4, 0, %v386_v58  ;;  %v13173_v18 = vunpack.c.l.bf16 %v13308_v0  ;;  %v352_v19 = vsel %vm15175_vm3, 0, %v351_v1 }
  0x2e   : > { %v1253_v12 = vld [vmem:[#allocation2 + $0xc] sm:$0xf]  ;;  %v13083_v14 = vpack.c.bf16 %v702_v4, %v702_v4  ;;  %v15310_v15 = vpack.c.bf16 %v703_v5, %v703_v5  ;;  %388 = vst [vmem:[#allocation2 + $0x2c] sm:$0x1] %v387_v11  ;;  %v1254_v22 = vld [vmem:[#allocation2 + $0x10] sm:$0xf]  ;;  %v657_v26 = vadd.f32 %v15201_v17, %v619_v8  ;;  %v13174_v27 = vunpack.c.h.bf16 %v13308_v0 }
  0x2f   : > { %v15314_v23 = vld [vmem:[#allocation2 + $0x14] sm:$0x1]  ;;  %v1343_v24 = vshrl.u32 %v1253_v12, 16  ;;  %v1346_v25 = vshll.u32 %v1253_v12, 16  ;;  %353 = vst [vmem:[#allocation2 + $0x78] sm:$0x1] %v352_v19  ;;  %v620_v52 = vmul.f32 %v13173_v18, %v15196_v16 }
  0x30   : > { %v1352_v28 = vshll.u32 %v1254_v22, 16  ;;  %v1356_v29 = vshrl.u32 %v1254_v22, 16  ;;  %v1362_v30 = vshll.u32 %v15314_v23, 16  ;;  %v2360_v31 = vrot.slane %v15314_v23, 5  ;;  %v1195_v2 = vld [vmem:[#allocation2 + $0x6c] sm:$0xf] }
  0x31   : > { %v1345_v32 = vrot.slane %v1343_v24, 4  ;;  %v1348_v33 = vrot.slane %v1346_v25, 5  ;;  %v953_v34 = vshrl.u32 %v13083_v14, 16  ;;  %v956_v36 = vshll.u32 %v13083_v14, 16  ;;  %v1199_v14 = vld [vmem:[#allocation2 + $0x74] sm:$0x1] }
  0x32   : > { %v1354_v37 = vrot.slane %v1352_v28, 5  ;;  %v1358_v38 = vrot.slane %v1356_v29, 4  ;;  %v1364_v39 = vrot.slane %v1362_v30, 5  ;;  %v961_v20 = vshrl.u32 %v15310_v15, 16 }
  0x33   : > { %v1349_v40 = vor.u32 %v1348_v33, %v1345_v32  ;;  %v1267_v41 = vld [vmem:[#allocation2 + $0x60] sm:$0xf]  ;;  %v955_v42 = vrot.slane %v953_v34, 7  ;;  %v964_v44 = vshll.u32 %v15310_v15, 16  ;;  %v688_v45 = vmax.f32 %v15306_v9, 0.0  ;;  %v14741_v15 = vld [vmem:[%s20620_s1 + $0xb0] sm:$0xff]  }
  0x34   : > { %v1359_v46 = vor.u32 %v1358_v38, %v1354_v37  ;;  %v1268_v47 = vld [vmem:[#allocation2 + $0x64] sm:$0xf]  ;;  %v1307_v48 = vld [vmem:[#allocation2 + $0x68] sm:$0x1]  ;;  %v1511_v49 = vshrl.u32 %v1267_v41, 16  ;;  %v1514_v51 = vshll.u32 %v1267_v41, 16  ;;  %v621_v61 = vmul.f32 %v13174_v27, %v15196_v16 }
  0x35   : > { %v1350_v53 = vrot.slane %v1349_v40, 4  ;;  %v1520_v54 = vshll.u32 %v1268_v47, 16  ;;  %v1524_v55 = vshrl.u32 %v1268_v47, 16  ;;  %v1530_v56 = vshll.u32 %v1307_v48, 16  ;;  %v1146_v41 = vld [vmem:[#allocation2 + $0x18] sm:$0xf] }
  0x36   : > { %v1360_v57 = vrot.slane %v1359_v46, 4  ;;  %v1513_v58 = vrot.slane %v1511_v49, 4  ;;  %v1516_v60 = vrot.slane %v1514_v51, 5  ;;  %v958_v5 = vor.u32 %v956_v36, %v955_v42  ;;  %v407_v36 = vld [vmem:[#allocation2 + $0x80] sm:$0x1] }
  0x37   : > { %v1355_v62 = vsel %vm15241_vm9, %v1350_v53, %v1354_v37  ;;  %v1522_v63 = vrot.slane %v1520_v54, 5  ;;  %v1526_v0 = vrot.slane %v1524_v55, 4  ;;  %v1532_v1 = vrot.slane %v1530_v56, 5  ;;  %v13315_v37 = vld [vmem:[%s15171_s18 + $0x48] sm:$0xff]   ;;  %v1150_v54 = vld [vmem:[#allocation2 + $0x20] sm:$0x1] }
  0x38   : > { %v1365_v3 = vsel %vm15241_vm9, %v1360_v57, %v1364_v39  ;;  %v1517_v4 = vor.u32 %v1516_v60, %v1513_v58  ;;  %v959_v8 = vrot.slane %v955_v42, 4  ;;  %v963_v12 = vrot.slane %v961_v20, 7 }
  0x39   : > { %v12206_v9 = vcombine.low %v1355_v62, %v1365_v3  ;;  %v1527_v11 = vor.u32 %v1526_v0, %v1522_v63  ;;  %v689_v18 = vmax.f32 %v657_v26, 0.0  ;;  %v1196_v22 = vsel %vm15253_vm10, %v958_v5, %v1195_v2  ;;  %v14745_v62 = vld [vmem:[%s20620_s1 + $0xa0] sm:$0xff]  }
  0x3a   : > { %v1518_v19 = vrot.slane %v1517_v4, 4  ;;  %v13069_v24 = vpack.c.bf16 %v688_v45, %v688_v45  ;;  %v658_v25 = vadd.f32 %v15201_v17, %v620_v52  ;;  %v966_v28 = vor.u32 %v964_v44, %v963_v12  ;;  %1197 = vst [vmem:[#allocation2 + $0x6c] sm:$0xf] %v1196_v22  ;;  %v15358_v4 = vld [vmem:[%s15171_s18 + $0x50] sm:$0xff]   ;;  %v14747_v22 = vld [vmem:[%s20620_s1 + $0x98] sm:$0xff]  }
  0x3b   : > { %13810 = vmatmul.mubr.bf16.vlgmr.msra.gmra.mxu0 %v12206_v9  ;;  %v1528_v27 = vrot.slane %v1527_v11, 4  ;;  %v968_v29 = vrot.slane %v963_v12, 4  ;;  %v13070_v30 = vpack.c.bf16 %v689_v18, %v689_v18  ;;  %v659_v34 = vadd.f32 %v15201_v17, %v621_v61  ;;  %v1153_v12 = vld [vmem:[#allocation2 + $0x24] sm:$0xf] }
  0x3c   : > { %v1523_v32 = vsel %vm15241_vm9, %v1518_v19, %v1522_v63  ;;  %13890 = vmatpush3.bf16.msra.mxu0 %v15281_v43  ;;  %v834_v26 = vshrl.u32 %v13069_v24, 16  ;;  %v837_v33 = vshll.u32 %v13069_v24, 16  ;;  %v967_v39 = vsel %vm15259_vm11, %v959_v8, %v966_v28  ;;  %v14743_v43 = vld [vmem:[%s20620_s1 + $0xa8] sm:$0xff]  }
  0x3d   : > { %v1533_v38 = vsel %vm15241_vm9, %v1528_v27, %v1532_v1  ;;  %v1200_v20 = vsel %vm15175_vm3, %v968_v29, %v1199_v14  ;;  %13891 = vmatprep.subr.bf16.mxu0 %v14741_v15  ;;  %v842_v40 = vshrl.u32 %v13070_v30, 16  ;;  %1198 = vst [vmem:[#allocation2 + $0x70] sm:$0xf] %v967_v39  ;;  %v845_v45 = vshll.u32 %v13070_v30, 16  ;;  %v354_v30 = vld [vmem:[#allocation2 + $0x84] sm:$0x1] }
  0x3e   : > { %v12213_v42 = vcombine.low %v1523_v32, %v1533_v38  ;;  %1201 = vst [vmem:[#allocation2 + $0x74] sm:$0x1] %v1200_v20  ;;  %v836_v44 = vrot.slane %v834_v26, 7  ;;  %v690_v46 = vmax.f32 %v658_v25, 0.0  ;;  %v691_v48 = vmax.f32 %v659_v34, 0.0 }
  0x3f   : > { %v844_v47 = vrot.slane %v842_v40, 7  ;;  %v408_v49 = vsel %vm15183_vm4, 0, %v407_v36  ;;  %v13201_v51 = vunpack.c.l.bf16 %v13315_v37  ;;  %v13202_v56 = vunpack.c.h.bf16 %v13315_v37  ;;  %v410_v40 = vld [vmem:[#allocation2 + $0x8c] sm:$0x1] }
  0x40   : > { %13825 = vmatprep.mubr.bf16.mxu1 %v12213_v42  ;;  %13892 = vmatpush3.bf16.msra.mxu0 %v14741_v15  ;;  %v839_v52 = vor.u32 %v837_v33, %v836_v44  ;;  %v840_v53 = vrot.slane %v836_v44, 4  ;;  %v13071_v55 = vpack.c.bf16 %v690_v46, %v690_v46  ;;  %409 = vst [vmem:[#allocation2 + $0x80] sm:$0x1] %v408_v49  ;;  %v13205_v32 = vunpack.c.l.bf16 %v15358_v4  ;;  %v14749_v49 = vld [vmem:[%s20620_s1 + $0x90] sm:$0xff]  }
  0x41   : > { %v847_v57 = vor.u32 %v845_v45, %v844_v47  ;;  %v849_v58 = vrot.slane %v844_v47, 4  ;;  %v13072_v60 = vpack.c.bf16 %v691_v48, %v691_v48  ;;  %v634_v61 = vmul.f32 %v13201_v51, %v15196_v16  ;;  %13893 = vmatprep.subr.bf16.mxu0 %v14743_v43  ;;  %v1269_v63 = vld [vmem:[#allocation2 + $0x6c] sm:$0xf] }
  0x42   : > { %v1147_v0 = vsel %vm15253_vm10, %v839_v52, %v1146_v41  ;;  %v851_v1 = vshrl.u32 %v13071_v55, 16  ;;  %v854_v2 = vshll.u32 %v13071_v55, 16  ;;  %v635_v3 = vmul.f32 %v13202_v56, %v15196_v16 }
  0x43   : > { %v1535_v5 = vshrl.u32 %v1269_v63, 16  ;;  %v1538_v8 = vshll.u32 %v1269_v63, 16  ;;  %v848_v9 = vsel %vm15259_vm11, %v840_v53, %v847_v57  ;;  %1148 = vst [vmem:[#allocation2 + $0x18] sm:$0xf] %v1147_v0  ;;  %v1151_v11 = vsel %vm15175_vm3, %v849_v58, %v1150_v54  ;;  %v1157_v53 = vld [vmem:[#allocation2 + $0x2c] sm:$0x1] }
  0x44   : > { %1149 = vst [vmem:[#allocation2 + $0x1c] sm:$0xf] %v848_v9  ;;  %1152 = vst [vmem:[#allocation2 + $0x20] sm:$0x1] %v1151_v11  ;;  %v853_v14 = vrot.slane %v851_v1, 7  ;;  %v859_v15 = vshrl.u32 %v13072_v60, 16  ;;  %v672_v19 = vadd.f32 %v15201_v17, %v634_v61  ;;  %13894 = vmatpush3.bf16.msra.mxu0 %v14743_v43  ;;  %v673_v29 = vadd.f32 %v15201_v17, %v635_v3 }
  0x45   : > { %v862_v18 = vshll.u32 %v13072_v60, 16  ;;  %v1270_v24 = vld [vmem:[#allocation2 + $0x70] sm:$0xf]  ;;  %v1308_v25 = vld [vmem:[#allocation2 + $0x74] sm:$0x1]  ;;  %v1537_v27 = vrot.slane %v1535_v5, 4  ;;  %13895 = vmatprep.subr.bf16.mxu0 %v14745_v62 }
  0x46   : > { %v1540_v28 = vrot.slane %v1538_v8, 5  ;;  %v1544_v26 = vshll.u32 %v1270_v24, 16  ;;  %v1548_v33 = vshrl.u32 %v1270_v24, 16  ;;  %v1554_v34 = vshll.u32 %v1308_v25, 16 }
  0x47   : > { %v856_v36 = vor.u32 %v854_v2, %v853_v14  ;;  %v857_v38 = vrot.slane %v853_v14, 4  ;;  %v861_v39 = vrot.slane %v859_v15, 7  ;;  %v704_v20 = vmax.f32 %v672_v19, 0.0 }
  0x48   : > { %v1541_v37 = vor.u32 %v1540_v28, %v1537_v27  ;;  %v1546_v41 = vrot.slane %v1544_v26, 5  ;;  %v1550_v43 = vrot.slane %v1548_v33, 4  ;;  %v1556_v42 = vrot.slane %v1554_v34, 5  ;;  %13896 = vmatpush3.bf16.msra.mxu0 %v14745_v62 }
  0x49   : > { %v1154_v44 = vsel %vm15253_vm10, %v856_v36, %v1153_v12  ;;  %v864_v46 = vor.u32 %v862_v18, %v861_v39  ;;  %v866_v47 = vrot.slane %v861_v39, 4  ;;  %v705_v48 = vmax.f32 %v673_v29, 0.0  ;;  %13897 = vmatprep.subr.bf16.mxu0 %v14747_v22  ;;  %v14751_v12 = vld [vmem:[%s20620_s1 + $0x88] sm:$0xff]   ;;  %v14753_v36 = vld [vmem:[%s20620_s1 + $0x80] sm:$0xff]  }
  0x4a   : > { %v1542_v45 = vrot.slane %v1541_v37, 4  ;;  %1155 = vst [vmem:[#allocation2 + $0x24] sm:$0xf] %v1154_v44  ;;  %v1551_v51 = vor.u32 %v1550_v43, %v1546_v41  ;;  %v1255_v52 = vld [vmem:[#allocation2 + $0x18] sm:$0xf]  ;;  %v13085_v54 = vpack.c.bf16 %v704_v20, %v704_v20  ;;  %v355_v55 = vsel %vm15175_vm3, 0, %v354_v30 }
  0x4b   : > { %v411_v56 = vsel %vm15183_vm4, 0, %v410_v40  ;;  %v1256_v58 = vld [vmem:[#allocation2 + $0x1c] sm:$0xf]  ;;  %v1301_v60 = vld [vmem:[#allocation2 + $0x20] sm:$0x1]  ;;  %v1367_v61 = vshrl.u32 %v1255_v52, 16  ;;  %v865_v63 = vsel %vm15259_vm11, %v857_v38, %v864_v46  ;;  %v1158_v9 = vsel %vm15175_vm3, %v866_v47, %v1157_v53 }
  0x4c   : > { %v1547_v57 = vsel %vm15241_vm9, %v1542_v45, %v1546_v41  ;;  %v1370_v62 = vshll.u32 %v1255_v52, 16  ;;  %356 = vst [vmem:[#allocation2 + $0x84] sm:$0x1] %v355_v55  ;;  %412 = vst [vmem:[#allocation2 + $0x8c] sm:$0x1] %v411_v56  ;;  %v1552_v0 = vrot.slane %v1551_v51, 4  ;;  %13898 = vmatpush3.bf16.msra.mxu0 %v14747_v22  ;;  %v13086_v11 = vpack.c.bf16 %v705_v48, %v705_v48 }
  0x4d   : > { %v1376_v1 = vshll.u32 %v1256_v58, 16  ;;  %v1380_v2 = vshrl.u32 %v1256_v58, 16  ;;  %v1386_v3 = vshll.u32 %v1301_v60, 16  ;;  %1156 = vst [vmem:[#allocation2 + $0x28] sm:$0xf] %v865_v63  ;;  %v1369_v5 = vrot.slane %v1367_v61, 4  ;;  %13899 = vmatprep.subr.bf16.mxu0 %v14749_v49 }
  0x4e   : > { %v1372_v8 = vrot.slane %v1370_v62, 5  ;;  %v1557_v14 = vsel %vm15241_vm9, %v1552_v0, %v1556_v42  ;;  %1159 = vst [vmem:[#allocation2 + $0x2c] sm:$0x1] %v1158_v9  ;;  %v14740_v22 = vld [vmem:[%s20620_s1 + $0x30] sm:$0xff]   ;;  %v970_v27 = vshrl.u32 %v13085_v54, 16  ;;  %v973_v28 = vshll.u32 %v13085_v54, 16 }
  0x4f   : > { %v1378_v15 = vrot.slane %v1376_v1, 5  ;;  %v1382_v18 = vrot.slane %v1380_v2, 4  ;;  %v1388_v19 = vrot.slane %v1386_v3, 5  ;;  %v12214_v24 = vcombine.low %v1547_v57, %v1557_v14  ;;  %v14742_v40 = vld [vmem:[%s20620_s1 + $0x28] sm:$0xff]   ;;  %v1202_v42 = vld [vmem:[#allocation2 + $0x78] sm:$0xf] }
  0x50   : > { %v1373_v25 = vor.u32 %v1372_v8, %v1369_v5  ;;  %v978_v26 = vshrl.u32 %v13086_v11, 16  ;;  %v981_v33 = vshll.u32 %v13086_v11, 16  ;;  %v13206_v34 = vunpack.c.h.bf16 %v15358_v4  ;;  %13900 = vmatpush3.bf16.msra.mxu0 %v14749_v49  ;;  %v1206_v44 = vld [vmem:[#allocation2 + $0x80] sm:$0x1]  ;;  %v333_v53 = vld [vmem:[#allocation2 + $0x30] sm:$0x1] }
  0x51   : > { %v1383_v29 = vor.u32 %v1382_v18, %v1378_v15  ;;  %v1257_v30 = vld [vmem:[#allocation2 + $0x24] sm:$0xf]  ;;  %13826 = vmatmul.mubr.bf16.vlgmr.msra.gmra.mxu1 %v12214_v24  ;;  %v972_v20 = vrot.slane %v970_v27, 7  ;;  %13901 = vmatprep.subr.bf16.mxu0 %v14751_v12  ;;  %v636_v45 = vmul.f32 %v13205_v32, %v15196_v16  ;;  %v389_v4 = vld [vmem:[#allocation2 + $0x38] sm:$0x1]  ;;  %vm2345_vm12 = vcmask 1042432  }
  0x52   : > { %v1374_v37 = vrot.slane %v1373_v25, 4  ;;  %v1391_v38 = vshrl.u32 %v1257_v30, 16  ;;  %v1394_v39 = vshll.u32 %v1257_v30, 16  ;;  %13842 = vmatpush3.bf16.msra.mxu1 %v15271_v35  ;;  %v980_v43 = vrot.slane %v978_v26, 7  ;;  %v14744_v62 = vld [vmem:[%s20620_s1 + $0x20] sm:$0xff]   ;;  %v14757_v63 = vld [vmem:[%s20620_s1 + $0x138] sm:$0xff]  }
  0x53   : > { %v1384_v41 = vrot.slane %v1383_v29, 4  ;;  %v637_v46 = vmul.f32 %v13206_v34, %v15196_v16  ;;  %13843 = vmatprep.subr.bf16.mxu1 %v14740_v22  ;;  %v975_v52 = vor.u32 %v973_v28, %v972_v20  ;;  %v976_v56 = vrot.slane %v972_v20, 4  ;;  %v13309_v5 = vld [vmem:[%s15171_s18 + $0x18] sm:$0xff]   ;;  %v13310_v18 = vld [vmem:[%s15171_s18 + $0x20] sm:$0xff]  }
  0x54   : > { %v1379_v47 = vsel %vm15241_vm9, %v1374_v37, %v1378_v15  ;;  %v1258_v48 = vld [vmem:[#allocation2 + $0x28] sm:$0xf]  ;;  %v1393_v49 = vrot.slane %v1391_v38, 4  ;;  %v1396_v51 = vrot.slane %v1394_v39, 5  ;;  %13902 = vmatpush3.bf16.msra.mxu0 %v14751_v12  ;;  %v983_v60 = vor.u32 %v981_v33, %v980_v43  ;;  %v336_v8 = vld [vmem:[#allocation2 + $0x3c] sm:$0x1] }
  0x55   : > { %v1389_v35 = vsel %vm15241_vm9, %v1384_v41, %v1388_v19  ;;  %v1400_v54 = vshll.u32 %v1258_v48, 16  ;;  %v1404_v55 = vshrl.u32 %v1258_v48, 16  ;;  %v1302_v57 = vld [vmem:[#allocation2 + $0x2c] sm:$0x1]  ;;  %v985_v61 = vrot.slane %v980_v43, 4  ;;  %13903 = vmatprep.subr.bf16.mxu0 %v14753_v36  ;;  %v15434_v38 = vld [vmem:[%s15171_s18 + $0x58] sm:$0xff]  }
  0x56   : > { %v12207_v32 = vcombine.low %v1379_v47, %v1389_v35  ;;  %v1397_v58 = vor.u32 %v1396_v51, %v1393_v49  ;;  %13844 = vmatpush3.bf16.msra.mxu1 %v14740_v22  ;;  %v1410_v2 = vshll.u32 %v1302_v57, 16  ;;  %v1203_v3 = vsel %vm15253_vm10, %v975_v52, %v1202_v42  ;;  %v392_v15 = vld [vmem:[#allocation2 + $0x44] sm:$0x1]  ;;  %v14748_v51 = vld [vmem:[%s20620_s1 + $0x10] sm:$0xff]  }
  0x57   : > { %v1402_v0 = vrot.slane %v1400_v54, 5  ;;  %v1406_v1 = vrot.slane %v1404_v55, 4  ;;  %v984_v11 = vsel %vm15259_vm11, %v976_v56, %v983_v60  ;;  %1204 = vst [vmem:[#allocation2 + $0x78] sm:$0xf] %v1203_v3  ;;  %v1207_v12 = vsel %vm15175_vm3, %v985_v61, %v1206_v44  ;;  %13845 = vmatprep.subr.bf16.mxu1 %v14742_v40 }
  0x58   : > { %13813 = vmatprep.mubr.bf16.mxu0 %v12207_v32  ;;  %v1398_v9 = vrot.slane %v1397_v58, 4  ;;  %v674_v14 = vadd.f32 %v15201_v17, %v636_v45  ;;  %v1412_v24 = vrot.slane %v1410_v2, 5  ;;  %1205 = vst [vmem:[#allocation2 + $0x7c] sm:$0xf] %v984_v11  ;;  %1208 = vst [vmem:[#allocation2 + $0x80] sm:$0x1] %v1207_v12  ;;  %v675_v22 = vadd.f32 %v15201_v17, %v637_v46 }
  0x59   : > { %v1407_v19 = vor.u32 %v1406_v1, %v1402_v0  ;;  %v334_v25 = vsel %vm15175_vm3, 0, %v333_v53  ;;  %13904 = vmatpush3.bf16.msra.mxu0 %v14753_v36  ;;  %v390_v29 = vsel %vm15183_vm4, 0, %v389_v4  ;;  %v13177_v30 = vunpack.c.l.bf16 %v13309_v5 }
  0x5a   : > { %v1403_v27 = vsel %vm15241_vm9, %v1398_v9, %v1402_v0  ;;  %v706_v28 = vmax.f32 %v674_v14, 0.0  ;;  %335 = vst [vmem:[#allocation2 + $0x30] sm:$0x1] %v334_v25  ;;  %13985 = vmatprep.subr.bf16.mxu0 %v14757_v63  ;;  %v707_v33 = vmax.f32 %v675_v22, 0.0  ;;  %13846 = vmatpush3.bf16.msra.mxu1 %v14742_v40  ;;  %391 = vst [vmem:[#allocation2 + $0x38] sm:$0x1] %v390_v29  ;;  %v13178_v34 = vunpack.c.h.bf16 %v13309_v5 }
  0x5b   : > { %v1408_v26 = vrot.slane %v1407_v19, 4  ;;  %v337_v37 = vsel %vm15175_vm3, 0, %v336_v8  ;;  %13847 = vmatprep.subr.bf16.mxu1 %v14744_v62  ;;  %v622_v39 = vmul.f32 %v13177_v30, %v15196_v16  ;;  %v393_v20 = vsel %vm15183_vm4, 0, %v392_v15  ;;  %v14746_v40 = vld [vmem:[%s20620_s1 + $0x18] sm:$0xff]   ;;  %v1213_v14 = vld [vmem:[#allocation2 + $0x8c] sm:$0x1] }
  0x5c   : > { %v13087_v36 = vpack.c.bf16 %v706_v28, %v706_v28  ;;  %338 = vst [vmem:[#allocation2 + $0x3c] sm:$0x1] %v337_v37  ;;  %v13181_v41 = vunpack.c.l.bf16 %v13310_v18  ;;  %v13088_v42 = vpack.c.bf16 %v707_v33, %v707_v33  ;;  %v623_v44 = vmul.f32 %v13178_v34, %v15196_v16  ;;  %394 = vst [vmem:[#allocation2 + $0x44] sm:$0x1] %v393_v20  ;;  %v14750_v22 = vld [vmem:[%s20620_s1 + $0x8] sm:$0xff]  }
  0x5d   : > { %v1413_v43 = vsel %vm15241_vm9, %v1408_v26, %v1412_v24  ;;  %v13182_v45 = vunpack.c.h.bf16 %v13310_v18  ;;  %v660_v49 = vadd.f32 %v15201_v17, %v622_v39  ;;  %v13209_v60 = vunpack.c.l.bf16 %v15434_v38  ;;  %v357_v24 = vld [vmem:[#allocation2 + $0x90] sm:$0x1]  ;;  %v413_v30 = vld [vmem:[#allocation2 + $0x98] sm:$0x1]  ;;  %v15465_v37 = vld [vmem:[%s20624_s5] ss:$0 sm:$0xff] }
  0x5e   : > { %v12208_v46 = vcombine.low %v1403_v27, %v1413_v43  ;;  %v987_v47 = vshrl.u32 %v13087_v36, 16  ;;  %v990_v48 = vshll.u32 %v13087_v36, 16  ;;  %v1271_v52 = vld [vmem:[#allocation2 + $0x78] sm:$0xf]  ;;  %v995_v53 = vshrl.u32 %v13088_v42, 16  ;;  %13848 = vmatpush3.bf16.msra.mxu1 %v14744_v62  ;;  %v14752_v43 = vld [vmem:[%s20620_s1] sm:$0xff]  }
  0x5f   : > { %v998_v35 = vshll.u32 %v13088_v42, 16  ;;  %v661_v54 = vadd.f32 %v15201_v17, %v623_v44  ;;  %v624_v55 = vmul.f32 %v13181_v41, %v15196_v16  ;;  %v1272_v56 = vld [vmem:[#allocation2 + $0x7c] sm:$0xf]  ;;  %v1309_v4 = vld [vmem:[#allocation2 + $0x80] sm:$0x1]  ;;  %v1559_v32 = vshrl.u32 %v1271_v52, 16  ;;  %13849 = vmatprep.subr.bf16.mxu1 %v14746_v40 }
  0x60   : > { %13814 = vmatmul.mubr.bf16.gmra.mxu0 %v12208_v46  ;;  %v1562_v57 = vshll.u32 %v1271_v52, 16  ;;  %v625_v58 = vmul.f32 %v13182_v45, %v15196_v16  ;;  %v1568_v61 = vshll.u32 %v1272_v56, 16  ;;  %v1572_v63 = vshrl.u32 %v1272_v56, 16  ;;  %v1209_v17 = vld [vmem:[#allocation2 + $0x84] sm:$0xf] }
  0x61   : > { %v1578_v0 = vshll.u32 %v1309_v4, 16  ;;  %v989_v1 = vrot.slane %v987_v47, 7  ;;  %v1561_v2 = vrot.slane %v1559_v32, 4  ;;  %v997_v3 = vrot.slane %v995_v53, 7  ;;  %v1160_v44 = vld [vmem:[#allocation2 + $0x30] sm:$0xf] }
  0x62   : > { %v1564_v62 = vrot.slane %v1562_v57, 5  ;;  %v692_v5 = vmax.f32 %v660_v49, 0.0  ;;  %v1570_v8 = vrot.slane %v1568_v61, 5  ;;  %v1574_v9 = vrot.slane %v1572_v63, 4  ;;  %13850 = vmatpush3.bf16.msra.mxu1 %v14746_v40  ;;  %v1164_v61 = vld [vmem:[#allocation2 + $0x38] sm:$0x1] }
  0x63   : > { %v1580_v11 = vrot.slane %v1578_v0, 5  ;;  %v992_v12 = vor.u32 %v990_v48, %v989_v1  ;;  %v993_v16 = vrot.slane %v989_v1, 4  ;;  %v1000_v18 = vor.u32 %v998_v35, %v997_v3  ;;  %13851 = vmatprep.subr.bf16.mxu1 %v14748_v51 }
  0x64   : > { %v1565_v15 = vor.u32 %v1564_v62, %v1561_v2  ;;  %v1002_v19 = vrot.slane %v997_v3, 4  ;;  %v1575_v25 = vor.u32 %v1574_v9, %v1570_v8  ;;  %v693_v28 = vmax.f32 %v661_v54, 0.0  ;;  %v15487_v2 = vld [vmem:[%s20623_s4] ss:$0 sm:$0xff]  ;;  %v14755_v3 = vld [vmem:[%s20620_s1 + $0xf8] sm:$0xff]  }
  0x65   : > { %v1210_v27 = vsel %vm15253_vm10, %v992_v12, %v1209_v17  ;;  %v13073_v29 = vpack.c.bf16 %v692_v5, %v692_v5  ;;  %v1001_v33 = vsel %vm15259_vm11, %v993_v16, %v1000_v18  ;;  %v662_v36 = vadd.f32 %v15465_v37, %v624_v55 }
  0x66   : > { %v1566_v26 = vrot.slane %v1565_v15, 4  ;;  %1211 = vst [vmem:[#allocation2 + $0x84] sm:$0xf] %v1210_v27  ;;  %v1214_v34 = vsel %vm15175_vm3, %v1002_v19, %v1213_v14  ;;  %v1576_v39 = vrot.slane %v1575_v25, 4  ;;  %1212 = vst [vmem:[#allocation2 + $0x88] sm:$0xf] %v1001_v33  ;;  %v13074_v20 = vpack.c.bf16 %v693_v28, %v693_v28  ;;  %13852 = vmatpush3.bf16.msra.mxu1 %v14748_v51 }
  0x67   : > { %1215 = vst [vmem:[#allocation2 + $0x8c] sm:$0x1] %v1214_v34  ;;  %v868_v41 = vshrl.u32 %v13073_v29, 16  ;;  %v871_v40 = vshll.u32 %v13073_v29, 16  ;;  %v663_v45 = vadd.f32 %v15465_v37, %v625_v58  ;;  %v694_v46 = vmax.f32 %v662_v36, 0.0  ;;  %13853 = vmatprep.subr.bf16.mxu1 %v14750_v22  ;;  %v15482_v58 = vld [vmem:[%s15171_s18 + $0x60] sm:$0xff]  }
  0x68   : > { %v1571_v42 = vsel %vm15241_vm9, %v1566_v26, %v1570_v8  ;;  %v358_v47 = vsel %vm15175_vm3, 0, %v357_v24  ;;  %v1581_v48 = vsel %vm15241_vm9, %v1576_v39, %v1580_v11  ;;  %v876_v51 = vshrl.u32 %v13074_v20, 16  ;;  %v360_v25 = vld [vmem:[#allocation2 + $0x9c] sm:$0x1]  ;;  %v416_v27 = vld [vmem:[#allocation2 + $0xa4] sm:$0x1] }
  0x69   : > { %v870_v49 = vrot.slane %v868_v41, 7  ;;  %v879_v52 = vshll.u32 %v13074_v20, 16  ;;  %359 = vst [vmem:[#allocation2 + $0x90] sm:$0x1] %v358_v47  ;;  %v12215_v53 = vcombine.low %v1571_v42, %v1581_v48  ;;  %v695_v35 = vmax.f32 %v663_v45, 0.0 }
  0x6a   : > { %v13075_v54 = vpack.c.bf16 %v694_v46, %v694_v46  ;;  %v414_v55 = vsel %vm15183_vm4, 0, %v413_v30  ;;  %v878_v32 = vrot.slane %v876_v51, 7  ;;  %v13210_v57 = vunpack.c.h.bf16 %v15434_v38  ;;  %13854 = vmatpush3.bf16.msra.mxu1 %v14750_v22  ;;  %v1167_v33 = vld [vmem:[#allocation2 + $0x3c] sm:$0xf]  ;;  %v1171_v51 = vld [vmem:[#allocation2 + $0x44] sm:$0x1] }
  0x6b   : > { %v873_v56 = vor.u32 %v871_v40, %v870_v49  ;;  %v874_v4 = vrot.slane %v870_v49, 4  ;;  %415 = vst [vmem:[#allocation2 + $0x98] sm:$0x1] %v414_v55  ;;  %13829 = vmatprep.mubr.bf16.mxu1 %v12215_v53  ;;  %v13076_v63 = vpack.c.bf16 %v695_v35, %v695_v35  ;;  %v638_v62 = vmul.f32 %v15487_v2, %v13209_v60 }
  0x6c   : > { %v885_v0 = vshrl.u32 %v13075_v54, 16  ;;  %v888_v1 = vshll.u32 %v13075_v54, 16  ;;  %13855 = vmatprep.subr.bf16.mxu1 %v14752_v43  ;;  %v881_v5 = vor.u32 %v879_v52, %v878_v32  ;;  %v883_v8 = vrot.slane %v878_v32, 4 }
  0x6d   : > { %v1273_v17 = vld [vmem:[#allocation2 + $0x84] sm:$0xf]  ;;  %v1161_v9 = vsel %vm15253_vm10, %v873_v56, %v1160_v44  ;;  %v639_v11 = vmul.f32 %v15487_v2, %v13210_v57  ;;  %v1274_v12 = vld [vmem:[#allocation2 + $0x88] sm:$0xf]  ;;  %v676_v38 = vadd.f32 %v15465_v37, %v638_v62  ;;  %v13213_v60 = vunpack.c.l.bf16 %v15482_v58 }
  0x6e   : > { %v1310_v14 = vld [vmem:[#allocation2 + $0x8c] sm:$0x1]  ;;  %v1583_v15 = vshrl.u32 %v1273_v17, 16  ;;  %v1586_v16 = vshll.u32 %v1273_v17, 16  ;;  %1162 = vst [vmem:[#allocation2 + $0x30] sm:$0xf] %v1161_v9  ;;  %v882_v22 = vsel %vm15259_vm11, %v874_v4, %v881_v5  ;;  %13856 = vmatpush3.bf16.msra.mxu1 %v14752_v43  ;;  %v1165_v30 = vsel %vm15175_vm3, %v883_v8, %v1164_v61 }
  0x6f   : > { %v1592_v18 = vshll.u32 %v1274_v12, 16  ;;  %v1596_v19 = vshrl.u32 %v1274_v12, 16  ;;  %v1602_v24 = vshll.u32 %v1310_v14, 16  ;;  %1163 = vst [vmem:[#allocation2 + $0x34] sm:$0xf] %v882_v22  ;;  %v887_v26 = vrot.slane %v885_v0, 7  ;;  %13937 = vmatprep.subr.bf16.mxu1 %v14755_v3 }
  0x70   : > { %v1585_v28 = vrot.slane %v1583_v15, 4  ;;  %v1588_v29 = vrot.slane %v1586_v16, 5  ;;  %1166 = vst [vmem:[#allocation2 + $0x38] sm:$0x1] %v1165_v30  ;;  %v893_v20 = vshrl.u32 %v13076_v63, 16  ;;  %v896_v44 = vshll.u32 %v13076_v63, 16 }
  0x71   : > { %v1594_v34 = vrot.slane %v1592_v18, 5  ;;  %v1598_v36 = vrot.slane %v1596_v19, 4  ;;  %v1604_v39 = vrot.slane %v1602_v24, 5  ;;  %v890_v40 = vor.u32 %v888_v1, %v887_v26  ;;  %v15529_v14 = vld [vmem:[%s15171_s18 + $0x28] sm:$0xff]  }
  0x72   : > { %v1589_v41 = vor.u32 %v1588_v29, %v1585_v28  ;;  %v891_v42 = vrot.slane %v887_v26, 4  ;;  %v895_v43 = vrot.slane %v893_v20, 7  ;;  %v677_v46 = vadd.f32 %v15465_v37, %v639_v11 }
  0x73   : > { %v1599_v45 = vor.u32 %v1598_v36, %v1594_v34  ;;  %v708_v47 = vmax.f32 %v676_v38, 0.0  ;;  %v1168_v49 = vsel %vm15253_vm10, %v890_v40, %v1167_v33  ;;  %v361_v52 = vsel %vm15175_vm3, 0, %v360_v25  ;;  %v1216_v36 = vld [vmem:[#allocation2 + $0x90] sm:$0xf] }
  0x74   : > { %v1590_v48 = vrot.slane %v1589_v41, 4  ;;  %v417_v53 = vsel %vm15183_vm4, 0, %v416_v27  ;;  %v898_v55 = vor.u32 %v896_v44, %v895_v43  ;;  %v900_v56 = vrot.slane %v895_v43, 4  ;;  %1169 = vst [vmem:[#allocation2 + $0x3c] sm:$0xf] %v1168_v49 }
  0x75   : > { %v1600_v35 = vrot.slane %v1599_v45, 4  ;;  %v15511_v54 = vld [vmem:[#allocation2 + $0x30] sm:$0xf]  ;;  %v709_v4 = vmax.f32 %v677_v46, 0.0  ;;  %362 = vst [vmem:[#allocation2 + $0x9c] sm:$0x1] %v361_v52  ;;  %v13089_v63 = vpack.c.bf16 %v708_v47, %v708_v47  ;;  %v13214_v30 = vunpack.c.h.bf16 %v15482_v58 }
  0x76   : > { %418 = vst [vmem:[#allocation2 + $0xa4] sm:$0x1] %v417_v53  ;;  %v1595_v32 = vsel %vm15241_vm9, %v1590_v48, %v1594_v34  ;;  %v1415_v57 = vshrl.u32 %v15511_v54, 16  ;;  %v1418_v61 = vshll.u32 %v15511_v54, 16  ;;  %v15519_v1 = vld [vmem:[#allocation2 + $0x34] sm:$0xf]  ;;  %v899_v62 = vsel %vm15259_vm11, %v891_v42, %v898_v55 }
  0x77   : > { %v1605_v0 = vsel %vm15241_vm9, %v1600_v35, %v1604_v39  ;;  %v1172_v3 = vsel %vm15175_vm3, %v900_v56, %v1171_v51  ;;  %v13090_v17 = vpack.c.bf16 %v709_v4, %v709_v4  ;;  %v15525_v8 = vld [vmem:[#allocation2 + $0x38] sm:$0x1]  ;;  %v1424_v12 = vshll.u32 %v15519_v1, 16  ;;  %1170 = vst [vmem:[#allocation2 + $0x40] sm:$0xf] %v899_v62 }
  0x78   : > { %v12216_v5 = vcombine.low %v1595_v32, %v1605_v0  ;;  %v1417_v9 = vrot.slane %v1415_v57, 4  ;;  %v1420_v11 = vrot.slane %v1418_v61, 5  ;;  %1173 = vst [vmem:[#allocation2 + $0x44] sm:$0x1] %v1172_v3  ;;  %v1428_v15 = vshrl.u32 %v15519_v1, 16 }
  0x79   : > { %v1434_v16 = vshll.u32 %v15525_v8, 16  ;;  %v1004_v38 = vshrl.u32 %v13089_v63, 16  ;;  %v1007_v18 = vshll.u32 %v13089_v63, 16  ;;  %v1426_v24 = vrot.slane %v1424_v12, 5  ;;  %v1220_v48 = vld [vmem:[#allocation2 + $0x98] sm:$0x1] }
  0x7a   : > { %13830 = vmatmul.mubr.bf16.gmra.mxu1 %v12216_v5  ;;  %v1421_v19 = vor.u32 %v1420_v11, %v1417_v9  ;;  %v1012_v22 = vshrl.u32 %v13090_v17, 16  ;;  %v1015_v25 = vshll.u32 %v13090_v17, 16  ;;  %v1430_v27 = vrot.slane %v1428_v15, 4  ;;  %v339_v49 = vld [vmem:[#allocation2 + $0x48] sm:$0x1] }
  0x7b   : > { %v1436_v28 = vrot.slane %v1434_v16, 5  ;;  %v1006_v29 = vrot.slane %v1004_v38, 7  ;;  %v15534_v33 = vld [vmem:[#allocation2 + $0x3c] sm:$0xf]  ;;  %v640_v39 = vmul.f32 %v15487_v2, %v13213_v60  ;;  %v13185_v20 = vunpack.c.l.bf16 %v15529_v14  ;;  %v395_v55 = vld [vmem:[#allocation2 + $0x50] sm:$0x1] }
  0x7c   : > { %v1422_v26 = vrot.slane %v1421_v19, 4  ;;  %v1014_v34 = vrot.slane %v1012_v22, 7  ;;  %v1431_v41 = vor.u32 %v1430_v27, %v1426_v24  ;;  %v1439_v40 = vshrl.u32 %v15534_v33, 16  ;;  %v342_v61 = vld [vmem:[#allocation2 + $0x54] sm:$0x1] }
  0x7d   : > { %v1442_v42 = vshll.u32 %v15534_v33, 16  ;;  %v1009_v44 = vor.u32 %v1007_v18, %v1006_v29  ;;  %v1010_v43 = vrot.slane %v1006_v29, 4  ;;  %v641_v35 = vmul.f32 %v15487_v2, %v13214_v30  ;;  %v398_v17 = vld [vmem:[#allocation2 + $0x5c] sm:$0x1] }
  0x7e   : > { %v1427_v45 = vsel %vm15241_vm9, %v1422_v26, %v1426_v24  ;;  %v1017_v46 = vor.u32 %v1015_v25, %v1014_v34  ;;  %v1019_v47 = vrot.slane %v1014_v34, 4  ;;  %v1432_v51 = vrot.slane %v1431_v41, 4  ;;  %v15544_v58 = vld [vmem:[#allocation2 + $0x40] sm:$0xf]  ;;  %v13312_v41 = vld [vmem:[%s15171_s18 + $0x30] sm:$0xff]  }
  0x7f   : > { %v15546_v60 = vld [vmem:[#allocation2 + $0x44] sm:$0x1]  ;;  %v1441_v52 = vrot.slane %v1439_v40, 4  ;;  %v1217_v53 = vsel %vm15253_vm10, %v1009_v44, %v1216_v36  ;;  %v1444_v56 = vrot.slane %v1442_v42, 5  ;;  %v1448_v4 = vshll.u32 %v15544_v58, 16 }
  0x80   : > { %v1452_v32 = vshrl.u32 %v15544_v58, 16  ;;  %v1458_v57 = vshll.u32 %v15546_v60, 16  ;;  %1218 = vst [vmem:[#allocation2 + $0x90] sm:$0xf] %v1217_v53  ;;  %v1437_v63 = vsel %vm15241_vm9, %v1432_v51, %v1436_v28  ;;  %v1018_v0 = vsel %vm15259_vm11, %v1010_v43, %v1017_v46 }
  0x81   : > { %v1221_v62 = vsel %vm15175_vm3, %v1019_v47, %v1220_v48  ;;  %v678_v3 = vadd.f32 %v15465_v37, %v640_v39  ;;  %v12209_v5 = vcombine.low %v1427_v45, %v1437_v63  ;;  %v1445_v9 = vor.u32 %v1444_v56, %v1441_v52  ;;  %1219 = vst [vmem:[#allocation2 + $0x94] sm:$0xf] %v1018_v0 }
  0x82   : > { %v1450_v11 = vrot.slane %v1448_v4, 5  ;;  %v1454_v12 = vrot.slane %v1452_v32, 4  ;;  %1222 = vst [vmem:[#allocation2 + $0x98] sm:$0x1] %v1221_v62  ;;  %v1460_v15 = vrot.slane %v1458_v57, 5  ;;  %v679_v16 = vadd.f32 %v15465_v37, %v641_v35 }
  0x83   : > { %v710_v38 = vmax.f32 %v678_v3, 0.0  ;;  %v340_v18 = vsel %vm15175_vm3, 0, %v339_v49  ;;  %13817 = vmatprep.mubr.bf16.mxu0 %v12209_v5  ;;  %v1446_v19 = vrot.slane %v1445_v9, 4  ;;  %v396_v22 = vsel %vm15183_vm4, 0, %v395_v55  ;;  %v1223_v57 = vld [vmem:[#allocation2 + $0x9c] sm:$0xf] }
  0x84   : > { %v1455_v24 = vor.u32 %v1454_v12, %v1450_v11  ;;  %341 = vst [vmem:[#allocation2 + $0x48] sm:$0x1] %v340_v18  ;;  %v13186_v25 = vunpack.c.h.bf16 %v15529_v14  ;;  %v711_v27 = vmax.f32 %v679_v16, 0.0  ;;  %397 = vst [vmem:[#allocation2 + $0x50] sm:$0x1] %v396_v22  ;;  %v626_v29 = vmul.f32 %v15487_v2, %v13185_v20 }
  0x85   : > { %v13091_v28 = vpack.c.bf16 %v710_v38, %v710_v38  ;;  %v343_v30 = vsel %vm15175_vm3, 0, %v342_v61  ;;  %v1451_v26 = vsel %vm15241_vm9, %v1446_v19, %v1450_v11  ;;  %v399_v39 = vsel %vm15183_vm4, 0, %v398_v17  ;;  %v1227_v11 = vld [vmem:[#allocation2 + $0xa4] sm:$0x1] }
  0x86   : > { %v1456_v34 = vrot.slane %v1455_v24, 4  ;;  %v627_v36 = vmul.f32 %v15487_v2, %v13186_v25  ;;  %344 = vst [vmem:[#allocation2 + $0x54] sm:$0x1] %v343_v30  ;;  %v13092_v40 = vpack.c.bf16 %v711_v27, %v711_v27  ;;  %v664_v20 = vadd.f32 %v15465_v37, %v626_v29  ;;  %400 = vst [vmem:[#allocation2 + $0x5c] sm:$0x1] %v399_v39 }
  0x87   : > { %v15576_v14 = vld [vmem:[#allocation2 + $0x90] sm:$0xf]  ;;  %v1021_v42 = vshrl.u32 %v13091_v28, 16  ;;  %v1024_v44 = vshll.u32 %v13091_v28, 16  ;;  %v13189_v35 = vunpack.c.l.bf16 %v13312_v41  ;;  %v13190_v28 = vunpack.c.h.bf16 %v13312_v41  ;;  %v363_v30 = vld [vmem:[#allocation2 + $0xa8] sm:$0x1] }
  0x88   : > { %v1461_v45 = vsel %vm15241_vm9, %v1456_v34, %v1460_v15  ;;  %v1607_v43 = vshrl.u32 %v15576_v14, 16  ;;  %v1610_v46 = vshll.u32 %v15576_v14, 16  ;;  %v665_v47 = vadd.f32 %v15465_v37, %v627_v36  ;;  %v15584_v49 = vld [vmem:[#allocation2 + $0x94] sm:$0xf] }
  0x89   : > { %v12210_v48 = vcombine.low %v1451_v26, %v1461_v45  ;;  %v15586_v51 = vld [vmem:[#allocation2 + $0x98] sm:$0x1]  ;;  %v1023_v52 = vrot.slane %v1021_v42, 7  ;;  %v1029_v53 = vshrl.u32 %v13092_v40, 16  ;;  %v1616_v4 = vshll.u32 %v15584_v49, 16 }
  0x8a   : > { %v1609_v55 = vrot.slane %v1607_v43, 4  ;;  %v1612_v56 = vrot.slane %v1610_v46, 5  ;;  %v1620_v32 = vshrl.u32 %v15584_v49, 16  ;;  %v1626_v61 = vshll.u32 %v15586_v51, 16  ;;  %v419_v45 = vld [vmem:[#allocation2 + $0xb0] sm:$0x1] }
  0x8b   : > { %13818 = vmatmul.mubr.bf16.gmra.mxu0 %v12210_v48  ;;  %v1026_v63 = vor.u32 %v1024_v44, %v1023_v52  ;;  %v1027_v0 = vrot.slane %v1023_v52, 4  ;;  %v1031_v62 = vrot.slane %v1029_v53, 7  ;;  %v1618_v17 = vrot.slane %v1616_v4, 5  ;;  %v1174_v4 = vld [vmem:[#allocation2 + $0x48] sm:$0xf] }
  0x8c   : > { %v1613_v3 = vor.u32 %v1612_v56, %v1609_v55  ;;  %v1622_v5 = vrot.slane %v1620_v32, 4  ;;  %v1032_v9 = vshll.u32 %v13092_v40, 16  ;;  %v1628_v12 = vrot.slane %v1626_v61, 5  ;;  %v15601_v40 = vld [vmem:[%s15171_s18 + $0x68] sm:$0xff]  }
  0x8d   : > { %v1036_v15 = vrot.slane %v1031_v62, 4  ;;  %v1224_v16 = vsel %vm15253_vm10, %v1026_v63, %v1223_v57  ;;  %v696_v38 = vmax.f32 %v664_v20, 0.0  ;;  %v697_v22 = vmax.f32 %v665_v47, 0.0 }
  0x8e   : > { %v1614_v18 = vrot.slane %v1613_v3, 4  ;;  %v1623_v19 = vor.u32 %v1622_v5, %v1618_v17  ;;  %v1034_v24 = vor.u32 %v1032_v9, %v1031_v62  ;;  %1225 = vst [vmem:[#allocation2 + $0x9c] sm:$0xf] %v1224_v16  ;;  %v628_v29 = vmul.f32 %v15487_v2, %v13189_v35 }
  0x8f   : > { %v1228_v25 = vsel %vm15175_vm3, %v1036_v15, %v1227_v11  ;;  %v13077_v27 = vpack.c.bf16 %v696_v38, %v696_v38  ;;  %v13078_v39 = vpack.c.bf16 %v697_v22, %v697_v22  ;;  %v629_v20 = vmul.f32 %v15487_v2, %v13190_v28  ;;  %v1178_v15 = vld [vmem:[#allocation2 + $0x50] sm:$0x1] }
  0x90   : > { %v1619_v26 = vsel %vm15241_vm9, %v1614_v18, %v1618_v17  ;;  %v1624_v34 = vrot.slane %v1623_v19, 4  ;;  %v1035_v36 = vsel %vm15259_vm11, %v1027_v0, %v1034_v24  ;;  %1229 = vst [vmem:[#allocation2 + $0xa4] sm:$0x1] %v1228_v25  ;;  %v666_v41 = vadd.f32 %v15465_v37, %v628_v29 }
  0x91   : > { %1226 = vst [vmem:[#allocation2 + $0xa0] sm:$0xf] %v1035_v36  ;;  %v902_v42 = vshrl.u32 %v13077_v27, 16  ;;  %v905_v44 = vshll.u32 %v13077_v27, 16  ;;  %v910_v46 = vshrl.u32 %v13078_v39, 16  ;;  %v913_v47 = vshll.u32 %v13078_v39, 16 }
  0x92   : > { %v1629_v43 = vsel %vm15241_vm9, %v1624_v34, %v1628_v12  ;;  %v364_v48 = vsel %vm15175_vm3, 0, %v363_v30  ;;  %v667_v35 = vadd.f32 %v15465_v37, %v629_v20  ;;  %v698_v55 = vmax.f32 %v666_v41, 0.0  ;;  %v366_v30 = vld [vmem:[#allocation2 + $0xb4] sm:$0x1] }
  0x93   : > { %v12217_v52 = vcombine.low %v1619_v26, %v1629_v43  ;;  %v904_v53 = vrot.slane %v902_v42, 7  ;;  %365 = vst [vmem:[#allocation2 + $0xa8] sm:$0x1] %v364_v48  ;;  %v912_v56 = vrot.slane %v910_v46, 7  ;;  %v420_v32 = vsel %vm15183_vm4, 0, %v419_v45 }
  0x94   : > { %v13217_v57 = vunpack.c.l.bf16 %v15601_v40  ;;  %v13218_v61 = vunpack.c.h.bf16 %v15601_v40  ;;  %v699_v3 = vmax.f32 %v667_v35, 0.0  ;;  %v13079_v17 = vpack.c.bf16 %v698_v55, %v698_v55  ;;  %421 = vst [vmem:[#allocation2 + $0xb0] sm:$0x1] %v420_v32  ;;  %v422_v40 = vld [vmem:[#allocation2 + $0xbc] sm:$0x1] }
  0x95   : > { %13833 = vmatprep.mubr.bf16.mxu1 %v12217_v52  ;;  %v15614_v63 = vld [vmem:[#allocation2 + $0x9c] sm:$0xf]  ;;  %v907_v0 = vor.u32 %v905_v44, %v904_v53  ;;  %v908_v62 = vrot.slane %v904_v53, 4  ;;  %v915_v11 = vor.u32 %v913_v47, %v912_v56  ;;  %v917_v12 = vrot.slane %v912_v56, 4  ;;  %v1181_v45 = vld [vmem:[#allocation2 + $0x54] sm:$0xf] }
  0x96   : > { %v1631_v5 = vshrl.u32 %v15614_v63, 16  ;;  %v1634_v9 = vshll.u32 %v15614_v63, 16  ;;  %v13080_v18 = vpack.c.bf16 %v699_v3, %v699_v3  ;;  %v919_v19 = vshrl.u32 %v13079_v17, 16  ;;  %v1185_v35 = vld [vmem:[#allocation2 + $0x5c] sm:$0x1] }
  0x97   : > { %v15618_v16 = vld [vmem:[#allocation2 + $0xa4] sm:$0x1]  ;;  %v1175_v38 = vsel %vm15253_vm10, %v907_v0, %v1174_v4  ;;  %v922_v24 = vshll.u32 %v13079_v17, 16  ;;  %v916_v29 = vsel %vm15259_vm11, %v908_v62, %v915_v11  ;;  %v1179_v36 = vsel %vm15175_vm3, %v917_v12, %v1178_v15  ;;  %v13320_v4 = vld [vmem:[%s15171_s18 + $0x70] sm:$0xff]  }
  0x98   : > { %v15622_v22 = vld [vmem:[#allocation2 + $0xa0] sm:$0xf]  ;;  %v1633_v25 = vrot.slane %v1631_v5, 4  ;;  %v1636_v27 = vrot.slane %v1634_v9, 5  ;;  %v1650_v28 = vshll.u32 %v15618_v16, 16  ;;  %v921_v39 = vrot.slane %v919_v19, 7 }
  0x99   : > { %1176 = vst [vmem:[#allocation2 + $0x48] sm:$0xf] %v1175_v38  ;;  %v1640_v26 = vshll.u32 %v15622_v22, 16  ;;  %v1644_v34 = vshrl.u32 %v15622_v22, 16  ;;  %1177 = vst [vmem:[#allocation2 + $0x4c] sm:$0xf] %v916_v29  ;;  %v642_v55 = vmul.f32 %v15487_v2, %v13217_v57  ;;  %v643_v56 = vmul.f32 %v15487_v2, %v13218_v61 }
  0x9a   : > { %v1637_v42 = vor.u32 %v1636_v27, %v1633_v25  ;;  %v1652_v44 = vrot.slane %v1650_v28, 5  ;;  %1180 = vst [vmem:[#allocation2 + $0x50] sm:$0x1] %v1179_v36  ;;  %v927_v20 = vshrl.u32 %v13080_v18, 16  ;;  %v930_v41 = vshll.u32 %v13080_v18, 16 }
  0x9b   : > { %v1642_v43 = vrot.slane %v1640_v26, 5  ;;  %v1646_v46 = vrot.slane %v1644_v34, 4  ;;  %v924_v47 = vor.u32 %v922_v24, %v921_v39  ;;  %v925_v48 = vrot.slane %v921_v39, 4 }
  0x9c   : > { %v1638_v52 = vrot.slane %v1637_v42, 4  ;;  %v929_v53 = vrot.slane %v927_v20, 7  ;;  %v367_v62 = vsel %vm15175_vm3, 0, %v366_v30  ;;  %v423_v3 = vsel %vm15183_vm4, 0, %v422_v40 }
  0x9d   : > { %v1647_v32 = vor.u32 %v1646_v46, %v1642_v43  ;;  %v1182_v0 = vsel %vm15253_vm10, %v924_v47, %v1181_v45  ;;  %v680_v57 = vadd.f32 %v15465_v37, %v642_v55  ;;  %368 = vst [vmem:[#allocation2 + $0xb4] sm:$0x1] %v367_v62  ;;  %424 = vst [vmem:[#allocation2 + $0xbc] sm:$0x1] %v423_v3  ;;  %v13221_v15 = vunpack.c.l.bf16 %v13320_v4 }
  0x9e   : > { %v1643_v17 = vsel %vm15241_vm9, %v1638_v52, %v1642_v43  ;;  %v932_v5 = vor.u32 %v930_v41, %v929_v53  ;;  %v934_v9 = vrot.slane %v929_v53, 4  ;;  %1183 = vst [vmem:[#allocation2 + $0x54] sm:$0xf] %v1182_v0  ;;  %v681_v12 = vadd.f32 %v15465_v37, %v643_v56 }
  0x9f   : > { %v1648_v61 = vrot.slane %v1647_v32, 4  ;;  %v13222_v38 = vunpack.c.h.bf16 %v13320_v4  ;;  %v712_v34 = vmax.f32 %v680_v57, 0.0  ;;  %v644_v47 = vmul.f32 %v15487_v2, %v13221_v15 }
  0xa0   : > { %v15643_v11 = vld [vmem:[#allocation2 + $0x48] sm:$0xf]  ;;  %v15646_v18 = vld [vmem:[#allocation2 + $0x4c] sm:$0xf]  ;;  %v933_v25 = vsel %vm15259_vm11, %v925_v48, %v932_v5  ;;  %v1186_v27 = vsel %vm15175_vm3, %v934_v9, %v1185_v35  ;;  %v713_v45 = vmax.f32 %v681_v12, 0.0  ;;  %vm2346_vm13 = vcmask 1046532  }
  0xa1   : > { %v1463_v19 = vshrl.u32 %v15643_v11, 16  ;;  %v1466_v24 = vshll.u32 %v15643_v11, 16  ;;  %v1653_v28 = vsel %vm15241_vm9, %v1648_v61, %v1652_v44  ;;  %v15656_v29 = vld [vmem:[#allocation2 + $0x50] sm:$0x1]  ;;  %v1472_v30 = vshll.u32 %v15646_v18, 16  ;;  %vm15689_vm14 = vmor %vm2345_vm12, %vm2346_vm13 }
  0xa2   : > { %v1476_v26 = vshrl.u32 %v15646_v18, 16  ;;  %1184 = vst [vmem:[#allocation2 + $0x58] sm:$0xf] %v933_v25  ;;  %1187 = vst [vmem:[#allocation2 + $0x5c] sm:$0x1] %v1186_v27  ;;  %v12218_v36 = vcombine.low %v1643_v17, %v1653_v28  ;;  %v1482_v42 = vshll.u32 %v15656_v29, 16  ;;  %v13093_v43 = vpack.c.bf16 %v712_v34, %v712_v34 }
  0xa3   : > { %v1465_v39 = vrot.slane %v1463_v19, 4  ;;  %v1468_v40 = vrot.slane %v1466_v24, 5  ;;  %v1474_v20 = vrot.slane %v1472_v30, 5  ;;  %v645_v48 = vmul.f32 %v15487_v2, %v13222_v38  ;;  %v1230_v28 = vld [vmem:[#allocation2 + $0xa8] sm:$0xf] }
  0xa4   : > { %v1478_v41 = vrot.slane %v1476_v26, 4  ;;  %13834 = vmatmul.mubr.bf16.gmra.mxu1 %v12218_v36  ;;  %v1484_v46 = vrot.slane %v1482_v42, 5  ;;  %v13094_v35 = vpack.c.bf16 %v713_v45, %v713_v45  ;;  %v1038_v55 = vshrl.u32 %v13093_v43, 16 }
  0xa5   : > { %v1469_v44 = vor.u32 %v1468_v40, %v1465_v39  ;;  %v15663_v53 = vld [vmem:[#allocation2 + $0x54] sm:$0xf]  ;;  %v1041_v56 = vshll.u32 %v13093_v43, 16  ;;  %v682_v62 = vadd.f32 %v15465_v37, %v644_v47  ;;  %v683_v38 = vadd.f32 %v15465_v37, %v645_v48  ;;  %v1234_v39 = vld [vmem:[#allocation2 + $0xb0] sm:$0x1] }
  0xa6   : > { %v1479_v52 = vor.u32 %v1478_v41, %v1474_v20  ;;  %v1487_v32 = vshrl.u32 %v15663_v53, 16  ;;  %v1490_v0 = vshll.u32 %v15663_v53, 16  ;;  %v1040_v17 = vrot.slane %v1038_v55, 7  ;;  %v2297_v40 = vld [vmem:[#allocation2] sm:$0xe] }
  0xa7   : > { %v1470_v4 = vrot.slane %v1469_v44, 4  ;;  %v1046_v5 = vshrl.u32 %v13094_v35, 16  ;;  %v1049_v9 = vshll.u32 %v13094_v35, 16  ;;  %v714_v44 = vmax.f32 %v682_v62, 0.0  ;;  %v2298_v35 = vld [vmem:[#allocation2 + $0xc] sm:$0xe] }
  0xa8   : > { %v1480_v3 = vrot.slane %v1479_v52, 4  ;;  %v1489_v12 = vrot.slane %v1487_v32, 4  ;;  %v1492_v15 = vrot.slane %v1490_v0, 5  ;;  %v1043_v34 = vor.u32 %v1041_v56, %v1040_v17  ;;  %v2304_v10 = vld [vmem:[#allocation2 + $0x54] sm:$0xe] }
  0xa9   : > { %v1475_v2 = vsel %vm15241_vm9, %v1470_v4, %v1474_v20  ;;  %v15670_v57 = vld [vmem:[#allocation2 + $0x58] sm:$0xf]  ;;  %v15672_v61 = vld [vmem:[#allocation2 + $0x5c] sm:$0x1]  ;;  %v1044_v36 = vrot.slane %v1040_v17, 4  ;;  %v1048_v37 = vrot.slane %v1046_v5, 7  ;;  %v13095_v56 = vpack.c.bf16 %v714_v44, %v714_v44 }
  0xaa   : > { %v1485_v19 = vsel %vm15241_vm9, %v1480_v3, %v1484_v46  ;;  %v1496_v24 = vshll.u32 %v15670_v57, 16  ;;  %v1500_v25 = vshrl.u32 %v15670_v57, 16  ;;  %v1506_v27 = vshll.u32 %v15672_v61, 16 }
  0xab   : > { %v12211_v30 = vcombine.low %v1475_v2, %v1485_v19  ;;  %v1493_v26 = vor.u32 %v1492_v15, %v1489_v12  ;;  %v1231_v43 = vsel %vm15253_vm10, %v1043_v34, %v1230_v28  ;;  %v715_v46 = vmax.f32 %v683_v38, 0.0  ;;  %v15693_v15 = vld [vmem:[#allocation2 + $0x68] sm:$0x1]  ;;  %v15701_v28 = vld [vmem:[#allocation2] sm:$0xf] }
  0xac   : > { %v1498_v42 = vrot.slane %v1496_v24, 5  ;;  %v1502_v20 = vrot.slane %v1500_v25, 4  ;;  %v1508_v41 = vrot.slane %v1506_v27, 5  ;;  %v1051_v48 = vor.u32 %v1049_v9, %v1048_v37  ;;  %1232 = vst [vmem:[#allocation2 + $0xa8] sm:$0xf] %v1231_v43 }
  0xad   : > { %13821 = vmatprep.mubr.bf16.mxu0 %v12211_v30  ;;  %v1494_v45 = vrot.slane %v1493_v26, 4  ;;  %v1053_v52 = vrot.slane %v1048_v37, 4  ;;  %v13096_v4 = vpack.c.bf16 %v715_v46, %v715_v46  ;;  %v12253_v3 = vrot.slane %v2297_v40, 9  ;;  %v1237_v24 = vld [vmem:[#allocation2 + $0xb4] sm:$0xf] }
  0xae   : > { %v1503_v47 = vor.u32 %v1502_v20, %v1498_v42  ;;  %v1052_v0 = vsel %vm15259_vm11, %v1044_v36, %v1051_v48  ;;  %v1055_v17 = vshrl.u32 %v13095_v56, 16  ;;  %v1058_v5 = vshll.u32 %v13095_v56, 16  ;;  %v15698_v25 = vld [vmem:[#allocation2 + $0x4] sm:$0xf]  ;;  %v2299_v26 = vld [vmem:[#allocation2 + $0x18] sm:$0xe] }
  0xaf   : > { %v1499_v55 = vsel %vm15241_vm9, %v1494_v45, %v1498_v42  ;;  %v1235_v62 = vsel %vm15175_vm3, %v1053_v52, %v1234_v39  ;;  %1233 = vst [vmem:[#allocation2 + $0xac] sm:$0xf] %v1052_v0  ;;  %v1063_v9 = vshrl.u32 %v13096_v4, 16  ;;  %v1066_v2 = vshll.u32 %v13096_v4, 16  ;;  %v1241_v40 = vld [vmem:[#allocation2 + $0xbc] sm:$0x1] }
  0xb0   : > { %v1504_v32 = vrot.slane %v1503_v47, 4  ;;  %1236 = vst [vmem:[#allocation2 + $0xb0] sm:$0x1] %v1235_v62  ;;  %v20728_v12 = vmov 0  ;;  %v2350_v27 = vrot.slane %v15698_v25, 5  ;;  %v1057_v36 = vrot.slane %v1055_v17, 7 }
  0xb1   : > { %v20729_v12 = vsel %vm15689_vm14, 4294967295, %v20728_v12  ;;  %v1065_v39 = vrot.slane %v1063_v9, 7  ;;  %v12254_v42 = vrot.slane %v2298_v35, 9  ;;  %v15707_v37 = vld [vmem:[#allocation2 + $0x10] sm:$0xf] }
  0xb2   : > { %20730 = vst [vmem:[#allocation9_spill] sm:$0xff] %v20729_v12  ;;  %v1509_v19 = vsel %vm15241_vm9, %v1504_v32, %v1508_v41  ;;  %v2351_v20 = vsel %vm15689_vm14, %v12253_v3, %v2350_v27  ;;  %v2352_v41 = vrot.slane %v2350_v27, 4  ;;  %v2357_v45 = vrot.slane %v15707_v37, 5  ;;  %v15710_v43 = vld [vmem:[#allocation2 + $0xc] sm:$0xf] }
  0xb3   : > { %v12212_v34 = vcombine.low %v1499_v55, %v1509_v19  ;;  %v15714_v46 = vld [vmem:[#allocation2 + $0xa8] sm:$0xf]  ;;  %v1060_v47 = vor.u32 %v1058_v5, %v1057_v36  ;;  %v1061_v48 = vrot.slane %v1057_v36, 4  ;;  %v1068_v52 = vor.u32 %v1066_v2, %v1065_v39  ;;  %v2300_v5 = vld [vmem:[#allocation2 + $0x24] sm:$0xe] }
  0xb4   : > { %v1070_v35 = vrot.slane %v1065_v39, 4  ;;  %v1655_v55 = vshrl.u32 %v15714_v46, 16  ;;  %v1658_v56 = vshll.u32 %v15714_v46, 16  ;;  %v2354_v4 = vsel %vm15689_vm14, %v2352_v41, %v2353_v7  ;;  %v15734_v27 = vld [vmem:[#allocation2 + $0x18] sm:$0xf] }
  0xb5   : > { %13822 = vmatmul.mubr.bf16.gmra.mxu0 %v12212_v34  ;;  %v12255_v32 = vrot.slane %v2299_v26, 9  ;;  %v1069_v0 = vsel %vm15259_vm11, %v1061_v48, %v1068_v52  ;;  %v1238_v62 = vsel %vm15253_vm10, %v1060_v47, %v1237_v24  ;;  %v12285_v17 = vcombine.low %v2351_v20, %v2354_v4  ;;  %v15736_v24 = vld [vmem:[#allocation2 + $0x1c] sm:$0xf]  ;;  %v15003_v47 = vld [vmem:[#allocation2 + $0x20] sm:$0x1] }
  0xb6   : > { %v1242_v3 = vsel %vm15175_vm3, %v1070_v35, %v1241_v40  ;;  %v15728_v9 = vld [vmem:[#allocation2 + $0xac] sm:$0xf]  ;;  %v1657_v50 = vrot.slane %v1655_v55, 4  ;;  %v1660_v19 = vrot.slane %v1658_v56, 5  ;;  %1239 = vst [vmem:[#allocation2 + $0xb4] sm:$0xf] %v1238_v62  ;;  %v2358_v7 = vsel %vm15689_vm14, %v12254_v42, %v2357_v45 }
  0xb7   : > { %v15730_v2 = vld [vmem:[#allocation2 + $0xb0] sm:$0x1]  ;;  %1240 = vst [vmem:[#allocation2 + $0xb8] sm:$0xf] %v1069_v0  ;;  %1243 = vst [vmem:[#allocation2 + $0xbc] sm:$0x1] %v1242_v3  ;;  %13905 = vmatprep.mubr.bf16.mxu0 %v12285_v17 }
  0xb8   : > { %v1664_v34 = vshll.u32 %v15728_v9, 16  ;;  %v1668_v36 = vshrl.u32 %v15728_v9, 16  ;;  %v1674_v39 = vshll.u32 %v15730_v2, 16  ;;  %v2359_v40 = vrot.slane %v2357_v45, 4  ;;  %v15744_v48 = vld [vmem:[#allocation2 + $0x24] sm:$0xf] }
  0xb9   : > { %v1661_v20 = vor.u32 %v1660_v19, %v1657_v50  ;;  %v2364_v41 = vrot.slane %v15736_v24, 5  ;;  %v2367_v42 = vrot.slane %v15003_v47, 5  ;;  %v15746_v52 = vld [vmem:[#allocation2 + $0x28] sm:$0xf]  ;;  %v2301_v55 = vld [vmem:[#allocation2 + $0x30] sm:$0xe] }
  0xba   : > { %v1666_v56 = vrot.slane %v1664_v34, 5  ;;  %v1670_v4 = vrot.slane %v1668_v36, 4  ;;  %v2361_v45 = vsel %vm15689_vm14, %v2359_v40, %v2360_v31  ;;  %v12256_v0 = vrot.slane %v2300_v5, 9  ;;  %v14761_v19 = vld [vmem:[%s20620_s1 + $0x130] sm:$0xff]   ;;  %v15006_v36 = vld [vmem:[#allocation2 + $0x2c] sm:$0x1] }
  0xbb   : > { %v1662_v62 = vrot.slane %v1661_v20, 4  ;;  %v12286_v3 = vcombine.low %v2358_v7, %v2361_v45  ;;  %v2365_v17 = vsel %vm15689_vm14, %v12255_v32, %v2364_v41  ;;  %v2366_v50 = vrot.slane %v2364_v41, 4  ;;  %v14765_v40 = vld [vmem:[%s20620_s1 + $0x128] sm:$0xff]   ;;  %v3177_v12 = vld [vmem:[#allocation2 + $0x30] sm:$0xf] }
  0xbc   : > { %v1671_v47 = vor.u32 %v1670_v4, %v1666_v56  ;;  %v1676_v35 = vrot.slane %v1674_v39, 5  ;;  %v2371_v34 = vrot.slane %v15746_v52, 5  ;;  %v2374_v23 = vrot.slane %v15006_v36, 5 }
  0xbd   : > { %v1667_v31 = vsel %vm15241_vm9, %v1662_v62, %v1666_v56  ;;  %13906 = vmatmul.mubr.bf16.vlgmr.msra.gmra.mxu0 %v12286_v3  ;;  %v2368_v5 = vsel %vm15689_vm14, %v2366_v50, %v2367_v42  ;;  %v12257_v7 = vrot.slane %v2301_v55, 9  ;;  %v2378_v32 = vrot.slane %v15519_v1, 5  ;;  %v15768_v39 = vld [vmem:[#allocation2 + $0xb4] sm:$0xf]  ;;  %v15007_v56 = vld [vmem:[%s20620_s1 + $0x138] sm:$0xff]  }
  0xbe   : > { %v1672_v20 = vrot.slane %v1671_v47, 4  ;;  %v15770_v41 = vld [vmem:[#allocation2 + $0xb8] sm:$0xf]  ;;  %13986 = vmatpush3.bf16.msra.mxu0 %v15007_v56  ;;  %v12287_v4 = vcombine.low %v2365_v17, %v2368_v5  ;;  %v2372_v42 = vsel %vm15689_vm14, %v12256_v0, %v2371_v34  ;;  %v2373_v55 = vrot.slane %v2371_v34, 4  ;;  %v15777_v45 = vld [vmem:[#allocation2 + $0xbc] sm:$0x1] }
  0xbf   : > { %v1679_v62 = vshrl.u32 %v15768_v39, 16  ;;  %v1682_v3 = vshll.u32 %v15768_v39, 16  ;;  %v1688_v50 = vshll.u32 %v15770_v41, 16  ;;  %v1692_v47 = vshrl.u32 %v15770_v41, 16  ;;  %13987 = vmatprep.subr.bf16.mxu0 %v14761_v19  ;;  %v2302_v5 = vld [vmem:[#allocation2 + $0x3c] sm:$0xe] }
  0xc0   : > { %v1677_v36 = vsel %vm15241_vm9, %v1672_v20, %v1676_v35  ;;  %v1698_v17 = vshll.u32 %v15777_v45, 16  ;;  %13909 = vmatprep.mubr.bf16.mxu0 %v12287_v4  ;;  %v2375_v0 = vsel %vm15689_vm14, %v2373_v55, %v2374_v23  ;;  %v2381_v34 = vrot.slane %v15525_v8, 5  ;;  %v2303_v20 = vld [vmem:[#allocation2 + $0x48] sm:$0xe] }
  0xc1   : > { %v12219_v56 = vcombine.low %v1667_v31, %v1677_v36  ;;  %v1681_v26 = vrot.slane %v1679_v62, 4  ;;  %v1684_v44 = vrot.slane %v1682_v3, 5  ;;  %v1690_v38 = vrot.slane %v1688_v50, 5  ;;  %v14769_v31 = vld [vmem:[%s20620_s1 + $0x120] sm:$0xff]  }
  0xc2   : > { %v1694_v30 = vrot.slane %v1692_v47, 4  ;;  %v12288_v21 = vcombine.low %v2372_v42, %v2375_v0  ;;  %13988 = vmatpush3.bf16.msra.mxu0 %v14761_v19  ;;  %v2379_v13 = vsel %vm15689_vm14, %v12257_v7, %v2378_v32  ;;  %v2380_v35 = vrot.slane %v2378_v32, 4 }
  0xc3   : > { %13837 = vmatprep.mubr.bf16.mxu1 %v12219_v56  ;;  %v1685_v4 = vor.u32 %v1684_v44, %v1681_v26  ;;  %v1700_v6 = vrot.slane %v1698_v17, 5  ;;  %v12258_v23 = vrot.slane %v2302_v5, 9  ;;  %v2385_v8 = vrot.slane %v15544_v58, 5  ;;  %13989 = vmatprep.subr.bf16.mxu0 %v14765_v40  ;;  %v2305_v17 = vld [vmem:[#allocation2 + $0x60] sm:$0xe] }
  0xc4   : > { %v1695_v55 = vor.u32 %v1694_v30, %v1690_v38  ;;  %v2382_v19 = vsel %vm15689_vm14, %v2380_v35, %v2381_v34  ;;  %v12233_v7 = vcombine.low %v15511_v54, %v15519_v1  ;;  %v2388_v32 = vrot.slane %v15546_v60, 5  ;;  %v2306_v5 = vld [vmem:[#allocation2 + $0x6c] sm:$0xe] }
  0xc5   : > { %v1686_v42 = vrot.slane %v1685_v4, 4  ;;  %13910 = vmatmul.mubr.bf16.gmra.mxu0 %v12288_v21  ;;  %v12289_v44 = vcombine.low %v2379_v13, %v2382_v19  ;;  %v2386_v26 = vsel %vm15689_vm14, %v12258_v23, %v2385_v8  ;;  %v2387_v62 = vrot.slane %v2385_v8, 4  ;;  %v15825_v8 = vld [vmem:[#allocation2 + $0x64] sm:$0xf]  ;;  %v2307_v19 = vld [vmem:[#allocation2 + $0x78] sm:$0xe] }
  0xc6   : > { %v1696_v3 = vrot.slane %v1695_v55, 4  ;;  %13990 = vmatpush3.bf16.msra.mxu0 %v14765_v40  ;;  %v12259_v50 = vrot.slane %v2303_v20, 9  ;;  %v2392_v30 = vrot.slane %v15646_v18, 5  ;;  %v2395_v47 = vrot.slane %v15656_v29, 5  ;;  %v14773_v40 = vld [vmem:[%s20620_s1 + $0x118] sm:$0xff]  }
  0xc7   : > { %v1691_v36 = vsel %vm15241_vm9, %v1686_v42, %v1690_v38  ;;  %13913 = vmatprep.mubr.bf16.mxu0 %v12289_v44  ;;  %v2389_v60 = vsel %vm15689_vm14, %v2387_v62, %v2388_v32  ;;  %v12260_v21 = vrot.slane %v2304_v10, 9  ;;  %13991 = vmatprep.subr.bf16.mxu0 %v14769_v31  ;;  %v2399_v35 = vrot.slane %v15670_v57, 5  ;;  %v15831_v44 = vld [vmem:[#allocation2 + $0x60] sm:$0xf] }
  0xc8   : > { %v1701_v29 = vsel %vm15241_vm9, %v1696_v3, %v1700_v6  ;;  %v12290_v0 = vcombine.low %v2386_v26, %v2389_v60  ;;  %v2393_v38 = vsel %vm15689_vm14, %v12259_v50, %v2392_v30  ;;  %v2394_v34 = vrot.slane %v2392_v30, 4  ;;  %v15011_v60 = vld [vmem:[#allocation2 + $0x74] sm:$0x1] }
  0xc9   : > { %v12220_v56 = vcombine.low %v1691_v36, %v1701_v29  ;;  %v2402_v10 = vrot.slane %v15672_v61, 5  ;;  %v12261_v23 = vrot.slane %v2305_v17, 9  ;;  %v2406_v55 = vrot.slane %v15825_v8, 5  ;;  %v14777_v61 = vld [vmem:[%s20620_s1 + $0x110] sm:$0xff]  }
  0xca   : > { %v2396_v6 = vsel %vm15689_vm14, %v2394_v34, %v2395_v47  ;;  %13992 = vmatpush3.bf16.msra.mxu0 %v14769_v31  ;;  %v2401_v42 = vrot.slane %v2399_v35, 4  ;;  %v12262_v62 = vrot.slane %v2306_v5, 9  ;;  %v2308_v31 = vld [vmem:[#allocation2 + $0x84] sm:$0xe]  ;;  %v20731_v3 = vcombine.low %v15701_v28, %v15698_v25  ;;  %v15842_v47 = vld [vmem:[#allocation2 + $0x70] sm:$0xf] }
  0xcb   : > { %13838 = vmatmul.mubr.bf16.gmra.mxu1 %v12220_v56  ;;  %v12291_v32 = vcombine.low %v2393_v38, %v2396_v6  ;;  %13993 = vmatprep.subr.bf16.mxu0 %v14773_v40  ;;  %v15840_v50 = vsel %vm15689_vm14, %v12260_v21, %v2399_v35  ;;  %v2408_v30 = vrot.slane %v2406_v55, 4  ;;  %v2413_v36 = vrot.slane %v15842_v47, 5  ;;  %v15849_v28 = vld [vmem:[#allocation2 + $0x7c] sm:$0xf]  ;;  %v15860_v35 = vld [vmem:[#allocation2 + $0x6c] sm:$0xf] }
  0xcc   : > { %13857 = vmatprep.mubr.bf16.mxu1 %v20731_v3  ;;  %v2416_v17 = vrot.slane %v15011_v60, 5  ;;  %v2403_v29 = vsel %vm15689_vm14, %v2401_v42, %v2402_v10  ;;  %v2407_v38 = vsel %vm15689_vm14, %v12261_v23, %v2406_v55  ;;  %v12263_v25 = vrot.slane %v2307_v19, 9  ;;  %v14781_v6 = vld [vmem:[%s20620_s1 + $0x108] sm:$0xff]   ;;  %v15014_v19 = vld [vmem:[#allocation2 + $0x80] sm:$0x1]  ;;  %v14759_v60 = vld [vmem:[%s20620_s1 + $0xf0] sm:$0xff]  }
  0xcd   : > { %13914 = vmatmul.mubr.bf16.gmra.mxu0 %v12290_v0  ;;  %v2420_v21 = vrot.slane %v15849_v28, 5  ;;  %v20732_v34 = vrot.slane %v15693_v15, 5  ;;  %v15858_v0 = vsel %vm15689_vm14, %v12262_v62, %v2413_v36  ;;  %v2415_v56 = vrot.slane %v2413_v36, 4  ;;  %v2309_v42 = vld [vmem:[#allocation2 + $0x90] sm:$0xe] }
  0xce   : > { %13917 = vmatprep.mubr.bf16.mxu0 %v12291_v32  ;;  %13994 = vmatpush3.bf16.msra.mxu0 %v14773_v40  ;;  %v12292_v15 = vcombine.low %v15840_v50, %v2403_v29  ;;  %v2423_v32 = vrot.slane %v15014_v19, 5  ;;  %v2310_v62 = vld [vmem:[#allocation2 + $0x9c] sm:$0xe]  ;;  %v15876_v36 = vld [vmem:[#allocation2 + $0x88] sm:$0xf]  ;;  %v20733_v26 = vcombine.low %v15710_v43, %v15707_v37  ;;  %v2434_v20 = vrot.slane %v15584_v49, 5 }
  0xcf   : > { %v2410_v5 = vsel %vm15689_vm14, %v2408_v30, %v20732_v34  ;;  %v15870_v23 = vsel %vm15689_vm14, %v12263_v25, %v2420_v21  ;;  %v2422_v55 = vrot.slane %v2420_v21, 4  ;;  %13995 = vmatprep.subr.bf16.mxu0 %v14777_v61  ;;  %v15874_v40 = vsel %vm15689_vm14, %v2415_v56, %v2416_v17  ;;  %v15017_v17 = vld [vmem:[#allocation2 + $0x8c] sm:$0x1]  ;;  %v2311_v34 = vld [vmem:[#allocation2 + $0xa8] sm:$0xe]  ;;  %v15019_v37 = vld [vmem:[%s20620_s1 + $0xf8] sm:$0xff]  }
  0xd0   : > { %v12293_v3 = vcombine.low %v2407_v38, %v2410_v5  ;;  %v12264_v30 = vrot.slane %v2308_v31, 9  ;;  %v2427_v50 = vrot.slane %v15876_v36, 5  ;;  %v12294_v29 = vcombine.low %v15858_v0, %v15874_v40  ;;  %v15888_v38 = vld [vmem:[#allocation2 + $0x78] sm:$0xf]  ;;  %v15894_v19 = vld [vmem:[#allocation2 + $0x84] sm:$0xf] }
  0xd1   : > { %v15886_v25 = vsel %vm15689_vm14, %v2422_v55, %v2423_v32  ;;  %v2430_v21 = vrot.slane %v15017_v17, 5  ;;  %v12265_v55 = vrot.slane %v2309_v42, 9  ;;  %v2312_v32 = vld [vmem:[#allocation2 + $0xb4] sm:$0xe]  ;;  %v14763_v17 = vld [vmem:[%s20620_s1 + $0xe8] sm:$0xff]   ;;  %v2437_v13 = vrot.slane %v15586_v51, 5 }
  0xd2   : > { %v2429_v56 = vrot.slane %v2427_v50, 4  ;;  %13996 = vmatpush3.bf16.msra.mxu0 %v14777_v61  ;;  %v15906_v31 = vsel %vm15689_vm14, %v12264_v30, %v2427_v50  ;;  %v12266_v10 = vrot.slane %v2310_v62, 9  ;;  %v14785_v61 = vld [vmem:[%s20620_s1 + $0x100] sm:$0xff]   ;;  %v20734_v43 = vcombine.low %v15734_v27, %v15736_v24 }
  0xd3   : > { %13858 = vmatmul.mubr.bf16.vlgmr.msra.gmra.mxu1 %v20733_v26  ;;  %13997 = vmatprep.subr.bf16.mxu0 %v14781_v6  ;;  %v2441_v51 = vrot.slane %v15622_v22, 5  ;;  %v2444_v42 = vrot.slane %v15618_v16, 5  ;;  %v15931_v27 = vsel %vm15689_vm14, %v12265_v55, %v2434_v20  ;;  %v2436_v24 = vrot.slane %v2434_v20, 4  ;;  %v15992_v5 = vld [vmem:[#allocation2 + $0x20] sm:$0x1] }
  0xd4   : > { %13938 = vmatpush3.bf16.msra.mxu1 %v15019_v37  ;;  %13861 = vmatprep.mubr.bf16.mxu1 %v20734_v43  ;;  %v15927_v30 = vsel %vm15689_vm14, %v2429_v56, %v2430_v21  ;;  %v12267_v50 = vrot.slane %v2311_v34, 9  ;;  %v3168_v37 = vld [vmem:[#allocation2 + $0xc] sm:$0xf]  ;;  %v2451_v62 = vrot.slane %v15730_v2, 5  ;;  %v15939_v21 = vld [vmem:[#allocation2 + $0x10] sm:$0xf] }
  0xd5   : > { %13939 = vmatprep.subr.bf16.mxu1 %v14759_v60  ;;  %13918 = vmatmul.mubr.bf16.gmra.mxu0 %v12292_v15  ;;  %v15935_v16 = vsel %vm15689_vm14, %v12266_v10, %v2441_v51  ;;  %v2443_v43 = vrot.slane %v2441_v51, 4  ;;  %v2448_v15 = vrot.slane %v15728_v9, 5  ;;  %v15944_v56 = vld [vmem:[%s20620_s1 + $0x1b8] sm:$0xff]   ;;  %v15948_v20 = vsel %vm15689_vm14, %v2436_v24, %v2437_v13  ;;  %v14767_v2 = vld [vmem:[%s20620_s1 + $0xe0] sm:$0xff]   ;;  %v15971_v34 = vld [vmem:[#allocation2 + $0x14] sm:$0x1] }
  0xd6   : > { %13921 = vmatprep.mubr.bf16.mxu0 %v12293_v3  ;;  %13998 = vmatpush3.bf16.msra.mxu0 %v14781_v6  ;;  %v12268_v3 = vrot.slane %v2312_v32, 9  ;;  %v2455_v6 = vrot.slane %v15770_v41, 5  ;;  %v3171_v51 = vld [vmem:[#allocation2 + $0x18] sm:$0xf]  ;;  %v2458_v26 = vrot.slane %v15777_v45, 5  ;;  %20735 = vst [vmem:[#allocation10_spill] sm:$0xff] %v15971_v34  ;;  %v20736_v24 = vcombine.low %v15744_v48, %v15746_v52 }
  0xd7   : > { %13999 = vmatprep.subr.bf16.mxu0 %v14785_v61  ;;  %v15960_v55 = vsel %vm15689_vm14, %v2443_v43, %v2444_v42  ;;  %v15964_v13 = vsel %vm15689_vm14, %v12267_v50, %v2448_v15  ;;  %v2450_v32 = vrot.slane %v2448_v15, 4  ;;  %v15973_v42 = vld [vmem:[#allocation2 + $0x1c] sm:$0xf]  ;;  %v3217_v15 = vshrl.u32 %v3168_v37, 16 }
  0xd8   : > { %13940 = vmatpush3.bf16.msra.mxu1 %v14759_v60  ;;  %v2457_v10 = vrot.slane %v2455_v6, 4  ;;  %v3220_v60 = vshll.u32 %v3168_v37, 16  ;;  %v15988_v4 = vsel %vm15689_vm14, %v12268_v3, %v2455_v6  ;;  %v14771_v48 = vld [vmem:[%s20620_s1 + $0xd8] sm:$0xff]   ;;  %v3236_v3 = vshll.u32 %v15971_v34, 16  ;;  %v3174_v6 = vld [vmem:[#allocation2 + $0x24] sm:$0xf] }
  0xd9   : > { %13941 = vmatprep.subr.bf16.mxu1 %v14763_v17  ;;  %v15977_v50 = vsel %vm15689_vm14, %v2450_v32, %v2451_v62  ;;  %v3226_v62 = vshll.u32 %v15939_v21, 16  ;;  %v3230_v32 = vshrl.u32 %v15939_v21, 16  ;;  %v3254_v43 = vshrl.u32 %v15973_v42, 16 }
  0xda   : > { %14000 = vmatpush3.bf16.msra.mxu0 %v14785_v61  ;;  %v16003_v52 = vsel %vm15689_vm14, %v2457_v10, %v2458_v26  ;;  %v3219_v61 = vrot.slane %v3217_v15, 4  ;;  %v3222_v37 = vrot.slane %v3220_v60, 5  ;;  %v20737_v26 = vcombine.low %v15870_v23, %v15886_v25  ;;  %v14775_v23 = vld [vmem:[%s20620_s1 + $0xd0] sm:$0xff]  }
  0xdb   : > { %13862 = vmatmul.mubr.bf16.gmra.mxu1 %v20736_v24  ;;  %14081 = vmatprep.subr.bf16.mxu0 %v15944_v56  ;;  %v3228_v54 = vrot.slane %v3226_v62, 5  ;;  %v3232_v1 = vrot.slane %v3230_v32, 4  ;;  %v16009_v24 = vld [vmem:[#allocation2 + $0x28] sm:$0xf]  ;;  %v3238_v60 = vrot.slane %v3236_v3, 5  ;;  %v3250_v15 = vshll.u32 %v15973_v42, 16 }
  0xdc   : > { %13865 = vmatprep.mubr.bf16.mxu1 %v12233_v7  ;;  %13942 = vmatpush3.bf16.msra.mxu1 %v14763_v17  ;;  %v3241_v7 = vshrl.u32 %v3171_v51, 16  ;;  %v3244_v17 = vshll.u32 %v3171_v51, 16  ;;  %v3223_v10 = vor.u32 %v3222_v37, %v3219_v61  ;;  %v3260_v40 = vshll.u32 %v15992_v5, 16  ;;  %v16020_v3 = vld [vmem:[#allocation2 + $0x2c] sm:$0x1] }
  0xdd   : > { %13943 = vmatprep.subr.bf16.mxu1 %v14767_v2  ;;  %13922 = vmatmul.mubr.bf16.gmra.mxu0 %v12294_v29  ;;  %v3233_v45 = vor.u32 %v3232_v1, %v3228_v54  ;;  %v3252_v51 = vrot.slane %v3250_v15, 5  ;;  %v3256_v62 = vrot.slane %v3254_v43, 4  ;;  %v3265_v32 = vshrl.u32 %v3174_v6, 16 }
  0xde   : > { %13925 = vmatprep.mubr.bf16.mxu0 %v20737_v26  ;;  %v3243_v34 = vrot.slane %v3241_v7, 4  ;;  %v3246_v0 = vrot.slane %v3244_v17, 5  ;;  %v3224_v29 = vrot.slane %v3223_v10, 4  ;;  %v3262_v37 = vrot.slane %v3260_v40, 5  ;;  %v16022_v7 = vld [vmem:[#allocation2 + $0x34] sm:$0xf] }
  0xdf   : > { %v3234_v25 = vrot.slane %v3233_v45, 4  ;;  %v3268_v1 = vshll.u32 %v3174_v6, 16  ;;  %v3257_v17 = vor.u32 %v3256_v62, %v3252_v51  ;;  %v3267_v43 = vrot.slane %v3265_v32, 4  ;;  %v14779_v62 = vld [vmem:[%s20620_s1 + $0xc8] sm:$0xff]   ;;  %v3180_v32 = vld [vmem:[#allocation2 + $0x3c] sm:$0xf] }
  0xe0   : > { %13944 = vmatpush3.bf16.msra.mxu1 %v14767_v2  ;;  %v3247_v61 = vor.u32 %v3246_v0, %v3243_v34  ;;  %v12300_v2 = vcombine.low %v15988_v4, %v16003_v52  ;;  %v3274_v26 = vshll.u32 %v16009_v24, 16  ;;  %v20738_v10 = vcombine.low %v15534_v33, %v15544_v58  ;;  %v16033_v0 = vld [vmem:[#allocation2 + $0x38] sm:$0x1] }
  0xe1   : > { %13945 = vmatprep.subr.bf16.mxu1 %v14771_v48  ;;  %v3229_v34 = vsel %vm15241_vm9, %v3224_v29, %v3228_v54  ;;  %v3270_v15 = vrot.slane %v3268_v1, 5  ;;  %v3278_v6 = vshrl.u32 %v16009_v24, 16  ;;  %v20739_v40 = vcombine.low %v15643_v11, %v15646_v18 }
  0xe2   : > { %v3248_v45 = vrot.slane %v3247_v61, 4  ;;  %v3239_v33 = vsel %vm15241_vm9, %v3234_v25, %v3238_v60  ;;  %v3258_v58 = vrot.slane %v3257_v17, 4  ;;  %v16043_v54 = vrot.slane %v3274_v26, 5 }
  0xe3   : > { %13866 = vmatmul.mubr.bf16.gmra.mxu1 %v20738_v10  ;;  %v3284_v29 = vshll.u32 %v16020_v3, 16  ;;  %v20740_v61 = vcombine.low %v15906_v31, %v15927_v30  ;;  %v3271_v18 = vor.u32 %v3270_v15, %v3267_v43  ;;  %v3289_v1 = vshrl.u32 %v3177_v12, 16  ;;  %v16051_v10 = vld [vmem:[#allocation2 + $0x40] sm:$0xf] }
  0xe4   : > { %13869 = vmatprep.mubr.bf16.mxu1 %v20739_v40  ;;  %13946 = vmatpush3.bf16.msra.mxu1 %v14771_v48  ;;  %v3253_v11 = vsel %vm15241_vm9, %v3248_v45, %v3252_v51  ;;  %v3280_v48 = vrot.slane %v3278_v6, 4  ;;  %v20741_v60 = vcombine.low %v15931_v27, %v15948_v20  ;;  %v3263_v25 = vsel %vm15241_vm9, %v3258_v58, %v3262_v37  ;;  %v16064_v20 = vld [vmem:[#allocation2 + $0x44] sm:$0x1]  ;;  %v3183_v37 = vld [vmem:[#allocation2 + $0x48] sm:$0xf] }
  0xe5   : > { %13926 = vmatmul.mubr.bf16.gmra.mxu0 %v20740_v61  ;;  %13947 = vmatprep.subr.bf16.mxu1 %v14775_v23  ;;  %v3286_v17 = vrot.slane %v3284_v29, 5  ;;  %v3292_v26 = vshll.u32 %v3177_v12, 16  ;;  %v3298_v31 = vshll.u32 %v16022_v7, 16  ;;  %v16059_v30 = vcombine.low %v3229_v34, %v3239_v33  ;;  %v14783_v12 = vld [vmem:[%s20620_s1 + $0xc0] sm:$0xff]  }
  0xe6   : > { %13929 = vmatprep.mubr.bf16.mxu0 %v20741_v60  ;;  %v3272_v40 = vrot.slane %v3271_v18, 4  ;;  %v3281_v51 = vor.u32 %v3280_v48, %v16043_v54  ;;  %v3291_v43 = vrot.slane %v3289_v1, 4  ;;  %v3302_v6 = vshrl.u32 %v16022_v7, 16  ;;  %v16075_v1 = vld [vmem:[#allocation2 + $0x4c] sm:$0xf] }
  0xe7   : > { %v3294_v45 = vrot.slane %v3292_v26, 5  ;;  %v3300_v15 = vrot.slane %v3298_v31, 5  ;;  %v3308_v27 = vshll.u32 %v16033_v0, 16  ;;  %v16069_v34 = vcombine.low %v3253_v11, %v3263_v25 }
  0xe8   : > { %13948 = vmatpush3.bf16.msra.mxu1 %v14775_v23  ;;  %v3282_v33 = vrot.slane %v3281_v51, 4  ;;  %v3313_v58 = vshrl.u32 %v3180_v32, 16  ;;  %v3316_v29 = vshll.u32 %v3180_v32, 16  ;;  %v3277_v23 = vsel %vm15241_vm9, %v3272_v40, %v16043_v54 }
  0xe9   : > { %13949 = vmatprep.subr.bf16.mxu1 %v14779_v62  ;;  %v3295_v61 = vor.u32 %v3294_v45, %v3291_v43  ;;  %v3304_v18 = vrot.slane %v3302_v6, 4  ;;  %v3322_v48 = vshll.u32 %v16051_v10, 16  ;;  %v20742_v60 = vcombine.low %v15663_v53, %v15670_v57  ;;  %v16086_v45 = vld [vmem:[#allocation2 + $0x50] sm:$0x1]  ;;  %v16094_v57 = vld [vmem:[%s20620_s1 + $0x178] sm:$0xff]  }
  0xea   : > { %v3310_v26 = vrot.slane %v3308_v27, 5  ;;  %v3315_v11 = vrot.slane %v3313_v58, 4  ;;  %v3318_v25 = vrot.slane %v3316_v29, 5  ;;  %v3326_v31 = vshrl.u32 %v16051_v10, 16  ;;  %v3186_v6 = vld [vmem:[#allocation2 + $0x54] sm:$0xf] }
  0xeb   : > { %13870 = vmatmul.mubr.bf16.gmra.mxu1 %v20742_v60  ;;  %v20743_v32 = vcombine.low %v15831_v44, %v15825_v8  ;;  %v3287_v54 = vsel %vm15241_vm9, %v3282_v33, %v3286_v17  ;;  %v3296_v40 = vrot.slane %v3295_v61, 4  ;;  %v3305_v51 = vor.u32 %v3304_v18, %v3300_v15  ;;  %v16103_v29 = vld [vmem:[#allocation2 + $0x58] sm:$0xf] }
  0xec   : > { %13950 = vmatpush3.bf16.msra.mxu1 %v14779_v62  ;;  %v3324_v43 = vrot.slane %v3322_v48, 5  ;;  %v20744_v53 = vcombine.low %v15935_v16, %v15960_v55  ;;  %v3319_v8 = vor.u32 %v3318_v25, %v3315_v11  ;;  %v3328_v44 = vrot.slane %v3326_v31, 4 }
  0xed   : > { %13873 = vmatprep.mubr.bf16.mxu1 %v20743_v32  ;;  %13951 = vmatprep.subr.bf16.mxu1 %v14783_v12  ;;  %v3332_v62 = vshll.u32 %v16064_v20, 16  ;;  %v3337_v17 = vshrl.u32 %v3183_v37, 16  ;;  %v20745_v27 = vcombine.low %v15964_v13, %v15977_v50  ;;  %v3301_v16 = vsel %vm15241_vm9, %v3296_v40, %v3300_v15  ;;  %v16116_v40 = vld [vmem:[#allocation2 + $0x5c] sm:$0x1] }
  0xee   : > { %13930 = vmatmul.mubr.bf16.gmra.mxu0 %v20744_v53  ;;  %v3306_v55 = vrot.slane %v3305_v51, 4  ;;  %v3340_v33 = vshll.u32 %v3183_v37, 16  ;;  %v3346_v58 = vshll.u32 %v16075_v1, 16  ;;  %v3320_v61 = vrot.slane %v3319_v8, 4 }
  0xef   : > { %13933 = vmatprep.mubr.bf16.mxu0 %v20745_v27  ;;  %v3329_v18 = vor.u32 %v3328_v44, %v3324_v43  ;;  %v3334_v48 = vrot.slane %v3332_v62, 5  ;;  %v3339_v60 = vrot.slane %v3337_v17, 4  ;;  %v3350_v50 = vshrl.u32 %v16075_v1, 16  ;;  %v16127_v27 = vld [vmem:[#allocation2 + $0x64] sm:$0xf] }
  0xf0   : > { %13952 = vmatpush3.bf16.msra.mxu1 %v14783_v12  ;;  %v3311_v11 = vsel %vm15241_vm9, %v3306_v55, %v3310_v26  ;;  %v3342_v25 = vrot.slane %v3340_v33, 5  ;;  %v16107_v13 = vrot.slane %v3346_v58, 5  ;;  %v16111_v15 = vcombine.low %v3277_v23, %v3287_v54  ;;  %v3189_v12 = vld [vmem:[#allocation2 + $0x60] sm:$0xf] }
  0xf1   : > { %14033 = vmatprep.subr.bf16.mxu1 %v16094_v57  ;;  %v16113_v37 = vcombine.low %v3301_v16, %v3311_v11  ;;  %v3330_v31 = vrot.slane %v3329_v18, 4  ;;  %v3356_v32 = vshll.u32 %v16086_v45, 16  ;;  %v3352_v53 = vrot.slane %v3350_v50, 4  ;;  %v16137_v18 = vld [vmem:[#allocation2 + $0x68] sm:$0x1] }
  0xf2   : > { %v3343_v51 = vor.u32 %v3342_v25, %v3339_v60  ;;  %v3361_v26 = vshrl.u32 %v3186_v6, 16  ;;  %v3364_v8 = vshll.u32 %v3186_v6, 16  ;;  %v20746_v44 = vcombine.low %v15860_v35, %v15842_v47 }
  0xf3   : > { %v3325_v23 = vsel %vm15241_vm9, %v3320_v61, %v3324_v43  ;;  %v3335_v54 = vsel %vm15241_vm9, %v3330_v31, %v3334_v48  ;;  %v3370_v62 = vshll.u32 %v16103_v29, 16  ;;  %v3374_v17 = vshrl.u32 %v16103_v29, 16  ;;  %v3192_v48 = vld [vmem:[#allocation2 + $0x6c] sm:$0xf] }
  0xf4   : > { %13874 = vmatmul.mubr.bf16.gmra.mxu1 %v20746_v44  ;;  %v20747_v16 = vcombine.low %v15888_v38, %v15849_v28  ;;  %v3344_v6 = vrot.slane %v3343_v51, 4  ;;  %v3353_v47 = vor.u32 %v3352_v53, %v16107_v13  ;;  %v3358_v35 = vrot.slane %v3356_v32, 5  ;;  %v16147_v53 = vld [vmem:[#allocation2 + $0x70] sm:$0xf]  ;;  %v16153_v44 = vld [vmem:[#allocation2 + $0x74] sm:$0x1] }
  0xf5   : > { %v3363_v55 = vrot.slane %v3361_v26, 4  ;;  %v3366_v43 = vrot.slane %v3364_v8, 5  ;;  %v3372_v33 = vrot.slane %v3370_v62, 5  ;;  %v3376_v58 = vrot.slane %v3374_v17, 4 }
  0xf6   : > { %13877 = vmatprep.mubr.bf16.mxu1 %v20747_v16  ;;  %13934 = vmatmul.mubr.bf16.gmra.mxu0 %v12300_v2  ;;  %v3380_v61 = vshll.u32 %v16116_v40, 16  ;;  %v16140_v28 = vcombine.low %v3325_v23, %v3335_v54  ;;  %v3354_v38 = vrot.slane %v3353_v47, 4  ;;  %v3385_v60 = vshrl.u32 %v3189_v12, 16  ;;  %v3195_v23 = vld [vmem:[#allocation2 + $0x78] sm:$0xf] }
  0xf7   : > { %14001 = vmatprep.mubr.bf16.mxu0 %v16059_v30  ;;  %v3388_v11 = vshll.u32 %v3189_v12, 16  ;;  %v3367_v25 = vor.u32 %v3366_v43, %v3363_v55  ;;  %v3377_v50 = vor.u32 %v3376_v58, %v3372_v33  ;;  %v3394_v4 = vshll.u32 %v16127_v27, 16 }
  0xf8   : > { %v3382_v31 = vrot.slane %v3380_v61, 5  ;;  %v3349_v52 = vsel %vm15241_vm9, %v3344_v6, %v16107_v13  ;;  %v3387_v2 = vrot.slane %v3385_v60, 4  ;;  %v3398_v51 = vshrl.u32 %v16127_v27, 16  ;;  %v14793_v13 = vld [vmem:[%s20620_s1 + $0x1b0] sm:$0xff]  }
  0xf9   : > { %v3390_v32 = vrot.slane %v3388_v11, 5  ;;  %v3359_v30 = vsel %vm15241_vm9, %v3354_v38, %v3358_v35  ;;  %v3368_v26 = vrot.slane %v3367_v25, 4  ;;  %v3378_v12 = vrot.slane %v3377_v50, 4  ;;  %v16177_v50 = vld [vmem:[#allocation2 + $0x80] sm:$0x1] }
  0xfa   : > { %v16151_v8 = vrot.slane %v3394_v4, 5  ;;  %v3400_v62 = vrot.slane %v3398_v51, 4  ;;  %v3404_v17 = vshll.u32 %v16137_v18, 16  ;;  %v3409_v16 = vshrl.u32 %v3192_v48, 16 }
  0xfb   : > { %v3391_v54 = vor.u32 %v3390_v32, %v3387_v2  ;;  %v20748_v6 = vcombine.low %v15894_v19, %v15876_v36  ;;  %v3373_v47 = vsel %vm15241_vm9, %v3368_v26, %v3372_v33  ;;  %v3383_v35 = vsel %vm15241_vm9, %v3378_v12, %v3382_v31  ;;  %v16173_v19 = vld [vmem:[#allocation2 + $0x7c] sm:$0xf]  ;;  %v3198_v31 = vld [vmem:[#allocation2 + $0x84] sm:$0xf] }
  0xfc   : > { %v3412_v55 = vshll.u32 %v3192_v48, 16  ;;  %v3418_v43 = vshll.u32 %v16147_v53, 16  ;;  %v20749_v58 = vcombine.low %v15576_v14, %v15584_v49  ;;  %v16170_v61 = vcombine.low %v3349_v52, %v3359_v30 }
  0xfd   : > { %13878 = vmatmul.mubr.bf16.gmra.mxu1 %v20748_v6  ;;  %v3392_v38 = vrot.slane %v3391_v54, 4  ;;  %v3401_v60 = vor.u32 %v3400_v62, %v16151_v8  ;;  %v3406_v36 = vrot.slane %v3404_v17, 5  ;;  %v3411_v33 = vrot.slane %v3409_v16, 4  ;;  %v16192_v54 = vld [vmem:[#allocation2 + $0x88] sm:$0xf]  ;;  %v14801_v17 = vld [vmem:[%s20620_s1 + $0x1a0] sm:$0xff]  }
  0xfe   : > { %13881 = vmatprep.mubr.bf16.mxu1 %v20749_v58  ;;  %14002 = vmatmul.mubr.bf16.vlgmr.msra.gmra.mxu0 %v16069_v34  ;;  %v3414_v11 = vrot.slane %v3412_v55, 5  ;;  %v3420_v25 = vrot.slane %v3418_v43, 5  ;;  %v3422_v48 = vshrl.u32 %v16147_v53, 16  ;;  %v16181_v14 = vcombine.low %v3373_v47, %v3383_v35  ;;  %v14797_v34 = vld [vmem:[%s20620_s1 + $0x1a8] sm:$0xff]   ;;  %v3201_v58 = vld [vmem:[#allocation2 + $0x90] sm:$0xf] }
  0xff   : > { %14082 = vmatpush3.bf16.msra.mxu0 %v15944_v56  ;;  %14005 = vmatprep.mubr.bf16.mxu0 %v16111_v15  ;;  %v3402_v49 = vrot.slane %v3401_v60, 4  ;;  %v3428_v4 = vshll.u32 %v16153_v44, 16  ;;  %v3433_v52 = vshrl.u32 %v3195_v23, 16  ;;  %v3436_v51 = vshll.u32 %v3195_v23, 16  ;;  %v16199_v47 = vld [vmem:[#allocation2 + $0x8c] sm:$0x1] }
 0x100   : > { %14083 = vmatprep.subr.bf16.mxu0 %v14793_v13  ;;  %v3415_v2 = vor.u32 %v3414_v11, %v3411_v33  ;;  %v3424_v32 = vrot.slane %v3422_v48, 4  ;;  %v3442_v30 = vshll.u32 %v16173_v19, 16  ;;  %v3397_v56 = vsel %vm15241_vm9, %v3392_v38, %v16151_v8  ;;  %v16207_v48 = vld [vmem:[#allocation2 + $0x94] sm:$0xf] }
 0x101   : > { %v3430_v15 = vrot.slane %v3428_v4, 5  ;;  %v3435_v26 = vrot.slane %v3433_v52, 4  ;;  %v3446_v12 = vshrl.u32 %v16173_v19, 16  ;;  %v3407_v62 = vsel %vm15241_vm9, %v3402_v49, %v3406_v36 }
 0x102   : > { %v3416_v23 = vrot.slane %v3415_v2, 4  ;;  %v3425_v16 = vor.u32 %v3424_v32, %v3420_v25  ;;  %v3438_v6 = vrot.slane %v3436_v51, 5  ;;  %v3444_v8 = vrot.slane %v3442_v30, 5  ;;  %v16217_v32 = vld [vmem:[#allocation2 + $0x98] sm:$0x1]  ;;  %v14786_v51 = vld [vmem:[#allocation2 + $0xc] sm:$0xff]  }
 0x103   : > { %14084 = vmatpush3.bf16.msra.mxu0 %v14793_v13  ;;  %v3448_v35 = vrot.slane %v3446_v12, 4  ;;  %v3452_v55 = vshll.u32 %v16177_v50, 16  ;;  %v3457_v43 = vshrl.u32 %v3198_v31, 16  ;;  %v20750_v38 = vcombine.low %v15614_v63, %v15622_v22 }
 0x104   : > { %14085 = vmatprep.subr.bf16.mxu0 %v14797_v34  ;;  %v3421_v60 = vsel %vm15241_vm9, %v3416_v23, %v3420_v25  ;;  %v3426_v36 = vrot.slane %v3425_v16, 4  ;;  %v3439_v33 = vor.u32 %v3438_v6, %v3435_v26  ;;  %v3460_v11 = vshll.u32 %v3198_v31, 16  ;;  %v3204_v6 = vld [vmem:[#allocation2 + $0x9c] sm:$0xf] }
 0x105   : > { %13882 = vmatmul.mubr.bf16.gmra.mxu1 %v20750_v38  ;;  %v20751_v13 = vcombine.low %v15714_v46, %v15728_v9  ;;  %v3449_v49 = vor.u32 %v3448_v35, %v3444_v8  ;;  %v3454_v4 = vrot.slane %v3452_v55, 5  ;;  %v3459_v52 = vrot.slane %v3457_v43, 4  ;;  %v16235_v35 = vld [vmem:[#allocation2 + $0xa0] sm:$0xf] }
 0x106   : > { %v3466_v2 = vshll.u32 %v16192_v54, 16  ;;  %14006 = vmatmul.mubr.bf16.gmra.mxu0 %v16113_v37  ;;  %v3431_v63 = vsel %vm15241_vm9, %v3426_v36, %v3430_v15  ;;  %v3440_v22 = vrot.slane %v3439_v33, 4  ;;  %v3462_v25 = vrot.slane %v3460_v11, 5  ;;  %v14805_v37 = vld [vmem:[%s20620_s1 + $0x198] sm:$0xff]  }
 0x107   : > { %13885 = vmatprep.mubr.bf16.mxu1 %v20751_v13  ;;  %v3470_v31 = vshrl.u32 %v16192_v54, 16  ;;  %14009 = vmatprep.mubr.bf16.mxu0 %v16140_v28  ;;  %v16220_v46 = vcombine.low %v3397_v56, %v3407_v62  ;;  %v3450_v9 = vrot.slane %v3449_v49, 4  ;;  %v3476_v15 = vshll.u32 %v16199_v47, 16  ;;  %v16240_v13 = vld [vmem:[#allocation2 + $0xa4] sm:$0x1] }
 0x108   : > { %14086 = vmatpush3.bf16.msra.mxu0 %v14797_v34  ;;  %v16225_v30 = vrot.slane %v3466_v2, 5  ;;  %v16228_v26 = vcombine.low %v3421_v60, %v3431_v63  ;;  %v3463_v12 = vor.u32 %v3462_v25, %v3459_v52  ;;  %v3481_v16 = vshrl.u32 %v3201_v58, 16  ;;  %v3207_v49 = vld [vmem:[#allocation2 + $0xa8] sm:$0xf] }
 0x109   : > { %14087 = vmatprep.subr.bf16.mxu0 %v14801_v17  ;;  %v3472_v23 = vrot.slane %v3470_v31, 4  ;;  %v3445_v28 = vsel %vm15241_vm9, %v3440_v22, %v3444_v8  ;;  %v3455_v34 = vsel %vm15241_vm9, %v3450_v9, %v3454_v4  ;;  %v3484_v56 = vshll.u32 %v3201_v58, 16 }
 0x10a   : > { %v3490_v62 = vshll.u32 %v16207_v48, 16  ;;  %v3464_v55 = vrot.slane %v3463_v12, 4  ;;  %v3478_v38 = vrot.slane %v3476_v15, 5  ;;  %v3483_v60 = vrot.slane %v3481_v16, 4 }
 0x10b   : > { %v3473_v43 = vor.u32 %v3472_v23, %v16225_v30  ;;  %v3486_v36 = vrot.slane %v3484_v56, 5  ;;  %v3494_v11 = vshrl.u32 %v16207_v48, 16  ;;  %v3500_v8 = vshll.u32 %v16217_v32, 16 }
 0x10c   : > { %14088 = vmatpush3.bf16.msra.mxu0 %v14801_v17  ;;  %v3492_v33 = vrot.slane %v3490_v62, 5  ;;  %v20752_v58 = vcombine.low %v15768_v39, %v15770_v41  ;;  %v16245_v4 = vcombine.low %v3445_v28, %v3455_v34  ;;  %v14809_v17 = vld [vmem:[%s20620_s1 + $0x190] sm:$0xff]   ;;  %v3505_v2 = vshrl.u32 %v3204_v6, 16  ;;  %v16254_v41 = vld [vmem:[#allocation2 + $0xac] sm:$0xf]  ;;  %v14788_v28 = vld [vmem:[#allocation2 + $0x18] sm:$0xff]  }
 0x10d   : > { %14089 = vmatprep.subr.bf16.mxu0 %v14805_v37  ;;  %v3474_v52 = vrot.slane %v3473_v43, 4  ;;  %v3508_v63 = vshll.u32 %v3204_v6, 16  ;;  %v3469_v22 = vsel %vm15241_vm9, %v3464_v55, %v16225_v30  ;;  %v3487_v25 = vor.u32 %v3486_v36, %v3483_v60  ;;  %v14813_v55 = vld [vmem:[%s20620_s1 + $0x188] sm:$0xff]  }
 0x10e   : > { %13886 = vmatmul.mubr.bf16.gmra.mxu1 %v20752_v58  ;;  %v3496_v31 = vrot.slane %v3494_v11, 4  ;;  %v3514_v39 = vshll.u32 %v16235_v35, 16  ;;  %14010 = vmatmul.mubr.bf16.gmra.mxu0 %v16170_v61  ;;  %v3502_v9 = vrot.slane %v3500_v8, 5  ;;  %v3507_v15 = vrot.slane %v3505_v2, 4  ;;  %v14791_v11 = vld [vmem:[%s20620_s1 + $0x170] sm:$0xff]  }
 0x10f   : > { %13953 = vmatprep.mubr.bf16.mxu1 %v14786_v51  ;;  %v3510_v12 = vrot.slane %v3508_v63, 5  ;;  %v3518_v23 = vshrl.u32 %v16235_v35, 16  ;;  %14013 = vmatprep.mubr.bf16.mxu0 %v16181_v14  ;;  %v3479_v51 = vsel %vm15241_vm9, %v3474_v52, %v3478_v38  ;;  %v3488_v30 = vrot.slane %v3487_v25, 4  ;;  %v14790_v14 = vld [vmem:[#allocation2 + $0x24] sm:$0xff]   ;;  %v16269_v38 = vld [vmem:[#allocation2 + $0xb0] sm:$0x1] }
 0x110   : > { %14090 = vmatpush3.bf16.msra.mxu0 %v14805_v37  ;;  %v3497_v16 = vor.u32 %v3496_v31, %v3492_v33  ;;  %v16261_v6 = vrot.slane %v3514_v39, 5  ;;  %v3524_v61 = vshll.u32 %v16240_v13, 16  ;;  %v3529_v62 = vshrl.u32 %v3207_v49, 16  ;;  %v3210_v63 = vld [vmem:[#allocation2 + $0xb4] sm:$0xf] }
 0x111   : > { %14091 = vmatprep.subr.bf16.mxu0 %v14809_v17  ;;  %v3511_v34 = vor.u32 %v3510_v12, %v3507_v15  ;;  %v3520_v56 = vrot.slane %v3518_v23, 4  ;;  %v3493_v37 = vsel %vm15241_vm9, %v3488_v30, %v3492_v33  ;;  %v3532_v60 = vshll.u32 %v3207_v49, 16  ;;  %v16281_v39 = vld [vmem:[#allocation2 + $0xb8] sm:$0xf] }
 0x112   : > { %v3498_v43 = vrot.slane %v3497_v16, 4  ;;  %v3538_v36 = vshll.u32 %v16254_v41, 16  ;;  %v3526_v52 = vrot.slane %v3524_v61, 5  ;;  %v3531_v2 = vrot.slane %v3529_v62, 4 }
 0x113   : > { %v3512_v8 = vrot.slane %v3511_v34, 4  ;;  %v3521_v58 = vor.u32 %v3520_v56, %v16261_v6  ;;  %v3534_v33 = vrot.slane %v3532_v60, 5  ;;  %v3542_v49 = vshrl.u32 %v16254_v41, 16 }
 0x114   : > { %v3503_v25 = vsel %vm15241_vm9, %v3498_v43, %v3502_v9  ;;  %14092 = vmatpush3.bf16.msra.mxu0 %v14809_v17  ;;  %v16278_v31 = vrot.slane %v3538_v36, 5  ;;  %v16283_v15 = vcombine.low %v3469_v22, %v3479_v51  ;;  %v3548_v30 = vshll.u32 %v16269_v38, 16  ;;  %v14817_v17 = vld [vmem:[%s20620_s1 + $0x180] sm:$0xff]   ;;  %v14795_v9 = vld [vmem:[%s20620_s1 + $0x168] sm:$0xff]   ;;  %v16295_v51 = vld [vmem:[#allocation2 + $0xbc] sm:$0x1] }
 0x115   : > { %v16285_v12 = vcombine.low %v3493_v37, %v3503_v25  ;;  %v3522_v23 = vrot.slane %v3521_v58, 4  ;;  %14093 = vmatprep.subr.bf16.mxu0 %v14813_v55  ;;  %v3535_v16 = vor.u32 %v3534_v33, %v3531_v2  ;;  %v3544_v22 = vrot.slane %v3542_v49, 4  ;;  %v425_v37 = vld [vmem:[#allocation2 + $0xc8] sm:$0x1]  ;;  %v13321_v58 = vld [vmem:[%s15171_s18 + $0x78] sm:$0xff]  }
 0x116   : > { %13954 = vmatmul.mubr.bf16.vlgmr.msra.gmra.mxu1 %v14788_v28  ;;  %v3553_v28 = vshrl.u32 %v3210_v63, 16  ;;  %v3556_v34 = vshll.u32 %v3210_v63, 16  ;;  %14014 = vmatmul.mubr.bf16.gmra.mxu0 %v16220_v46  ;;  %v3517_v56 = vsel %vm15241_vm9, %v3512_v8, %v16261_v6  ;;  %v3562_v61 = vshll.u32 %v16281_v39, 16  ;;  %v3922_v2 = vld [vmem:[#allocation2 + $0xc] sm:$0xe]  ;;  %v14792_v6 = vld [vmem:[#allocation2 + $0x30] sm:$0xff]  }
 0x117   : > { %14034 = vmatpush3.bf16.msra.mxu1 %v16094_v57  ;;  %13957 = vmatprep.mubr.bf16.mxu1 %v14790_v14  ;;  %v3527_v57 = vsel %vm15241_vm9, %v3522_v23, %v3526_v52  ;;  %v3566_v62 = vshrl.u32 %v16281_v39, 16  ;;  %v369_v14 = vld [vmem:[#allocation2 + $0xc0] sm:$0x1]  ;;  %v3536_v43 = vrot.slane %v3535_v16, 4  ;;  %v3545_v60 = vor.u32 %v3544_v22, %v16278_v31  ;;  %v16312_v33 = vld [vmem:[%s20620_s1 + $0x238] sm:$0xff]  }
 0x118   : > { %14035 = vmatprep.subr.bf16.mxu1 %v14791_v11  ;;  %14017 = vmatprep.mubr.bf16.mxu0 %v16228_v26  ;;  %v3550_v36 = vrot.slane %v3548_v30, 5  ;;  %v3555_v46 = vrot.slane %v3553_v28, 4  ;;  %v3558_v8 = vrot.slane %v3556_v34, 5  ;;  %v3564_v63 = vrot.slane %v3562_v61, 5  ;;  %v14794_v26 = vld [vmem:[#allocation2 + $0x3c] sm:$0xff]  }
 0x119   : > { %14094 = vmatpush3.bf16.msra.mxu0 %v14813_v55  ;;  %v3568_v52 = vrot.slane %v3566_v62, 4  ;;  %v3572_v25 = vshll.u32 %v16295_v51, 16  ;;  %v16314_v49 = vcombine.low %v3517_v56, %v3527_v57  ;;  %v3546_v55 = vrot.slane %v3545_v60, 4  ;;  %v14799_v28 = vld [vmem:[%s20620_s1 + $0x160] sm:$0xff]   ;;  %v3923_v60 = vld [vmem:[#allocation2 + $0x18] sm:$0xe] }
 0x11a   : > { %14095 = vmatprep.subr.bf16.mxu0 %v14817_v17  ;;  %v370_v30 = vsel %vm15175_vm3, 0, %v369_v14  ;;  %v426_v22 = vsel %vm15183_vm4, 0, %v425_v37  ;;  %v3559_v34 = vor.u32 %v3558_v8, %v3555_v46  ;;  %v3541_v56 = vsel %vm15241_vm9, %v3536_v43, %v16278_v31 }
 0x11b   : > { %14036 = vmatpush3.bf16.msra.mxu1 %v14791_v11  ;;  %v3569_v61 = vor.u32 %v3568_v52, %v3564_v63  ;;  %v3574_v62 = vrot.slane %v3572_v25, 5  ;;  %371 = vst [vmem:[#allocation2 + $0xc0] sm:$0x1] %v370_v30  ;;  %427 = vst [vmem:[#allocation2 + $0xc8] sm:$0x1] %v426_v22  ;;  %v13225_v11 = vunpack.c.l.bf16 %v13321_v58  ;;  %v13226_v57 = vunpack.c.h.bf16 %v13321_v58  ;;  %v20756_v58 = vld [vmem:[#allocation10_spill] sm:$0xff] }
 0x11c   : > { %14037 = vmatprep.subr.bf16.mxu1 %v14795_v9  ;;  %v12389_v14 = vrot.slane %v3922_v2, 9  ;;  %v3988_v37 = vrot.slane %v15939_v21, 5  ;;  %v3551_v16 = vsel %vm15241_vm9, %v3546_v55, %v3550_v36  ;;  %v3560_v46 = vrot.slane %v3559_v34, 4  ;;  %v15020_v52 = vld [vmem:[%s20623_s4] ss:$0 sm:$0xff] }
 0x11d   : > { %14096 = vmatpush3.bf16.msra.mxu0 %v14817_v17  ;;  %v3570_v8 = vrot.slane %v3569_v61, 4  ;;  %v646_v25 = vmul.f32 %v15020_v52, %v13225_v11  ;;  %v647_v31 = vmul.f32 %v15020_v52, %v13226_v57  ;;  %v3991_v2 = vrot.slane %v20756_v58, 5  ;;  %v3924_v36 = vld [vmem:[#allocation2 + $0x24] sm:$0xe]  ;;  %v15021_v55 = vld [vmem:[%s20624_s5] ss:$0 sm:$0xff] }
 0x11e   : > { %13958 = vmatmul.mubr.bf16.gmra.mxu1 %v14792_v6  ;;  %14177 = vmatprep.subr.bf16.mxu0 %v16312_v33  ;;  %v16335_v21 = vsel %vm15689_vm14, %v12389_v14, %v3988_v37  ;;  %v3990_v43 = vrot.slane %v3988_v37, 4  ;;  %v14803_v6 = vld [vmem:[%s20620_s1 + $0x158] sm:$0xff]   ;;  %v12390_v22 = vrot.slane %v3923_v60, 9  ;;  %v16350_v34 = vcombine.low %v3541_v56, %v3551_v16  ;;  %v3925_v11 = vld [vmem:[#allocation2 + $0x30] sm:$0xe]  ;;  %v14796_v57 = vld [vmem:[#allocation2 + $0x48] sm:$0xff]  }
 0x11f   : > { %13961 = vmatprep.mubr.bf16.mxu1 %v14794_v26  ;;  %14038 = vmatpush3.bf16.msra.mxu1 %v14795_v9  ;;  %v3565_v26 = vsel %vm15241_vm9, %v3560_v46, %v3564_v63  ;;  %v3575_v9 = vsel %vm15241_vm9, %v3570_v8, %v3574_v62  ;;  %v684_v30 = vadd.f32 %v15021_v55, %v646_v25  ;;  %v3995_v63 = vrot.slane %v15973_v42, 5  ;;  %v14798_v46 = vld [vmem:[#allocation2 + $0x54] sm:$0xff]  }
 0x120   : > { %14039 = vmatprep.subr.bf16.mxu1 %v14799_v28  ;;  %14018 = vmatmul.mubr.bf16.gmra.mxu0 %v16245_v4  ;;  %v685_v4 = vadd.f32 %v15021_v55, %v647_v31  ;;  %v16354_v61 = vsel %vm15689_vm14, %v3990_v43, %v3991_v2  ;;  %v3998_v37 = vrot.slane %v15992_v5, 5  ;;  %v12391_v60 = vrot.slane %v3924_v36, 9  ;;  %v14807_v42 = vld [vmem:[%s20620_s1 + $0x150] sm:$0xff]   ;;  %v3926_v36 = vld [vmem:[#allocation2 + $0x3c] sm:$0xe] }
 0x121   : > { %14021 = vmatprep.mubr.bf16.mxu0 %v16283_v15  ;;  %v716_v62 = vmax.f32 %v684_v30, 0.0  ;;  %v12421_v14 = vcombine.low %v16335_v21, %v16354_v61  ;;  %v16360_v15 = vcombine.low %v3565_v26, %v3575_v9  ;;  %v16364_v56 = vsel %vm15689_vm14, %v12390_v22, %v3995_v63  ;;  %v16609_v55 = vld [vmem:[#allocation2 + $0x24] sm:$0xe]  ;;  %v16616_v21 = vld [vmem:[#allocation2 + $0x34] sm:$0xf] }
 0x122   : > { %v717_v16 = vmax.f32 %v685_v4, 0.0  ;;  %v3997_v8 = vrot.slane %v3995_v63, 4  ;;  %v4002_v25 = vrot.slane %v16009_v24, 5  ;;  %v4005_v5 = vrot.slane %v16020_v3, 5  ;;  %v3927_v3 = vld [vmem:[#allocation2 + $0x48] sm:$0xe] }
 0x123   : > { %14040 = vmatpush3.bf16.msra.mxu1 %v14799_v28  ;;  %v13097_v52 = vpack.c.bf16 %v716_v62, %v716_v62  ;;  %v12392_v31 = vrot.slane %v3925_v11, 9  ;;  %v4009_v58 = vrot.slane %v16022_v7, 5  ;;  %v4012_v2 = vrot.slane %v16033_v0, 5  ;;  %v14811_v0 = vld [vmem:[%s20620_s1 + $0x148] sm:$0xff]   ;;  %v4813_v61 = vld [vmem:[#allocation2 + $0x30] sm:$0xf] }
 0x124   : > { %14041 = vmatprep.subr.bf16.mxu1 %v14803_v6  ;;  %v13098_v28 = vpack.c.bf16 %v717_v16, %v717_v16  ;;  %v16373_v43 = vsel %vm15689_vm14, %v3997_v8, %v3998_v37  ;;  %v16381_v24 = vsel %vm15689_vm14, %v12391_v60, %v4002_v25  ;;  %v4004_v4 = vrot.slane %v4002_v25, 4  ;;  %v1244_v37 = vld [vmem:[#allocation2 + $0xc0] sm:$0xf]  ;;  %v1248_v25 = vld [vmem:[#allocation2 + $0xc8] sm:$0x1] }
 0x125   : > { %v1072_v26 = vshrl.u32 %v13097_v52, 16  ;;  %v1075_v9 = vshll.u32 %v13097_v52, 16  ;;  %v16385_v7 = vsel %vm15689_vm14, %v12392_v31, %v4009_v58  ;;  %v4011_v11 = vrot.slane %v4009_v58, 4  ;;  %v14800_v16 = vld [vmem:[#allocation2 + $0x60] sm:$0xff]  }
 0x126   : > { %13962 = vmatmul.mubr.bf16.gmra.mxu1 %v14796_v57  ;;  %v1080_v30 = vshrl.u32 %v13098_v28, 16  ;;  %v1083_v22 = vshll.u32 %v13098_v28, 16  ;;  %v12393_v57 = vrot.slane %v3926_v36, 9  ;;  %v4016_v62 = vrot.slane %v16051_v10, 5  ;;  %v14802_v28 = vld [vmem:[#allocation2 + $0x6c] sm:$0xff]  }
 0x127   : > { %13965 = vmatprep.mubr.bf16.mxu1 %v14798_v46  ;;  %14042 = vmatpush3.bf16.msra.mxu1 %v14803_v6  ;;  %v1074_v63 = vrot.slane %v1072_v26, 7  ;;  %v16395_v60 = vsel %vm15689_vm14, %v4004_v4, %v4005_v5  ;;  %v12394_v46 = vrot.slane %v3927_v3, 9  ;;  %v16402_v10 = vsel %vm15689_vm14, %v4011_v11, %v4012_v2  ;;  %v3929_v26 = vld [vmem:[#allocation2 + $0x60] sm:$0xe] }
 0x128   : > { %14022 = vmatmul.mubr.bf16.gmra.mxu0 %v16285_v12  ;;  %14043 = vmatprep.subr.bf16.mxu1 %v14807_v42  ;;  %v1082_v6 = vrot.slane %v1080_v30, 7  ;;  %v4019_v12 = vrot.slane %v16064_v20, 5  ;;  %v16408_v36 = vsel %vm15689_vm14, %v12393_v57, %v4016_v62  ;;  %v14815_v2 = vld [vmem:[%s20620_s1 + $0x140] sm:$0xff]   ;;  %v4018_v30 = vrot.slane %v4016_v62, 4 }
 0x129   : > { %14025 = vmatprep.mubr.bf16.mxu0 %v16314_v49  ;;  %v1077_v8 = vor.u32 %v1075_v9, %v1074_v63  ;;  %v1078_v52 = vrot.slane %v1074_v63, 4  ;;  %v3928_v49 = vld [vmem:[#allocation2 + $0x54] sm:$0xe] }
 0x12a   : > { %v1085_v58 = vor.u32 %v1083_v22, %v1082_v6  ;;  %v1087_v5 = vrot.slane %v1082_v6, 4  ;;  %v4026_v22 = vrot.slane %v16086_v45, 5  ;;  %v12395_v57 = vrot.slane %v3928_v49, 9 }
 0x12b   : > { %14044 = vmatpush3.bf16.msra.mxu1 %v14807_v42  ;;  %v1245_v3 = vsel %vm15253_vm10, %v1077_v8, %v1244_v37  ;;  %v4023_v42 = vrot.slane %v16075_v1, 5  ;;  %v4030_v6 = vrot.slane %v16103_v29, 5  ;;  %v3930_v37 = vld [vmem:[#allocation2 + $0x6c] sm:$0xe]  ;;  %v16424_v62 = vsel %vm15689_vm14, %v4018_v30, %v4019_v12  ;;  %v3931_v12 = vld [vmem:[#allocation2 + $0x78] sm:$0xe] }
 0x12c   : > { %14045 = vmatprep.subr.bf16.mxu1 %v14811_v0  ;;  %v1086_v63 = vsel %vm15259_vm11, %v1078_v52, %v1085_v58  ;;  %1246 = vst [vmem:[#allocation2 + $0xc0] sm:$0xf] %v1245_v3  ;;  %v1249_v11 = vsel %vm15175_vm3, %v1087_v5, %v1248_v25  ;;  %v4033_v8 = vrot.slane %v16116_v40, 5  ;;  %v12396_v25 = vrot.slane %v3929_v26, 9  ;;  %v3932_v3 = vld [vmem:[#allocation2 + $0x84] sm:$0xe] }
 0x12d   : > { %1247 = vst [vmem:[#allocation2 + $0xc4] sm:$0xf] %v1086_v63  ;;  %1250 = vst [vmem:[#allocation2 + $0xc8] sm:$0x1] %v1249_v11  ;;  %v16428_v1 = vsel %vm15689_vm14, %v12394_v46, %v4023_v42  ;;  %v4025_v45 = vrot.slane %v4023_v42, 4  ;;  %v4032_v52 = vrot.slane %v4030_v6, 4 }
 0x12e   : > { %13966 = vmatmul.mubr.bf16.gmra.mxu1 %v14800_v16  ;;  %v16435_v16 = vsel %vm15689_vm14, %v12395_v57, %v4030_v6  ;;  %v16441_v46 = vld [vmem:[%s20620_s1 + $0x1f8] sm:$0xff]   ;;  %v4040_v49 = vrot.slane %v16137_v18, 5  ;;  %v4044_v5 = vrot.slane %v16147_v53, 5  ;;  %v4047_v26 = vrot.slane %v16153_v44, 5 }
 0x12f   : > { %13969 = vmatprep.mubr.bf16.mxu1 %v14802_v28  ;;  %14046 = vmatpush3.bf16.msra.mxu1 %v14811_v0  ;;  %v16445_v40 = vsel %vm15689_vm14, %v4025_v45, %v4026_v22  ;;  %v4037_v0 = vrot.slane %v16127_v27, 5  ;;  %v12397_v28 = vrot.slane %v3930_v37, 9  ;;  %v16454_v58 = vsel %vm15689_vm14, %v4032_v52, %v4033_v8  ;;  %v14804_v30 = vld [vmem:[#allocation2 + $0x78] sm:$0xff]   ;;  %v14806_v22 = vld [vmem:[#allocation2 + $0x84] sm:$0xff]  }
 0x130   : > { %14026 = vmatmul.mubr.bf16.gmra.mxu0 %v16350_v34  ;;  %14047 = vmatprep.subr.bf16.mxu1 %v14815_v2  ;;  %v12398_v42 = vrot.slane %v3931_v12, 9  ;;  %v4046_v53 = vrot.slane %v4044_v5, 4  ;;  %v4051_v44 = vrot.slane %v16173_v19, 5  ;;  %v4054_v11 = vrot.slane %v16177_v50, 5  ;;  %v3933_v12 = vld [vmem:[#allocation2 + $0x90] sm:$0xe] }
 0x131   : > { %14029 = vmatprep.mubr.bf16.mxu0 %v16360_v15  ;;  %v16462_v18 = vsel %vm15689_vm14, %v12396_v25, %v4037_v0  ;;  %v4039_v15 = vrot.slane %v4037_v0, 4  ;;  %v16466_v63 = vsel %vm15689_vm14, %v12397_v28, %v4044_v5  ;;  %v12399_v37 = vrot.slane %v3932_v3, 9  ;;  %v3934_v5 = vld [vmem:[#allocation2 + $0x9c] sm:$0xe] }
 0x132   : > { %v4058_v45 = vrot.slane %v16192_v54, 5  ;;  %v16484_v50 = vsel %vm15689_vm14, %v4046_v53, %v4047_v26  ;;  %v4053_v26 = vrot.slane %v4051_v44, 4 }
 0x133   : > { %14048 = vmatpush3.bf16.msra.mxu1 %v14815_v2  ;;  %v3213_v57 = vld [vmem:[#allocation2 + $0xc0] sm:$0xf]  ;;  %v16473_v6 = vsel %vm15689_vm14, %v4039_v15, %v4040_v49 }
 0x134   : > { %14129 = vmatprep.subr.bf16.mxu1 %v16441_v46  ;;  %v16476_v2 = vld [vmem:[#allocation2 + $0xc4] sm:$0xf]  ;;  %v16478_v8 = vld [vmem:[#allocation2 + $0xc8] sm:$0x1]  ;;  %v3577_v52 = vshrl.u32 %v3213_v57, 16  ;;  %v3580_v25 = vshll.u32 %v3213_v57, 16  ;;  %v16493_v57 = vsel %vm15689_vm14, %v12398_v42, %v4051_v44  ;;  %v16497_v27 = vsel %vm15689_vm14, %v12399_v37, %v4058_v45 }
 0x135   : > { %v3586_v0 = vshll.u32 %v16476_v2, 16  ;;  %v3590_v49 = vshrl.u32 %v16476_v2, 16  ;;  %v3596_v54 = vshll.u32 %v16478_v8, 16  ;;  %20759 = vst [vmem:[#allocation10_spill] sm:$0xff] %v16497_v27  ;;  %v16501_v28 = vsel %vm15689_vm14, %v4053_v26, %v4054_v11  ;;  %v16717_v27 = vpop.f32.mrf.mxu1 }
 0x136   : > { %13970 = vmatmul.mubr.bf16.gmra.mxu1 %v14804_v30  ;;  %v3579_v3 = vrot.slane %v3577_v52, 4  ;;  %v3582_v15 = vrot.slane %v3580_v25, 5  ;;  %20760 = vst [vmem:[#allocation11_spill] sm:$0xff] %v16501_v28  ;;  %v4061_v52 = vrot.slane %v16199_v47, 5  ;;  %v14808_v25 = vld [vmem:[#allocation2 + $0x90] sm:$0xff]   ;;  %v12400_v44 = vrot.slane %v3933_v12, 9 }
 0x137   : > { %13973 = vmatprep.mubr.bf16.mxu1 %v14806_v22  ;;  %v3588_v53 = vrot.slane %v3586_v0, 5  ;;  %v3592_v30 = vrot.slane %v3590_v49, 4  ;;  %v3598_v19 = vrot.slane %v3596_v54, 5  ;;  %v4060_v22 = vrot.slane %v4058_v45, 4  ;;  %v3935_v49 = vld [vmem:[#allocation2 + $0xa8] sm:$0xe] }
 0x138   : > { %v3583_v34 = vor.u32 %v3582_v15, %v3579_v3  ;;  %v4065_v0 = vrot.slane %v16207_v48, 5  ;;  %v14810_v54 = vld [vmem:[#allocation2 + $0x9c] sm:$0xff]   ;;  %v4068_v11 = vrot.slane %v16217_v32, 5  ;;  %v12401_v45 = vrot.slane %v3934_v5, 9  ;;  %v3936_v32 = vld [vmem:[#allocation2 + $0xb4] sm:$0xe] }
 0x139   : > { %v3593_v29 = vor.u32 %v3592_v30, %v3588_v53  ;;  %v16509_v3 = vsel %vm15689_vm14, %v4060_v22, %v4061_v52  ;;  %v4072_v30 = vrot.slane %v16235_v35, 5  ;;  %v4075_v22 = vrot.slane %v16240_v13, 5  ;;  %20785 = vst [vmem:[#allocation30_spill] sm:$0xff] %v16717_v27 }
 0x13a   : > { %v3584_v37 = vrot.slane %v3583_v34, 4  ;;  %20761 = vst [vmem:[#allocation12_spill] sm:$0xff] %v16509_v3  ;;  %v16516_v26 = vsel %vm15689_vm14, %v12400_v44, %v4065_v0  ;;  %v4067_v12 = vrot.slane %v4065_v0, 4  ;;  %v14818_v34 = vld [vmem:[#allocation2 + $0x18] sm:$0xff]   ;;  %v12402_v52 = vrot.slane %v3935_v49, 9 }
 0x13b   : > { %v3594_v15 = vrot.slane %v3593_v29, 4  ;;  %20762 = vst [vmem:[#allocation13_spill] sm:$0xff] %v16516_v26  ;;  %v4079_v44 = vrot.slane %v16254_v41, 5  ;;  %v4082_v0 = vrot.slane %v16269_v38, 5  ;;  %v12403_v41 = vrot.slane %v3936_v32, 9  ;;  %v14836_v3 = vld [vmem:[%s20620_s1 + $0x1d8] sm:$0xff]  }
 0x13c   : > { %v3589_v48 = vsel %vm15241_vm9, %v3584_v37, %v3588_v53  ;;  %v16526_v5 = vsel %vm15689_vm14, %v4067_v12, %v4068_v11  ;;  %v372_v53 = vld [vmem:[#allocation2 + $0xcc] sm:$0x1]  ;;  %v3937_v37 = vld [vmem:[#allocation2 + $0xc0] sm:$0xe]  ;;  %v4086_v38 = vrot.slane %v16281_v39, 5 }
 0x13d   : > { %v3599_v29 = vsel %vm15241_vm9, %v3594_v15, %v3598_v19  ;;  %20763 = vst [vmem:[#allocation14_spill] sm:$0xff] %v16526_v5  ;;  %v4074_v19 = vrot.slane %v4072_v30, 4  ;;  %v16538_v49 = vsel %vm15689_vm14, %v12402_v52, %v4079_v44  ;;  %v4081_v11 = vrot.slane %v4079_v44, 4 }
 0x13e   : > { %13974 = vmatmul.mubr.bf16.gmra.mxu1 %v14808_v25  ;;  %v12380_v35 = vcombine.low %v3589_v48, %v3599_v29  ;;  %v16534_v25 = vsel %vm15689_vm14, %v12401_v45, %v4072_v30  ;;  %20765 = vst [vmem:[#allocation16_spill] sm:$0xff] %v16538_v49  ;;  %v4089_v15 = vrot.slane %v16295_v51, 5  ;;  %v373_v45 = vsel %vm15175_vm3, 0, %v372_v53  ;;  %v14812_v48 = vld [vmem:[#allocation2 + $0xa8] sm:$0xff]   ;;  %v14814_v51 = vld [vmem:[#allocation2 + $0xb4] sm:$0xff]  }
 0x13f   : > { %13977 = vmatprep.mubr.bf16.mxu1 %v14810_v54  ;;  %20764 = vst [vmem:[#allocation15_spill] sm:$0xff] %v16534_v25  ;;  %v16543_v54 = vsel %vm15689_vm14, %v4074_v19, %v4075_v22  ;;  %v12404_v12 = vrot.slane %v3937_v37, 9  ;;  %v16552_v52 = vsel %vm15689_vm14, %v4081_v11, %v4082_v0  ;;  %v16556_v39 = vsel %vm15689_vm14, %v12403_v41, %v4086_v38  ;;  %v14819_v0 = vld [vmem:[#allocation2 + $0x24] sm:$0xff]   ;;  %v14822_v19 = vld [vmem:[#allocation2 + $0x30] sm:$0xff]   ;;  %v4807_v41 = vld [vmem:[#allocation2 + $0x18] sm:$0xf] }
 0x140   : > { %14030 = vmatmul.mubr.bf16.gmra.mxu0 %v12380_v35  ;;  %20766 = vst [vmem:[#allocation17_spill] sm:$0xff] %v16543_v54  ;;  %20767 = vst [vmem:[#allocation18_spill] sm:$0xff] %v16552_v52  ;;  %v4088_v22 = vrot.slane %v4086_v38, 4  ;;  %v4093_v29 = vrot.slane %v16476_v2, 5  ;;  %v14825_v2 = vld [vmem:[%s20620_s1 + $0x230] sm:$0xff]   ;;  %v14834_v54 = vld [vmem:[#allocation2 + $0x78] sm:$0xff]  }
 0x141   : > { %14097 = vmatprep.mubr.bf16.mxu0 %v14818_v34  ;;  %20768 = vst [vmem:[#allocation19_spill] sm:$0xff] %v16556_v39  ;;  %374 = vst [vmem:[#allocation2 + $0xcc] sm:$0x1] %v373_v45  ;;  %v4096_v34 = vrot.slane %v16478_v8, 5  ;;  %v16575_v8 = vpop.f32.mrf.mxu0  ;;  %v14816_v45 = vld [vmem:[#allocation2 + $0xc0] sm:$0xff]  }
 0x142   : > { %v16564_v44 = vsel %vm15689_vm14, %v4088_v22, %v4089_v15  ;;  %v16570_v37 = vsel %vm15689_vm14, %v12404_v12, %v4093_v29  ;;  %v4095_v35 = vrot.slane %v4093_v29, 4  ;;  %20771 = vst [vmem:[#allocation22_spill] sm:$0xff] %v16575_v8  ;;  %v16583_v15 = vld [vmem:[#allocation2 + $0x1c] sm:$0xf]  ;;  %v4856_v12 = vshrl.u32 %v4807_v41, 16 }
 0x143   : > { %20769 = vst [vmem:[#allocation20_spill] sm:$0xff] %v16564_v44  ;;  %20770 = vst [vmem:[#allocation21_spill] sm:$0xff] %v16570_v37  ;;  %v14823_v22 = vld [vmem:[#allocation2 + $0x3c] sm:$0xff]   ;;  %v16589_v29 = vpop.f32.mrf.mxu0  ;;  %v4810_v38 = vld [vmem:[#allocation2 + $0x24] sm:$0xf]  ;;  %v20776_v37 = vrot.slane %v16583_v15, 5 }
 0x144   : > { %v16579_v11 = vsel %vm15689_vm14, %v4095_v35, %v4096_v34  ;;  %20773 = vst [vmem:[#allocation24_spill] sm:$0xff] %v16589_v29  ;;  %v14826_v34 = vld [vmem:[#allocation2 + $0x48] sm:$0xff]   ;;  %v4865_v35 = vshll.u32 %v16583_v15, 16  ;;  %v4858_v32 = vrot.slane %v4856_v12, 4  ;;  %v4880_v47 = vshrl.u32 %v4810_v38, 16  ;;  %v14830_v29 = vld [vmem:[#allocation2 + $0x60] sm:$0xff]  }
 0x145   : > { %20772 = vst [vmem:[#allocation23_spill] sm:$0xff] %v16579_v11  ;;  %v16600_v53 = vld [vmem:[#allocation2 + $0x28] sm:$0xf]  ;;  %v16605_v13 = vpop.f32.mrf.mxu0  ;;  %v4883_v42 = vshll.u32 %v4810_v38, 16  ;;  %v16614_v12 = vld [vmem:[#allocation2 + $0x2c] sm:$0x1] }
 0x146   : > { %13978 = vmatmul.mubr.bf16.gmra.mxu1 %v14812_v48  ;;  %v4859_v48 = vshll.u32 %v4807_v41, 16  ;;  %v16598_v41 = vld [vmem:[#allocation2 + $0x18] sm:$0xe]  ;;  %20774 = vst [vmem:[#allocation25_spill] sm:$0xff] %v16605_v13  ;;  %v16607_v20 = vrot.slane %v4865_v35, 5  ;;  %v4889_v4 = vshll.u32 %v16600_v53, 16 }
 0x147   : > { %13981 = vmatprep.mubr.bf16.mxu1 %v14814_v51  ;;  %v14829_v51 = vld [vmem:[%s20620_s1 + $0x228] sm:$0xff]   ;;  %v14837_v38 = vld [vmem:[%s20620_s1 + $0x218] sm:$0xff]   ;;  %v16628_v9 = vpop.f32.mrf.mxu0  ;;  %v4882_v13 = vrot.slane %v4880_v47, 4  ;;  %v4904_v47 = vshrl.u32 %v4813_v61, 16  ;;  %v4917_v44 = vshrl.u32 %v16616_v21, 16 }
 0x148   : > { %14098 = vmatmul.mubr.bf16.vlgmr.msra.gmra.mxu0 %v14819_v0  ;;  %v4869_v0 = vshrl.u32 %v16583_v15, 16  ;;  %v4861_v30 = vrot.slane %v4859_v48, 5  ;;  %20775 = vst [vmem:[#allocation26_spill] sm:$0xff] %v16628_v9  ;;  %v16633_v11 = vrot.slane %v4889_v4, 5  ;;  %v16642_v9 = vrot.slane %v20776_v37, 4 }
 0x149   : > { %14178 = vmatpush3.bf16.msra.mxu0 %v16312_v33  ;;  %14101 = vmatprep.mubr.bf16.mxu0 %v14822_v19  ;;  %v14833_v33 = vld [vmem:[%s20620_s1 + $0x220] sm:$0xff]   ;;  %v4816_v37 = vld [vmem:[#allocation2 + $0x3c] sm:$0xf]  ;;  %v4819_v49 = vld [vmem:[#allocation2 + $0x48] sm:$0xf] }
 0x14a   : > { %14179 = vmatprep.subr.bf16.mxu0 %v14825_v2  ;;  %v16596_v19 = vld [vmem:[#allocation2 + $0x20] sm:$0x1]  ;;  %v4871_v31 = vrot.slane %v4869_v0, 4  ;;  %v4862_v23 = vor.u32 %v4861_v30, %v4858_v32  ;;  %v14841_v0 = vld [vmem:[%s20620_s1 + $0x210] sm:$0xff]   ;;  %v4907_v30 = vshll.u32 %v4813_v61, 16  ;;  %v20778_v61 = vcombine.low %v16381_v24, %v16395_v60  ;;  %v14828_v32 = vld [vmem:[%s20620_s1 + $0x1e8] sm:$0xff]  }
 0x14b   : > { %v4875_v35 = vshll.u32 %v16596_v19, 16  ;;  %v16653_v39 = vld [vmem:[#allocation2 + $0x40] sm:$0xf]  ;;  %v4899_v60 = vshll.u32 %v16614_v12, 16  ;;  %v4931_v52 = vshll.u32 %v4816_v37, 16  ;;  %v4955_v5 = vshll.u32 %v4819_v49, 16 }
 0x14c   : > { %v4872_v8 = vor.u32 %v4871_v31, %v16607_v20  ;;  %v20777_v31 = vcombine.low %v16364_v56, %v16373_v43  ;;  %v16659_v56 = vpop.f32.mrf.mxu0  ;;  %v16661_v43 = vrot.slane %v4862_v23, 4 }
 0x14d   : > { %14180 = vmatpush3.bf16.msra.mxu0 %v14825_v2  ;;  %v4893_v2 = vshrl.u32 %v16600_v53, 16  ;;  %v16648_v4 = vrot.slane %v4875_v35, 5  ;;  %20779 = vst [vmem:[#allocation27_spill] sm:$0xff] %v16659_v56  ;;  %v4928_v56 = vshrl.u32 %v4816_v37, 16  ;;  %v16694_v25 = vrot.slane %v4899_v60, 5 }
 0x14e   : > { %13982 = vmatmul.mubr.bf16.gmra.mxu1 %v14816_v45  ;;  %14181 = vmatprep.subr.bf16.mxu0 %v14829_v51  ;;  %v14827_v45 = vld [vmem:[#allocation2 + $0x54] sm:$0xff]   ;;  %v20784_v60 = vcombine.low %v16385_v7, %v16402_v10  ;;  %v20787_v7 = vcombine.low %v16408_v36, %v16424_v62 }
 0x14f   : > { %14049 = vmatprep.mubr.bf16.mxu1 %v12421_v14  ;;  %v14824_v14 = vld [vmem:[%s20620_s1 + $0x1f0] sm:$0xff]   ;;  %v4895_v48 = vrot.slane %v4893_v2, 4  ;;  %v4913_v2 = vshll.u32 %v16616_v21, 16  ;;  %v16735_v62 = vld [vmem:[#allocation2 + $0x58] sm:$0xf] }
 0x150   : > { %14102 = vmatmul.mubr.bf16.gmra.mxu0 %v14823_v22  ;;  %v16635_v22 = vld [vmem:[#allocation2 + $0x38] sm:$0x1] }
 0x151   : > { %14105 = vmatprep.mubr.bf16.mxu0 %v14826_v34  ;;  %14182 = vmatpush3.bf16.msra.mxu0 %v14829_v51  ;;  %v4885_v34 = vrot.slane %v4883_v42, 5  ;;  %v16630_v51 = vld [vmem:[#allocation2 + $0x30] sm:$0xe]  ;;  %v4896_v24 = vor.u32 %v4895_v48, %v16633_v11  ;;  %v4909_v42 = vrot.slane %v4907_v30, 5  ;;  %v14845_v48 = vld [vmem:[%s20620_s1 + $0x208] sm:$0xff]   ;;  %v16685_v23 = vrot.slane %v4913_v2, 5  ;;  %v16689_v30 = vpop.f32.mrf.mxu0 }
 0x152   : > { %14183 = vmatprep.subr.bf16.mxu0 %v14833_v33  ;;  %20781 = vst [vmem:[#allocation28_spill] sm:$0xff] %v16689_v30  ;;  %v16697_v2 = vld [vmem:[#allocation2 + $0x4c] sm:$0xf] }
 0x153   : > { %v16702_v30 = vrot.slane %v4896_v24, 4  ;;  %v16727_v10 = vpop.f32.mrf.mxu0  ;;  %v4961_v36 = vshll.u32 %v16697_v2, 16 }
 0x154   : > { %20788 = vst [vmem:[#allocation32_spill] sm:$0xff] %v16727_v10 }
 0x155   : > { %14184 = vmatpush3.bf16.msra.mxu0 %v14833_v33  ;;  %v20780_v33 = vrot.slane %v16600_v53, 5 }
 0x156   : > { %14050 = vmatmul.mubr.bf16.vlgmr.msra.gmra.mxu1 %v20777_v31  ;;  %v4886_v31 = vor.u32 %v4885_v34, %v4882_v13  ;;  %14185 = vmatprep.subr.bf16.mxu0 %v14837_v38  ;;  %v4923_v13 = vshll.u32 %v16635_v22, 16  ;;  %v16677_v34 = vld [vmem:[#allocation2 + $0x3c] sm:$0xe] }
 0x157   : > { %14130 = vmatpush3.bf16.msra.mxu1 %v16441_v46  ;;  %14053 = vmatprep.mubr.bf16.mxu1 %v20778_v61  ;;  %v16665_v35 = vrot.slane %v20780_v33, 4  ;;  %v16670_v46 = vrot.slane %v4872_v8, 4  ;;  %v4906_v33 = vrot.slane %v4904_v47, 4  ;;  %v14832_v8 = vld [vmem:[%s20620_s1 + $0x1e0] sm:$0xff]   ;;  %v14831_v47 = vld [vmem:[#allocation2 + $0x6c] sm:$0xff]  }
 0x158   : > { %14131 = vmatprep.subr.bf16.mxu1 %v14824_v14  ;;  %14106 = vmatmul.mubr.bf16.gmra.mxu0 %v14827_v45  ;;  %v4919_v45 = vrot.slane %v4917_v44, 4  ;;  %v16687_v61 = vld [vmem:[#allocation2 + $0x44] sm:$0x1]  ;;  %v4941_v44 = vshrl.u32 %v16653_v39, 16  ;;  %v16709_v26 = vrot.slane %v4923_v13, 5 }
 0x159   : > { %14109 = vmatprep.mubr.bf16.mxu0 %v14830_v29  ;;  %14186 = vmatpush3.bf16.msra.mxu0 %v14837_v38  ;;  %v16691_v29 = vrot.slane %v4886_v31, 4  ;;  %v4937_v38 = vshll.u32 %v16653_v39, 16  ;;  %v20782_v31 = vrot.slane %v16616_v21, 5  ;;  %v4910_v24 = vor.u32 %v4909_v42, %v4906_v33  ;;  %v16722_v13 = vld [vmem:[#allocation2 + $0x48] sm:$0xe] }
 0x15a   : > { %14187 = vmatprep.subr.bf16.mxu0 %v14841_v0  ;;  %20783 = vst [vmem:[#allocation29_spill] sm:$0xff] %v16709_v26  ;;  %v4920_v28 = vor.u32 %v4919_v45, %v16685_v23  ;;  %20786 = vst [vmem:[#allocation31_spill] sm:$0xff] %v16722_v13  ;;  %v4933_v26 = vrot.slane %v4931_v52, 5  ;;  %v4822_v42 = vld [vmem:[#allocation2 + $0x54] sm:$0xf]  ;;  %v4943_v33 = vrot.slane %v4941_v44, 4 }
 0x15b   : > { %14132 = vmatpush3.bf16.msra.mxu1 %v14824_v14  ;;  %v14849_v14 = vld [vmem:[%s20620_s1 + $0x200] sm:$0xff]   ;;  %v16706_v37 = vrot.slane %v20782_v31, 4  ;;  %v16729_v27 = vrot.slane %v4937_v38, 5  ;;  %v16732_v45 = vld [vmem:[#allocation2 + $0x50] sm:$0x1]  ;;  %v4952_v31 = vshrl.u32 %v4819_v49, 16 }
 0x15c   : > { %14133 = vmatprep.subr.bf16.mxu1 %v14828_v32  ;;  %v16739_v52 = vrot.slane %v4910_v24, 4  ;;  %v14835_v49 = vld [vmem:[#allocation2 + $0x84] sm:$0xff]   ;;  %v16749_v10 = vrot.slane %v4920_v28, 4  ;;  %v14838_v24 = vld [vmem:[#allocation2 + $0x90] sm:$0xff]   ;;  %v4979_v28 = vshll.u32 %v4822_v42, 16 }
 0x15d   : > { %14188 = vmatpush3.bf16.msra.mxu0 %v14841_v0  ;;  %v4947_v0 = vshll.u32 %v16687_v61, 16  ;;  %v4944_v44 = vor.u32 %v4943_v33, %v16729_v27  ;;  %v14844_v33 = vld [vmem:[%s20620_s1 + $0x1c8] sm:$0xff]  }
 0x15e   : > { %14054 = vmatmul.mubr.bf16.gmra.mxu1 %v20784_v60  ;;  %v4930_v60 = vrot.slane %v4928_v56, 4  ;;  %14189 = vmatprep.subr.bf16.mxu0 %v14845_v48  ;;  %20790 = vst [vmem:[#allocation34_spill] sm:$0xff] %v16739_v52  ;;  %v20791_v56 = vrot.slane %v16653_v39, 5  ;;  %20793 = vst [vmem:[#allocation36_spill] sm:$0xff] %v16749_v10  ;;  %v16759_v52 = vld [vmem:[#allocation2 + $0x54] sm:$0xe] }
 0x15f   : > { %14057 = vmatprep.mubr.bf16.mxu1 %v20787_v7  ;;  %14134 = vmatpush3.bf16.msra.mxu1 %v14828_v32  ;;  %v16737_v32 = vpop.f32.mrf.mxu1  ;;  %v4965_v7 = vshrl.u32 %v16697_v2, 16  ;;  %v4954_v10 = vrot.slane %v4952_v31, 4  ;;  %v20798_v31 = vcombine.low %v16435_v16, %v16454_v58  ;;  %v4989_v58 = vshrl.u32 %v16735_v62, 16 }
 0x160   : > { %14135 = vmatprep.subr.bf16.mxu1 %v14832_v8  ;;  %14110 = vmatmul.mubr.bf16.gmra.mxu0 %v14831_v47  ;;  %20789 = vst [vmem:[#allocation33_spill] sm:$0xff] %v16737_v32  ;;  %v16743_v38 = vrot.slane %v20791_v56, 4  ;;  %v16747_v47 = vpop.f32.mrf.mxu0  ;;  %v16751_v32 = vrot.slane %v4947_v0, 5  ;;  %v14840_v56 = vld [vmem:[%s20620_s1 + $0x1d0] sm:$0xff]   ;;  %v4971_v0 = vshll.u32 %v16732_v45, 16 }
 0x161   : > { %14113 = vmatprep.mubr.bf16.mxu0 %v14834_v54  ;;  %14190 = vmatpush3.bf16.msra.mxu0 %v14845_v48  ;;  %20792 = vst [vmem:[#allocation35_spill] sm:$0xff] %v16747_v47  ;;  %v4934_v54 = vor.u32 %v4933_v26, %v4930_v60  ;;  %v4976_v47 = vshrl.u32 %v4822_v42, 16  ;;  %v4957_v26 = vrot.slane %v4955_v5, 5  ;;  %v16761_v60 = vrot.slane %v4961_v36, 5  ;;  %v16764_v48 = vld [vmem:[#allocation2 + $0x5c] sm:$0x1]  ;;  %v16769_v13 = vpop.f32.mrf.mxu1 }
 0x162   : > { %14191 = vmatprep.subr.bf16.mxu0 %v14849_v14  ;;  %20794 = vst [vmem:[#allocation37_spill] sm:$0xff] %v16751_v32  ;;  %20795 = vst [vmem:[#allocation38_spill] sm:$0xff] %v16764_v48  ;;  %v20796_v32 = vcombine.low %v16428_v1, %v16445_v40  ;;  %v4967_v42 = vrot.slane %v4965_v7, 4  ;;  %v4985_v5 = vshll.u32 %v16735_v62, 16  ;;  %v16778_v36 = vpop.f32.mrf.mxu0  ;;  %v20800_v1 = vrot.slane %v16583_v15, 5 }
 0x163   : > { %14136 = vmatpush3.bf16.msra.mxu1 %v14832_v8  ;;  %v20654_v8 = vrot.slane %v16697_v2, 5  ;;  %20797 = vst [vmem:[#allocation39_spill] sm:$0xff] %v16769_v13  ;;  %20799 = vst [vmem:[#allocation40_spill] sm:$0xff] %v16778_v36  ;;  %v20801_v40 = vrot.slane %v16598_v41, 9  ;;  %v16795_v16 = vrot.slane %v4934_v54, 4  ;;  %v16807_v54 = vrot.slane %v4971_v0, 5  ;;  %v16812_v36 = vpop.f32.mrf.mxu1 }
 0x164   : > { %14137 = vmatprep.subr.bf16.mxu1 %v14836_v3  ;;  %v16810_v13 = vld [vmem:[#allocation2 + $0x60] sm:$0xe]  ;;  %20803 = vst [vmem:[#allocation41_spill] sm:$0xff] %v16812_v36  ;;  %v20805_v41 = vrot.slane %v16600_v53, 5  ;;  %v4828_v53 = vld [vmem:[#allocation2 + $0x6c] sm:$0xf] }
 0x165   : > { %14192 = vmatpush3.bf16.msra.mxu0 %v14849_v14  ;;  %v20802_v14 = vrot.slane %v16596_v19, 5  ;;  %v16800_v15 = vrot.slane %v20654_v8, 4  ;;  %v16803_v19 = vld [vmem:[#allocation2 + $0x64] sm:$0xf]  ;;  %v14839_v0 = vld [vmem:[#allocation2 + $0x9c] sm:$0xff]   ;;  %v20806_v8 = vrot.slane %v16609_v55, 9  ;;  %v4878_v55 = vsel %vm15241_vm9, %v16670_v46, %v16648_v4 }
 0x166   : > { %14058 = vmatmul.mubr.bf16.gmra.mxu1 %v20796_v32  ;;  %v16786_v32 = vsel %vm15689_vm14, %v20801_v40, %v20800_v1  ;;  %v4981_v1 = vrot.slane %v4979_v28, 5  ;;  %v16805_v40 = vrot.slane %v4944_v44, 4  ;;  %v4968_v28 = vor.u32 %v4967_v42, %v16761_v60 }
 0x167   : > { %14061 = vmatprep.mubr.bf16.mxu1 %v20798_v31  ;;  %14138 = vmatpush3.bf16.msra.mxu1 %v14836_v3  ;;  %v16793_v7 = vsel %vm15689_vm14, %v16642_v9, %v20802_v14  ;;  %v4825_v3 = vld [vmem:[#allocation2 + $0x60] sm:$0xf]  ;;  %v4978_v31 = vrot.slane %v4976_v47, 4  ;;  %v4958_v9 = vor.u32 %v4957_v26, %v4954_v10  ;;  %v16820_v10 = vrot.slane %v4985_v5, 5  ;;  %v16822_v26 = vld [vmem:[#allocation2 + $0x68] sm:$0x1]  ;;  %v16824_v14 = vpop.f32.mrf.mxu0 }
 0x168   : > { %14139 = vmatprep.subr.bf16.mxu1 %v14840_v56  ;;  %14114 = vmatmul.mubr.bf16.gmra.mxu0 %v14835_v49  ;;  %v14848_v47 = vld [vmem:[%s20620_s1 + $0x1c0] sm:$0xff]   ;;  %20804 = vst [vmem:[#allocation42_spill] sm:$0xff] %v16824_v14  ;;  %v16834_v42 = vsel %vm15689_vm14, %v20806_v8, %v20805_v41  ;;  %v4991_v44 = vrot.slane %v4989_v58, 4  ;;  %v4995_v5 = vshll.u32 %v16764_v48, 16  ;;  %v14842_v49 = vld [vmem:[#allocation2 + $0xa8] sm:$0xff]   ;;  %v5003_v14 = vshll.u32 %v4825_v3, 16 }
 0x169   : > { %14117 = vmatprep.mubr.bf16.mxu0 %v14838_v24  ;;  %v4982_v36 = vor.u32 %v4981_v1, %v4978_v31  ;;  %v5000_v24 = vshrl.u32 %v4825_v3, 16  ;;  %v20807_v8 = vrot.slane %v16614_v12, 5  ;;  %v5009_v41 = vshll.u32 %v16803_v19, 16  ;;  %v16859_v31 = vpop.f32.mrf.mxu1  ;;  %v16873_v48 = vpop.f32.mrf.mxu0 }
 0x16a   : > { %v20808_v3 = vcombine.low %v16462_v18, %v16473_v6  ;;  %20809 = vst [vmem:[#allocation43_spill] sm:$0xff] %v16859_v31  ;;  %v16861_v4 = vrot.slane %v4958_v9, 4  ;;  %v16863_v12 = vrot.slane %v4968_v28, 4  ;;  %v20810_v46 = vrot.slane %v16735_v62, 5  ;;  %20812 = vst [vmem:[#allocation44_spill] sm:$0xff] %v16873_v48 }
 0x16b   : > { %14140 = vmatpush3.bf16.msra.mxu1 %v14840_v56  ;;  %v4868_v56 = vsel %vm15241_vm9, %v16661_v43, %v16607_v20  ;;  %v16850_v58 = vsel %vm15689_vm14, %v16665_v35, %v20807_v8  ;;  %v5013_v20 = vshrl.u32 %v16803_v19, 16  ;;  %v16854_v43 = vld [vmem:[#allocation2 + $0x70] sm:$0xf]  ;;  %v20811_v8 = vcombine.low %v16466_v63, %v16484_v50  ;;  %v16883_v63 = vld [vmem:[#allocation2 + $0x74] sm:$0x1]  ;;  %v16889_v9 = vpop.f32.mrf.mxu1 }
 0x16c   : > { %14141 = vmatprep.subr.bf16.mxu1 %v14844_v33  ;;  %v16867_v35 = vrot.slane %v20810_v46, 4  ;;  %v4992_v18 = vor.u32 %v4991_v44, %v16820_v10  ;;  %v16876_v6 = vrot.slane %v4995_v5, 5  ;;  %v5002_v46 = vrot.slane %v5000_v24, 4  ;;  %20814 = vst [vmem:[#allocation46_spill] sm:$0xff] %v16883_v63  ;;  %v16885_v50 = vld [vmem:[#allocation2 + $0x6c] sm:$0xe] }
 0x16d   : > { %v5005_v1 = vrot.slane %v5003_v14, 5  ;;  %v5019_v31 = vshll.u32 %v16822_v26, 16  ;;  %v5015_v44 = vrot.slane %v5013_v20, 4  ;;  %v5024_v5 = vshrl.u32 %v4828_v53, 16  ;;  %20816 = vst [vmem:[#allocation48_spill] sm:$0xff] %v16889_v9 }
 0x16e   : > { %14062 = vmatmul.mubr.bf16.gmra.mxu1 %v20808_v3  ;;  %20813 = vst [vmem:[#allocation45_spill] sm:$0xff] %v16876_v6  ;;  %v16880_v3 = vrot.slane %v4982_v36, 4  ;;  %v16891_v28 = vcombine.low %v4868_v56, %v4878_v55  ;;  %v5033_v14 = vshll.u32 %v16854_v43, 16  ;;  %v5037_v24 = vshrl.u32 %v16854_v43, 16  ;;  %v4831_v48 = vld [vmem:[#allocation2 + $0x78] sm:$0xf]  ;;  %v16897_v6 = vpop.f32.mrf.mxu0 }
 0x16f   : > { %14065 = vmatprep.mubr.bf16.mxu1 %v20811_v8  ;;  %14142 = vmatpush3.bf16.msra.mxu1 %v14844_v33  ;;  %v16887_v33 = vrot.slane %v5009_v41, 5  ;;  %v5027_v8 = vshll.u32 %v4828_v53, 16  ;;  %20817 = vst [vmem:[#allocation49_spill] sm:$0xff] %v16897_v6  ;;  %v20818_v56 = vrot.slane %v16616_v21, 5  ;;  %v20819_v53 = vrot.slane %v16630_v51, 9 }
 0x170   : > { %14143 = vmatprep.subr.bf16.mxu1 %v14848_v47  ;;  %14118 = vmatmul.mubr.bf16.gmra.mxu0 %v14839_v0  ;;  %v4892_v0 = vsel %vm15241_vm9, %v16691_v29, %v16633_v11  ;;  %v16922_v11 = vld [vmem:[#allocation2 + $0x7c] sm:$0xf]  ;;  %v14843_v29 = vld [vmem:[#allocation2 + $0xb4] sm:$0xff]   ;;  %v16924_v20 = vrot.slane %v4992_v18, 4  ;;  %v5006_v51 = vor.u32 %v5005_v1, %v5002_v46  ;;  %v20824_v18 = vld [vmem:[#allocation11_spill] sm:$0xff]  ;;  %v5026_v1 = vrot.slane %v5024_v5, 4 }
 0x171   : > { %20815 = vst [vmem:[#allocation47_spill] sm:$0xff] %v16887_v33  ;;  %14121 = vmatprep.mubr.bf16.mxu0 %v14842_v49  ;;  %v4902_v49 = vsel %vm15241_vm9, %v16702_v30, %v16694_v25  ;;  %v16913_v55 = vsel %vm15689_vm14, %v20819_v53, %v20818_v56  ;;  %v20821_v25 = vrot.slane %v16803_v19, 5  ;;  %v16930_v30 = vrot.slane %v5019_v31, 5  ;;  %v14846_v56 = vld [vmem:[#allocation2 + $0xc0] sm:$0xff]   ;;  %v16936_v36 = vld [vmem:[#allocation2 + $0x78] sm:$0xe] }
 0x172   : > { %20823 = vst [vmem:[#allocation51_spill] sm:$0xff] %v16936_v36  ;;  %v20825_v9 = vcombine.low %v16493_v57, %v20824_v18  ;;  %v5029_v31 = vrot.slane %v5027_v8, 5  ;;  %v16943_v46 = vrot.slane %v5033_v14, 5  ;;  %v5039_v6 = vrot.slane %v5037_v24, 4  ;;  %v20829_v53 = vld [vmem:[#allocation12_spill] sm:$0xff] }
 0x173   : > { %14144 = vmatpush3.bf16.msra.mxu1 %v14848_v47  ;;  %v20820_v47 = vrot.slane %v16635_v22, 5  ;;  %v16928_v21 = vrot.slane %v20821_v25, 4  ;;  %20822 = vst [vmem:[#allocation50_spill] sm:$0xff] %v16930_v30  ;;  %v5016_v22 = vor.u32 %v5015_v44, %v16887_v33  ;;  %v16941_v25 = vpop.f32.mrf.mxu1  ;;  %v4834_v44 = vld [vmem:[#allocation2 + $0x84] sm:$0xf]  ;;  %v5051_v18 = vshll.u32 %v4831_v48, 16 }
 0x174   : > { %20826 = vst [vmem:[#allocation11_spill] sm:$0xff] %v16941_v25  ;;  %20827 = vst [vmem:[#allocation52_spill] sm:$0xff] %v16943_v46  ;;  %v20828_v30 = vld [vmem:[#allocation10_spill] sm:$0xff]  ;;  %v20833_v5 = vrot.slane %v16653_v39, 5  ;;  %v20834_v8 = vrot.slane %v16677_v34, 9  ;;  %v20835_v24 = vrot.slane %v16687_v61, 5 }
 0x175   : > { %v16920_v41 = vsel %vm15689_vm14, %v16706_v37, %v20820_v47  ;;  %v20830_v33 = vcombine.low %v20828_v30, %v20829_v53  ;;  %v16948_v37 = vpop.f32.mrf.mxu0  ;;  %v16950_v47 = vcombine.low %v4892_v0, %v4902_v49  ;;  %v5043_v0 = vshll.u32 %v16883_v63, 16  ;;  %v16970_v49 = vld [vmem:[#allocation2 + $0x80] sm:$0x1]  ;;  %v20838_v61 = vld [vmem:[#allocation29_spill] sm:$0xff]  ;;  %v20839_v53 = vld [vmem:[#allocation36_spill] sm:$0xff]  ;;  %v16988_v57 = vpop.f32.mrf.mxu1 }
 0x176   : > { %14066 = vmatmul.mubr.bf16.gmra.mxu1 %v20825_v9  ;;  %20831 = vst [vmem:[#allocation10_spill] sm:$0xff] %v16948_v37  ;;  %v5048_v9 = vshrl.u32 %v4831_v48, 16  ;;  %v16960_v14 = vsel %vm15689_vm14, %v20834_v8, %v20833_v5  ;;  %v5057_v48 = vshll.u32 %v16922_v11, 16  ;;  %v20837_v34 = vld [vmem:[#allocation34_spill] sm:$0xff]  ;;  %v16983_v5 = vrot.slane %v5006_v51, 4  ;;  %20841 = vst [vmem:[#allocation29_spill] sm:$0xff] %v16988_v57 }
 0x177   : > { %14069 = vmatprep.mubr.bf16.mxu1 %v20830_v33  ;;  %20832 = vst [vmem:[#allocation12_spill] sm:$0xff] %v16950_v47  ;;  %v16967_v33 = vsel %vm15689_vm14, %v16743_v38, %v20835_v24  ;;  %v16973_v39 = vpop.f32.mrf.mxu0  ;;  %v4916_v30 = vsel %vm15241_vm9, %v20837_v34, %v16685_v23  ;;  %v4926_v38 = vsel %vm15241_vm9, %v20839_v53, %v20838_v61  ;;  %v5061_v8 = vshrl.u32 %v16922_v11, 16  ;;  %v16986_v24 = vld [vmem:[#allocation2 + $0x88] sm:$0xf]  ;;  %v14847_v63 = vld [vmem:[#allocation2 + $0xcc] sm:$0xff]  }
 0x178   : > { %14122 = vmatmul.mubr.bf16.gmra.mxu0 %v14843_v29  ;;  %20836 = vst [vmem:[#allocation53_spill] sm:$0xff] %v16973_v39  ;;  %20840 = vst [vmem:[#allocation34_spill] sm:$0xff] %v16983_v5  ;;  %v16990_v29 = vrot.slane %v5016_v22, 4  ;;  %v20842_v25 = vrot.slane %v16854_v43, 5  ;;  %v5030_v23 = vor.u32 %v5029_v31, %v5026_v1  ;;  %v5050_v51 = vrot.slane %v5048_v9, 4 }
 0x179   : > { %14125 = vmatprep.mubr.bf16.mxu0 %v14846_v56  ;;  %v16997_v37 = vpop.f32.mrf.mxu0  ;;  %v5053_v61 = vrot.slane %v5051_v18, 5  ;;  %v5072_v53 = vshrl.u32 %v4834_v44, 16  ;;  %v5075_v47 = vshll.u32 %v4834_v44, 16  ;;  %v5040_v5 = vor.u32 %v5039_v6, %v16943_v46  ;;  %v17014_v34 = vld [vmem:[#allocation2 + $0x8c] sm:$0x1]  ;;  %v20849_v6 = vld [vmem:[#allocation13_spill] sm:$0xff] }
 0x17a   : > { %v16994_v39 = vrot.slane %v20842_v25, 4  ;;  %20844 = vst [vmem:[#allocation54_spill] sm:$0xff] %v16997_v37  ;;  %v17000_v57 = vrot.slane %v5043_v0, 5  ;;  %v17003_v22 = vrot.slane %v5057_v48, 5  ;;  %v17005_v25 = vld [vmem:[#allocation2 + $0x84] sm:$0xe]  ;;  %v17009_v31 = vcombine.low %v4916_v30, %v4926_v38  ;;  %v17019_v48 = vpop.f32.mrf.mxu1 }
 0x17b   : > { %v17007_v1 = vpop.f32.mrf.mxu0  ;;  %v5063_v18 = vrot.slane %v5061_v8, 4  ;;  %v5067_v44 = vshll.u32 %v16970_v49, 16  ;;  %20848 = vst [vmem:[#allocation58_spill] sm:$0xff] %v17014_v34  ;;  %v20850_v0 = vld [vmem:[#allocation14_spill] sm:$0xff]  ;;  %20852 = vst [vmem:[#allocation13_spill] sm:$0xff] %v17019_v48  ;;  %v20853_v38 = vrot.slane %v16697_v2, 5 }
 0x17c   : > { %20843 = vst [vmem:[#allocation36_spill] sm:$0xff] %v16994_v39  ;;  %20845 = vst [vmem:[#allocation55_spill] sm:$0xff] %v17000_v57  ;;  %v20851_v37 = vcombine.low %v20849_v6, %v20850_v0  ;;  %v20854_v56 = vld [vmem:[#allocation31_spill] sm:$0xff]  ;;  %v5085_v6 = vshrl.u32 %v16986_v24, 16  ;;  %v20857_v48 = vld [vmem:[#allocation17_spill] sm:$0xff]  ;;  %v20859_v46 = vrot.slane %v16732_v45, 5 }
 0x17d   : > { %20846 = vst [vmem:[#allocation56_spill] sm:$0xff] %v17007_v1  ;;  %20847 = vst [vmem:[#allocation57_spill] sm:$0xff] %v17009_v31  ;;  %v20855_v9 = vrot.slane %v20854_v56, 9  ;;  %v5081_v1 = vshll.u32 %v16986_v24, 16  ;;  %v20856_v0 = vld [vmem:[#allocation15_spill] sm:$0xff]  ;;  %v5054_v56 = vor.u32 %v5053_v61, %v5050_v51  ;;  %v5074_v30 = vrot.slane %v5072_v53, 4  ;;  %v17047_v36 = vpop.f32.mrf.mxu0  ;;  %v17063_v61 = vpop.f32.mrf.mxu1 }
 0x17e   : > { %14070 = vmatmul.mubr.bf16.gmra.mxu1 %v20851_v37  ;;  %v4837_v37 = vld [vmem:[#allocation2 + $0x90] sm:$0xf]  ;;  %v20858_v57 = vcombine.low %v20856_v0, %v20857_v48  ;;  %v17043_v2 = vsel %vm15689_vm14, %v16800_v15, %v20859_v46  ;;  %20860 = vst [vmem:[#allocation14_spill] sm:$0xff] %v17047_v36  ;;  %v17049_v31 = vrot.slane %v5030_v23, 4  ;;  %v17051_v39 = vrot.slane %v5040_v5, 4  ;;  %20863 = vst [vmem:[#allocation15_spill] sm:$0xff] %v17063_v61 }
 0x17f   : > { %v17031_v8 = vsel %vm15689_vm14, %v20855_v9, %v20853_v38  ;;  %v5077_v9 = vrot.slane %v5075_v47, 5  ;;  %v17045_v38 = vld [vmem:[#allocation2 + $0x94] sm:$0xf]  ;;  %v5064_v15 = vor.u32 %v5063_v18, %v17003_v22  ;;  %v17059_v46 = vrot.slane %v5067_v44, 5  ;;  %v17068_v23 = vpop.f32.mrf.mxu0  ;;  %v17074_v44 = vld [vmem:[#allocation2 + $0x98] sm:$0x1] }
 0x180   : > { %14073 = vmatprep.mubr.bf16.mxu1 %v20858_v57  ;;  %v20861_v57 = vrot.slane %v16922_v11, 5  ;;  %14126 = vmatmul.mubr.bf16.gmra.mxu0 %v14847_v63  ;;  %v20864_v5 = vcombine.low %v16786_v32, %v16793_v7  ;;  %20865 = vst [vmem:[#allocation17_spill] sm:$0xff] %v17068_v23  ;;  %v17071_v0 = vrot.slane %v5081_v1, 5  ;;  %v5087_v63 = vrot.slane %v5085_v6, 4  ;;  %v4840_v32 = vld [vmem:[#allocation2 + $0x9c] sm:$0xf] }
 0x181   : > { %20862 = vst [vmem:[#allocation31_spill] sm:$0xff] %v17059_v46  ;;  %v5091_v18 = vshll.u32 %v17014_v34, 16  ;;  %v17078_v47 = vrot.slane %v5054_v56, 4  ;;  %v5078_v45 = vor.u32 %v5077_v9, %v5074_v30  ;;  %v5096_v51 = vshrl.u32 %v4837_v37, 16  ;;  %v17080_v7 = vpop.f32.mrf.mxu0  ;;  %v20874_v36 = vld [vmem:[#allocation18_spill] sm:$0xff]  ;;  %v20882_v34 = vld [vmem:[#allocation20_spill] sm:$0xff] }
 0x182   : > { %v17055_v48 = vrot.slane %v20861_v57, 4  ;;  %14193 = vmatprep.mubr.bf16.mxu0 %v20864_v5  ;;  %20866 = vst [vmem:[#allocation59_spill] sm:$0xff] %v17071_v0  ;;  %v17076_v57 = vld [vmem:[#allocation2 + $0x90] sm:$0xe]  ;;  %v5099_v61 = vshll.u32 %v4837_v37, 16  ;;  %20867 = vst [vmem:[#allocation60_spill] sm:$0xff] %v17080_v7  ;;  %v4964_v30 = vsel %vm15241_vm9, %v16861_v4, %v16761_v60  ;;  %v4974_v37 = vsel %vm15241_vm9, %v16863_v12, %v16807_v54 }
 0x183   : > { %v20868_v5 = vld [vmem:[#allocation37_spill] sm:$0xff]  ;;  %v5105_v53 = vshll.u32 %v17045_v38, 16  ;;  %v5109_v23 = vshrl.u32 %v17045_v38, 16  ;;  %v20869_v56 = vrot.slane %v16735_v62, 5  ;;  %v17113_v60 = vld [vmem:[#allocation2 + $0xa0] sm:$0xf]  ;;  %v17118_v62 = vpop.f32.mrf.mxu1 }
 0x184   : > { %v4950_v1 = vsel %vm15241_vm9, %v16805_v40, %v20868_v5  ;;  %v20870_v40 = vrot.slane %v16759_v52, 9  ;;  %v20871_v5 = vld [vmem:[#allocation38_spill] sm:$0xff]  ;;  %v20873_v4 = vld [vmem:[#allocation16_spill] sm:$0xff]  ;;  %20876 = vst [vmem:[#allocation37_spill] sm:$0xff] %v17118_v62  ;;  %v17120_v52 = vpop.f32.mrf.mxu0  ;;  %v17122_v12 = vrot.slane %v5064_v15, 4 }
 0x185   : > { %v20872_v6 = vrot.slane %v20871_v5, 5  ;;  %v20875_v54 = vcombine.low %v20873_v4, %v20874_v36  ;;  %20877 = vst [vmem:[#allocation38_spill] sm:$0xff] %v17120_v52  ;;  %v5088_v5 = vor.u32 %v5087_v63, %v17071_v0  ;;  %v17134_v36 = vrot.slane %v5078_v45, 4  ;;  %v4843_v62 = vld [vmem:[#allocation2 + $0xa8] sm:$0xf]  ;;  %v17159_v4 = vpop.f32.mrf.mxu1 }
 0x186   : > { %v17104_v9 = vsel %vm15689_vm14, %v20870_v40, %v20869_v56  ;;  %v20878_v56 = vrot.slane %v16986_v24, 5  ;;  %v17139_v52 = vpop.f32.mrf.mxu0  ;;  %v17141_v63 = vld [vmem:[#allocation2 + $0x9c] sm:$0xe]  ;;  %v20887_v45 = vsel %vm15241_vm9, %v16795_v16, %v16729_v27  ;;  %v17155_v15 = vrot.slane %v5105_v53, 5  ;;  %20889 = vst [vmem:[#allocation62_spill] sm:$0xff] %v17159_v4 }
 0x187   : > { %v17111_v7 = vsel %vm15689_vm14, %v16867_v35, %v20872_v6  ;;  %14074 = vmatmul.mubr.bf16.gmra.mxu1 %v20875_v54  ;;  %v17129_v35 = vrot.slane %v5091_v18, 5  ;;  %v20881_v6 = vld [vmem:[#allocation19_spill] sm:$0xff]  ;;  %v20664_v54 = vrot.slane %v17045_v38, 5  ;;  %20885 = vst [vmem:[#allocation20_spill] sm:$0xff] %v17141_v63  ;;  %v5120_v18 = vshrl.u32 %v4840_v32, 16 }
 0x188   : > { %v17126_v40 = vrot.slane %v20878_v56, 4  ;;  %v20883_v46 = vcombine.low %v20881_v6, %v20882_v34  ;;  %20884 = vst [vmem:[#allocation19_spill] sm:$0xff] %v17134_v36  ;;  %v5098_v56 = vrot.slane %v5096_v51, 4  ;;  %v20886_v34 = vcombine.low %v16834_v42, %v16850_v58  ;;  %20888 = vst [vmem:[#allocation61_spill] sm:$0xff] %v17155_v15  ;;  %v17164_v58 = vpop.f32.mrf.mxu0  ;;  %v17230_v27 = vld [vmem:[#allocation2 + $0xb0] sm:$0x1] }
 0x189   : > { %20880 = vst [vmem:[#allocation18_spill] sm:$0xff] %v17129_v35  ;;  %v5123_v35 = vshll.u32 %v4840_v32, 16  ;;  %v17153_v6 = vcombine.low %v4964_v30, %v4974_v37  ;;  %v5111_v51 = vrot.slane %v5109_v23, 4  ;;  %v20890_v42 = vcombine.low %v16913_v55, %v16920_v41  ;;  %v20897_v41 = vld [vmem:[#allocation21_spill] sm:$0xff]  ;;  %v4846_v63 = vld [vmem:[#allocation2 + $0xb4] sm:$0xf] }
 0x18a   : > { %20879 = vst [vmem:[#allocation16_spill] sm:$0xff] %v17126_v40  ;;  %14077 = vmatprep.mubr.bf16.mxu1 %v20883_v46  ;;  %v5101_v40 = vrot.slane %v5099_v61, 5  ;;  %14194 = vmatmul.mubr.bf16.vlgmr.msra.gmra.mxu0 %v20886_v34  ;;  %v17151_v46 = vcombine.low %v20887_v45, %v4950_v1  ;;  %v17157_v61 = vld [vmem:[#allocation2 + $0xac] sm:$0xf]  ;;  %v20891_v16 = vrot.slane %v16803_v19, 5  ;;  %v20892_v32 = vrot.slane %v16810_v13, 9 }
 0x18b   : > { %14197 = vmatprep.mubr.bf16.mxu0 %v20890_v42  ;;  %v17176_v53 = vrot.slane %v5088_v5, 4  ;;  %v17178_v1 = vld [vmem:[#allocation2 + $0xa4] sm:$0x1]  ;;  %v5129_v55 = vshll.u32 %v17113_v60, 16  ;;  %v20894_v30 = vrot.slane %v16822_v26, 5  ;;  %v17194_v19 = vrot.slane %v20664_v54, 4  ;;  %v17197_v5 = vpop.f32.mrf.mxu0 }
 0x18c   : > { %v17174_v23 = vsel %vm15689_vm14, %v20892_v32, %v20891_v16  ;;  %v5133_v37 = vshrl.u32 %v17113_v60, 16  ;;  %20895 = vst [vmem:[#allocation64_spill] sm:$0xff] %v17197_v5  ;;  %v5115_v34 = vshll.u32 %v17074_v44, 16  ;;  %v5122_v45 = vrot.slane %v5120_v18, 4  ;;  %v20898_v54 = vld [vmem:[#allocation23_spill] sm:$0xff] }
 0x18d   : > { %20893 = vst [vmem:[#allocation63_spill] sm:$0xff] %v17176_v53  ;;  %v17190_v13 = vsel %vm15689_vm14, %v16928_v21, %v20894_v30  ;;  %v5125_v42 = vrot.slane %v5123_v35, 5  ;;  %v5144_v16 = vshrl.u32 %v4843_v62, 16  ;;  %v5102_v32 = vor.u32 %v5101_v40, %v5098_v56  ;;  %v17202_v30 = vpop.f32.mrf.mxu1  ;;  %v17207_v53 = vpop.f32.mrf.mxu0  ;;  %v17212_v35 = vld [vmem:[#allocation2 + $0xa8] sm:$0xe] }
 0x18e   : > { %v5112_v26 = vor.u32 %v5111_v51, %v17155_v15  ;;  %v5147_v21 = vshll.u32 %v4843_v62, 16  ;;  %20896 = vst [vmem:[#allocation65_spill] sm:$0xff] %v17202_v30  ;;  %v20899_v4 = vcombine.low %v20897_v41, %v20898_v54  ;;  %20900 = vst [vmem:[#allocation21_spill] sm:$0xff] %v17207_v53  ;;  %v17210_v0 = vrot.slane %v5129_v55, 5  ;;  %v20902_v62 = vld [vmem:[#allocation45_spill] sm:$0xff]  ;;  %v20907_v30 = vld [vmem:[#allocation47_spill] sm:$0xff] }
 0x18f   : > { %v5153_v40 = vshll.u32 %v17157_v61, 16  ;;  %v5157_v56 = vshrl.u32 %v17157_v61, 16  ;;  %v4998_v54 = vsel %vm15241_vm9, %v16924_v20, %v20902_v62  ;;  %v20904_v18 = vrot.slane %v16885_v50, 9  ;;  %v17232_v36 = vpop.f32.mrf.mxu1  ;;  %v20908_v15 = vld [vmem:[#allocation34_spill] sm:$0xff]  ;;  %v20913_v53 = vld [vmem:[#allocation36_spill] sm:$0xff] }
 0x190   : > { %14078 = vmatmul.mubr.bf16.gmra.mxu1 %v20899_v4  ;;  %20901 = vst [vmem:[#allocation23_spill] sm:$0xff] %v17210_v0  ;;  %v20903_v4 = vrot.slane %v16854_v43, 5  ;;  %v5135_v55 = vrot.slane %v5133_v37, 4  ;;  %v5139_v41 = vshll.u32 %v17178_v1, 16  ;;  %20905 = vst [vmem:[#allocation45_spill] sm:$0xff] %v17232_v36  ;;  %v5012_v43 = vsel %vm15241_vm9, %v20908_v15, %v20907_v30  ;;  %v20911_v36 = vld [vmem:[#allocation46_spill] sm:$0xff] }
 0x191   : > { %14145 = vmatprep.mubr.bf16.mxu1 %v16891_v28  ;;  %v17234_v28 = vpop.f32.mrf.mxu0  ;;  %v5126_v20 = vor.u32 %v5125_v42, %v5122_v45  ;;  %v5146_v50 = vrot.slane %v5144_v16, 4  ;;  %v5149_v62 = vrot.slane %v5147_v21, 5  ;;  %v20909_v37 = vcombine.low %v16960_v14, %v16967_v33  ;;  %v17256_v42 = vld [vmem:[#allocation2 + $0xb8] sm:$0xf]  ;;  %v17258_v16 = vpop.f32.mrf.mxu1 }
 0x192   : > { %v17227_v51 = vsel %vm15689_vm14, %v20904_v18, %v20903_v4  ;;  %20906 = vst [vmem:[#allocation66_spill] sm:$0xff] %v17234_v28  ;;  %v20910_v4 = vld [vmem:[#allocation50_spill] sm:$0xff]  ;;  %v20912_v28 = vrot.slane %v20911_v36, 5  ;;  %v17254_v15 = vrot.slane %v5153_v40, 5  ;;  %v5159_v45 = vrot.slane %v5157_v56, 4  ;;  %20915 = vst [vmem:[#allocation34_spill] sm:$0xff] %v17256_v42 }
 0x193   : > { %14198 = vmatmul.mubr.bf16.gmra.mxu0 %v20909_v37  ;;  %v5022_v18 = vsel %vm15241_vm9, %v16990_v29, %v20910_v4  ;;  %20916 = vst [vmem:[#allocation50_spill] sm:$0xff] %v17258_v16  ;;  %v20917_v14 = vcombine.low %v17031_v8, %v17043_v2  ;;  %v17263_v33 = vpop.f32.mrf.mxu0  ;;  %v17265_v29 = vrot.slane %v5102_v32, 4  ;;  %v17267_v36 = vrot.slane %v5112_v26, 4  ;;  %v17279_v2 = vpop.f32.mrf.mxu1  ;;  %v20924_v16 = vld [vmem:[#allocation12_spill] sm:$0xff] }
 0x194   : > { %v17252_v5 = vsel %vm15689_vm14, %v20913_v53, %v20912_v28  ;;  %20914 = vst [vmem:[#allocation47_spill] sm:$0xff] %v17254_v15  ;;  %v17269_v21 = vrot.slane %v5115_v34, 5  ;;  %v20918_v30 = vrot.slane %v17113_v60, 5  ;;  %v5136_v56 = vor.u32 %v5135_v55, %v17210_v0  ;;  %20919 = vst [vmem:[#allocation46_spill] sm:$0xff] %v17279_v2  ;;  %v17292_v28 = vld [vmem:[#allocation2 + $0xb4] sm:$0xe] }
 0x195   : > { %14201 = vmatprep.mubr.bf16.mxu0 %v20917_v14  ;;  %v17281_v32 = vpop.f32.mrf.mxu0  ;;  %v17283_v26 = vrot.slane %v5126_v20, 4  ;;  %v17285_v34 = vrot.slane %v5139_v41, 5  ;;  %v5163_v4 = vshll.u32 %v17230_v27, 16  ;;  %v17289_v14 = vld [vmem:[#allocation2 + $0xbc] sm:$0x1]  ;;  %v5160_v55 = vor.u32 %v5159_v45, %v17254_v15  ;;  %20923 = vst [vmem:[#allocation69_spill] sm:$0xff] %v17292_v28  ;;  %v13859_v2 = vpop.f32.mrf.mxu1 }
 0x196   : > { %v17274_v40 = vrot.slane %v20918_v30, 4  ;;  %20922 = vst [vmem:[#allocation68_spill] sm:$0xff] %v17289_v14  ;;  %v5150_v30 = vor.u32 %v5149_v62, %v5146_v50  ;;  %v5168_v53 = vshrl.u32 %v4846_v63, 16  ;;  %v5171_v8 = vshll.u32 %v4846_v63, 16  ;;  %v4849_v63 = vld [vmem:[#allocation2 + $0xc0] sm:$0xf] }
 0x197   : > { %20920 = vst [vmem:[#allocation36_spill] sm:$0xff] %v17283_v26  ;;  %20921 = vst [vmem:[#allocation67_spill] sm:$0xff] %v17285_v34  ;;  %v20925_v41 = vsel %vm15241_vm9, %v16880_v3, %v16820_v10  ;;  %v17302_v37 = vpop.f32.mrf.mxu0  ;;  %v12563_v50 = vcombine.low %v17174_v23, %v17190_v13  ;;  %v5177_v62 = vshll.u32 %v17256_v42, 16  ;;  %v5181_v45 = vshrl.u32 %v17256_v42, 16  ;;  %v20926_v15 = vld [vmem:[#allocation57_spill] sm:$0xff]  ;;  %v20928_v3 = vld [vmem:[#allocation51_spill] sm:$0xff] }
 0x198   : > { %14146 = vmatmul.mubr.bf16.vlgmr.msra.gmra.mxu1 %v20924_v16  ;;  %v17300_v20 = vcombine.low %v20925_v41, %v4998_v54  ;;  %v17309_v16 = vcombine.low %v5012_v43, %v5022_v18  ;;  %v12564_v34 = vcombine.low %v17227_v51, %v17252_v5  ;;  %v20927_v10 = vrot.slane %v16922_v11, 5  ;;  %v2170_v43 = vpop.f32.mrf.mxu1 }
 0x199   : > { %14149 = vmatprep.mubr.bf16.mxu1 %v20926_v15  ;;  %v20929_v54 = vrot.slane %v20928_v3, 9  ;;  %v20930_v23 = vrot.slane %v16970_v49, 5  ;;  %v17328_v18 = vpop.f32.mrf.mxu0  ;;  %v17330_v15 = vrot.slane %v5136_v56, 4  ;;  %v20932_v11 = vrot.slane %v17157_v61, 5 }
 0x19a   : > { %v17336_v51 = vrot.slane %v5163_v4, 5  ;;  %v20934_v49 = vcombine.low %v17104_v9, %v17111_v7  ;;  %v17342_v3 = vrot.slane %v5150_v30, 4  ;;  %v17352_v26 = vrot.slane %v5177_v62, 5  ;;  %v20939_v9 = vld [vmem:[#allocation52_spill] sm:$0xff] }
 0x19b   : > { %v17319_v41 = vsel %vm15689_vm14, %v20929_v54, %v20927_v10  ;;  %v17326_v13 = vsel %vm15689_vm14, %v17055_v48, %v20930_v23  ;;  %20931 = vst [vmem:[#allocation12_spill] sm:$0xff] %v17330_v15  ;;  %v17334_v5 = vrot.slane %v20932_v11, 4  ;;  %v17344_v48 = vrot.slane %v5160_v55, 4  ;;  %v17348_v23 = vld [vmem:[#allocation2 + $0xc0] sm:$0xe]  ;;  %v13860_v15 = vpop.f32.mrf.mxu1  ;;  %v17350_v4 = vpop.f32.mrf.mxu0  ;;  %v20940_v55 = vld [vmem:[#allocation55_spill] sm:$0xff] }
 0x19c   : > { %20933 = vst [vmem:[#allocation57_spill] sm:$0xff] %v17336_v51  ;;  %14202 = vmatmul.mubr.bf16.gmra.mxu0 %v20934_v49  ;;  %20935 = vst [vmem:[#allocation51_spill] sm:$0xff] %v17342_v3  ;;  %v428_v11 = vld [vmem:[#allocation2 + $0xd4] sm:$0x1]  ;;  %v5170_v10 = vrot.slane %v5168_v53, 4  ;;  %v5173_v51 = vrot.slane %v5171_v8, 5  ;;  %v12565_v53 = vcombine.low %v17319_v41, %v17326_v13 }
 0x19d   : > { %20936 = vst [vmem:[#allocation70_spill] sm:$0xff] %v17344_v48  ;;  %14205 = vmatprep.mubr.bf16.mxu0 %v12563_v50  ;;  %20937 = vst [vmem:[#allocation71_spill] sm:$0xff] %v17350_v4  ;;  %v5183_v7 = vrot.slane %v5181_v45, 4  ;;  %v5192_v56 = vshrl.u32 %v4849_v63, 16  ;;  %v5195_v54 = vshll.u32 %v4849_v63, 16  ;;  %v2173_v50 = vpop.f32.mrf.mxu1  ;;  %v17362_v48 = vpop.f32.mrf.mxu0  ;;  %v20942_v8 = vrot.slane %v16986_v24, 5 }
 0x19e   : > { %20938 = vst [vmem:[#allocation72_spill] sm:$0xff] %v17352_v26  ;;  %20941 = vst [vmem:[#allocation52_spill] sm:$0xff] %v17362_v48  ;;  %v20943_v62 = vrot.slane %v17005_v25, 9  ;;  %v20944_v30 = vrot.slane %v17256_v42, 5  ;;  %v5187_v63 = vshll.u32 %v17289_v14, 16  ;;  %v20946_v24 = vld [vmem:[#allocation31_spill] sm:$0xff]  ;;  %v5174_v25 = vor.u32 %v5173_v51, %v5170_v10 }
 0x19f   : > { %v17379_v49 = vld [vmem:[#allocation2 + $0xc4] sm:$0xf]  ;;  %v20950_v48 = vrot.slane %v17045_v38, 5  ;;  %v20951_v0 = vrot.slane %v17076_v57, 9  ;;  %v13863_v41 = vpop.f32.mrf.mxu1  ;;  %v17408_v14 = vld [vmem:[#allocation2 + $0xc8] sm:$0x1] }
 0x1a0   : > { %v17372_v45 = vsel %vm15689_vm14, %v20943_v62, %v20942_v8  ;;  %v17376_v3 = vrot.slane %v20944_v30, 4  ;;  %v20947_v13 = vld [vmem:[#allocation58_spill] sm:$0xff]  ;;  %v20949_v62 = vld [vmem:[#allocation16_spill] sm:$0xff]  ;;  %14150 = vmatmul.mubr.bf16.gmra.mxu1 %v17151_v46  ;;  %v429_v38 = vsel %vm15183_vm4, 0, %v428_v11  ;;  %v5197_v46 = vrot.slane %v5195_v54, 5  ;;  %v14850_v51 = vld [vmem:[%s20622_s3 + $0x38] sm:$0xff]  }
 0x1a1   : > { %v20948_v8 = vrot.slane %v20947_v13, 5  ;;  %v17402_v4 = vsel %vm15689_vm14, %v20951_v0, %v20950_v48  ;;  %v5184_v13 = vor.u32 %v5183_v7, %v17352_v26  ;;  %v20954_v57 = vld [vmem:[#allocation22_spill] sm:$0xff]  ;;  %v20955_v42 = vld [vmem:[#allocation24_spill] sm:$0xff]  ;;  %14153 = vmatprep.mubr.bf16.mxu1 %v17153_v6  ;;  %v5194_v48 = vrot.slane %v5192_v56, 4  ;;  %430 = vst [vmem:[#allocation2 + $0xd4] sm:$0x1] %v429_v38  ;;  %14273 = vmatprep.subr.bf16.mxu0 %v14850_v51 }
 0x1a2   : > { %20945 = vst [vmem:[#allocation55_spill] sm:$0xff] %v17376_v3  ;;  %v17405_v3 = vpop.f32.mrf.mxu0  ;;  %v2179_v28 = vadd.f32 %v13859_v2, %v20954_v57  ;;  %v2171_v0 = vadd.f32 %v2170_v43, %v20955_v42  ;;  %v20956_v10 = vld [vmem:[#allocation25_spill] sm:$0xff]  ;;  %v20957_v26 = vld [vmem:[#allocation26_spill] sm:$0xff]  ;;  %v17423_v11 = vrot.slane %v5187_v63, 5  ;;  %v20958_v2 = vld [vmem:[#allocation27_spill] sm:$0xff]  ;;  %v20959_v43 = vrot.slane %v17074_v44, 5  ;;  %14274 = vmatpush3.bf16.msra.mxu0 %v14850_v51 }
 0x1a3   : > { %v17394_v30 = vsel %vm15689_vm14, %v20949_v62, %v20948_v8  ;;  %20952 = vst [vmem:[#allocation31_spill] sm:$0xff] %v17405_v3  ;;  %v2182_v7 = vadd.f32 %v13860_v15, %v20956_v10  ;;  %v2174_v8 = vadd.f32 %v2173_v50, %v20957_v26  ;;  %v2186_v3 = vpop.f32.mrf.mxu1  ;;  %v2195_v6 = vadd.f32 %v13863_v41, %v20958_v2  ;;  %v20960_v56 = vld [vmem:[#allocation28_spill] sm:$0xff]  ;;  %v17442_v41 = vld [vmem:[#allocation2 + $0xcc] sm:$0xe] }
 0x1a4   : > { %v17421_v62 = vpop.f32.mrf.mxu0  ;;  %14206 = vmatmul.mubr.bf16.gmra.mxu0 %v12564_v34  ;;  %v5701_v54 = vsel %vm15689_vm14, %v17194_v19, %v20959_v43  ;;  %v5201_v26 = vshll.u32 %v17379_v49, 16  ;;  %v2187_v50 = vadd.f32 %v2186_v3, %v20960_v56  ;;  %v17437_v57 = vrot.slane %v5174_v25, 4  ;;  %v20961_v19 = vld [vmem:[#allocation32_spill] sm:$0xff]  ;;  %v20962_v43 = vld [vmem:[#allocation14_spill] sm:$0xff]  ;;  %v20964_v3 = vld [vmem:[#allocation17_spill] sm:$0xff] }
 0x1a5   : > { %v13864_v63 = vpop.f32.mrf.mxu1  ;;  %14209 = vmatprep.mubr.bf16.mxu0 %v12565_v53  ;;  %v17439_v34 = vrot.slane %v5184_v13, 4  ;;  %v5205_v44 = vshrl.u32 %v17379_v49, 16  ;;  %v5198_v2 = vor.u32 %v5197_v46, %v5194_v48  ;;  %v17446_v15 = vadd.f32 %v20962_v43, %v2179_v28  ;;  %v14851_v53 = vld [vmem:[%s20622_s3 + $0x30] sm:$0xff]   ;;  %v20967_v46 = vld [vmem:[#allocation38_spill] sm:$0xff] }
 0x1a6   : > { %v17435_v38 = vpop.f32.mrf.mxu0  ;;  %v2198_v10 = vadd.f32 %v13864_v63, %v20961_v19  ;;  %v17449_v56 = vadd.f32 %v20964_v3, %v2171_v0  ;;  %v12566_v13 = vcombine.low %v17372_v45, %v17394_v30  ;;  %v12567_v51 = vcombine.low %v17402_v4, %v5701_v54  ;;  %v17459_v63 = vld [vmem:[#allocation2 + $0xd0] sm:$0xf]  ;;  %v20968_v19 = vld [vmem:[#allocation35_spill] sm:$0xff]  ;;  %14275 = vmatprep.subr.bf16.mxu0 %v14851_v53 }
 0x1a7   : > { %20963 = vst [vmem:[#allocation58_spill] sm:$0xff] %v17446_v15  ;;  %v2189_v25 = vpop.f32.mrf.mxu1  ;;  %v20966_v48 = vld [vmem:[#allocation60_spill] sm:$0xff]  ;;  %v17465_v0 = vadd.f32 %v20967_v46, %v2174_v8  ;;  %v20969_v3 = vrot.slane %v17379_v49, 5  ;;  %v17472_v15 = vrot.slane %v5201_v26, 5  ;;  %v17475_v45 = vadd.f32 %v17139_v52, %v2195_v6  ;;  %v17483_v54 = vld [vmem:[#allocation2 + $0xcc] sm:$0xf]  ;;  %14276 = vmatpush3.bf16.msra.mxu0 %v14851_v53 }
 0x1a8   : > { %20965 = vst [vmem:[#allocation16_spill] sm:$0xff] %v17449_v56  ;;  %v17456_v42 = vpop.f32.mrf.mxu0  ;;  %v17462_v28 = vadd.f32 %v20966_v48, %v2182_v7  ;;  %v2190_v43 = vadd.f32 %v2189_v25, %v20968_v19  ;;  %14154 = vmatmul.mubr.bf16.gmra.mxu1 %v17300_v20  ;;  %v17480_v7 = vrot.slane %v5205_v44, 4  ;;  %v5211_v8 = vshll.u32 %v17408_v14, 16  ;;  %v20970_v26 = vld [vmem:[#allocation64_spill] sm:$0xff]  ;;  %v14852_v19 = vld [vmem:[%s20622_s3 + $0x28] sm:$0xff]  }
 0x1a9   : > { %v17470_v56 = vrot.slane %v20969_v3, 4  ;;  %v13867_v4 = vpop.f32.mrf.mxu1  ;;  %v17486_v25 = vadd.f32 %v17164_v58, %v2187_v50  ;;  %v17489_v48 = vadd.f32 %v20970_v26, %v2198_v10  ;;  %v20971_v52 = vld [vmem:[#allocation40_spill] sm:$0xff]  ;;  %14157 = vmatprep.mubr.bf16.mxu1 %v17309_v16  ;;  %v17493_v20 = vrot.slane %v5198_v2, 4  ;;  %v20977_v26 = vld [vmem:[#allocation42_spill] sm:$0xff]  ;;  %14277 = vmatprep.subr.bf16.mxu0 %v14852_v19 }
 0x1aa   : > { %v17478_v30 = vpop.f32.mrf.mxu0  ;;  %v2211_v6 = vadd.f32 %v13867_v4, %v20971_v52  ;;  %v20674_v46 = vrot.slane %v17459_v63, 5  ;;  %v20972_v50 = vsel %vm15241_vm9, %v17051_v39, %v20940_v55  ;;  %v20973_v16 = vsel %vm15241_vm9, %v17049_v31, %v20939_v9  ;;  %v20976_v39 = vld [vmem:[#allocation21_spill] sm:$0xff]  ;;  %v20979_v9 = vld [vmem:[#allocation20_spill] sm:$0xff] }
 0x1ab   : > { %v2202_v58 = vpop.f32.mrf.mxu1  ;;  %v12508_v10 = vcombine.low %v20973_v16, %v20972_v50  ;;  %v20974_v2 = vsel %vm15241_vm9, %v17122_v12, %v20946_v24  ;;  %v20975_v53 = vsel %vm15241_vm9, %v17078_v47, %v17003_v22  ;;  %v17523_v55 = vadd.f32 %v20976_v39, %v2190_v43  ;;  %14278 = vmatpush3.bf16.msra.mxu0 %v14852_v19  ;;  %v20988_v19 = vld [vmem:[#allocation19_spill] sm:$0xff]  ;;  %v21015_v22 = vld [vmem:[#allocation70_spill] sm:$0xff] }
 0x1ac   : > { %v12509_v3 = vcombine.low %v20975_v53, %v20974_v2  ;;  %v17520_v4 = vpop.f32.mrf.mxu0  ;;  %v2203_v52 = vadd.f32 %v2202_v58, %v20977_v26  ;;  %14210 = vmatmul.mubr.bf16.gmra.mxu0 %v12566_v13  ;;  %v20978_v31 = vrot.slane %v17113_v60, 5  ;;  %v20980_v50 = vrot.slane %v20979_v9, 9  ;;  %v20984_v53 = vld [vmem:[#allocation66_spill] sm:$0xff]  ;;  %v20987_v9 = vld [vmem:[#allocation59_spill] sm:$0xff] }
 0x1ad   : > { %v13868_v47 = vpop.f32.mrf.mxu1  ;;  %14213 = vmatprep.mubr.bf16.mxu0 %v12567_v51  ;;  %v20981_v43 = vrot.slane %v17178_v1, 5  ;;  %v20982_v60 = vrot.slane %v17157_v61, 5  ;;  %v20983_v16 = vrot.slane %v17212_v35, 9  ;;  %v17548_v39 = vadd.f32 %v20984_v53, %v2211_v6  ;;  %v20985_v51 = vld [vmem:[#allocation44_spill] sm:$0xff]  ;;  %v14853_v35 = vld [vmem:[%s20622_s3 + $0x20] sm:$0xff]  }
 0x1ae   : > { %v5705_v12 = vsel %vm15689_vm14, %v20980_v50, %v20978_v31  ;;  %v17539_v58 = vpop.f32.mrf.mxu0  ;;  %v2214_v26 = vadd.f32 %v13868_v47, %v20985_v51  ;;  %v20986_v1 = vrot.slane %v17230_v27, 5  ;;  %v17558_v61 = vadd.f32 %v17263_v33, %v2203_v52  ;;  %v20989_v47 = vld [vmem:[#allocation49_spill] sm:$0xff]  ;;  %14279 = vmatprep.subr.bf16.mxu0 %v14853_v35 }
 0x1af   : > { %v5708_v13 = vsel %vm15689_vm14, %v17274_v40, %v20981_v43  ;;  %v5712_v2 = vsel %vm15689_vm14, %v20983_v16, %v20982_v60  ;;  %v2205_v6 = vpop.f32.mrf.mxu1  ;;  %v5084_v50 = vsel %vm15241_vm9, %v20988_v19, %v20987_v9  ;;  %v20991_v60 = vld [vmem:[#allocation63_spill] sm:$0xff]  ;;  %v20992_v51 = vld [vmem:[#allocation61_spill] sm:$0xff]  ;;  %14280 = vmatpush3.bf16.msra.mxu0 %v14853_v35 }
 0x1b0   : > { %v5715_v40 = vsel %vm15689_vm14, %v17334_v5, %v20986_v1  ;;  %v17567_v27 = vpop.f32.mrf.mxu0  ;;  %v2206_v43 = vadd.f32 %v2205_v6, %v20989_v47  ;;  %v20990_v5 = vld [vmem:[#allocation18_spill] sm:$0xff]  ;;  %v12568_v52 = vcombine.low %v5705_v12, %v5708_v13  ;;  %v17575_v16 = vadd.f32 %v17281_v32, %v2214_v26  ;;  %14158 = vmatmul.mubr.bf16.gmra.mxu1 %v12508_v10  ;;  %v17587_v12 = vld [vmem:[#allocation2 + $0xd4] sm:$0x1]  ;;  %v21014_v31 = vld [vmem:[#allocation57_spill] sm:$0xff] }
 0x1b1   : > { %v5094_v33 = vsel %vm15241_vm9, %v20991_v60, %v20990_v5  ;;  %v13871_v53 = vpop.f32.mrf.mxu1  ;;  %v5108_v1 = vsel %vm15241_vm9, %v17265_v29, %v20992_v51  ;;  %v5118_v6 = vsel %vm15241_vm9, %v17267_v36, %v17269_v21  ;;  %v12569_v19 = vcombine.low %v5712_v2, %v5715_v40  ;;  %v20993_v32 = vld [vmem:[#allocation10_spill] sm:$0xff]  ;;  %14161 = vmatprep.mubr.bf16.mxu1 %v12509_v3  ;;  %v14854_v29 = vld [vmem:[%s20622_s3 + $0x18] sm:$0xff]  }
 0x1b2   : > { %v17585_v9 = vpop.f32.mrf.mxu0  ;;  %v2227_v13 = vadd.f32 %v13871_v53, %v20993_v32  ;;  %v5734_v10 = vrot.slane %v20674_v46, 4  ;;  %v17593_v26 = vadd.f32 %v17302_v37, %v2206_v43  ;;  %v12510_v21 = vcombine.low %v5084_v50, %v5094_v33  ;;  %v20994_v2 = vld [vmem:[#allocation53_spill] sm:$0xff]  ;;  %14281 = vmatprep.subr.bf16.mxu0 %v14854_v29  ;;  %v20995_v37 = vld [vmem:[#allocation34_spill] sm:$0xff]  ;;  %v20999_v50 = vld [vmem:[#allocation68_spill] sm:$0xff] }
 0x1b3   : > { %v2218_v36 = vpop.f32.mrf.mxu1  ;;  %v12511_v35 = vcombine.low %v5108_v1, %v5118_v6  ;;  %v20996_v43 = vrot.slane %v20995_v37, 5  ;;  %v20997_v60 = vld [vmem:[#allocation69_spill] sm:$0xff]  ;;  %v21000_v33 = vrot.slane %v20999_v50, 5  ;;  %v21001_v32 = vld [vmem:[#allocation55_spill] sm:$0xff]  ;;  %v21003_v6 = vrot.slane %v17348_v23, 9  ;;  %14282 = vmatpush3.bf16.msra.mxu0 %v14854_v29  ;;  %v14855_v23 = vld [vmem:[%s20622_s3 + $0x10] sm:$0xff]  }
 0x1b4   : > { %v17598_v47 = vpop.f32.mrf.mxu0  ;;  %v2219_v40 = vadd.f32 %v2218_v36, %v20994_v2  ;;  %14214 = vmatmul.mubr.bf16.gmra.mxu0 %v12568_v52  ;;  %v17602_v3 = vadd.f32 %v17328_v18, %v2227_v13  ;;  %v20998_v53 = vrot.slane %v20997_v60, 9  ;;  %v21002_v18 = vrot.slane %v17379_v49, 5  ;;  %v21004_v13 = vld [vmem:[#allocation54_spill] sm:$0xff]  ;;  %v21006_v60 = vld [vmem:[#allocation71_spill] sm:$0xff]  ;;  %v21008_v29 = vld [vmem:[#allocation36_spill] sm:$0xff]  ;;  %14283 = vmatprep.subr.bf16.mxu0 %v14855_v23 }
 0x1b5   : > { %v13872_v5 = vpop.f32.mrf.mxu1  ;;  %14217 = vmatprep.mubr.bf16.mxu0 %v12569_v19  ;;  %v5722_v1 = vsel %vm15689_vm14, %v21001_v32, %v21000_v33  ;;  %v21005_v2 = vrot.slane %v17408_v14, 5  ;;  %v21007_v50 = vld [vmem:[#allocation23_spill] sm:$0xff]  ;;  %v21010_v32 = vld [vmem:[#allocation12_spill] sm:$0xff]  ;;  %v5166_v24 = vsel %vm15241_vm9, %v21015_v22, %v21014_v31 }
 0x1b6   : > { %v5719_v51 = vsel %vm15689_vm14, %v20998_v53, %v20996_v43  ;;  %v17615_v52 = vpop.f32.mrf.mxu0  ;;  %v5726_v19 = vsel %vm15689_vm14, %v21003_v6, %v21002_v18  ;;  %v2230_v36 = vadd.f32 %v13872_v5, %v21004_v13  ;;  %v5735_v43 = vrot.slane %v17587_v12, 5  ;;  %v21009_v33 = vld [vmem:[#allocation67_spill] sm:$0xff] }
 0x1b7   : > { %v5729_v37 = vsel %vm15689_vm14, %v17470_v56, %v21005_v2  ;;  %v17631_v53 = vadd.f32 %v21006_v60, %v2219_v40  ;;  %v2221_v49 = vpop.f32.mrf.mxu1  ;;  %v5132_v5 = vsel %vm15241_vm9, %v21008_v29, %v21007_v50  ;;  %v5142_v56 = vsel %vm15241_vm9, %v21010_v32, %v21009_v33  ;;  %v21011_v18 = vld [vmem:[#allocation47_spill] sm:$0xff]  ;;  %v21013_v2 = vld [vmem:[#allocation56_spill] sm:$0xff]  ;;  %14284 = vmatpush3.bf16.msra.mxu0 %v14855_v23 }
 0x1b8   : > { %v21012_v6 = vld [vmem:[#allocation51_spill] sm:$0xff]  ;;  %v17648_v13 = vpop.f32.mrf.mxu0  ;;  %v2222_v60 = vadd.f32 %v2221_v49, %v21013_v2  ;;  %v12570_v50 = vcombine.low %v5719_v51, %v5722_v1  ;;  %v21016_v29 = vld [vmem:[#allocation52_spill] sm:$0xff]  ;;  %14162 = vmatmul.mubr.bf16.gmra.mxu1 %v12510_v21  ;;  %v12571_v46 = vcombine.low %v5726_v19, %v5729_v37  ;;  %v21017_v49 = vld [vmem:[#allocation30_spill] sm:$0xff]  ;;  %v5229_v2 = vshrl.u32 %v17459_v63, 16 }
 0x1b9   : > { %v5156_v40 = vsel %vm15241_vm9, %v21012_v6, %v21011_v18  ;;  %v17656_v44 = vadd.f32 %v21016_v29, %v2230_v36  ;;  %v13875_v33 = vpop.f32.mrf.mxu1  ;;  %v5208_v18 = vor.u32 %v17480_v7, %v17472_v15  ;;  %14165 = vmatprep.mubr.bf16.mxu1 %v12511_v35  ;;  %v21018_v22 = vld [vmem:[#allocation31_spill] sm:$0xff]  ;;  %v12512_v1 = vcombine.low %v5132_v5, %v5142_v56  ;;  %v21019_v37 = vld [vmem:[#allocation33_spill] sm:$0xff] }
 0x1ba   : > { %v17658_v32 = vpop.f32.mrf.mxu0  ;;  %v2243_v6 = vadd.f32 %v13875_v33, %v21017_v49  ;;  %v17665_v31 = vadd.f32 %v21018_v22, %v2222_v60  ;;  %v14856_v51 = vld [vmem:[%s20622_s3 + $0x8] sm:$0xff]   ;;  %v12513_v36 = vcombine.low %v5156_v40, %v5166_v24  ;;  %v5213_v35 = vrot.slane %v5211_v8, 5  ;;  %v14857_v24 = vld [vmem:[%s20621_s2 + $0x38] sm:$0xff]  }
 0x1bb   : > { %v2234_v21 = vpop.f32.mrf.mxu1  ;;  %v21020_v23 = vrot.slane %v17459_v63, 5  ;;  %v21021_v60 = vrot.slane %v17442_v41, 9  ;;  %14285 = vmatprep.subr.bf16.mxu0 %v14856_v51  ;;  %v5209_v56 = vrot.slane %v5208_v18, 4  ;;  %v5736_v14 = vsel %vm15689_vm14, %v5734_v10, %v5735_v43  ;;  %14225 = vmatprep.subr.bf16.mxu1 %v14857_v24  ;;  %v14858_v10 = vld [vmem:[%s20622_s3] sm:$0xff]  }
 0x1bc   : > { %v17670_v19 = vpop.f32.mrf.mxu0  ;;  %v2235_v7 = vadd.f32 %v2234_v21, %v21019_v37  ;;  %14218 = vmatmul.mubr.bf16.gmra.mxu0 %v12570_v50  ;;  %v17682_v33 = vadd.f32 %v17421_v62, %v2243_v6  ;;  %v21022_v8 = vshrl.u32 %v17483_v54, 16  ;;  %v21023_v40 = vshll.u32 %v17483_v54, 16  ;;  %v21024_v62 = vld [vmem:[#allocation39_spill] sm:$0xff]  ;;  %14226 = vmatpush3.bf16.msra.mxu1 %v14857_v24 }
 0x1bd   : > { %v5733_v29 = vsel %vm15689_vm14, %v21021_v60, %v21020_v23  ;;  %v13876_v5 = vpop.f32.mrf.mxu1  ;;  %14221 = vmatprep.mubr.bf16.mxu0 %v12571_v46  ;;  %14286 = vmatpush3.bf16.msra.mxu0 %v14856_v51  ;;  %v21025_v22 = vshll.u32 %v17459_v63, 16  ;;  %v5231_v46 = vrot.slane %v5229_v2, 4  ;;  %v21026_v51 = vld [vmem:[#allocation72_spill] sm:$0xff]  ;;  %v5204_v23 = vsel %vm15241_vm9, %v17493_v20, %v17472_v15 }
 0x1be   : > { %v5218_v41 = vrot.slane %v21022_v8, 4  ;;  %v5221_v50 = vrot.slane %v21023_v40, 5  ;;  %v17693_v49 = vpop.f32.mrf.mxu0  ;;  %v2246_v6 = vadd.f32 %v13876_v5, %v21024_v62  ;;  %v17701_v18 = vadd.f32 %v17435_v38, %v2235_v7  ;;  %14287 = vmatprep.subr.bf16.mxu0 %v14858_v10  ;;  %v21028_v8 = vld [vmem:[#allocation48_spill] sm:$0xff] }
 0x1bf   : > { %v17698_v21 = vrot.slane %v21025_v22, 5  ;;  %v17706_v54 = vpop.f32.mrf.mxu1  ;;  %v5180_v63 = vsel %vm15241_vm9, %v17437_v57, %v21026_v51  ;;  %v12572_v2 = vcombine.low %v5733_v29, %v5736_v14  ;;  %v5190_v7 = vsel %vm15241_vm9, %v17439_v34, %v17423_v11  ;;  %v21027_v29 = vld [vmem:[#allocation43_spill] sm:$0xff]  ;;  %v14859_v11 = vld [vmem:[%s15171_s18] sm:$0xff]  }
 0x1c0   : > { %v17708_v43 = vpop.f32.mrf.mxu0  ;;  %v17715_v38 = vadd.f32 %v17456_v42, %v2246_v6  ;;  %14166 = vmatmul.mubr.bf16.gmra.mxu1 %v12512_v1  ;;  %v5222_v60 = vor.u32 %v5221_v50, %v5218_v41  ;;  %v5214_v1 = vsel %vm15241_vm9, %v5209_v56, %v5213_v35  ;;  %v5235_v5 = vshll.u32 %v17587_v12, 16  ;;  %v21029_v50 = vld [vmem:[#allocation11_spill] sm:$0xff] }
 0x1c1   : > { %v13879_v37 = vpop.f32.mrf.mxu1  ;;  %14288 = vmatpush3.bf16.msra.mxu0 %v14858_v10  ;;  %14169 = vmatprep.mubr.bf16.mxu1 %v12513_v36  ;;  %v5232_v24 = vor.u32 %v5231_v46, %v17698_v21  ;;  %v14861_v36 = vld [vmem:[%s20621_s2 + $0x30] sm:$0xff]   ;;  %v12514_v56 = vcombine.low %v5180_v63, %v5190_v7  ;;  %v12515_v41 = vcombine.low %v5204_v23, %v5214_v1  ;;  %v14860_v63 = vld [vmem:[%s15171_s18 + $0x8] sm:$0xff]   ;;  %v21030_v7 = vld [vmem:[#allocation13_spill] sm:$0xff] }
 0x1c2   : > { %v17725_v57 = vpop.f32.mrf.mxu0  ;;  %v2259_v42 = vadd.f32 %v13879_v37, %v21027_v29  ;;  %v5223_v40 = vrot.slane %v5222_v60, 4  ;;  %v5237_v22 = vrot.slane %v5235_v5, 5  ;;  %14227 = vmatprep.subr.bf16.mxu1 %v14861_v36  ;;  %v14862_v29 = vld [vmem:[%s15171_s18 + $0x10] sm:$0xff]  }
 0x1c3   : > { %v2250_v34 = vpop.f32.mrf.mxu1  ;;  %v5233_v6 = vrot.slane %v5232_v24, 4  ;;  %14228 = vmatpush3.bf16.msra.mxu1 %v14861_v36 }
 0x1c4   : > { %v17733_v14 = vpop.f32.mrf.mxu0  ;;  %v2251_v15 = vadd.f32 %v2250_v34, %v21028_v8  ;;  %14222 = vmatmul.mubr.bf16.gmra.mxu0 %v12572_v2  ;;  %v17737_v20 = vadd.f32 %v17520_v4, %v2259_v42 }
 0x1c5   : > { %v13880_v35 = vpop.f32.mrf.mxu1  ;;  %14289 = vmatprep.mubr.bf16.mxu0 %v14859_v11  ;;  %v5238_v60 = vsel %vm15241_vm9, %v5233_v6, %v5237_v22  ;;  %v14864_v11 = vld [vmem:[%s20621_s2 + $0x28] sm:$0xff]  }
 0x1c6   : > { %v17742_v12 = vpop.f32.mrf.mxu0  ;;  %v2262_v62 = vadd.f32 %v13880_v35, %v21029_v50  ;;  %v17746_v4 = vadd.f32 %v17539_v58, %v2251_v15  ;;  %v5228_v58 = vsel %vm15241_vm9, %v5223_v40, %v17698_v21  ;;  %v21032_v15 = vld [vmem:[#allocation37_spill] sm:$0xff]  ;;  %14229 = vmatprep.subr.bf16.mxu1 %v14864_v11 }
 0x1c7   : > { %v17748_v46 = vpop.f32.mrf.mxu1  ;;  %v12516_v21 = vcombine.low %v5228_v58, %v5238_v60  ;;  %14230 = vmatpush3.bf16.msra.mxu1 %v14864_v11  ;;  %v21035_v60 = vld [vmem:[#allocation45_spill] sm:$0xff] }
 0x1c8   : > { %v17750_v10 = vpop.f32.mrf.mxu0  ;;  %v17753_v51 = vadd.f32 %v17567_v27, %v2262_v62  ;;  %14170 = vmatmul.mubr.bf16.gmra.mxu1 %v12514_v56  ;;  %v21031_v27 = vld [vmem:[#allocation15_spill] sm:$0xff]  ;;  %v14863_v62 = vld [vmem:[%s15171_s18 + $0x18] sm:$0xff]  }
 0x1c9   : > { %v13883_v2 = vpop.f32.mrf.mxu1  ;;  %14173 = vmatprep.mubr.bf16.mxu1 %v12515_v41  ;;  %v21033_v41 = vld [vmem:[#allocation62_spill] sm:$0xff] }
 0x1ca   : > { %v17756_v37 = vpop.f32.mrf.mxu0  ;;  %v2275_v23 = vadd.f32 %v13883_v2, %v21030_v7  ;;  %v14865_v7 = vld [vmem:[%s15171_s18 + $0x20] sm:$0xff]  }
 0x1cb   : > { %v2266_v42 = vpop.f32.mrf.mxu1 }
 0x1cc   : > { %v17765_v1 = vpop.f32.mrf.mxu0  ;;  %v2267_v24 = vadd.f32 %v2266_v42, %v21031_v27  ;;  %v17769_v5 = vadd.f32 %v17598_v47, %v2275_v23  ;;  %14290 = vmatmul.mubr.bf16.vlgmr.msra.gmra.mxu0 %v14860_v63  ;;  %v21034_v63 = vld [vmem:[#allocation65_spill] sm:$0xff]  ;;  %v14867_v42 = vld [vmem:[%s20621_s2 + $0x20] sm:$0xff]  }
 0x1cd   : > { %v13884_v34 = vpop.f32.mrf.mxu1  ;;  %14293 = vmatprep.mubr.bf16.mxu0 %v14862_v29  ;;  %14231 = vmatprep.subr.bf16.mxu1 %v14867_v42 }
 0x1ce   : > { %v17774_v8 = vpop.f32.mrf.mxu0  ;;  %v2278_v36 = vadd.f32 %v13884_v34, %v21032_v15  ;;  %v17778_v35 = vadd.f32 %v17615_v52, %v2267_v24  ;;  %14232 = vmatpush3.bf16.msra.mxu1 %v14867_v42 }
 0x1cf   : > { %v2269_v56 = vpop.f32.mrf.mxu1 }
 0x1d0   : > { %v17780_v47 = vpop.f32.mrf.mxu0  ;;  %v2270_v40 = vadd.f32 %v2269_v56, %v21033_v41  ;;  %v17784_v50 = vadd.f32 %v17648_v13, %v2278_v36  ;;  %14174 = vmatmul.mubr.bf16.gmra.mxu1 %v12516_v21  ;;  %v14866_v41 = vld [vmem:[%s15171_s18 + $0x28] sm:$0xff]  }
 0x1d1   : > { %v13887_v6 = vpop.f32.mrf.mxu1 }
 0x1d2   : > { %v17787_v22 = vpop.f32.mrf.mxu0  ;;  %v2291_v2 = vadd.f32 %v13887_v6, %v21034_v63  ;;  %v17791_v52 = vadd.f32 %v17658_v32, %v2270_v40  ;;  %v21036_v32 = vld [vmem:[#allocation50_spill] sm:$0xff]  ;;  %v444_v40 = vld [vmem:[#allocation3 + $0x18] sm:$0x1] }
 0x1d3   : > { %v2282_v23 = vpop.f32.mrf.mxu1 }
 0x1d4   : > { %v17794_v58 = vpop.f32.mrf.mxu0  ;;  %v2283_v29 = vadd.f32 %v2282_v23, %v21035_v60  ;;  %v17798_v13 = vadd.f32 %v17670_v19, %v2291_v2  ;;  %14294 = vmatmul.mubr.bf16.gmra.mxu0 %v14863_v62  ;;  %v21037_v19 = vld [vmem:[#allocation46_spill] sm:$0xff]  ;;  %v445_v2 = vsel %vm15175_vm3, 0, %v444_v40 }
 0x1d5   : > { %v13888_v27 = vpop.f32.mrf.mxu1  ;;  %14297 = vmatprep.mubr.bf16.mxu0 %v14865_v7  ;;  %446 = vst [vmem:[#allocation3 + $0x18] sm:$0x1] %v445_v2 }
 0x1d6   : > { %v17803_v24 = vpop.f32.mrf.mxu0  ;;  %v2294_v11 = vadd.f32 %v13888_v27, %v21036_v32  ;;  %v17807_v34 = vadd.f32 %v17693_v49, %v2283_v29  ;;  %v21039_v49 = vld [vmem:[#allocation58_spill] sm:$0xff] }
 0x1d7   : > { %v2285_v21 = vpop.f32.mrf.mxu1 }
 0x1d8   : > { %v17809_v15 = vpop.f32.mrf.mxu0  ;;  %v2286_v36 = vadd.f32 %v2285_v21, %v21037_v19  ;;  %v17813_v56 = vadd.f32 %v17708_v43, %v2294_v11  ;;  %v21040_v43 = vld [vmem:[#allocation16_spill] sm:$0xff] }
 0x1d9   : > { %v13955_v62 = vpop.f32.mrf.mxu1 }
 0x1da   : > { %v17816_v6 = vpop.f32.mrf.mxu0  ;;  %v3138_v7 = vadd.f32 %v13955_v62, %v21039_v49  ;;  %v17822_v23 = vadd.f32 %v17725_v57, %v2286_v36 }
 0x1db   : > { %v3009_v60 = vpop.f32.mrf.mxu1 }
 0x1dc   : > { %v17824_v29 = vpop.f32.mrf.mxu0  ;;  %v3136_v42 = vadd.f32 %v3009_v60, %v21040_v43  ;;  %v17828_v27 = vadd.f32 %v17733_v14, %v3138_v7  ;;  %14298 = vmatmul.mubr.bf16.gmra.mxu0 %v14866_v41  ;;  %v14868_v41 = vld [vmem:[%s15171_s18 + $0x30] sm:$0xff]  }
 0x1dd   : > { %v13956_v32 = vpop.f32.mrf.mxu1  ;;  %14301 = vmatprep.mubr.bf16.mxu0 %v14868_v41 }
 0x1de   : > { %v17830_v11 = vpop.f32.mrf.mxu0  ;;  %v3139_v21 = vadd.f32 %v13956_v32, %v17462_v28  ;;  %v17834_v57 = vadd.f32 %v17742_v12, %v3136_v42  ;;  %v14869_v28 = vld [vmem:[%s15171_s18 + $0x38] sm:$0xff]  }
 0x1df   : > { %v3012_v19 = vpop.f32.mrf.mxu1 }
 0x1e0   : > { %v17836_v36 = vpop.f32.mrf.mxu0  ;;  %v3137_v40 = vadd.f32 %v3012_v19, %v17465_v0  ;;  %v17840_v62 = vadd.f32 %v17750_v10, %v3139_v21 }
 0x1e1   : > { %v13959_v2 = vpop.f32.mrf.mxu1 }
 0x1e2   : > { %v17842_v14 = vpop.f32.mrf.mxu0  ;;  %v3142_v49 = vadd.f32 %v13959_v2, %v17475_v45  ;;  %v17847_v7 = vadd.f32 %v17756_v37, %v3137_v40  ;;  %v14871_v2 = vld [vmem:[%s15171_s18 + $0x40] sm:$0xff]  }
 0x1e3   : > { %v3025_v12 = vpop.f32.mrf.mxu1 }
 0x1e4   : > { %v17850_v60 = vpop.f32.mrf.mxu0  ;;  %v3140_v0 = vadd.f32 %v3025_v12, %v17486_v25  ;;  %v17854_v10 = vadd.f32 %v17765_v1, %v3142_v49  ;;  %14302 = vmatmul.mubr.bf16.gmra.mxu0 %v14869_v28 }
 0x1e5   : > { %v13960_v43 = vpop.f32.mrf.mxu1  ;;  %14305 = vmatprep.mubr.bf16.mxu0 %v14871_v2 }
 0x1e6   : > { %v17856_v42 = vpop.f32.mrf.mxu0  ;;  %v3143_v45 = vadd.f32 %v13960_v43, %v17489_v48  ;;  %v17860_v37 = vadd.f32 %v17774_v8, %v3140_v0  ;;  %v14872_v48 = vld [vmem:[%s15171_s18 + $0x48] sm:$0xff]   ;;  %v14873_v8 = vld [vmem:[%s20621_s2 + $0xb8] sm:$0xff]  }
 0x1e7   : > { %v3028_v32 = vpop.f32.mrf.mxu1  ;;  %14369 = vmatprep.subr.bf16.mxu0 %v14873_v8 }
 0x1e8   : > { %v17862_v21 = vpop.f32.mrf.mxu0  ;;  %v3141_v19 = vadd.f32 %v3028_v32, %v17523_v55  ;;  %v17866_v25 = vadd.f32 %v17780_v47, %v3143_v45  ;;  %14370 = vmatpush3.bf16.msra.mxu0 %v14873_v8 }
 0x1e9   : > { %v13963_v40 = vpop.f32.mrf.mxu1 }
 0x1ea   : > { %v17868_v1 = vpop.f32.mrf.mxu0  ;;  %v3146_v41 = vadd.f32 %v13963_v40, %v17548_v39  ;;  %v17873_v49 = vadd.f32 %v17787_v22, %v3141_v19  ;;  %v441_v22 = vld [vmem:[#allocation3 + $0xc] sm:$0x1]  ;;  %v14870_v40 = vld [vmem:[%s20621_s2 + $0x18] sm:$0xff]  }
 0x1eb   : > { %21041 = vst [vmem:[#allocation22_spill] sm:$0xff] %v17868_v1  ;;  %v3041_v28 = vpop.f32.mrf.mxu1  ;;  %v442_v32 = vsel %vm15175_vm3, 0, %v441_v22  ;;  %14233 = vmatprep.subr.bf16.mxu1 %v14870_v40 }
 0x1ec   : > { %21042 = vst [vmem:[#allocation24_spill] sm:$0xff] %v17873_v49  ;;  %v17879_v12 = vpop.f32.mrf.mxu0  ;;  %v3144_v55 = vadd.f32 %v3041_v28, %v17558_v61  ;;  %v17883_v47 = vadd.f32 %v17794_v58, %v3146_v41  ;;  %14306 = vmatmul.mubr.bf16.gmra.mxu0 %v14872_v48  ;;  %v14875_v61 = vld [vmem:[%s20621_s2 + $0xb0] sm:$0xff]   ;;  %443 = vst [vmem:[#allocation3 + $0xc] sm:$0x1] %v442_v32  ;;  %14234 = vmatpush3.bf16.msra.mxu1 %v14870_v40 }
 0x1ed   : > { %v13964_v39 = vpop.f32.mrf.mxu1  ;;  %14371 = vmatprep.subr.bf16.mxu0 %v14875_v61 }
 0x1ee   : > { %v17885_v0 = vpop.f32.mrf.mxu0  ;;  %v3147_v43 = vadd.f32 %v13964_v39, %v17575_v16  ;;  %v17889_v45 = vadd.f32 %v17803_v24, %v3144_v55  ;;  %v498_v16 = vld [vmem:[#allocation3 + $0x20] sm:$0x1]  ;;  %v495_v55 = vld [vmem:[#allocation3 + $0x14] sm:$0x1]  ;;  %14372 = vmatpush3.bf16.msra.mxu0 %v14875_v61  ;;  %v14876_v39 = vld [vmem:[%s15171_s18 + $0x50] sm:$0xff]  }
 0x1ef   : > { %v3044_v58 = vpop.f32.mrf.mxu1  ;;  %v499_v48 = vsel %vm15183_vm4, 0, %v498_v16  ;;  %14309 = vmatprep.mubr.bf16.mxu0 %v14876_v39 }
 0x1f0   : > { %v17896_v19 = vpop.f32.mrf.mxu0  ;;  %v3145_v24 = vadd.f32 %v3044_v58, %v17593_v26  ;;  %v17903_v2 = vadd.f32 %v17809_v15, %v3147_v43  ;;  %500 = vst [vmem:[#allocation3 + $0x20] sm:$0x1] %v499_v48  ;;  %v496_v26 = vsel %vm15183_vm4, 0, %v495_v55  ;;  %v14877_v15 = vld [vmem:[%s15171_s18 + $0x58] sm:$0xff]   ;;  %v14878_v43 = vld [vmem:[%s20621_s2 + $0xa8] sm:$0xff]  }
 0x1f1   : > { %v13967_v8 = vpop.f32.mrf.mxu1  ;;  %497 = vst [vmem:[#allocation3 + $0x14] sm:$0x1] %v496_v26  ;;  %14373 = vmatprep.subr.bf16.mxu0 %v14878_v43 }
 0x1f2   : > { %v17907_v28 = vpop.f32.mrf.mxu0  ;;  %v3150_v22 = vadd.f32 %v13967_v8, %v17602_v3  ;;  %v17912_v32 = vadd.f32 %v17816_v6, %v3145_v24  ;;  %v450_v6 = vld [vmem:[#allocation3 + $0x30] sm:$0x1]  ;;  %14374 = vmatpush3.bf16.msra.mxu0 %v14878_v43 }
 0x1f3   : > { %21044 = vst [vmem:[#allocation25_spill] sm:$0xff] %v17907_v28  ;;  %v3057_v58 = vpop.f32.mrf.mxu1  ;;  %v451_v24 = vsel %vm15175_vm3, 0, %v450_v6 }
 0x1f4   : > { %21045 = vst [vmem:[#allocation26_spill] sm:$0xff] %v17912_v32  ;;  %v3148_v61 = vadd.f32 %v3057_v58, %v17631_v53  ;;  %v17921_v16 = vpop.f32.mrf.mxu0  ;;  %v17924_v3 = vadd.f32 %v17824_v29, %v3150_v22  ;;  %14310 = vmatmul.mubr.bf16.gmra.mxu0 %v14877_v15  ;;  %452 = vst [vmem:[#allocation3 + $0x30] sm:$0x1] %v451_v24  ;;  %v447_v53 = vld [vmem:[#allocation3 + $0x24] sm:$0x1]  ;;  %v14880_v29 = vld [vmem:[%s20621_s2 + $0xa0] sm:$0xff]  }
 0x1f5   : > { %v13968_v40 = vpop.f32.mrf.mxu1  ;;  %v448_v39 = vsel %vm15175_vm3, 0, %v447_v53  ;;  %v504_v15 = vld [vmem:[#allocation3 + $0x38] sm:$0x1]  ;;  %14375 = vmatprep.subr.bf16.mxu0 %v14880_v29  ;;  %v14883_v53 = vld [vmem:[%s20621_s2 + $0x98] sm:$0xff]  }
 0x1f6   : > { %v3151_v48 = vadd.f32 %v13968_v40, %v17656_v44  ;;  %v17930_v8 = vadd.f32 %v17830_v11, %v3148_v61  ;;  %v17938_v26 = vpop.f32.mrf.mxu0  ;;  %449 = vst [vmem:[#allocation3 + $0x24] sm:$0x1] %v448_v39  ;;  %v14874_v11 = vld [vmem:[%s20621_s2 + $0x10] sm:$0xff]   ;;  %v505_v58 = vsel %vm15183_vm4, 0, %v504_v15  ;;  %14376 = vmatpush3.bf16.msra.mxu0 %v14880_v29  ;;  %v14881_v61 = vld [vmem:[%s15171_s18 + $0x60] sm:$0xff]   ;;  %v14882_v40 = vld [vmem:[%s15171_s18 + $0x68] sm:$0xff]  }
 0x1f7   : > { %v3060_v55 = vpop.f32.mrf.mxu1  ;;  %14235 = vmatprep.subr.bf16.mxu1 %v14874_v11  ;;  %506 = vst [vmem:[#allocation3 + $0x38] sm:$0x1] %v505_v58  ;;  %14313 = vmatprep.mubr.bf16.mxu0 %v14881_v61  ;;  %v14879_v39 = vld [vmem:[%s20621_s2 + $0x8] sm:$0xff]  }
 0x1f8   : > { %v3149_v22 = vadd.f32 %v3060_v55, %v17665_v31  ;;  %v17941_v44 = vadd.f32 %v17836_v36, %v3151_v48  ;;  %v501_v36 = vld [vmem:[#allocation3 + $0x2c] sm:$0x1]  ;;  %14236 = vmatpush3.bf16.msra.mxu1 %v14874_v11  ;;  %v456_v55 = vld [vmem:[#allocation3 + $0x48] sm:$0x1]  ;;  %14377 = vmatprep.subr.bf16.mxu0 %v14883_v53 }
 0x1f9   : > { %v13971_v43 = vpop.f32.mrf.mxu1  ;;  %v502_v48 = vsel %vm15183_vm4, 0, %v501_v36  ;;  %v457_v11 = vsel %vm15175_vm3, 0, %v456_v55  ;;  %14237 = vmatprep.subr.bf16.mxu1 %v14879_v39 }
 0x1fa   : > { %v3154_v31 = vadd.f32 %v13971_v43, %v17682_v33  ;;  %v17951_v6 = vadd.f32 %v17842_v14, %v3149_v22  ;;  %v17960_v33 = vpop.f32.mrf.mxu0  ;;  %503 = vst [vmem:[#allocation3 + $0x2c] sm:$0x1] %v502_v48  ;;  %458 = vst [vmem:[#allocation3 + $0x48] sm:$0x1] %v457_v11  ;;  %14378 = vmatpush3.bf16.msra.mxu0 %v14883_v53  ;;  %v438_v48 = vld [vmem:[#allocation3] sm:$0x1] }
 0x1fb   : > { %v3073_v24 = vpop.f32.mrf.mxu1  ;;  %v439_v55 = vsel %vm15175_vm3, 0, %v438_v48  ;;  %v462_v11 = vld [vmem:[#allocation3 + $0x60] sm:$0x1] }
 0x1fc   : > { %21046 = vst [vmem:[#allocation27_spill] sm:$0xff] %v17951_v6  ;;  %v3152_v29 = vadd.f32 %v3073_v24, %v17701_v18  ;;  %v17963_v14 = vadd.f32 %v17850_v60, %v3154_v31  ;;  %14314 = vmatmul.mubr.bf16.gmra.mxu0 %v14882_v40  ;;  %v453_v60 = vld [vmem:[#allocation3 + $0x3c] sm:$0x1]  ;;  %14238 = vmatpush3.bf16.msra.mxu1 %v14879_v39  ;;  %v17978_v61 = vpop.f32.mrf.mxu0  ;;  %v507_v24 = vld [vmem:[#allocation3 + $0x44] sm:$0x1] }
 0x1fd   : > { %v13972_v22 = vpop.f32.mrf.mxu1  ;;  %v454_v58 = vsel %vm15175_vm3, 0, %v453_v60  ;;  %21047 = vst [vmem:[#allocation28_spill] sm:$0xff] %v17978_v61  ;;  %440 = vst [vmem:[#allocation3] sm:$0x1] %v439_v55  ;;  %v463_v60 = vsel %vm15175_vm3, 0, %v462_v11  ;;  %v14887_v11 = vld [vmem:[%s15171_s18 + $0x78] sm:$0xff]  }
 0x1fe   : > { %v3155_v15 = vadd.f32 %v13972_v22, %v17715_v38  ;;  %v17972_v18 = vadd.f32 %v17856_v42, %v3152_v29  ;;  %455 = vst [vmem:[#allocation3 + $0x3c] sm:$0x1] %v454_v58  ;;  %v510_v38 = vld [vmem:[#allocation3 + $0x50] sm:$0x1]  ;;  %v508_v29 = vsel %vm15183_vm4, 0, %v507_v24 }
 0x1ff   : > { %v17974_v43 = vpop.f32.mrf.mxu1  ;;  %v511_v42 = vsel %vm15183_vm4, 0, %v510_v38  ;;  %509 = vst [vmem:[#allocation3 + $0x44] sm:$0x1] %v508_v29  ;;  %464 = vst [vmem:[#allocation3 + $0x60] sm:$0x1] %v463_v60 }
 0x200   : > { %v17981_v31 = vadd.f32 %v17862_v21, %v3155_v15  ;;  %512 = vst [vmem:[#allocation3 + $0x50] sm:$0x1] %v511_v42  ;;  %v17991_v39 = vpop.f32.mrf.mxu0  ;;  %v471_v61 = vld [vmem:[#allocation3 + $0x84] sm:$0x1] }
 0x201   : > { %v13975_v36 = vpop.f32.mrf.mxu1 }
 0x202   : > { %v3158_v40 = vadd.f32 %v13975_v36, %v17737_v20  ;;  %v14884_v20 = vld [vmem:[%s20621_s2] sm:$0xff]   ;;  %v459_v36 = vld [vmem:[#allocation3 + $0x54] sm:$0x1] }
 0x203   : > { %v3089_v53 = vpop.f32.mrf.mxu1  ;;  %14239 = vmatprep.subr.bf16.mxu1 %v14884_v20 }
 0x204   : > { %v3156_v21 = vadd.f32 %v3089_v53, %v17746_v4  ;;  %v17994_v22 = vadd.f32 %v17879_v12, %v3158_v40  ;;  %v14885_v4 = vld [vmem:[%s20621_s2 + $0x90] sm:$0xff]   ;;  %v18005_v12 = vpop.f32.mrf.mxu0  ;;  %v460_v40 = vsel %vm15175_vm3, 0, %v459_v36  ;;  %14240 = vmatpush3.bf16.msra.mxu1 %v14884_v20  ;;  %v14888_v20 = vld [vmem:[%s20621_s2 + $0x88] sm:$0xff]   ;;  %v516_v36 = vld [vmem:[#allocation3 + $0x68] sm:$0x1] }
 0x205   : > { %v13976_v15 = vpop.f32.mrf.mxu1  ;;  %14379 = vmatprep.subr.bf16.mxu0 %v14885_v4  ;;  %461 = vst [vmem:[#allocation3 + $0x54] sm:$0x1] %v460_v40  ;;  %v14886_v53 = vld [vmem:[%s15171_s18 + $0x70] sm:$0xff]   ;;  %v517_v40 = vsel %vm15183_vm4, 0, %v516_v36 }
 0x206   : > { %v3159_v58 = vadd.f32 %v13976_v15, %v17753_v51  ;;  %v18008_v38 = vadd.f32 %v17885_v0, %v3156_v21  ;;  %v18014_v24 = vpop.f32.mrf.mxu0  ;;  %14380 = vmatpush3.bf16.msra.mxu0 %v14885_v4  ;;  %v492_v0 = vld [vmem:[#allocation3 + $0x8] sm:$0x1]  ;;  %14317 = vmatprep.mubr.bf16.mxu0 %v14886_v53  ;;  %v14889_v15 = vld [vmem:[#allocation3] sm:$0xff]   ;;  %518 = vst [vmem:[#allocation3 + $0x68] sm:$0x1] %v517_v40 }
 0x207   : > { %v18010_v42 = vpop.f32.mrf.mxu1  ;;  %v493_v29 = vsel %vm15183_vm4, 0, %v492_v0  ;;  %14318 = vmatmul.mubr.bf16.gmra.mxu0 %v14887_v11  ;;  %14381 = vmatprep.subr.bf16.mxu0 %v14888_v20 }
 0x208   : > { %v18017_v51 = vadd.f32 %v17896_v19, %v3159_v58  ;;  %v18023_v21 = vpop.f32.mrf.mxu0  ;;  %494 = vst [vmem:[#allocation3 + $0x8] sm:$0x1] %v493_v29  ;;  %14241 = vmatprep.mubr.bf16.mxu1 %v14889_v15  ;;  %v7403_v29 = vld [vmem:[#allocation3 + $0x4] sm:$0xf]  ;;  %v8156_v15 = vld [vmem:[#allocation3] sm:$0xe] }
 0x209   : > { %v13979_v48 = vpop.f32.mrf.mxu1  ;;  %21048 = vst [vmem:[#allocation32_spill] sm:$0xff] %v18023_v21  ;;  %v12703_v40 = vrot.slane %v8156_v15, 9  ;;  %v468_v21 = vld [vmem:[#allocation3 + $0x78] sm:$0x1] }
 0x20a   : > { %v3162_v55 = vadd.f32 %v13979_v48, %v17769_v5  ;;  %v18030_v4 = vpop.f32.mrf.mxu0  ;;  %14382 = vmatpush3.bf16.msra.mxu0 %v14888_v20 }
 0x20b   : > { %v3105_v19 = vpop.f32.mrf.mxu1 }
 0x20c   : > { %v3160_v60 = vadd.f32 %v3105_v19, %v17778_v35  ;;  %v18033_v58 = vadd.f32 %v17921_v16, %v3162_v55  ;;  %v18038_v48 = vpop.f32.mrf.mxu0  ;;  %v14893_v16 = vld [vmem:[%s20621_s2 + $0x80] sm:$0xff]   ;;  %v513_v19 = vld [vmem:[#allocation3 + $0x5c] sm:$0x1] }
 0x20d   : > { %v13980_v5 = vpop.f32.mrf.mxu1  ;;  %14383 = vmatprep.subr.bf16.mxu0 %v14893_v16 }
 0x20e   : > { %v3163_v0 = vadd.f32 %v13980_v5, %v17784_v50  ;;  %v18041_v35 = vadd.f32 %v17938_v26, %v3160_v60  ;;  %v18048_v55 = vpop.f32.mrf.mxu0  ;;  %v8222_v50 = vrot.slane %v7403_v29, 5  ;;  %14384 = vmatpush3.bf16.msra.mxu0 %v14893_v16  ;;  %v514_v5 = vsel %vm15183_vm4, 0, %v513_v19 }
 0x20f   : > { %v18046_v53 = vpop.f32.mrf.mxu1  ;;  %21049 = vst [vmem:[#allocation14_spill] sm:$0xff] %v18048_v55  ;;  %v7404_v26 = vld [vmem:[#allocation3 + $0x8] sm:$0x1]  ;;  %515 = vst [vmem:[#allocation3 + $0x5c] sm:$0x1] %v514_v5  ;;  %v469_v19 = vsel %vm15175_vm3, 0, %v468_v21 }
 0x210   : > { %v18051_v11 = vadd.f32 %v17960_v33, %v3163_v0  ;;  %v18054_v36 = vpop.f32.mrf.mxu0  ;;  %v8224_v6 = vrot.slane %v8222_v50, 4  ;;  %v8225_v33 = vrot.slane %v7404_v26, 5  ;;  %470 = vst [vmem:[#allocation3 + $0x78] sm:$0x1] %v469_v19 }
 0x211   : > { %v13983_v20 = vpop.f32.mrf.mxu1  ;;  %21050 = vst [vmem:[#allocation17_spill] sm:$0xff] %v18054_v36 }
 0x212   : > { %v3166_v60 = vadd.f32 %v13983_v20, %v17798_v13  ;;  %v18059_v29 = vpop.f32.mrf.mxu0  ;;  %v8223_v13 = vsel %vm15689_vm14, %v12703_v40, %v8222_v50  ;;  %v8226_v15 = vsel %vm15689_vm14, %v8224_v6, %v8225_v33  ;;  %v522_v6 = vld [vmem:[#allocation3 + $0x80] sm:$0x1] }
 0x213   : > { %v3121_v59 = vpop.f32.mrf.mxu1  ;;  %21051 = vst [vmem:[#allocation60_spill] sm:$0xff] %v18059_v29 }
 0x214   : > { %v3164_v0 = vadd.f32 %v3121_v59, %v17807_v34  ;;  %v18062_v16 = vadd.f32 %v17991_v39, %v3166_v60  ;;  %v18071_v5 = vpop.f32.mrf.mxu0  ;;  %v465_v34 = vld [vmem:[#allocation3 + $0x6c] sm:$0x1]  ;;  %v12735_v39 = vcombine.low %v8223_v13, %v8226_v15 }
 0x215   : > { %v13984_v20 = vpop.f32.mrf.mxu1  ;;  %21052 = vst [vmem:[#allocation38_spill] sm:$0xff] %v18071_v5  ;;  %v466_v50 = vsel %vm15175_vm3, 0, %v465_v34 }
 0x216   : > { %v3167_v26 = vadd.f32 %v13984_v20, %v17813_v56  ;;  %v18074_v59 = vadd.f32 %v18005_v12, %v3164_v0  ;;  %v14104_v40 = vpop.f32.mrf.mxu0  ;;  %467 = vst [vmem:[#allocation3 + $0x6c] sm:$0x1] %v466_v50  ;;  %14385 = vmatprep.mubr.bf16.mxu0 %v12735_v39  ;;  %v523_v12 = vsel %vm15183_vm4, 0, %v522_v6  ;;  %v519_v0 = vld [vmem:[#allocation3 + $0x74] sm:$0x1]  ;;  %v18100_v39 = vld [vmem:[%s20621_s2 + $0x78] sm:$0xff]  }
 0x217   : > { %v18076_v60 = vpop.f32.mrf.mxu1  ;;  %524 = vst [vmem:[#allocation3 + $0x80] sm:$0x1] %v523_v12  ;;  %v520_v20 = vsel %vm15183_vm4, 0, %v519_v0  ;;  %21054 = vst [vmem:[#allocation64_spill] sm:$0xff] %v18100_v39  ;;  %14321 = vmatprep.subr.bf16.mxu1 %v18100_v39 }
 0x218   : > { %v18081_v21 = vadd.f32 %v18014_v24, %v3167_v26  ;;  %v18087_v33 = vpop.f32.mrf.mxu0  ;;  %521 = vst [vmem:[#allocation3 + $0x74] sm:$0x1] %v520_v20  ;;  %v474_v24 = vld [vmem:[#allocation3 + $0x90] sm:$0x1] }
 0x219   : > { %v18083_v56 = vpop.f32.mrf.mxu1  ;;  %21053 = vst [vmem:[#allocation35_spill] sm:$0xff] %v18087_v33  ;;  %v475_v26 = vsel %vm15175_vm3, 0, %v474_v24 }
 0x21a   : > { %v14107_v19 = vpop.f32.mrf.mxu0  ;;  %476 = vst [vmem:[#allocation3 + $0x90] sm:$0x1] %v475_v26 }
 0x21b   : > { %v18089_v13 = vpop.f32.mrf.mxu1 }
 0x21c   : > { %v4680_v34 = vpop.f32.mrf.mxu0 }
 0x21d   : > { %v18093_v15 = vpop.f32.mrf.mxu1 }
 0x21e   : > { %v14108_v6 = vpop.f32.mrf.mxu0 }
 0x21f   : > { %v18102_v50 = vpop.f32.mrf.mxu1 }
 0x220   : > { %v18107_v0 = vpop.f32.mrf.mxu0 }
 0x221   : > { %v18105_v12 = vpop.f32.mrf.mxu1  ;;  %21055 = vst [vmem:[#allocation40_spill] sm:$0xff] %v18107_v0 }
 0x222   : > { %v14111_v17 = vpop.f32.mrf.mxu0 }
 0x223   : > { %v18109_v20 = vpop.f32.mrf.mxu1 }
 0x224   : > { %v4696_v5 = vpop.f32.mrf.mxu0 }
 0x225   : > { %v14056_v24 = vpop.f32.mrf.mxu1 }
 0x226   : > { %v4395_v33 = vadd.f32 %v14056_v24, %v17866_v25  ;;  %v14112_v36 = vpop.f32.mrf.mxu0  ;;  %v472_v25 = vsel %vm15175_vm3, 0, %v471_v61 }
 0x227   : > { %v18112_v29 = vpop.f32.mrf.mxu1  ;;  %473 = vst [vmem:[#allocation3 + $0x84] sm:$0x1] %v472_v25 }
 0x228   : > { %21056 = vst [vmem:[#allocation21_spill] sm:$0xff] %v18112_v29  ;;  %v18114_v26 = vadd.f32 %v14104_v40, %v4395_v33  ;;  %v18117_v39 = vpop.f32.mrf.mxu0 }
 0x229   : > { %v14059_v32 = vpop.f32.mrf.mxu1  ;;  %21058 = vst [vmem:[#allocation20_spill] sm:$0xff] %v18117_v39 }
 0x22a   : > { %21057 = vst [vmem:[#allocation42_spill] sm:$0xff] %v18114_v26  ;;  %v4398_v49 = vadd.f32 %v14059_v32, %v17883_v47  ;;  %v14115_v28 = vpop.f32.mrf.mxu0 }
 0x22b   : > { %v4293_v55 = vpop.f32.mrf.mxu1 }
 0x22c   : > { %v4396_v0 = vadd.f32 %v4293_v55, %v17889_v45  ;;  %v18120_v1 = vadd.f32 %v14107_v19, %v4398_v49  ;;  %v4712_v33 = vpop.f32.mrf.mxu0  ;;  %v528_v19 = vld [vmem:[#allocation3 + $0x98] sm:$0x1] }
 0x22d   : > { %v14060_v24 = vpop.f32.mrf.mxu1 }
 0x22e   : > { %21059 = vst [vmem:[#allocation66_spill] sm:$0xff] %v18120_v1  ;;  %v4399_v40 = vadd.f32 %v14060_v24, %v17903_v2  ;;  %v18125_v26 = vadd.f32 %v4680_v34, %v4396_v0  ;;  %v14116_v32 = vpop.f32.mrf.mxu0  ;;  %v529_v2 = vsel %vm15183_vm4, 0, %v528_v19  ;;  %v477_v19 = vld [vmem:[#allocation3 + $0x9c] sm:$0x1] }
 0x22f   : > { %v18127_v47 = vpop.f32.mrf.mxu1  ;;  %530 = vst [vmem:[#allocation3 + $0x98] sm:$0x1] %v529_v2 }
 0x230   : > { %v18129_v39 = vadd.f32 %v14108_v6, %v4399_v40  ;;  %v18132_v49 = vpop.f32.mrf.mxu0 }
 0x231   : > { %v14063_v29 = vpop.f32.mrf.mxu1 }
 0x232   : > { %21060 = vst [vmem:[#allocation44_spill] sm:$0xff] %v18129_v39  ;;  %v4402_v45 = vadd.f32 %v14063_v29, %v17924_v3  ;;  %v14119_v25 = vpop.f32.mrf.mxu0  ;;  %v525_v39 = vld [vmem:[#allocation3 + $0x8c] sm:$0x1] }
 0x233   : > { %v4309_v55 = vpop.f32.mrf.mxu1 }
 0x234   : > { %v4400_v61 = vadd.f32 %v4309_v55, %v17930_v8  ;;  %v18135_v1 = vadd.f32 %v14111_v17, %v4402_v45  ;;  %v4728_v0 = vpop.f32.mrf.mxu0  ;;  %v480_v8 = vld [vmem:[#allocation3 + $0xa8] sm:$0x1]  ;;  %v526_v17 = vsel %vm15183_vm4, 0, %v525_v39 }
 0x235   : > { %v14064_v34 = vpop.f32.mrf.mxu1  ;;  %v481_v45 = vsel %vm15175_vm3, 0, %v480_v8  ;;  %527 = vst [vmem:[#allocation3 + $0x8c] sm:$0x1] %v526_v17 }
 0x236   : > { %v4403_v6 = vadd.f32 %v14064_v34, %v17941_v44  ;;  %v18140_v24 = vadd.f32 %v4696_v5, %v4400_v61  ;;  %v14120_v29 = vpop.f32.mrf.mxu0  ;;  %482 = vst [vmem:[#allocation3 + $0xa8] sm:$0x1] %v481_v45 }
 0x237   : > { %v18142_v3 = vpop.f32.mrf.mxu1 }
 0x238   : > { %21061 = vst [vmem:[#allocation59_spill] sm:$0xff] %v18140_v24  ;;  %v18144_v40 = vadd.f32 %v14112_v36, %v4403_v6  ;;  %v18151_v2 = vpop.f32.mrf.mxu0  ;;  %v478_v36 = vsel %vm15175_vm3, 0, %v477_v19 }
 0x239   : > { %v14067_v55 = vpop.f32.mrf.mxu1  ;;  %479 = vst [vmem:[#allocation3 + $0x9c] sm:$0x1] %v478_v36 }
 0x23a   : > { %21062 = vst [vmem:[#allocation19_spill] sm:$0xff] %v18144_v40  ;;  %v4406_v44 = vadd.f32 %v14067_v55, %v17963_v14  ;;  %v14123_v34 = vpop.f32.mrf.mxu0  ;;  %v534_v40 = vld [vmem:[#allocation3 + $0xb0] sm:$0x1] }
 0x23b   : > { %v4325_v5 = vpop.f32.mrf.mxu1  ;;  %v535_v55 = vsel %vm15183_vm4, 0, %v534_v40 }
 0x23c   : > { %v4404_v61 = vadd.f32 %v4325_v5, %v17972_v18  ;;  %v18156_v6 = vadd.f32 %v14115_v28, %v4406_v44  ;;  %v4744_v24 = vpop.f32.mrf.mxu0  ;;  %536 = vst [vmem:[#allocation3 + $0xb0] sm:$0x1] %v535_v55 }
 0x23d   : > { %v14068_v39 = vpop.f32.mrf.mxu1 }
 0x23e   : > { %v4407_v8 = vadd.f32 %v14068_v39, %v17981_v31  ;;  %v18159_v14 = vadd.f32 %v4712_v33, %v4404_v61  ;;  %v14124_v45 = vpop.f32.mrf.mxu0 }
 0x23f   : > { %v18163_v17 = vpop.f32.mrf.mxu1 }
 0x240   : > { %21063 = vst [vmem:[#allocation49_spill] sm:$0xff] %v18159_v14  ;;  %v18165_v19 = vadd.f32 %v14116_v32, %v4407_v8  ;;  %v18168_v44 = vpop.f32.mrf.mxu0  ;;  %v531_v32 = vld [vmem:[#allocation3 + $0xa4] sm:$0x1] }
 0x241   : > { %v14071_v18 = vpop.f32.mrf.mxu1 }
 0x242   : > { %21064 = vst [vmem:[#allocation18_spill] sm:$0xff] %v18165_v19  ;;  %v4410_v28 = vadd.f32 %v14071_v18, %v17994_v22  ;;  %v14127_v5 = vpop.f32.mrf.mxu0  ;;  %v532_v22 = vsel %vm15183_vm4, 0, %v531_v32 }
 0x243   : > { %v4341_v36 = vpop.f32.mrf.mxu1  ;;  %533 = vst [vmem:[#allocation3 + $0xa4] sm:$0x1] %v532_v22 }
 0x244   : > { %v4408_v31 = vadd.f32 %v4341_v36, %v18008_v38  ;;  %v18171_v33 = vadd.f32 %v14119_v25, %v4410_v28  ;;  %v4760_v39 = vpop.f32.mrf.mxu0  ;;  %v486_v28 = vld [vmem:[#allocation3 + $0xc0] sm:$0x1] }
 0x245   : > { %v14072_v61 = vpop.f32.mrf.mxu1 }
 0x246   : > { %21065 = vst [vmem:[#allocation63_spill] sm:$0xff] %v18171_v33  ;;  %v4411_v40 = vadd.f32 %v14072_v61, %v18017_v51  ;;  %v18174_v14 = vadd.f32 %v4728_v0, %v4408_v31  ;;  %v14128_v8 = vpop.f32.mrf.mxu0  ;;  %v483_v51 = vld [vmem:[#allocation3 + $0xb4] sm:$0x1]  ;;  %v487_v0 = vsel %vm15175_vm3, 0, %v486_v28 }
 0x247   : > { %v18176_v55 = vpop.f32.mrf.mxu1  ;;  %v484_v31 = vsel %vm15175_vm3, 0, %v483_v51  ;;  %488 = vst [vmem:[#allocation3 + $0xc0] sm:$0x1] %v487_v0  ;;  %v21069_v51 = vld [vmem:[#allocation29_spill] sm:$0xff] }
 0x248   : > { %21066 = vst [vmem:[#allocation61_spill] sm:$0xff] %v18174_v14  ;;  %v18178_v19 = vadd.f32 %v14120_v29, %v4411_v40  ;;  %v18183_v25 = vpop.f32.mrf.mxu0  ;;  %485 = vst [vmem:[#allocation3 + $0xb4] sm:$0x1] %v484_v31  ;;  %v540_v14 = vld [vmem:[#allocation3 + $0xc8] sm:$0x1] }
 0x249   : > { %v14075_v18 = vpop.f32.mrf.mxu1 }
 0x24a   : > { %21067 = vst [vmem:[#allocation10_spill] sm:$0xff] %v18178_v19  ;;  %v4414_v38 = vadd.f32 %v14075_v18, %v18033_v58  ;;  %v14195_v61 = vpop.f32.mrf.mxu0 }
 0x24b   : > { %v4357_v36 = vpop.f32.mrf.mxu1 }
 0x24c   : > { %v4412_v29 = vadd.f32 %v4357_v36, %v18041_v35  ;;  %v18190_v40 = vadd.f32 %v14123_v34, %v4414_v38  ;;  %v5900_v22 = vpop.f32.mrf.mxu0  ;;  %v541_v35 = vsel %vm15183_vm4, 0, %v540_v14  ;;  %v21068_v34 = vld [vmem:[#allocation41_spill] sm:$0xff]  ;;  %v2254_v36 = vadd.f32 %v17748_v46, %v21069_v51 }
 0x24d   : > { %v14076_v32 = vpop.f32.mrf.mxu1  ;;  %v2238_v38 = vadd.f32 %v17706_v54, %v21068_v34  ;;  %542 = vst [vmem:[#allocation3 + $0xc8] sm:$0x1] %v541_v35 }
 0x24e   : > { %v4415_v58 = vadd.f32 %v14076_v32, %v18051_v11  ;;  %v18193_v18 = vadd.f32 %v4744_v24, %v4412_v29  ;;  %v18197_v28 = vpop.f32.mrf.mxu0  ;;  %v2771_v46 = vadd.f32 %v17585_v9, %v2254_v36  ;;  %v4391_v9 = vadd.f32 %v18093_v15, %v17840_v62 }
 0x24f   : > { %v18195_v19 = vpop.f32.mrf.mxu1  ;;  %v2767_v54 = vadd.f32 %v17478_v30, %v2238_v38  ;;  %v4394_v62 = vadd.f32 %v18105_v12, %v17854_v10  ;;  %v21070_v38 = vld [vmem:[#allocation22_spill] sm:$0xff] }
 0x250   : > { %v18199_v33 = vadd.f32 %v14124_v45, %v4415_v58  ;;  %v18208_v0 = vpop.f32.mrf.mxu0  ;;  %v4390_v45 = vadd.f32 %v18083_v56, %v17828_v27  ;;  %v3161_v56 = vadd.f32 %v18046_v53, %v17791_v52  ;;  %v3165_v52 = vadd.f32 %v18076_v60, %v17822_v23  ;;  %v21071_v60 = vld [vmem:[#allocation25_spill] sm:$0xff] }
 0x251   : > { %v14079_v11 = vpop.f32.mrf.mxu1  ;;  %v3153_v27 = vadd.f32 %v17974_v43, %v2767_v54  ;;  %v18240_v43 = vld [vmem:[%s20621_s2 + $0x138] sm:$0xff]  }
 0x252   : > { %v4418_v24 = vadd.f32 %v14079_v11, %v18062_v16  ;;  %v4388_v16 = vadd.f32 %v18089_v13, %v17834_v57  ;;  %v4777_v57 = vadd.f32 %v18030_v4, %v4390_v45  ;;  %14465 = vmatprep.subr.bf16.mxu0 %v18240_v43  ;;  %v21074_v45 = vld [vmem:[#allocation24_spill] sm:$0xff] }
 0x253   : > { %v4373_v31 = vpop.f32.mrf.mxu1  ;;  %v18213_v32 = vpop.f32.mrf.mxu0  ;;  %v3907_v23 = vadd.f32 %v21070_v38, %v3153_v27  ;;  %v21078_v27 = vld [vmem:[#allocation17_spill] sm:$0xff]  ;;  %v21081_v38 = vld [vmem:[#allocation38_spill] sm:$0xff] }
 0x254   : > { %v4416_v29 = vadd.f32 %v4373_v31, %v18074_v59  ;;  %v18215_v14 = vadd.f32 %v14127_v5, %v4418_v24  ;;  %v3157_v59 = vadd.f32 %v18010_v42, %v2771_v46  ;;  %v537_v5 = vld [vmem:[#allocation3 + $0xbc] sm:$0x1]  ;;  %v4389_v42 = vadd.f32 %v18102_v50, %v17847_v7  ;;  %v18259_v7 = vld [vmem:[%s20625_s6] ss:$0 sm:$0xff] }
 0x255   : > { %v14080_v58 = vpop.f32.mrf.mxu1  ;;  %v18222_v34 = vpop.f32.mrf.mxu0  ;;  %v4775_v15 = vadd.f32 %v18038_v48, %v4388_v16  ;;  %v21072_v50 = vld [vmem:[#allocation28_spill] sm:$0xff]  ;;  %v21073_v24 = vld [vmem:[#allocation14_spill] sm:$0xff] }
 0x256   : > { %v4419_v35 = vadd.f32 %v14080_v58, %v18081_v21  ;;  %v18224_v51 = vadd.f32 %v4760_v39, %v4416_v29  ;;  %v538_v21 = vsel %vm15183_vm4, 0, %v537_v5  ;;  %v3911_v36 = vadd.f32 %v21071_v60, %v3157_v59  ;;  %v21075_v29 = vld [vmem:[#allocation21_spill] sm:$0xff]  ;;  %v21077_v46 = vld [vmem:[#allocation32_spill] sm:$0xff]  ;;  %v18271_v16 = vld [vmem:[%s20626_s7] ss:$0 sm:$0xff] }
 0x257   : > { %v4376_v30 = vpop.f32.mrf.mxu1  ;;  %539 = vst [vmem:[#allocation3 + $0xbc] sm:$0x1] %v538_v21  ;;  %v18249_v39 = vpop.f32.mrf.mxu0  ;;  %v3915_v12 = vadd.f32 %v21072_v50, %v3161_v56  ;;  %v4778_v31 = vadd.f32 %v21073_v24, %v4391_v9  ;;  %v4393_v54 = vadd.f32 %v21075_v29, %v21074_v45  ;;  %v3919_v58 = vadd.f32 %v21077_v46, %v3165_v52  ;;  %v21079_v9 = vld [vmem:[#allocation60_spill] sm:$0xff]  ;;  %v21082_v24 = vld [vmem:[#allocation35_spill] sm:$0xff] }
 0x258   : > { %v18233_v13 = vadd.f32 %v14128_v8, %v4419_v35  ;;  %v4392_v8 = vadd.f32 %v18109_v20, %v17860_v37  ;;  %v21076_v37 = vld [vmem:[#allocation26_spill] sm:$0xff]  ;;  %v4776_v59 = vadd.f32 %v21078_v27, %v4389_v42  ;;  %v4405_v52 = vadd.f32 %v18163_v17, %v3907_v23  ;;  %v21083_v17 = vld [vmem:[#allocation40_spill] sm:$0xff] }
 0x259   : > { %v14147_v53 = vpop.f32.mrf.mxu1  ;;  %v4397_v20 = vadd.f32 %v18127_v47, %v21076_v37  ;;  %v18276_v21 = vpop.f32.mrf.mxu0 }
 0x25a   : > { %v5531_v4 = vadd.f32 %v14147_v53, %v4777_v57  ;;  %v4781_v57 = vadd.f32 %v21079_v9, %v4394_v62  ;;  %v21080_v53 = vld [vmem:[#allocation27_spill] sm:$0xff]  ;;  %v4779_v60 = vadd.f32 %v21081_v38, %v4392_v8  ;;  %v4413_v62 = vadd.f32 %v18195_v19, %v3915_v12  ;;  %v21084_v19 = vld [vmem:[#allocation20_spill] sm:$0xff] }
 0x25b   : > { %v5402_v10 = vpop.f32.mrf.mxu1  ;;  %v4401_v47 = vadd.f32 %v18142_v3, %v21080_v53  ;;  %v18288_v3 = vadd.f32 %v21082_v24, %v4393_v54  ;;  %v18291_v23 = vadd.f32 %v21083_v17, %v4397_v20  ;;  %v18302_v12 = vadd.f32 %v18132_v49, %v4405_v52 }
 0x25c   : > { %v6029_v48 = vadd.f32 %v14195_v61, %v5531_v4  ;;  %v5529_v11 = vadd.f32 %v5402_v10, %v4775_v15  ;;  %v4409_v4 = vadd.f32 %v18176_v55, %v3911_v36  ;;  %v18296_v45 = vpop.f32.mrf.mxu0 }
 0x25d   : > { %v14148_v35 = vpop.f32.mrf.mxu1 }
 0x25e   : > { %v6067_v61 = vmul.f32 %v18259_v7, %v6029_v48  ;;  %v6027_v56 = vadd.f32 %v5900_v22, %v5529_v11  ;;  %v5532_v5 = vadd.f32 %v14148_v35, %v4778_v31  ;;  %v4417_v48 = vadd.f32 %v4376_v30, %v3919_v58  ;;  %v18316_v9 = vpop.f32.mrf.mxu0 }
 0x25f   : > { %v5405_v15 = vpop.f32.mrf.mxu1  ;;  %v18299_v30 = vadd.f32 %v21084_v19, %v4401_v47  ;;  %v18305_v54 = vadd.f32 %v18151_v2, %v4409_v4  ;;  %v21085_v47 = vld [vmem:[#allocation42_spill] sm:$0xff] }
 0x260   : > { %v6105_v42 = vadd.f32 %v18271_v16, %v6067_v61  ;;  %v6065_v10 = vmul.f32 %v18259_v7, %v6027_v56  ;;  %v6030_v22 = vadd.f32 %v18197_v28, %v5532_v5  ;;  %v5530_v50 = vadd.f32 %v5405_v15, %v4776_v59  ;;  %v18325_v17 = vpop.f32.mrf.mxu0 }
 0x261   : > { %v14151_v11 = vpop.f32.mrf.mxu1  ;;  %v18311_v59 = vadd.f32 %v18168_v44, %v4413_v62  ;;  %v18314_v61 = vadd.f32 %v18183_v25, %v4417_v48 }
 0x262   : > { %v6137_v55 = vmax.f32 %v6105_v42, 0.0  ;;  %v6103_v8 = vadd.f32 %v18271_v16, %v6065_v10  ;;  %v6068_v36 = vmul.f32 %v18259_v7, %v6030_v22  ;;  %v6028_v31 = vadd.f32 %v18208_v0, %v5530_v50 }
 0x263   : > { %v5535_v28 = vadd.f32 %v14151_v11, %v4781_v57  ;;  %v5418_v29 = vpop.f32.mrf.mxu1 }
 0x264   : > { %v13101_v37 = vpack.c.bf16 %v6137_v55, %v6137_v55  ;;  %v6135_v20 = vmax.f32 %v6103_v8, 0.0  ;;  %v6106_v46 = vadd.f32 %v18271_v16, %v6068_v36  ;;  %v6066_v58 = vmul.f32 %v18259_v7, %v6028_v31  ;;  %v6584_v55 = vld [vmem:[#allocation3 + $0xc] sm:$0xf] }
 0x265   : > { %v6033_v0 = vadd.f32 %v18213_v32, %v5535_v28  ;;  %v5533_v35 = vadd.f32 %v5418_v29, %v4779_v60  ;;  %v14152_v27 = vpop.f32.mrf.mxu1  ;;  %v6591_v60 = vld [vmem:[#allocation3 + $0x18] sm:$0xf] }
 0x266   : > { %v6281_v49 = vshrl.u32 %v13101_v37, 16  ;;  %v6284_v56 = vshll.u32 %v13101_v37, 16  ;;  %v13099_v2 = vpack.c.bf16 %v6135_v20, %v6135_v20  ;;  %v6138_v5 = vmax.f32 %v6106_v46, 0.0 }
 0x267   : > { %v6104_v57 = vadd.f32 %v18271_v16, %v6066_v58  ;;  %v6071_v53 = vmul.f32 %v18259_v7, %v6033_v0  ;;  %v6031_v32 = vadd.f32 %v18222_v34, %v5533_v35  ;;  %v5536_v52 = vadd.f32 %v14152_v27, %v21085_v47  ;;  %v5421_v4 = vpop.f32.mrf.mxu1  ;;  %v6595_v58 = vld [vmem:[#allocation3 + $0x20] sm:$0x1] }
 0x268   : > { %v6283_v44 = vrot.slane %v6281_v49, 7  ;;  %v6264_v15 = vshrl.u32 %v13099_v2, 16  ;;  %v6267_v38 = vshll.u32 %v13099_v2, 16  ;;  %v13102_v25 = vpack.c.bf16 %v6138_v5, %v6138_v5 }
 0x269   : > { %v6136_v42 = vmax.f32 %v6104_v57, 0.0  ;;  %v6109_v10 = vadd.f32 %v18271_v16, %v6071_v53  ;;  %v6069_v22 = vmul.f32 %v18259_v7, %v6031_v32  ;;  %v6034_v50 = vadd.f32 %v18249_v39, %v5536_v52  ;;  %v14155_v62 = vpop.f32.mrf.mxu1  ;;  %v5935_v32 = vpop.f32.mrf.mxu0 }
 0x26a   : > { %v6286_v48 = vor.u32 %v6284_v56, %v6283_v44  ;;  %v6287_v11 = vrot.slane %v6283_v44, 4  ;;  %v6266_v24 = vrot.slane %v6264_v15, 7  ;;  %v6289_v34 = vshrl.u32 %v13102_v25, 16 }
 0x26b   : > { %v6292_v8 = vshll.u32 %v13102_v25, 16  ;;  %v13100_v36 = vpack.c.bf16 %v6136_v42, %v6136_v42  ;;  %v6141_v31 = vmax.f32 %v6109_v10, 0.0  ;;  %v6107_v28 = vadd.f32 %v18271_v16, %v6069_v22  ;;  %v5434_v29 = vpop.f32.mrf.mxu1  ;;  %v6588_v10 = vld [vmem:[#allocation3 + $0x14] sm:$0x1] }
 0x26c   : > { %v6592_v37 = vsel %vm15253_vm10, %v6286_v48, %v6591_v60  ;;  %v6269_v20 = vor.u32 %v6267_v38, %v6266_v24  ;;  %v6270_v46 = vrot.slane %v6266_v24, 4  ;;  %v6291_v39 = vrot.slane %v6289_v34, 7 }
 0x26d   : > { %6593 = vst [vmem:[#allocation3 + $0x18] sm:$0xf] %v6592_v37  ;;  %v6272_v0 = vshrl.u32 %v13100_v36, 16  ;;  %v6275_v35 = vshll.u32 %v13100_v36, 16  ;;  %v13105_v27 = vpack.c.bf16 %v6141_v31, %v6141_v31  ;;  %v6139_v49 = vmax.f32 %v6107_v28, 0.0  ;;  %v14156_v56 = vpop.f32.mrf.mxu1  ;;  %v21088_v37 = vld [vmem:[#allocation66_spill] sm:$0xff] }
 0x26e   : > { %v6585_v2 = vsel %vm15253_vm10, %v6269_v20, %v6584_v55  ;;  %v6294_v5 = vor.u32 %v6292_v8, %v6291_v39  ;;  %v6296_v57 = vrot.slane %v6291_v39, 4  ;;  %v6072_v53 = vmul.f32 %v18259_v7, %v6034_v50  ;;  %v6605_v36 = vld [vmem:[#allocation3 + $0x30] sm:$0xf]  ;;  %v14207_v39 = vpop.f32.mrf.mxu0 }
 0x26f   : > { %6586 = vst [vmem:[#allocation3 + $0xc] sm:$0xf] %v6585_v2  ;;  %v6274_v47 = vrot.slane %v6272_v0, 7  ;;  %v6315_v52 = vshrl.u32 %v13105_v27, 16  ;;  %v6318_v44 = vshll.u32 %v13105_v27, 16  ;;  %v13103_v15 = vpack.c.bf16 %v6139_v49, %v6139_v49  ;;  %v5437_v38 = vpop.f32.mrf.mxu1 }
 0x270   : > { %v6295_v60 = vsel %vm15259_vm11, %v6287_v11, %v6294_v5  ;;  %v6596_v42 = vsel %vm15175_vm3, %v6296_v57, %v6595_v58  ;;  %v6110_v22 = vadd.f32 %v18271_v16, %v6072_v53  ;;  %v5534_v48 = vadd.f32 %v5421_v4, %v18288_v3  ;;  %v6598_v5 = vld [vmem:[#allocation3 + $0x24] sm:$0xf]  ;;  %v21089_v57 = vld [vmem:[#allocation44_spill] sm:$0xff] }
 0x271   : > { %6594 = vst [vmem:[#allocation3 + $0x1c] sm:$0xf] %v6295_v60  ;;  %6597 = vst [vmem:[#allocation3 + $0x20] sm:$0x1] %v6596_v42  ;;  %v6277_v50 = vor.u32 %v6275_v35, %v6274_v47  ;;  %v6279_v24 = vrot.slane %v6274_v47, 4  ;;  %v6317_v34 = vrot.slane %v6315_v52, 7  ;;  %v14159_v8 = vpop.f32.mrf.mxu1  ;;  %v5539_v20 = vadd.f32 %v14155_v62, %v21088_v37 }
 0x272   : > { %v6298_v55 = vshrl.u32 %v13103_v15, 16  ;;  %v6301_v31 = vshll.u32 %v13103_v15, 16  ;;  %v6142_v28 = vmax.f32 %v6110_v22, 0.0  ;;  %v6032_v11 = vadd.f32 %v18276_v21, %v5534_v48 }
 0x273   : > { %v6278_v58 = vsel %vm15259_vm11, %v6270_v46, %v6277_v50  ;;  %v6589_v3 = vsel %vm15175_vm3, %v6279_v24, %v6588_v10  ;;  %v6320_v4 = vor.u32 %v6318_v44, %v6317_v34  ;;  %v6321_v0 = vrot.slane %v6317_v34, 4  ;;  %v5450_v35 = vpop.f32.mrf.mxu1  ;;  %v6609_v50 = vld [vmem:[#allocation3 + $0x38] sm:$0x1] }
 0x274   : > { %6587 = vst [vmem:[#allocation3 + $0x10] sm:$0xf] %v6278_v58  ;;  %6590 = vst [vmem:[#allocation3 + $0x14] sm:$0x1] %v6589_v3  ;;  %v18345_v27 = vrot.slane %v6298_v55, 7  ;;  %v13106_v49 = vpack.c.bf16 %v6142_v28, %v6142_v28  ;;  %v6070_v2 = vmul.f32 %v18259_v7, %v6032_v11  ;;  %v6037_v21 = vadd.f32 %v18296_v45, %v5539_v20  ;;  %v5948_v45 = vpop.f32.mrf.mxu0  ;;  %v14894_v3 = vld [vmem:[%s20621_s2 + $0x70] sm:$0xff]  }
 0x275   : > { %v6606_v62 = vsel %vm15253_vm10, %v6320_v4, %v6605_v36  ;;  %v5537_v46 = vadd.f32 %v5434_v29, %v18125_v26  ;;  %v5540_v53 = vadd.f32 %v14156_v56, %v21089_v57  ;;  %v5538_v47 = vadd.f32 %v5437_v38, %v18291_v23  ;;  %v18354_v52 = vpop.f32.mrf.mxu1 }
 0x276   : > { %6607 = vst [vmem:[#allocation3 + $0x30] sm:$0xf] %v6606_v62  ;;  %v6303_v44 = vor.u32 %v6301_v31, %v18345_v27  ;;  %v6304_v15 = vrot.slane %v18345_v27, 4  ;;  %v6323_v60 = vshrl.u32 %v13106_v49, 16  ;;  %v6326_v42 = vshll.u32 %v13106_v49, 16  ;;  %v18371_v37 = vpop.f32.mrf.mxu0 }
 0x277   : > { %v6108_v10 = vadd.f32 %v18271_v16, %v6070_v2  ;;  %v6075_v22 = vmul.f32 %v18259_v7, %v6037_v21  ;;  %v6035_v26 = vadd.f32 %v18316_v9, %v5537_v46  ;;  %v6038_v29 = vadd.f32 %v18325_v17, %v5540_v53  ;;  %v18368_v31 = vpop.f32.mrf.mxu1 }
 0x278   : > { %v6599_v23 = vsel %vm15253_vm10, %v6303_v44, %v6598_v5  ;;  %v6325_v56 = vrot.slane %v6323_v60, 7  ;;  %v6036_v38 = vadd.f32 %v5935_v32, %v5538_v47  ;;  %v5543_v48 = vadd.f32 %v14159_v8, %v18135_v1  ;;  %v14892_v21 = vld [vmem:[#allocation3 + $0x18] sm:$0xff]   ;;  %v21090_v60 = vld [vmem:[#allocation59_spill] sm:$0xff] }
 0x279   : > { %6600 = vst [vmem:[#allocation3 + $0x24] sm:$0xf] %v6599_v23  ;;  %v6140_v24 = vmax.f32 %v6108_v10, 0.0  ;;  %v6113_v34 = vadd.f32 %v18271_v16, %v6075_v22  ;;  %v6073_v55 = vmul.f32 %v18259_v7, %v6035_v26  ;;  %v6076_v36 = vmul.f32 %v18259_v7, %v6038_v29  ;;  %v18384_v53 = vpop.f32.mrf.mxu1  ;;  %v18388_v10 = vpop.f32.mrf.mxu0  ;;  %v21091_v22 = vld [vmem:[#allocation64_spill] sm:$0xff] }
 0x27a   : > { %v6328_v9 = vor.u32 %v6326_v42, %v6325_v56  ;;  %v6330_v17 = vrot.slane %v6325_v56, 4  ;;  %v6074_v28 = vmul.f32 %v18259_v7, %v6036_v38  ;;  %v6041_v11 = vadd.f32 %v14207_v39, %v5543_v48  ;;  %v14897_v38 = vld [vmem:[%s20621_s2 + $0x68] sm:$0xff]   ;;  %v6602_v48 = vld [vmem:[#allocation3 + $0x2c] sm:$0x1] }
 0x27b   : > { %v13104_v32 = vpack.c.bf16 %v6140_v24, %v6140_v24  ;;  %v6145_v1 = vmax.f32 %v6113_v34, 0.0  ;;  %v6111_v8 = vadd.f32 %v18271_v16, %v6073_v55  ;;  %v6114_v20 = vadd.f32 %v18271_v16, %v6076_v36  ;;  %v14891_v58 = vld [vmem:[#allocation3 + $0xc] sm:$0xff]  }
 0x27c   : > { %v6329_v4 = vsel %vm15259_vm11, %v6321_v0, %v6328_v9  ;;  %v6610_v49 = vsel %vm15175_vm3, %v6330_v17, %v6609_v50  ;;  %v6112_v39 = vadd.f32 %v18271_v16, %v6074_v28  ;;  %v6079_v2 = vmul.f32 %v18259_v7, %v6041_v11  ;;  %14242 = vmatmul.mubr.bf16.vlgmr.msra.gmra.mxu1 %v14891_v58  ;;  %v5466_v28 = vpop.f32.mrf.mxu1  ;;  %v6619_v11 = vld [vmem:[#allocation3 + $0x48] sm:$0xf]  ;;  %v18394_v58 = vpop.f32.mrf.mxu0 }
 0x27d   : > { %6608 = vst [vmem:[#allocation3 + $0x34] sm:$0xf] %v6329_v4  ;;  %6611 = vst [vmem:[#allocation3 + $0x38] sm:$0x1] %v6610_v49  ;;  %v6306_v62 = vshrl.u32 %v13104_v32, 16  ;;  %v6309_v5 = vshll.u32 %v13104_v32, 16  ;;  %v13109_v46 = vpack.c.bf16 %v6145_v1, %v6145_v1  ;;  %v5541_v42 = vadd.f32 %v5450_v35, %v21090_v60  ;;  %14322 = vmatpush3.bf16.msra.mxu1 %v21091_v22 }
 0x27e   : > { %v6143_v57 = vmax.f32 %v6111_v8, 0.0  ;;  %v6146_v47 = vmax.f32 %v6114_v20, 0.0  ;;  %v6144_v44 = vmax.f32 %v6112_v39, 0.0  ;;  %v6117_v0 = vadd.f32 %v18271_v16, %v6079_v2  ;;  %14245 = vmatprep.mubr.bf16.mxu1 %v14892_v21  ;;  %14323 = vmatprep.subr.bf16.mxu1 %v14894_v3  ;;  %v14900_v2 = vld [vmem:[%s20621_s2 + $0x60] sm:$0xff]   ;;  %v14164_v60 = vpop.f32.mrf.mxu1 }
 0x27f   : > { %v6308_v26 = vrot.slane %v6306_v62, 7  ;;  %v6349_v29 = vshrl.u32 %v13109_v46, 16  ;;  %v6352_v23 = vshll.u32 %v13109_v46, 16  ;;  %v6039_v55 = vadd.f32 %v5948_v45, %v5541_v42  ;;  %v6623_v46 = vld [vmem:[#allocation3 + $0x50] sm:$0x1] }
 0x280   : > { %v13107_v56 = vpack.c.bf16 %v6143_v57, %v6143_v57  ;;  %v13110_v50 = vpack.c.bf16 %v6146_v47, %v6146_v47  ;;  %v13108_v24 = vpack.c.bf16 %v6144_v44, %v6144_v44  ;;  %v6149_v34 = vmax.f32 %v6117_v0, 0.0  ;;  %v21092_v44 = vld [vmem:[#allocation19_spill] sm:$0xff] }
 0x281   : > { %v6311_v35 = vor.u32 %v6309_v5, %v6308_v26  ;;  %v6313_v36 = vrot.slane %v6308_v26, 4  ;;  %v6351_v9 = vrot.slane %v6349_v29, 7  ;;  %14324 = vmatpush3.bf16.msra.mxu1 %v14894_v3  ;;  %v6077_v47 = vmul.f32 %v18259_v7, %v6039_v55 }
 0x282   : > { %v6332_v17 = vshrl.u32 %v13107_v56, 16  ;;  %v6335_v32 = vshll.u32 %v13107_v56, 16  ;;  %v6357_v1 = vshrl.u32 %v13110_v50, 16  ;;  %v6360_v8 = vshll.u32 %v13110_v50, 16  ;;  %14325 = vmatprep.subr.bf16.mxu1 %v14897_v38  ;;  %v5964_v56 = vpop.f32.mrf.mxu0 }
 0x283   : > { %v6340_v20 = vshrl.u32 %v13108_v24, 16  ;;  %v6312_v4 = vsel %vm15259_vm11, %v6304_v15, %v6311_v35  ;;  %v6603_v45 = vsel %vm15175_vm3, %v6313_v36, %v6602_v48  ;;  %v6354_v49 = vor.u32 %v6352_v23, %v6351_v9  ;;  %v6612_v15 = vld [vmem:[#allocation3 + $0x3c] sm:$0xf]  ;;  %v6616_v23 = vld [vmem:[#allocation3 + $0x44] sm:$0x1] }
 0x284   : > { %v6355_v39 = vrot.slane %v6351_v9, 4  ;;  %6601 = vst [vmem:[#allocation3 + $0x28] sm:$0xf] %v6312_v4  ;;  %6604 = vst [vmem:[#allocation3 + $0x2c] sm:$0x1] %v6603_v45  ;;  %v6334_v21 = vrot.slane %v6332_v17, 7  ;;  %v13113_v57 = vpack.c.bf16 %v6149_v34, %v6149_v34  ;;  %v5544_v0 = vadd.f32 %v18354_v52, %v21092_v44 }
 0x285   : > { %v6359_v62 = vrot.slane %v6357_v1, 7  ;;  %v6342_v3 = vrot.slane %v6340_v20, 7  ;;  %v6343_v5 = vshll.u32 %v13108_v24, 16  ;;  %v6620_v27 = vsel %vm15253_vm10, %v6354_v49, %v6619_v11  ;;  %14326 = vmatpush3.bf16.msra.mxu1 %v14897_v38  ;;  %v14903_v34 = vld [vmem:[%s20621_s2 + $0x58] sm:$0xff]  }
 0x286   : > { %6621 = vst [vmem:[#allocation3 + $0x48] sm:$0xf] %v6620_v27  ;;  %v6337_v42 = vor.u32 %v6335_v32, %v6334_v21  ;;  %v6338_v22 = vrot.slane %v6334_v21, 4  ;;  %v6383_v24 = vshrl.u32 %v13113_v57, 16  ;;  %v6386_v35 = vshll.u32 %v13113_v57, 16  ;;  %14327 = vmatprep.subr.bf16.mxu1 %v14900_v2  ;;  %v21093_v49 = vld [vmem:[#allocation49_spill] sm:$0xff]  ;;  %v14212_v21 = vpop.f32.mrf.mxu0 }
 0x287   : > { %v6362_v26 = vor.u32 %v6360_v8, %v6359_v62  ;;  %v6364_v29 = vrot.slane %v6359_v62, 4  ;;  %v6345_v48 = vor.u32 %v6343_v5, %v6342_v3  ;;  %v6347_v50 = vrot.slane %v6342_v3, 4  ;;  %v6633_v9 = vld [vmem:[#allocation3 + $0x60] sm:$0xf]  ;;  %v5469_v8 = vpop.f32.mrf.mxu1  ;;  %v21094_v5 = vld [vmem:[#allocation18_spill] sm:$0xff] }
 0x288   : > { %v6613_v52 = vsel %vm15253_vm10, %v6337_v42, %v6612_v15  ;;  %v6115_v38 = vadd.f32 %v18271_v16, %v6077_v47  ;;  %v18424_v32 = vrot.slane %v6383_v24, 7  ;;  %v6042_v1 = vadd.f32 %v18371_v37, %v5544_v0 }
 0x289   : > { %v6363_v55 = vsel %vm15259_vm11, %v6355_v39, %v6362_v26  ;;  %v6624_v36 = vsel %vm15175_vm3, %v6364_v29, %v6623_v46  ;;  %6614 = vst [vmem:[#allocation3 + $0x3c] sm:$0xf] %v6613_v52  ;;  %v6346_v17 = vsel %vm15259_vm11, %v6338_v22, %v6345_v48  ;;  %v6617_v11 = vsel %vm15175_vm3, %v6347_v50, %v6616_v23  ;;  %v14167_v0 = vpop.f32.mrf.mxu1 }
 0x28a   : > { %6622 = vst [vmem:[#allocation3 + $0x4c] sm:$0xf] %v6363_v55  ;;  %6625 = vst [vmem:[#allocation3 + $0x50] sm:$0x1] %v6624_v36  ;;  %v6147_v20 = vmax.f32 %v6115_v38, 0.0  ;;  %v5542_v4 = vadd.f32 %v18368_v31, %v18299_v30  ;;  %v5547_v45 = vadd.f32 %v18384_v53, %v18156_v6  ;;  %v5545_v39 = vadd.f32 %v5466_v28, %v21093_v49  ;;  %v14907_v30 = vld [vmem:[%s20621_s2 + $0x50] sm:$0xff]  }
 0x28b   : > { %6615 = vst [vmem:[#allocation3 + $0x40] sm:$0xf] %v6346_v17  ;;  %6618 = vst [vmem:[#allocation3 + $0x44] sm:$0x1] %v6617_v11  ;;  %14328 = vmatpush3.bf16.msra.mxu1 %v14900_v2  ;;  %v6388_v62 = vor.u32 %v6386_v35, %v18424_v32  ;;  %v6389_v3 = vrot.slane %v18424_v32, 4  ;;  %v6080_v37 = vmul.f32 %v18259_v7, %v6042_v1  ;;  %v14895_v15 = vld [vmem:[#allocation3 + $0x24] sm:$0xff]  }
 0x28c   : > { %v5548_v27 = vadd.f32 %v14164_v60, %v21094_v5  ;;  %14329 = vmatprep.subr.bf16.mxu1 %v14903_v34  ;;  %v13111_v31 = vpack.c.bf16 %v6147_v20, %v6147_v20  ;;  %v6040_v6 = vadd.f32 %v18388_v10, %v5542_v4  ;;  %v6045_v53 = vadd.f32 %v18394_v58, %v5547_v45  ;;  %v14896_v2 = vld [vmem:[#allocation3 + $0x30] sm:$0xff]   ;;  %v5967_v58 = vpop.f32.mrf.mxu0  ;;  %v6651_v32 = vld [vmem:[#allocation3 + $0x80] sm:$0x1] }
 0x28d   : > { %v6043_v28 = vadd.f32 %v5964_v56, %v5545_v39  ;;  %v6634_v46 = vsel %vm15253_vm10, %v6388_v62, %v6633_v9  ;;  %v6118_v57 = vadd.f32 %v18271_v16, %v6080_v37  ;;  %v5546_v44 = vadd.f32 %v5469_v8, %v18302_v12  ;;  %14246 = vmatmul.mubr.bf16.gmra.mxu1 %v14895_v15  ;;  %v14912_v12 = vld [vmem:[%s20621_s2 + $0x48] sm:$0xff]  }
 0x28e   : > { %v6046_v47 = vadd.f32 %v14212_v21, %v5548_v27  ;;  %6635 = vst [vmem:[#allocation3 + $0x60] sm:$0xf] %v6634_v46  ;;  %v6366_v60 = vshrl.u32 %v13111_v31, 16  ;;  %v6369_v42 = vshll.u32 %v13111_v31, 16  ;;  %v6078_v22 = vmul.f32 %v18259_v7, %v6040_v6  ;;  %14249 = vmatprep.mubr.bf16.mxu1 %v14896_v2  ;;  %v21095_v35 = vld [vmem:[#allocation63_spill] sm:$0xff]  ;;  %v14917_v21 = vld [vmem:[%s20621_s2 + $0x40] sm:$0xff]   ;;  %v14215_v15 = vpop.f32.mrf.mxu0  ;;  %v18468_v2 = vpop.f32.mrf.mxu1 }
 0x28f   : > { %v6083_v10 = vmul.f32 %v18259_v7, %v6045_v53  ;;  %14330 = vmatpush3.bf16.msra.mxu1 %v14903_v34  ;;  %v6150_v26 = vmax.f32 %v6118_v57, 0.0  ;;  %v6081_v29 = vmul.f32 %v18259_v7, %v6043_v28  ;;  %v6044_v56 = vadd.f32 %v5967_v58, %v5546_v44  ;;  %v6626_v34 = vld [vmem:[#allocation3 + $0x54] sm:$0xf]  ;;  %v6637_v46 = vld [vmem:[#allocation3 + $0x68] sm:$0x1] }
 0x290   : > { %v6084_v23 = vmul.f32 %v18259_v7, %v6046_v47  ;;  %14331 = vmatprep.subr.bf16.mxu1 %v14907_v30  ;;  %v18452_v48 = vrot.slane %v6366_v60, 7  ;;  %v6116_v50 = vadd.f32 %v18271_v16, %v6078_v22  ;;  %v5551_v52 = vadd.f32 %v14167_v0, %v21095_v35  ;;  %v6630_v22 = vld [vmem:[#allocation3 + $0x5c] sm:$0x1] }
 0x291   : > { %v6121_v24 = vadd.f32 %v18271_v16, %v6083_v10  ;;  %v13114_v55 = vpack.c.bf16 %v6150_v26, %v6150_v26  ;;  %v6119_v36 = vadd.f32 %v18271_v16, %v6081_v29  ;;  %v6082_v38 = vmul.f32 %v18259_v7, %v6044_v56  ;;  %v14899_v31 = vld [vmem:[#allocation3 + $0x48] sm:$0xff]   ;;  %v14921_v26 = vld [vmem:[%s20621_s2 + $0xf8] sm:$0xff]   ;;  %v6647_v56 = vld [vmem:[#allocation3 + $0x78] sm:$0xf] }
 0x292   : > { %v6122_v9 = vadd.f32 %v18271_v16, %v6084_v23  ;;  %v14898_v17 = vld [vmem:[#allocation3 + $0x3c] sm:$0xff]   ;;  %v6371_v11 = vor.u32 %v6369_v42, %v18452_v48  ;;  %v6372_v1 = vrot.slane %v18452_v48, 4  ;;  %v6148_v8 = vmax.f32 %v6116_v50, 0.0 }
 0x293   : > { %v6153_v20 = vmax.f32 %v6121_v24, 0.0  ;;  %14332 = vmatpush3.bf16.msra.mxu1 %v14907_v30  ;;  %v6391_v4 = vshrl.u32 %v13114_v55, 16  ;;  %v6394_v45 = vshll.u32 %v13114_v55, 16  ;;  %v6151_v49 = vmax.f32 %v6119_v36, 0.0  ;;  %v8157_v36 = vld [vmem:[#allocation3 + $0xc] sm:$0xe] }
 0x294   : > { %v6154_v39 = vmax.f32 %v6122_v9, 0.0  ;;  %14333 = vmatprep.subr.bf16.mxu1 %v14912_v12  ;;  %v6627_v62 = vsel %vm15253_vm10, %v6371_v11, %v6626_v34  ;;  %v13112_v37 = vpack.c.bf16 %v6148_v8, %v6148_v8  ;;  %v6120_v27 = vadd.f32 %v18271_v16, %v6082_v38  ;;  %v6640_v34 = vld [vmem:[#allocation3 + $0x6c] sm:$0xf]  ;;  %v18481_v9 = vpop.f32.mrf.mxu1 }
 0x295   : > { %v13117_v5 = vpack.c.bf16 %v6153_v20, %v6153_v20  ;;  %6628 = vst [vmem:[#allocation3 + $0x54] sm:$0xf] %v6627_v62  ;;  %v6393_v30 = vrot.slane %v6391_v4, 7  ;;  %v13115_v6 = vpack.c.bf16 %v6151_v49, %v6151_v49  ;;  %v6049_v28 = vadd.f32 %v14215_v15, %v5551_v52  ;;  %14250 = vmatmul.mubr.bf16.gmra.mxu1 %v14898_v17  ;;  %v5980_v20 = vpop.f32.mrf.mxu0  ;;  %v7406_v4 = vld [vmem:[#allocation3 + $0x10] sm:$0xf] }
 0x296   : > { %v13118_v53 = vpack.c.bf16 %v6154_v39, %v6154_v39  ;;  %v6374_v57 = vshrl.u32 %v13112_v37, 16  ;;  %v6377_v47 = vshll.u32 %v13112_v37, 16  ;;  %14253 = vmatprep.mubr.bf16.mxu1 %v14899_v31  ;;  %v6152_v55 = vmax.f32 %v6120_v27, 0.0  ;;  %v7407_v27 = vld [vmem:[#allocation3 + $0x14] sm:$0x1] }
 0x297   : > { %v6417_v44 = vshrl.u32 %v13117_v5, 16  ;;  %v6420_v0 = vshll.u32 %v13117_v5, 16  ;;  %14334 = vmatpush3.bf16.msra.mxu1 %v14912_v12  ;;  %v6396_v60 = vor.u32 %v6394_v45, %v6393_v30  ;;  %v6398_v42 = vrot.slane %v6393_v30, 4  ;;  %v8158_v15 = vld [vmem:[#allocation3 + $0x18] sm:$0xe] }
 0x298   : > { %v6400_v10 = vshrl.u32 %v13115_v6, 16  ;;  %v6403_v58 = vshll.u32 %v13115_v6, 16  ;;  %14335 = vmatprep.subr.bf16.mxu1 %v14917_v21  ;;  %v6376_v29 = vrot.slane %v6374_v57, 7  ;;  %v6425_v50 = vshrl.u32 %v13118_v53, 16 }
 0x299   : > { %v6419_v23 = vrot.slane %v6417_v44, 7  ;;  %v6428_v24 = vshll.u32 %v13118_v53, 16  ;;  %v6397_v12 = vsel %vm15259_vm11, %v6389_v3, %v6396_v60  ;;  %v6638_v35 = vsel %vm15175_vm3, %v6398_v42, %v6637_v46  ;;  %v7410_v53 = vld [vmem:[#allocation3 + $0x20] sm:$0x1]  ;;  %v5485_v46 = vpop.f32.mrf.mxu1 }
 0x29a   : > { %v18479_v52 = vrot.slane %v6400_v10, 7  ;;  %6636 = vst [vmem:[#allocation3 + $0x64] sm:$0xf] %v6397_v12  ;;  %6639 = vst [vmem:[#allocation3 + $0x68] sm:$0x1] %v6638_v35  ;;  %v6379_v38 = vor.u32 %v6377_v47, %v6376_v29  ;;  %v6381_v17 = vrot.slane %v6376_v29, 4  ;;  %v13116_v39 = vpack.c.bf16 %v6152_v55, %v6152_v55 }
 0x29b   : > { %v6422_v11 = vor.u32 %v6420_v0, %v6419_v23  ;;  %v6423_v8 = vrot.slane %v6419_v23, 4  ;;  %14336 = vmatpush3.bf16.msra.mxu1 %v14917_v21  ;;  %v6427_v49 = vrot.slane %v6425_v50, 7  ;;  %v6087_v21 = vmul.f32 %v18259_v7, %v6049_v28  ;;  %v14216_v0 = vpop.f32.mrf.mxu0  ;;  %v21097_v50 = vld [vmem:[#allocation61_spill] sm:$0xff]  ;;  %v14171_v55 = vpop.f32.mrf.mxu1 }
 0x29c   : > { %v6405_v3 = vor.u32 %v6403_v58, %v18479_v52  ;;  %v6406_v45 = vrot.slane %v18479_v52, 4  ;;  %14417 = vmatprep.subr.bf16.mxu1 %v14921_v26  ;;  %v6380_v62 = vsel %vm15259_vm11, %v6372_v1, %v6379_v38  ;;  %v6631_v37 = vsel %vm15175_vm3, %v6381_v17, %v6630_v22  ;;  %v7409_v1 = vld [vmem:[#allocation3 + $0x1c] sm:$0xf]  ;;  %v6644_v58 = vld [vmem:[#allocation3 + $0x74] sm:$0x1] }
 0x29d   : > { %v6648_v5 = vsel %vm15253_vm10, %v6422_v11, %v6647_v56  ;;  %6629 = vst [vmem:[#allocation3 + $0x58] sm:$0xf] %v6380_v62  ;;  %6632 = vst [vmem:[#allocation3 + $0x5c] sm:$0x1] %v6631_v37  ;;  %v6430_v48 = vor.u32 %v6428_v24, %v6427_v49  ;;  %v6432_v30 = vrot.slane %v6427_v49, 4  ;;  %v6408_v6 = vshrl.u32 %v13116_v39, 16 }
 0x29e   : > { %6649 = vst [vmem:[#allocation3 + $0x78] sm:$0xf] %v6648_v5  ;;  %v6641_v31 = vsel %vm15253_vm10, %v6405_v3, %v6640_v34  ;;  %v6411_v57 = vshll.u32 %v13116_v39, 16  ;;  %v6125_v47 = vadd.f32 %v18271_v16, %v6087_v21  ;;  %v12704_v44 = vrot.slane %v8157_v36, 9  ;;  %v7412_v39 = vld [vmem:[#allocation3 + $0x28] sm:$0xf] }
 0x29f   : > { %6642 = vst [vmem:[#allocation3 + $0x6c] sm:$0xf] %v6641_v31  ;;  %v8229_v28 = vrot.slane %v7406_v4, 5  ;;  %v6431_v60 = vsel %vm15259_vm11, %v6423_v8, %v6430_v48  ;;  %v6652_v42 = vsel %vm15175_vm3, %v6432_v30, %v6651_v32  ;;  %v6410_v22 = vrot.slane %v6408_v6, 7  ;;  %v5983_v8 = vpop.f32.mrf.mxu0  ;;  %v8159_v32 = vld [vmem:[#allocation3 + $0x24] sm:$0xe] }
 0x2a0   : > { %v8232_v10 = vrot.slane %v7407_v27, 5  ;;  %6650 = vst [vmem:[#allocation3 + $0x7c] sm:$0xf] %v6431_v60  ;;  %6653 = vst [vmem:[#allocation3 + $0x80] sm:$0x1] %v6652_v42  ;;  %v6157_v26 = vmax.f32 %v6125_v47, 0.0  ;;  %v5549_v24 = vadd.f32 %v18468_v2, %v21097_v50  ;;  %v5550_v48 = vadd.f32 %v5485_v46, %v18305_v54 }
 0x2a1   : > { %v8230_v23 = vsel %vm15689_vm14, %v12704_v44, %v8229_v28  ;;  %v8231_v56 = vrot.slane %v8229_v28, 4  ;;  %v6413_v12 = vor.u32 %v6411_v57, %v6410_v22  ;;  %v6415_v35 = vrot.slane %v6410_v22, 4  ;;  %v14910_v62 = vld [vmem:[%s20621_s2 + $0x130] sm:$0xff]   ;;  %v6661_v27 = vld [vmem:[#allocation3 + $0x90] sm:$0xf]  ;;  %v14219_v28 = vpop.f32.mrf.mxu0 }
 0x2a2   : > { %v12705_v52 = vrot.slane %v8158_v15, 9  ;;  %v8236_v34 = vrot.slane %v7409_v1, 5  ;;  %v13121_v36 = vpack.c.bf16 %v6157_v26, %v6157_v26  ;;  %v6047_v17 = vadd.f32 %v5980_v20, %v5549_v24  ;;  %v21098_v15 = vld [vmem:[#allocation10_spill] sm:$0xff]  ;;  %v5498_v1 = vpop.f32.mrf.mxu1  ;;  %v14911_v22 = vld [vmem:[%s20621_s2 + $0x128] sm:$0xff]  }
 0x2a3   : > { %v8233_v38 = vsel %vm15689_vm14, %v8231_v56, %v8232_v10  ;;  %v8239_v11 = vrot.slane %v7410_v53, 5  ;;  %v6414_v4 = vsel %vm15259_vm11, %v6406_v45, %v6413_v12  ;;  %v6645_v3 = vsel %vm15175_vm3, %v6415_v35, %v6644_v58  ;;  %v14902_v53 = vld [vmem:[#allocation3 + $0x60] sm:$0xff]   ;;  %v8160_v56 = vld [vmem:[#allocation3 + $0x30] sm:$0xe] }
 0x2a4   : > { %v12736_v2 = vcombine.low %v8230_v23, %v8233_v38  ;;  %v8237_v49 = vsel %vm15689_vm14, %v12705_v52, %v8236_v34  ;;  %6643 = vst [vmem:[#allocation3 + $0x70] sm:$0xf] %v6414_v4  ;;  %6646 = vst [vmem:[#allocation3 + $0x74] sm:$0x1] %v6645_v3  ;;  %v6451_v20 = vshrl.u32 %v13121_v36, 16  ;;  %v6454_v37 = vshll.u32 %v13121_v36, 16  ;;  %v14172_v12 = vpop.f32.mrf.mxu1 }
 0x2a5   : > { %v6085_v5 = vmul.f32 %v18259_v7, %v6047_v17  ;;  %v8238_v21 = vrot.slane %v8236_v34, 4  ;;  %v14901_v45 = vld [vmem:[#allocation3 + $0x54] sm:$0xff]   ;;  %v5552_v31 = vadd.f32 %v18481_v9, %v21098_v15  ;;  %v5555_v30 = vadd.f32 %v14171_v55, %v18190_v40  ;;  %v7413_v40 = vld [vmem:[#allocation3 + $0x2c] sm:$0x1] }
 0x2a6   : > { %14386 = vmatmul.mubr.bf16.vlgmr.msra.gmra.mxu0 %v12736_v2  ;;  %v12706_v6 = vrot.slane %v8159_v32, 9  ;;  %v18521_v57 = vrot.slane %v6451_v20, 7  ;;  %v8243_v60 = vrot.slane %v7412_v39, 5  ;;  %14254 = vmatmul.mubr.bf16.gmra.mxu1 %v14901_v45  ;;  %v6048_v54 = vadd.f32 %v5983_v8, %v5550_v48  ;;  %v7415_v36 = vld [vmem:[#allocation3 + $0x34] sm:$0xf]  ;;  %v5996_v8 = vpop.f32.mrf.mxu0  ;;  %v14915_v39 = vld [vmem:[%s20621_s2 + $0x120] sm:$0xff]  }
 0x2a7   : > { %v6123_v47 = vadd.f32 %v18271_v16, %v6085_v5  ;;  %v8240_v44 = vsel %vm15689_vm14, %v8238_v21, %v8239_v11  ;;  %14466 = vmatpush3.bf16.msra.mxu0 %v18240_v43  ;;  %v6050_v42 = vadd.f32 %v14216_v0, %v5552_v31  ;;  %v6053_v46 = vadd.f32 %v14219_v28, %v5555_v30  ;;  %v5501_v5 = vpop.f32.mrf.mxu1  ;;  %v18555_v45 = vld [vmem:[%s20625_s6] ss:$0 sm:$0xff]  ;;  %v14905_v48 = vld [vmem:[#allocation3 + $0x78] sm:$0xff]   ;;  %v6654_v30 = vld [vmem:[#allocation3 + $0x84] sm:$0xf] }
 0x2a8   : > { %v12737_v9 = vcombine.low %v8237_v49, %v8240_v44  ;;  %14257 = vmatprep.mubr.bf16.mxu1 %v14902_v53  ;;  %v6456_v10 = vor.u32 %v6454_v37, %v18521_v57  ;;  %v6457_v58 = vrot.slane %v18521_v57, 4  ;;  %v8244_v23 = vsel %vm15689_vm14, %v12706_v6, %v8243_v60  ;;  %14467 = vmatprep.subr.bf16.mxu0 %v14910_v62  ;;  %v14916_v44 = vld [vmem:[%s20621_s2 + $0x118] sm:$0xff]  }
 0x2a9   : > { %v6155_v26 = vmax.f32 %v6123_v47, 0.0  ;;  %v6088_v43 = vmul.f32 %v18259_v7, %v6050_v42  ;;  %v6086_v0 = vmul.f32 %v18259_v7, %v6048_v54  ;;  %v6091_v50 = vmul.f32 %v18259_v7, %v6053_v46  ;;  %v18543_v7 = vld [vmem:[#allocation3 + $0x38] sm:$0x1] }
 0x2aa   : > { %14389 = vmatprep.mubr.bf16.mxu0 %v12737_v9  ;;  %v8245_v24 = vrot.slane %v8243_v60, 4  ;;  %v6662_v35 = vsel %vm15253_vm10, %v6456_v10, %v6661_v27  ;;  %v8246_v34 = vrot.slane %v7413_v40, 5  ;;  %v5553_v55 = vadd.f32 %v5498_v1, %v18193_v18  ;;  %v18568_v9 = vld [vmem:[%s20626_s7] ss:$0 sm:$0xff] }
 0x2ab   : > { %v13119_v52 = vpack.c.bf16 %v6155_v26, %v6155_v26  ;;  %14468 = vmatpush3.bf16.msra.mxu0 %v14910_v62  ;;  %6663 = vst [vmem:[#allocation3 + $0x90] sm:$0xf] %v6662_v35  ;;  %v6126_v38 = vadd.f32 %v18271_v16, %v6088_v43  ;;  %v6124_v17 = vadd.f32 %v18271_v16, %v6086_v0  ;;  %v12707_v32 = vrot.slane %v8160_v56, 9  ;;  %v14904_v4 = vld [vmem:[#allocation3 + $0x6c] sm:$0xff]   ;;  %v14175_v26 = vpop.f32.mrf.mxu1  ;;  %v6665_v56 = vld [vmem:[#allocation3 + $0x98] sm:$0x1] }
 0x2ac   : > { %v6129_v11 = vadd.f32 %v18271_v16, %v6091_v50  ;;  %14469 = vmatprep.subr.bf16.mxu0 %v14911_v22  ;;  %v8247_v18 = vsel %vm15689_vm14, %v8245_v24, %v8246_v34  ;;  %v6051_v49 = vadd.f32 %v5996_v8, %v5553_v55  ;;  %v8250_v15 = vrot.slane %v7415_v36, 5  ;;  %v6658_v35 = vld [vmem:[#allocation3 + $0x8c] sm:$0x1]  ;;  %v14919_v55 = vld [vmem:[%s20621_s2 + $0x110] sm:$0xff]  }
 0x2ad   : > { %v6434_v3 = vshrl.u32 %v13119_v52, 16  ;;  %v6437_v2 = vshll.u32 %v13119_v52, 16  ;;  %v6158_v62 = vmax.f32 %v6126_v38, 0.0  ;;  %v6156_v20 = vmax.f32 %v6124_v17, 0.0  ;;  %v6675_v38 = vld [vmem:[#allocation3 + $0xa8] sm:$0xf] }
 0x2ae   : > { %v6161_v37 = vmax.f32 %v6129_v11, 0.0  ;;  %v12738_v16 = vcombine.low %v8244_v23, %v8247_v18  ;;  %v6089_v27 = vmul.f32 %v18555_v45, %v6051_v49  ;;  %v8253_v31 = vrot.slane %v18543_v7, 5  ;;  %14258 = vmatmul.mubr.bf16.gmra.mxu1 %v14904_v4  ;;  %v7418_v49 = vld [vmem:[#allocation3 + $0x40] sm:$0xf] }
 0x2af   : > { %v18550_v21 = vrot.slane %v6434_v3, 7  ;;  %14470 = vmatpush3.bf16.msra.mxu0 %v14911_v22  ;;  %v13122_v6 = vpack.c.bf16 %v6158_v62, %v6158_v62  ;;  %v13120_v1 = vpack.c.bf16 %v6156_v20, %v6156_v20  ;;  %v5556_v47 = vadd.f32 %v14172_v12, %v18199_v33  ;;  %v14220_v33 = vpop.f32.mrf.mxu0  ;;  %14261 = vmatprep.mubr.bf16.mxu1 %v14905_v48  ;;  %v5514_v48 = vpop.f32.mrf.mxu1 }
 0x2b0   : > { %v13125_v53 = vpack.c.bf16 %v6161_v37, %v6161_v37  ;;  %14390 = vmatmul.mubr.bf16.gmra.mxu0 %v12738_v16  ;;  %v6127_v42 = vadd.f32 %v18568_v9, %v6089_v27  ;;  %v18573_v54 = vsel %vm15689_vm14, %v12707_v32, %v8250_v15  ;;  %14471 = vmatprep.subr.bf16.mxu0 %v14915_v39  ;;  %v8252_v52 = vrot.slane %v8250_v15, 4  ;;  %v7419_v16 = vld [vmem:[#allocation3 + $0x44] sm:$0x1] }
 0x2b1   : > { %v6439_v28 = vor.u32 %v6437_v2, %v18550_v21  ;;  %v6440_v60 = vrot.slane %v18550_v21, 4  ;;  %v6459_v46 = vshrl.u32 %v13122_v6, 16  ;;  %v6462_v40 = vshll.u32 %v13122_v6, 16  ;;  %v5999_v11 = vpop.f32.mrf.mxu0  ;;  %v8161_v21 = vld [vmem:[#allocation3 + $0x3c] sm:$0xe] }
 0x2b2   : > { %v6442_v22 = vshrl.u32 %v13120_v1, 16  ;;  %v6445_v10 = vshll.u32 %v13120_v1, 16  ;;  %v6485_v43 = vshrl.u32 %v13125_v53, 16  ;;  %v6488_v0 = vshll.u32 %v13125_v53, 16  ;;  %v6668_v53 = vld [vmem:[#allocation3 + $0x9c] sm:$0xf] }
 0x2b3   : > { %v6655_v23 = vsel %vm15253_vm10, %v6439_v28, %v6654_v30  ;;  %v6159_v50 = vmax.f32 %v6127_v42, 0.0  ;;  %14472 = vmatpush3.bf16.msra.mxu0 %v14915_v39  ;;  %v6461_v24 = vrot.slane %v6459_v46, 7  ;;  %v6054_v34 = vadd.f32 %v14220_v33, %v5556_v47  ;;  %v14223_v1 = vpop.f32.mrf.mxu0 }
 0x2b4   : > { %6656 = vst [vmem:[#allocation3 + $0x84] sm:$0xf] %v6655_v23  ;;  %v6444_v12 = vrot.slane %v6442_v22, 7  ;;  %14473 = vmatprep.subr.bf16.mxu0 %v14916_v44  ;;  %v18580_v36 = vrot.slane %v6485_v43, 7  ;;  %v5554_v8 = vadd.f32 %v5501_v5, %v18311_v59  ;;  %v5559_v32 = vadd.f32 %v14175_v26, %v18215_v14  ;;  %v14920_v59 = vld [vmem:[%s20621_s2 + $0x108] sm:$0xff]   ;;  %v14922_v43 = vld [vmem:[%s20621_s2 + $0x100] sm:$0xff]  }
 0x2b5   : > { %v13123_v17 = vpack.c.bf16 %v6159_v50, %v6159_v50  ;;  %v6464_v4 = vor.u32 %v6462_v40, %v6461_v24  ;;  %v6466_v3 = vrot.slane %v6461_v24, 4  ;;  %v6092_v6 = vmul.f32 %v18555_v45, %v6054_v34  ;;  %v8162_v40 = vld [vmem:[#allocation3 + $0x48] sm:$0xe]  ;;  %v18615_v26 = vld [vmem:[#allocation3 + $0x4c] sm:$0xf]  ;;  %v6012_v24 = vpop.f32.mrf.mxu0 }
 0x2b6   : > { %v6447_v2 = vor.u32 %v6445_v10, %v6444_v12  ;;  %v6449_v18 = vrot.slane %v6444_v12, 4  ;;  %v6490_v39 = vor.u32 %v6488_v0, %v18580_v36  ;;  %v6491_v62 = vrot.slane %v18580_v36, 4  ;;  %v7422_v23 = vld [vmem:[#allocation3 + $0x50] sm:$0x1]  ;;  %v7427_v36 = vld [vmem:[#allocation3 + $0x64] sm:$0xf] }
 0x2b7   : > { %v6468_v20 = vshrl.u32 %v13123_v17, 16  ;;  %v6471_v37 = vshll.u32 %v13123_v17, 16  ;;  %14474 = vmatpush3.bf16.msra.mxu0 %v14916_v44  ;;  %v6465_v14 = vsel %vm15259_vm11, %v6457_v58, %v6464_v4  ;;  %v6666_v5 = vsel %vm15175_vm3, %v6466_v3, %v6665_v56  ;;  %v14176_v56 = vpop.f32.mrf.mxu1 }
 0x2b8   : > { %v6448_v27 = vsel %vm15259_vm11, %v6440_v60, %v6447_v2  ;;  %v6659_v15 = vsel %vm15175_vm3, %v6449_v18, %v6658_v35  ;;  %14475 = vmatprep.subr.bf16.mxu0 %v14919_v55  ;;  %6664 = vst [vmem:[#allocation3 + $0x94] sm:$0xf] %v6465_v14  ;;  %6667 = vst [vmem:[#allocation3 + $0x98] sm:$0x1] %v6666_v5  ;;  %v6676_v57 = vsel %vm15253_vm10, %v6490_v39, %v6675_v38  ;;  %v14224_v14 = vpop.f32.mrf.mxu0  ;;  %v18637_v5 = vld [vmem:[%s20621_s2 + $0x1b8] sm:$0xff]  }
 0x2b9   : > { %6657 = vst [vmem:[#allocation3 + $0x88] sm:$0xf] %v6448_v27  ;;  %6660 = vst [vmem:[#allocation3 + $0x8c] sm:$0x1] %v6659_v15  ;;  %v18601_v30 = vrot.slane %v6468_v20, 7  ;;  %v8254_v58 = vsel %vm15689_vm14, %v8252_v52, %v8253_v31  ;;  %v6052_v44 = vadd.f32 %v5999_v11, %v5554_v8  ;;  %v6057_v28 = vadd.f32 %v14223_v1, %v5559_v32 }
 0x2ba   : > { %6677 = vst [vmem:[#allocation3 + $0xa8] sm:$0xf] %v6676_v57  ;;  %v12739_v47 = vcombine.low %v18573_v54, %v8254_v58  ;;  %v12708_v60 = vrot.slane %v8161_v21, 9  ;;  %v6130_v46 = vadd.f32 %v18568_v9, %v6092_v6  ;;  %v8257_v7 = vrot.slane %v7418_v49, 5  ;;  %v18629_v32 = vld [vmem:[#allocation3 + $0x54] sm:$0xe]  ;;  %v5517_v49 = vpop.f32.mrf.mxu1 }
 0x2bb   : > { %v6473_v42 = vor.u32 %v6471_v37, %v18601_v30  ;;  %v6474_v33 = vrot.slane %v18601_v30, 4  ;;  %14476 = vmatpush3.bf16.msra.mxu0 %v14919_v55  ;;  %v6090_v31 = vmul.f32 %v18555_v45, %v6052_v44  ;;  %v6095_v22 = vmul.f32 %v18555_v45, %v6057_v28  ;;  %v6679_v6 = vld [vmem:[#allocation3 + $0xb0] sm:$0x1] }
 0x2bc   : > { %14393 = vmatprep.mubr.bf16.mxu0 %v12739_v47  ;;  %v8260_v10 = vrot.slane %v7419_v16, 5  ;;  %v5557_v54 = vadd.f32 %v5514_v48, %v18224_v51  ;;  %14477 = vmatprep.subr.bf16.mxu0 %v14920_v59  ;;  %v6162_v50 = vmax.f32 %v6130_v46, 0.0  ;;  %v8258_v12 = vsel %vm15689_vm14, %v12708_v60, %v8257_v7  ;;  %v7424_v46 = vld [vmem:[#allocation3 + $0x58] sm:$0xf] }
 0x2bd   : > { %v6669_v0 = vsel %vm15253_vm10, %v6473_v42, %v6668_v53  ;;  %v8259_v35 = vrot.slane %v8257_v7, 4  ;;  %v6128_v51 = vadd.f32 %v18568_v9, %v6090_v31  ;;  %v6133_v52 = vadd.f32 %v18568_v9, %v6095_v22  ;;  %v6015_v22 = vpop.f32.mrf.mxu0 }
 0x2be   : > { %6670 = vst [vmem:[#allocation3 + $0x9c] sm:$0xf] %v6669_v0  ;;  %v6055_v34 = vadd.f32 %v6012_v24, %v5557_v54  ;;  %v12709_v55 = vrot.slane %v8162_v40, 9  ;;  %v13126_v38 = vpack.c.bf16 %v6162_v50, %v6162_v50  ;;  %v8264_v11 = vrot.slane %v18615_v26, 5  ;;  %v6672_v54 = vld [vmem:[#allocation3 + $0xa4] sm:$0x1] }
 0x2bf   : > { %v8261_v17 = vsel %vm15689_vm14, %v8259_v35, %v8260_v10  ;;  %v8267_v8 = vrot.slane %v7422_v23, 5  ;;  %14478 = vmatpush3.bf16.msra.mxu0 %v14920_v59  ;;  %v6160_v4 = vmax.f32 %v6128_v51, 0.0  ;;  %v6165_v3 = vmax.f32 %v6133_v52, 0.0  ;;  %v14909_v57 = vld [vmem:[#allocation3 + $0x90] sm:$0xff]   ;;  %v6689_v50 = vld [vmem:[#allocation3 + $0xc0] sm:$0xf] }
 0x2c0   : > { %v12740_v2 = vcombine.low %v8258_v12, %v8261_v17  ;;  %v6093_v18 = vmul.f32 %v18555_v45, %v6055_v34  ;;  %v14908_v39 = vld [vmem:[#allocation3 + $0x84] sm:$0xff]   ;;  %14479 = vmatprep.subr.bf16.mxu0 %v14922_v43  ;;  %v6493_v20 = vshrl.u32 %v13126_v38, 16  ;;  %v6496_v37 = vshll.u32 %v13126_v38, 16  ;;  %v8164_v35 = vld [vmem:[#allocation3 + $0x60] sm:$0xe] }
 0x2c1   : > { %v8265_v16 = vsel %vm15689_vm14, %v12709_v55, %v8264_v11  ;;  %v8266_v21 = vrot.slane %v8264_v11, 4  ;;  %v13124_v59 = vpack.c.bf16 %v6160_v4, %v6160_v4  ;;  %v13129_v27 = vpack.c.bf16 %v6165_v3, %v6165_v3  ;;  %14262 = vmatmul.mubr.bf16.gmra.mxu1 %v14908_v39  ;;  %v7428_v38 = vld [vmem:[#allocation3 + $0x68] sm:$0x1] }
 0x2c2   : > { %14394 = vmatmul.mubr.bf16.gmra.mxu0 %v12740_v2  ;;  %v6131_v15 = vadd.f32 %v18568_v9, %v6093_v18  ;;  %v5560_v48 = vadd.f32 %v14176_v56, %v18233_v13  ;;  %v6495_v58 = vrot.slane %v6493_v20, 7  ;;  %v5558_v53 = vadd.f32 %v5517_v49, %v18314_v61  ;;  %14265 = vmatprep.mubr.bf16.mxu1 %v14909_v57  ;;  %v6682_v18 = vld [vmem:[#allocation3 + $0xb4] sm:$0xf]  ;;  %v7430_v20 = vld [vmem:[#allocation3 + $0x70] sm:$0xf] }
 0x2c3   : > { %v8268_v1 = vsel %vm15689_vm14, %v8266_v21, %v8267_v8  ;;  %v12710_v47 = vrot.slane %v18629_v32, 9  ;;  %14480 = vmatpush3.bf16.msra.mxu0 %v14922_v43  ;;  %v6476_v44 = vshrl.u32 %v13124_v59, 16  ;;  %v6479_v28 = vshll.u32 %v13124_v59, 16  ;;  %v7425_v32 = vld [vmem:[#allocation3 + $0x5c] sm:$0x1] }
 0x2c4   : > { %v6519_v60 = vshrl.u32 %v13129_v27, 16  ;;  %v6522_v42 = vshll.u32 %v13129_v27, 16  ;;  %14561 = vmatprep.subr.bf16.mxu0 %v18637_v5  ;;  %v6498_v13 = vor.u32 %v6496_v37, %v6495_v58  ;;  %v6500_v7 = vrot.slane %v6495_v58, 4  ;;  %v8165_v37 = vld [vmem:[#allocation3 + $0x6c] sm:$0xe] }
 0x2c5   : > { %v6163_v40 = vmax.f32 %v6131_v15, 0.0  ;;  %v12741_v31 = vcombine.low %v8265_v16, %v8268_v1  ;;  %v6478_v10 = vrot.slane %v6476_v44, 7  ;;  %v6058_v23 = vadd.f32 %v14224_v14, %v5560_v48  ;;  %v7431_v57 = vld [vmem:[#allocation3 + $0x74] sm:$0x1] }
 0x2c6   : > { %v18646_v61 = vrot.slane %v6519_v60, 7  ;;  %v6056_v56 = vadd.f32 %v6015_v22, %v5558_v53  ;;  %v6499_v43 = vsel %vm15259_vm11, %v6491_v62, %v6498_v13  ;;  %v6680_v0 = vsel %vm15175_vm3, %v6500_v7, %v6679_v6  ;;  %v8166_v53 = vld [vmem:[#allocation3 + $0x78] sm:$0xe]  ;;  %v18682_v22 = vld [vmem:[#allocation3 + $0x84] sm:$0xe] }
 0x2c7   : > { %v13127_v24 = vpack.c.bf16 %v6163_v40, %v6163_v40  ;;  %14397 = vmatprep.mubr.bf16.mxu0 %v12741_v31  ;;  %v8271_v12 = vrot.slane %v7424_v46, 5  ;;  %6678 = vst [vmem:[#allocation3 + $0xac] sm:$0xf] %v6499_v43  ;;  %6681 = vst [vmem:[#allocation3 + $0xb0] sm:$0x1] %v6680_v0  ;;  %v6481_v51 = vor.u32 %v6479_v28, %v6478_v10  ;;  %v6483_v52 = vrot.slane %v6478_v10, 4 }
 0x2c8   : > { %v6524_v34 = vor.u32 %v6522_v42, %v18646_v61  ;;  %v6525_v55 = vrot.slane %v18646_v61, 4  ;;  %v6096_v11 = vmul.f32 %v18555_v45, %v6058_v23  ;;  %v6094_v8 = vmul.f32 %v18555_v45, %v6056_v56  ;;  %v7433_v42 = vld [vmem:[#allocation3 + $0x7c] sm:$0xf]  ;;  %v7434_v46 = vld [vmem:[#allocation3 + $0x80] sm:$0x1] }
 0x2c9   : > { %v6502_v17 = vshrl.u32 %v13127_v24, 16  ;;  %v6505_v62 = vshll.u32 %v13127_v24, 16  ;;  %v6482_v4 = vsel %vm15259_vm11, %v6474_v33, %v6481_v51  ;;  %v6673_v3 = vsel %vm15175_vm3, %v6483_v52, %v6672_v54  ;;  %v7436_v56 = vld [vmem:[#allocation3 + $0x88] sm:$0xf] }
 0x2ca   : > { %v6690_v2 = vsel %vm15253_vm10, %v6524_v34, %v6689_v50  ;;  %6671 = vst [vmem:[#allocation3 + $0xa0] sm:$0xf] %v6482_v4  ;;  %6674 = vst [vmem:[#allocation3 + $0xa4] sm:$0x1] %v6673_v3  ;;  %v6134_v45 = vadd.f32 %v18568_v9, %v6096_v11  ;;  %v6132_v39 = vadd.f32 %v18568_v9, %v6094_v8  ;;  %v8273_v30 = vrot.slane %v8271_v12, 4 }
 0x2cb   : > { %6691 = vst [vmem:[#allocation3 + $0xc0] sm:$0xf] %v6690_v2  ;;  %v18666_v49 = vrot.slane %v6502_v17, 7  ;;  %v8272_v33 = vsel %vm15689_vm14, %v12710_v47, %v8271_v12  ;;  %v8274_v16 = vrot.slane %v7425_v32, 5  ;;  %v12711_v21 = vrot.slane %v8164_v35, 9 }
 0x2cc   : > { %v8278_v14 = vrot.slane %v7427_v36, 5  ;;  %v6166_v27 = vmax.f32 %v6134_v45, 0.0  ;;  %v6164_v15 = vmax.f32 %v6132_v39, 0.0  ;;  %v8281_v48 = vrot.slane %v7428_v38, 5  ;;  %v6693_v43 = vld [vmem:[#allocation3 + $0xc8] sm:$0x1] }
 0x2cd   : > { %v6507_v59 = vor.u32 %v6505_v62, %v18666_v49  ;;  %v6508_v58 = vrot.slane %v18666_v49, 4  ;;  %v8275_v9 = vsel %vm15689_vm14, %v8273_v30, %v8274_v16  ;;  %v12712_v7 = vrot.slane %v8165_v37, 9  ;;  %v6686_v50 = vld [vmem:[#allocation3 + $0xbc] sm:$0x1]  ;;  %v7437_v17 = vld [vmem:[#allocation3 + $0x8c] sm:$0x1] }
 0x2ce   : > { %v8279_v6 = vsel %vm15689_vm14, %v12711_v21, %v8278_v14  ;;  %v8280_v1 = vrot.slane %v8278_v14, 4  ;;  %v13130_v44 = vpack.c.bf16 %v6166_v27, %v6166_v27  ;;  %v13128_v28 = vpack.c.bf16 %v6164_v15, %v6164_v15  ;;  %v14914_v62 = vld [vmem:[#allocation3 + $0xa8] sm:$0xff]   ;;  %v7439_v3 = vld [vmem:[#allocation3 + $0x94] sm:$0xf]  ;;  %v8168_v2 = vld [vmem:[#allocation3 + $0x90] sm:$0xe] }
 0x2cf   : > { %v6683_v47 = vsel %vm15253_vm10, %v6507_v59, %v6682_v18  ;;  %v12742_v60 = vcombine.low %v8272_v33, %v8275_v9  ;;  %v8285_v40 = vrot.slane %v7430_v20, 5  ;;  %v8288_v31 = vrot.slane %v7431_v57, 5  ;;  %v7440_v30 = vld [vmem:[#allocation3 + $0x98] sm:$0x1]  ;;  %v8169_v20 = vld [vmem:[#allocation3 + $0x9c] sm:$0xe] }
 0x2d0   : > { %6684 = vst [vmem:[#allocation3 + $0xb4] sm:$0xf] %v6683_v47  ;;  %v8282_v13 = vsel %vm15689_vm14, %v8280_v1, %v8281_v48  ;;  %v6527_v10 = vshrl.u32 %v13130_v44, 16  ;;  %v6530_v54 = vshll.u32 %v13130_v44, 16  ;;  %v6510_v23 = vshrl.u32 %v13128_v28, 16 }
 0x2d1   : > { %14398 = vmatmul.mubr.bf16.gmra.mxu0 %v12742_v60  ;;  %v12713_v19 = vrot.slane %v8166_v53, 9  ;;  %v6513_v0 = vshll.u32 %v13128_v28, 16  ;;  %v12743_v24 = vcombine.low %v8279_v6, %v8282_v13  ;;  %v8287_v12 = vrot.slane %v8285_v40, 4  ;;  %v14913_v51 = vld [vmem:[#allocation3 + $0x9c] sm:$0xff]   ;;  %v7445_v59 = vld [vmem:[#allocation3 + $0xac] sm:$0xf] }
 0x2d2   : > { %v8292_v35 = vrot.slane %v7433_v42, 5  ;;  %v6529_v52 = vrot.slane %v6527_v10, 7  ;;  %v6512_v34 = vrot.slane %v6510_v23, 7  ;;  %v8286_v36 = vsel %vm15689_vm14, %v12712_v7, %v8285_v40  ;;  %14266 = vmatmul.mubr.bf16.gmra.mxu1 %v14913_v51  ;;  %v7442_v14 = vld [vmem:[#allocation3 + $0xa0] sm:$0xf] }
 0x2d3   : > { %v8295_v38 = vrot.slane %v7434_v46, 5  ;;  %14401 = vmatprep.mubr.bf16.mxu0 %v12743_v24  ;;  %v8289_v11 = vsel %vm15689_vm14, %v8287_v12, %v8288_v31  ;;  %v12714_v32 = vrot.slane %v18682_v22, 9  ;;  %v8299_v4 = vrot.slane %v7436_v56, 5  ;;  %14269 = vmatprep.mubr.bf16.mxu1 %v14914_v62  ;;  %v8170_v27 = vld [vmem:[#allocation3 + $0xa8] sm:$0xe] }
 0x2d4   : > { %v8294_v8 = vrot.slane %v8292_v35, 4  ;;  %v6532_v18 = vor.u32 %v6530_v54, %v6529_v52  ;;  %v6534_v49 = vrot.slane %v6529_v52, 4  ;;  %v6515_v45 = vor.u32 %v6513_v0, %v6512_v34  ;;  %v7443_v6 = vld [vmem:[#allocation3 + $0xa4] sm:$0x1]  ;;  %v7446_v1 = vld [vmem:[#allocation3 + $0xb0] sm:$0x1] }
 0x2d5   : > { %v6517_v39 = vrot.slane %v6512_v34, 4  ;;  %v12744_v37 = vcombine.low %v8286_v36, %v8289_v11  ;;  %v8293_v33 = vsel %vm15689_vm14, %v12713_v19, %v8292_v35  ;;  %v8301_v21 = vrot.slane %v8299_v4, 4  ;;  %v9040_v53 = vld [vmem:[#allocation3 + $0xc] sm:$0xf]  ;;  %v7402_v0 = vld [vmem:[#allocation3] sm:$0xf] }
 0x2d6   : > { %v8296_v16 = vsel %vm15689_vm14, %v8294_v8, %v8295_v38  ;;  %v6533_v15 = vsel %vm15259_vm11, %v6525_v55, %v6532_v18  ;;  %v6694_v48 = vsel %vm15175_vm3, %v6534_v49, %v6693_v43  ;;  %v6516_v57 = vsel %vm15259_vm11, %v6508_v58, %v6515_v45  ;;  %v9041_v58 = vld [vmem:[#allocation3 + $0x10] sm:$0xf]  ;;  %v9042_v52 = vld [vmem:[#allocation3 + $0x14] sm:$0x1] }
 0x2d7   : > { %v6687_v9 = vsel %vm15175_vm3, %v6517_v39, %v6686_v50  ;;  %6692 = vst [vmem:[#allocation3 + $0xc4] sm:$0xf] %v6533_v15  ;;  %6695 = vst [vmem:[#allocation3 + $0xc8] sm:$0x1] %v6694_v48  ;;  %v12745_v61 = vcombine.low %v8293_v33, %v8296_v16  ;;  %v8302_v47 = vrot.slane %v7437_v17, 5  ;;  %v8306_v44 = vrot.slane %v7439_v3, 5 }
 0x2d8   : > { %6685 = vst [vmem:[#allocation3 + $0xb8] sm:$0xf] %v6516_v57  ;;  %6688 = vst [vmem:[#allocation3 + $0xbc] sm:$0x1] %v6687_v9  ;;  %v8171_v55 = vld [vmem:[#allocation3 + $0xb4] sm:$0xe]  ;;  %v8300_v46 = vsel %vm15689_vm14, %v12714_v32, %v8299_v4 }
 0x2d9   : > { %14402 = vmatmul.mubr.bf16.gmra.mxu0 %v12744_v37  ;;  %v12715_v28 = vrot.slane %v8168_v2, 9  ;;  %v8309_v60 = vrot.slane %v7440_v30, 5  ;;  %v12716_v42 = vrot.slane %v8169_v20, 9  ;;  %v8313_v25 = vrot.slane %v7442_v14, 5  ;;  %v15024_v48 = vld [vmem:[#allocation3 + $0x4] sm:$0xf] }
 0x2da   : > { %14405 = vmatprep.mubr.bf16.mxu0 %v12745_v61  ;;  %v8303_v13 = vsel %vm15689_vm14, %v8301_v21, %v8302_v47  ;;  %v8308_v7 = vrot.slane %v8306_v44, 4  ;;  %v8316_v40 = vrot.slane %v7443_v6, 5  ;;  %v12717_v10 = vrot.slane %v8170_v27, 9  ;;  %v7405_v9 = vld [vmem:[#allocation3 + $0xc] sm:$0xf] }
 0x2db   : > { %v8307_v31 = vsel %vm15689_vm14, %v12715_v28, %v8306_v44  ;;  %v8315_v22 = vrot.slane %v8313_v25, 4  ;;  %v8320_v54 = vrot.slane %v7445_v59, 5  ;;  %v12746_v23 = vcombine.low %v8300_v46, %v8303_v13  ;;  %v15025_v28 = vld [vmem:[#allocation3 + $0x8] sm:$0x1] }
 0x2dc   : > { %v8310_v19 = vsel %vm15689_vm14, %v8308_v7, %v8309_v60  ;;  %v8323_v56 = vrot.slane %v7446_v1, 5  ;;  %v9089_v43 = vshrl.u32 %v9040_v53, 16  ;;  %v8314_v50 = vsel %vm15689_vm14, %v12716_v42, %v8313_v25  ;;  %v7408_v42 = vld [vmem:[#allocation3 + $0x18] sm:$0xf] }
 0x2dd   : > { %v8317_v24 = vsel %vm15689_vm14, %v8315_v22, %v8316_v40  ;;  %v8322_v12 = vrot.slane %v8320_v54, 4  ;;  %v12718_v35 = vrot.slane %v8171_v55, 9  ;;  %v12747_v51 = vcombine.low %v8307_v31, %v8310_v19 }
 0x2de   : > { %v9091_v34 = vrot.slane %v9089_v43, 4  ;;  %v9092_v36 = vshll.u32 %v9040_v53, 16  ;;  %v9098_v38 = vshll.u32 %v9041_v58, 16  ;;  %v12748_v17 = vcombine.low %v8314_v50, %v8317_v24 }
 0x2df   : > { %v8321_v62 = vsel %vm15689_vm14, %v12717_v10, %v8320_v54  ;;  %v8324_v11 = vsel %vm15689_vm14, %v8322_v12, %v8323_v56  ;;  %v14918_v8 = vld [vmem:[#allocation3 + $0xb4] sm:$0xff]   ;;  %v9102_v4 = vshrl.u32 %v9041_v58, 16  ;;  %v7449_v2 = vld [vmem:[#allocation3 + $0xbc] sm:$0x1]  ;;  %v9108_v20 = vshll.u32 %v9042_v52, 16 }
 0x2e0   : > { %v7448_v32 = vld [vmem:[#allocation3 + $0xb8] sm:$0xf]  ;;  %v12749_v3 = vcombine.low %v8321_v62, %v8324_v11  ;;  %v9094_v49 = vrot.slane %v9092_v36, 5  ;;  %v9100_v45 = vrot.slane %v9098_v38, 5  ;;  %14270 = vmatmul.mubr.bf16.gmra.mxu1 %v14918_v8  ;;  %v8330_v39 = vrot.slane %v7449_v2, 5 }
 0x2e1   : > { %v8327_v18 = vrot.slane %v7448_v32, 5  ;;  %14406 = vmatmul.mubr.bf16.gmra.mxu0 %v12746_v23  ;;  %v9104_v30 = vrot.slane %v9102_v4, 4  ;;  %v7451_v37 = vshrl.u32 %v7402_v0, 16  ;;  %v7454_v14 = vshll.u32 %v7402_v0, 16  ;;  %v15026_v10 = vld [vmem:[#allocation3 + $0x10] sm:$0xf] }
 0x2e2   : > { %14409 = vmatprep.mubr.bf16.mxu0 %v12747_v51  ;;  %v9095_v21 = vor.u32 %v9094_v49, %v9091_v34  ;;  %v9110_v27 = vrot.slane %v9108_v20, 5  ;;  %v7460_v57 = vshll.u32 %v15024_v48, 16  ;;  %v7464_v61 = vshrl.u32 %v15024_v48, 16  ;;  %v15027_v12 = vld [vmem:[#allocation3 + $0x14] sm:$0x1] }
 0x2e3   : > { %v18721_v33 = vsel %vm15689_vm14, %v12718_v35, %v8327_v18  ;;  %v8329_v16 = vrot.slane %v8327_v18, 4  ;;  %v9105_v59 = vor.u32 %v9104_v30, %v9100_v45  ;;  %v7453_v15 = vrot.slane %v7451_v37, 4  ;;  %v9043_v51 = vld [vmem:[#allocation3 + $0x18] sm:$0xf]  ;;  %v9044_v62 = vld [vmem:[#allocation3 + $0x1c] sm:$0xf] }
 0x2e4   : > { %v9096_v1 = vrot.slane %v9095_v21, 4  ;;  %v7456_v53 = vrot.slane %v7454_v14, 5  ;;  %v7462_v55 = vrot.slane %v7460_v57, 5  ;;  %v7470_v60 = vshll.u32 %v15025_v28, 16  ;;  %v15028_v4 = vld [vmem:[#allocation3 + $0x1c] sm:$0xf] }
 0x2e5   : > { %v18725_v6 = vsel %vm15689_vm14, %v8329_v16, %v8330_v39  ;;  %v9106_v44 = vrot.slane %v9105_v59, 4  ;;  %v7466_v13 = vrot.slane %v7464_v61, 4  ;;  %v7475_v7 = vshrl.u32 %v7405_v9, 16  ;;  %v9045_v37 = vld [vmem:[#allocation3 + $0x20] sm:$0x1]  ;;  %v14975_v41 = vld [vmem:[#allocation3 + $0xb4] sm:$0xff]  }
 0x2e6   : > { %v12750_v47 = vcombine.low %v18721_v33, %v18725_v6  ;;  %v9101_v58 = vsel %vm15241_vm9, %v9096_v1, %v9100_v45  ;;  %v7457_v46 = vor.u32 %v7456_v53, %v7453_v15  ;;  %v7472_v31 = vrot.slane %v7470_v60, 5  ;;  %v15029_v21 = vld [vmem:[#allocation3 + $0x20] sm:$0x1]  ;;  %v9046_v61 = vld [vmem:[#allocation3 + $0x24] sm:$0xf] }
 0x2e7   : > { %v9111_v40 = vsel %vm15241_vm9, %v9106_v44, %v9110_v27  ;;  %v7478_v22 = vshll.u32 %v7405_v9, 16  ;;  %v7484_v54 = vshll.u32 %v15026_v10, 16  ;;  %v7467_v56 = vor.u32 %v7466_v13, %v7462_v55 }
 0x2e8   : > { %v12815_v23 = vcombine.low %v9101_v58, %v9111_v40  ;;  %v7458_v19 = vrot.slane %v7457_v46, 4  ;;  %v7477_v43 = vrot.slane %v7475_v7, 4  ;;  %v7488_v24 = vshrl.u32 %v15026_v10, 16  ;;  %v14923_v40 = vld [vmem:[%s20621_s2 + $0xf0] sm:$0xff]  }
 0x2e9   : > { %14410 = vmatmul.mubr.bf16.gmra.mxu0 %v12748_v17  ;;  %v7480_v0 = vrot.slane %v7478_v22, 5  ;;  %v7486_v50 = vrot.slane %v7484_v54, 5  ;;  %v7494_v35 = vshll.u32 %v15027_v12, 16  ;;  %v7468_v34 = vrot.slane %v7467_v56, 4  ;;  %v9048_v22 = vld [vmem:[#allocation3 + $0x2c] sm:$0x1] }
 0x2ea   : > { %14413 = vmatprep.mubr.bf16.mxu0 %v12749_v3  ;;  %v7463_v52 = vsel %vm15241_vm9, %v7458_v19, %v7462_v55  ;;  %v7499_v36 = vshrl.u32 %v7408_v42, 16  ;;  %v7502_v38 = vshll.u32 %v7408_v42, 16  ;;  %v7490_v8 = vrot.slane %v7488_v24, 4  ;;  %v9047_v42 = vld [vmem:[#allocation3 + $0x28] sm:$0xf]  ;;  %v15030_v24 = vld [vmem:[%s20621_s2 + $0xf8] sm:$0xff]  }
 0x2eb   : > { %v7481_v11 = vor.u32 %v7480_v0, %v7477_v43  ;;  %v7496_v32 = vrot.slane %v7494_v35, 5  ;;  %v7508_v2 = vshll.u32 %v15028_v4, 16  ;;  %v7473_v17 = vsel %vm15241_vm9, %v7468_v34, %v7472_v31  ;;  %v7411_v0 = vld [vmem:[#allocation3 + $0x24] sm:$0xf] }
 0x2ec   : > { %v7501_v18 = vrot.slane %v7499_v36, 4  ;;  %v7504_v49 = vrot.slane %v7502_v38, 5  ;;  %v7512_v45 = vshrl.u32 %v15028_v4, 16  ;;  %v12679_v39 = vcombine.low %v7463_v52, %v7473_v17 }
 0x2ed   : > { %v7482_v3 = vrot.slane %v7481_v11, 4  ;;  %v7491_v30 = vor.u32 %v7490_v8, %v7486_v50  ;;  %v7510_v20 = vrot.slane %v7508_v2, 5  ;;  %v7518_v14 = vshll.u32 %v15029_v21, 16  ;;  %v14924_v11 = vld [vmem:[%s20621_s2 + $0xe8] sm:$0xff]  }
 0x2ee   : > { %v7505_v33 = vor.u32 %v7504_v49, %v7501_v18  ;;  %v7514_v16 = vrot.slane %v7512_v45, 4  ;;  %v9113_v59 = vshrl.u32 %v9043_v51, 16  ;;  %14337 = vmatprep.mubr.bf16.mxu1 %v12679_v39  ;;  %v9116_v48 = vshll.u32 %v9043_v51, 16  ;;  %v15031_v45 = vld [vmem:[#allocation3 + $0x28] sm:$0xf] }
 0x2ef   : > { %v7487_v27 = vsel %vm15241_vm9, %v7482_v3, %v7486_v50  ;;  %v7492_v15 = vrot.slane %v7491_v30, 4  ;;  %v9122_v57 = vshll.u32 %v9044_v62, 16  ;;  %v7520_v1 = vrot.slane %v7518_v14, 5  ;;  %v18748_v50 = vpop.f32.mrf.mxu0  ;;  %v7414_v3 = vld [vmem:[#allocation3 + $0x30] sm:$0xf] }
 0x2f0   : > { %v7506_v9 = vrot.slane %v7505_v33, 4  ;;  %v7515_v6 = vor.u32 %v7514_v16, %v7510_v20  ;;  %v9115_v53 = vrot.slane %v9113_v59, 4  ;;  %v9118_v55 = vrot.slane %v9116_v48, 5  ;;  %v14929_v48 = vld [vmem:[%s20621_s2 + $0x1b0] sm:$0xff]  }
 0x2f1   : > { %14414 = vmatmul.mubr.bf16.gmra.mxu0 %v12750_v47  ;;  %v7497_v44 = vsel %vm15241_vm9, %v7492_v15, %v7496_v32  ;;  %v9124_v28 = vrot.slane %v9122_v57, 5  ;;  %v9126_v60 = vshrl.u32 %v9044_v62, 16  ;;  %v9132_v7 = vshll.u32 %v9045_v37, 16  ;;  %v18758_v30 = vpop.f32.mrf.mxu0  ;;  %v14925_v15 = vld [vmem:[%s20621_s2 + $0xe0] sm:$0xff]  }
 0x2f2   : > { %14481 = vmatprep.mubr.bf16.mxu0 %v12815_v23  ;;  %v12680_v58 = vcombine.low %v7487_v27, %v7497_v44  ;;  %v7511_v46 = vsel %vm15241_vm9, %v7506_v9, %v7510_v20  ;;  %v7516_v13 = vrot.slane %v7515_v6, 4  ;;  %v9119_v31 = vor.u32 %v9118_v55, %v9115_v53 }
 0x2f3   : > { %v9128_v47 = vrot.slane %v9126_v60, 4  ;;  %v9137_v10 = vshrl.u32 %v9046_v61, 16  ;;  %v9140_v54 = vshll.u32 %v9046_v61, 16  ;;  %v9134_v23 = vrot.slane %v9132_v7, 5  ;;  %v18768_v57 = vpop.f32.mrf.mxu0  ;;  %v15033_v60 = vld [vmem:[#allocation3 + $0x34] sm:$0xf] }
 0x2f4   : > { %14338 = vmatmul.mubr.bf16.vlgmr.msra.gmra.mxu1 %v12680_v58  ;;  %v7521_v19 = vsel %vm15241_vm9, %v7516_v13, %v7520_v1  ;;  %v9146_v56 = vshll.u32 %v9047_v42, 16  ;;  %v9150_v43 = vshrl.u32 %v9047_v42, 16  ;;  %v9120_v35 = vrot.slane %v9119_v31, 4  ;;  %v15032_v1 = vld [vmem:[#allocation3 + $0x2c] sm:$0x1] }
 0x2f5   : > { %14418 = vmatpush3.bf16.msra.mxu1 %v15030_v24  ;;  %v12681_v12 = vcombine.low %v7511_v46, %v7521_v19  ;;  %v9129_v51 = vor.u32 %v9128_v47, %v9124_v28  ;;  %v9139_v52 = vrot.slane %v9137_v10, 4  ;;  %v9142_v34 = vrot.slane %v9140_v54, 5  ;;  %v9049_v58 = vld [vmem:[#allocation3 + $0x30] sm:$0xf]  ;;  %v18774_v46 = vpop.f32.mrf.mxu0  ;;  %v9050_v47 = vld [vmem:[#allocation3 + $0x34] sm:$0xf] }
 0x2f6   : > { %v9148_v36 = vrot.slane %v9146_v56, 5  ;;  %v9152_v38 = vrot.slane %v9150_v43, 4  ;;  %v9156_v62 = vshll.u32 %v9048_v22, 16  ;;  %14419 = vmatprep.subr.bf16.mxu1 %v14923_v40  ;;  %v9125_v8 = vsel %vm15241_vm9, %v9120_v35, %v9124_v28  ;;  %21100 = vst [vmem:[#allocation53_spill] sm:$0xff] %v18774_v46  ;;  %v14930_v56 = vld [vmem:[%s20621_s2 + $0x1a8] sm:$0xff]  }
 0x2f7   : > { %14341 = vmatprep.mubr.bf16.mxu1 %v12681_v12  ;;  %v9130_v32 = vrot.slane %v9129_v51, 4  ;;  %v7523_v4 = vshrl.u32 %v7411_v0, 16  ;;  %v7526_v2 = vshll.u32 %v7411_v0, 16  ;;  %v9143_v17 = vor.u32 %v9142_v34, %v9139_v52  ;;  %v18785_v43 = vpop.f32.mrf.mxu0  ;;  %v15034_v24 = vld [vmem:[#allocation3 + $0x38] sm:$0x1] }
 0x2f8   : > { %v9153_v18 = vor.u32 %v9152_v38, %v9148_v36  ;;  %v9158_v49 = vrot.slane %v9156_v62, 5  ;;  %v7532_v39 = vshll.u32 %v15031_v45, 16  ;;  %v7536_v16 = vshrl.u32 %v15031_v45, 16  ;;  %v9051_v35 = vld [vmem:[#allocation3 + $0x38] sm:$0x1] }
 0x2f9   : > { %v9135_v20 = vsel %vm15241_vm9, %v9130_v32, %v9134_v23  ;;  %v7525_v37 = vrot.slane %v7523_v4, 4  ;;  %v7528_v33 = vrot.slane %v7526_v2, 5  ;;  %14420 = vmatpush3.bf16.msra.mxu1 %v14923_v40  ;;  %v9144_v14 = vrot.slane %v9143_v17, 4  ;;  %v14926_v23 = vld [vmem:[%s20621_s2 + $0xd8] sm:$0xff]   ;;  %v9052_v62 = vld [vmem:[#allocation3 + $0x3c] sm:$0xf] }
 0x2fa   : > { %v12816_v21 = vcombine.low %v9125_v8, %v9135_v20  ;;  %v9154_v59 = vrot.slane %v9153_v18, 4  ;;  %v7534_v27 = vrot.slane %v7532_v39, 5  ;;  %14421 = vmatprep.subr.bf16.mxu1 %v14924_v11  ;;  %v7538_v6 = vrot.slane %v7536_v16, 4  ;;  %v9053_v39 = vld [vmem:[#allocation3 + $0x40] sm:$0xf]  ;;  %v14932_v20 = vld [vmem:[%s20621_s2 + $0x1a0] sm:$0xff]  }
 0x2fb   : > { %v7529_v9 = vor.u32 %v7528_v33, %v7525_v37  ;;  %v7542_v53 = vshll.u32 %v15032_v1, 16  ;;  %v7547_v61 = vshrl.u32 %v7414_v3, 16  ;;  %v9149_v44 = vsel %vm15241_vm9, %v9144_v14, %v9148_v36 }
 0x2fc   : > { %14482 = vmatmul.mubr.bf16.vlgmr.msra.gmra.mxu0 %v12816_v21  ;;  %v9159_v55 = vsel %vm15241_vm9, %v9154_v59, %v9158_v49  ;;  %v7550_v28 = vshll.u32 %v7414_v3, 16  ;;  %v7556_v42 = vshll.u32 %v15033_v60, 16  ;;  %v7539_v40 = vor.u32 %v7538_v6, %v7534_v27  ;;  %v14928_v3 = vld [vmem:[%s20621_s2 + $0xd0] sm:$0xff]  }
 0x2fd   : > { %v12817_v13 = vcombine.low %v9149_v44, %v9159_v55  ;;  %v7530_v7 = vrot.slane %v7529_v9, 4  ;;  %v7544_v31 = vrot.slane %v7542_v53, 5  ;;  %14422 = vmatpush3.bf16.msra.mxu1 %v14924_v11  ;;  %14562 = vmatpush3.bf16.msra.mxu0 %v18637_v5  ;;  %v7549_v22 = vrot.slane %v7547_v61, 4  ;;  %v18789_v11 = vpop.f32.mrf.mxu0  ;;  %v7417_v55 = vld [vmem:[#allocation3 + $0x3c] sm:$0xf] }
 0x2fe   : > { %v7552_v10 = vrot.slane %v7550_v28, 5  ;;  %v18777_v54 = vrot.slane %v7556_v42, 5  ;;  %v7560_v19 = vshrl.u32 %v15033_v60, 16  ;;  %14423 = vmatprep.subr.bf16.mxu1 %v14925_v15  ;;  %14563 = vmatprep.subr.bf16.mxu0 %v14929_v48  ;;  %v7540_v0 = vrot.slane %v7539_v40, 4 }
 0x2ff   : > { %14485 = vmatprep.mubr.bf16.mxu0 %v12817_v13  ;;  %v7535_v5 = vsel %vm15241_vm9, %v7530_v7, %v7534_v27  ;;  %v7566_v12 = vshll.u32 %v15034_v24, 16  ;;  %v9161_v51 = vshrl.u32 %v9049_v58, 16  ;;  %v9164_v36 = vshll.u32 %v9049_v58, 16  ;;  %v18800_v37 = vpop.f32.mrf.mxu0  ;;  %v14931_v13 = vld [vmem:[%s20621_s2 + $0xc8] sm:$0xff]  }
 0x300   : > { %v7553_v52 = vor.u32 %v7552_v10, %v7549_v22  ;;  %v7562_v34 = vrot.slane %v7560_v19, 4  ;;  %v9170_v38 = vshll.u32 %v9050_v47, 16  ;;  %v7545_v8 = vsel %vm15241_vm9, %v7540_v0, %v7544_v31  ;;  %v14933_v10 = vld [vmem:[%s20621_s2 + $0x198] sm:$0xff]  }
 0x301   : > { %v7568_v32 = vrot.slane %v7566_v12, 5  ;;  %v9163_v4 = vrot.slane %v9161_v51, 4  ;;  %v9174_v2 = vshrl.u32 %v9050_v47, 16  ;;  %14424 = vmatpush3.bf16.msra.mxu1 %v14925_v15  ;;  %14564 = vmatpush3.bf16.msra.mxu0 %v14929_v48  ;;  %v12682_v17 = vcombine.low %v7535_v5, %v7545_v8  ;;  %v9054_v48 = vld [vmem:[#allocation3 + $0x44] sm:$0x1]  ;;  %v18805_v6 = vpop.f32.mrf.mxu0 }
 0x302   : > { %v7554_v18 = vrot.slane %v7553_v52, 4  ;;  %v7563_v49 = vor.u32 %v7562_v34, %v18777_v54  ;;  %v9166_v45 = vrot.slane %v9164_v36, 5  ;;  %14425 = vmatprep.subr.bf16.mxu1 %v14926_v23  ;;  %14565 = vmatprep.subr.bf16.mxu0 %v14930_v56  ;;  %v9172_v33 = vrot.slane %v9170_v38, 5  ;;  %21101 = vst [vmem:[#allocation34_spill] sm:$0xff] %v18805_v6  ;;  %v15035_v12 = vld [vmem:[#allocation3 + $0x40] sm:$0xf] }
 0x303   : > { %v9176_v16 = vrot.slane %v9174_v2, 4  ;;  %v9180_v21 = vshll.u32 %v9051_v35, 16  ;;  %v9185_v14 = vshrl.u32 %v9052_v62, 16  ;;  %14342 = vmatmul.mubr.bf16.gmra.mxu1 %v12682_v17  ;;  %v9188_v9 = vshll.u32 %v9052_v62, 16  ;;  %v18812_v7 = vpop.f32.mrf.mxu0  ;;  %v7420_v51 = vld [vmem:[#allocation3 + $0x48] sm:$0xf] }
 0x304   : > { %v7559_v59 = vsel %vm15241_vm9, %v7554_v18, %v18777_v54  ;;  %v7564_v27 = vrot.slane %v7563_v49, 4  ;;  %v9167_v15 = vor.u32 %v9166_v45, %v9163_v4  ;;  %v9194_v44 = vshll.u32 %v9053_v39, 16  ;;  %v14934_v62 = vld [vmem:[%s20621_s2 + $0xc0] sm:$0xff]   ;;  %v15036_v17 = vld [vmem:[#allocation3 + $0x44] sm:$0x1]  ;;  %v14936_v49 = vld [vmem:[%s20621_s2 + $0x190] sm:$0xff]  }
 0x305   : > { %v9177_v1 = vor.u32 %v9176_v16, %v9172_v33  ;;  %v9182_v53 = vrot.slane %v9180_v21, 5  ;;  %v9187_v61 = vrot.slane %v9185_v14, 4  ;;  %14426 = vmatpush3.bf16.msra.mxu1 %v14926_v23  ;;  %14566 = vmatpush3.bf16.msra.mxu0 %v14930_v56  ;;  %v9190_v42 = vrot.slane %v9188_v9, 5  ;;  %v18824_v8 = vpop.f32.mrf.mxu0  ;;  %v15037_v9 = vld [vmem:[#allocation3 + $0x4c] sm:$0xf] }
 0x306   : > { %v7569_v28 = vsel %vm15241_vm9, %v7564_v27, %v7568_v32  ;;  %v9168_v60 = vrot.slane %v9167_v15, 4  ;;  %v9198_v58 = vshrl.u32 %v9053_v39, 16  ;;  %14427 = vmatprep.subr.bf16.mxu1 %v14928_v3  ;;  %14567 = vmatprep.subr.bf16.mxu0 %v14932_v20  ;;  %v9196_v47 = vrot.slane %v9194_v44, 5 }
 0x307   : > { %v12683_v40 = vcombine.low %v7559_v59, %v7569_v28  ;;  %v9178_v31 = vrot.slane %v9177_v1, 4  ;;  %v9204_v22 = vshll.u32 %v9054_v48, 16  ;;  %v9191_v19 = vor.u32 %v9190_v42, %v9187_v61  ;;  %v9055_v59 = vld [vmem:[#allocation3 + $0x48] sm:$0xf]  ;;  %v18837_v61 = vld [vmem:[%s20621_s2 + $0x178] sm:$0xff]   ;;  %v18839_v44 = vpop.f32.mrf.mxu0  ;;  %v14937_v42 = vld [vmem:[%s20621_s2 + $0x188] sm:$0xff]  }
 0x308   : > { %v9173_v54 = vsel %vm15241_vm9, %v9168_v60, %v9172_v33  ;;  %v9200_v23 = vrot.slane %v9198_v58, 4  ;;  %v7571_v56 = vshrl.u32 %v7417_v55, 16  ;;  %v7574_v24 = vshll.u32 %v7417_v55, 16 }
 0x309   : > { %14345 = vmatprep.mubr.bf16.mxu1 %v12683_v40  ;;  %v9183_v5 = vsel %vm15241_vm9, %v9178_v31, %v9182_v53  ;;  %v9206_v0 = vrot.slane %v9204_v22, 5  ;;  %v7580_v35 = vshll.u32 %v15035_v12, 16  ;;  %14428 = vmatpush3.bf16.msra.mxu1 %v14928_v3  ;;  %v9192_v34 = vrot.slane %v9191_v19, 4  ;;  %v9056_v53 = vld [vmem:[#allocation3 + $0x4c] sm:$0xf] }
 0x30a   : > { %v12818_v52 = vcombine.low %v9173_v54, %v9183_v5  ;;  %v9201_v36 = vor.u32 %v9200_v23, %v9196_v47  ;;  %v7573_v38 = vrot.slane %v7571_v56, 4  ;;  %14429 = vmatprep.subr.bf16.mxu1 %v14931_v13  ;;  %14568 = vmatpush3.bf16.msra.mxu0 %v14932_v20  ;;  %v7576_v32 = vrot.slane %v7574_v24, 5  ;;  %v15038_v40 = vld [vmem:[#allocation3 + $0x50] sm:$0x1] }
 0x30b   : > { %v7582_v4 = vrot.slane %v7580_v35, 5  ;;  %v7584_v2 = vshrl.u32 %v15035_v12, 16  ;;  %v7590_v18 = vshll.u32 %v15036_v17, 16  ;;  %14569 = vmatprep.subr.bf16.mxu0 %v14933_v10  ;;  %v9197_v45 = vsel %vm15241_vm9, %v9192_v34, %v9196_v47  ;;  %v9057_v54 = vld [vmem:[#allocation3 + $0x50] sm:$0x1]  ;;  %v18847_v35 = vpop.f32.mrf.mxu0 }
 0x30c   : > { %14486 = vmatmul.mubr.bf16.gmra.mxu0 %v12818_v52  ;;  %v9202_v39 = vrot.slane %v9201_v36, 4  ;;  %v7595_v3 = vshrl.u32 %v7420_v51, 16  ;;  %v7598_v20 = vshll.u32 %v7420_v51, 16  ;;  %v7577_v33 = vor.u32 %v7576_v32, %v7573_v38  ;;  %v9058_v12 = vld [vmem:[#allocation3 + $0x54] sm:$0xf]  ;;  %21102 = vst [vmem:[#allocation69_spill] sm:$0xff] %v18847_v35 }
 0x30d   : > { %v7586_v16 = vrot.slane %v7584_v2, 4  ;;  %v7592_v21 = vrot.slane %v7590_v18, 5  ;;  %v7604_v14 = vshll.u32 %v18615_v26, 16  ;;  %14430 = vmatpush3.bf16.msra.mxu1 %v14931_v13  ;;  %v7608_v1 = vshrl.u32 %v15037_v9, 16  ;;  %v9059_v38 = vld [vmem:[#allocation3 + $0x58] sm:$0xf] }
 0x30e   : > { %v9207_v27 = vsel %vm15241_vm9, %v9202_v39, %v9206_v0  ;;  %v7597_v15 = vrot.slane %v7595_v3, 4  ;;  %v7600_v48 = vrot.slane %v7598_v20, 5  ;;  %14570 = vmatpush3.bf16.msra.mxu0 %v14933_v10  ;;  %14431 = vmatprep.subr.bf16.mxu1 %v14934_v62  ;;  %v7578_v55 = vrot.slane %v7577_v33, 4 }
 0x30f   : > { %v12819_v26 = vcombine.low %v9197_v45, %v9207_v27  ;;  %v7587_v28 = vor.u32 %v7586_v16, %v7582_v4  ;;  %v7606_v60 = vrot.slane %v7604_v14, 5  ;;  %14571 = vmatprep.subr.bf16.mxu0 %v14936_v49  ;;  %v7610_v13 = vrot.slane %v7608_v1, 4  ;;  %v9060_v45 = vld [vmem:[#allocation3 + $0x5c] sm:$0x1]  ;;  %v7423_v14 = vld [vmem:[#allocation3 + $0x54] sm:$0xf] }
 0x310   : > { %v7601_v58 = vor.u32 %v7600_v48, %v7597_v15  ;;  %v7614_v31 = vshll.u32 %v15038_v40, 16  ;;  %v9209_v47 = vshrl.u32 %v9055_v59, 16  ;;  %v7583_v22 = vsel %vm15241_vm9, %v7578_v55, %v7582_v4  ;;  %v18863_v1 = vld [vmem:[%s20621_s2 + $0x238] sm:$0xff]  }
 0x311   : > { %14489 = vmatprep.mubr.bf16.mxu0 %v12819_v26  ;;  %v7588_v10 = vrot.slane %v7587_v28, 4  ;;  %v9212_v19 = vshll.u32 %v9055_v59, 16  ;;  %v9218_v23 = vshll.u32 %v9056_v53, 16  ;;  %14432 = vmatpush3.bf16.msra.mxu1 %v14934_v62  ;;  %v7611_v5 = vor.u32 %v7610_v13, %v7606_v60  ;;  %v14942_v62 = vld [vmem:[%s20621_s2 + $0x180] sm:$0xff]   ;;  %v18858_v59 = vpop.f32.mrf.mxu0 }
 0x312   : > { %v7602_v56 = vrot.slane %v7601_v58, 4  ;;  %v7616_v0 = vrot.slane %v7614_v31, 5  ;;  %v9211_v24 = vrot.slane %v9209_v47, 4  ;;  %14572 = vmatpush3.bf16.msra.mxu0 %v14936_v49  ;;  %14513 = vmatprep.subr.bf16.mxu1 %v18837_v61  ;;  %v9222_v36 = vshrl.u32 %v9056_v53, 16 }
 0x313   : > { %v7593_v51 = vsel %vm15241_vm9, %v7588_v10, %v7592_v21  ;;  %v9214_v52 = vrot.slane %v9212_v19, 5  ;;  %v9220_v34 = vrot.slane %v9218_v23, 5  ;;  %14573 = vmatprep.subr.bf16.mxu0 %v14937_v42  ;;  %v7612_v2 = vrot.slane %v7611_v5, 4  ;;  %v18867_v19 = vpop.f32.mrf.mxu0 }
 0x314   : > { %v12684_v32 = vcombine.low %v7583_v22, %v7593_v51  ;;  %v7607_v4 = vsel %vm15241_vm9, %v7602_v56, %v7606_v60  ;;  %v9228_v17 = vshll.u32 %v9057_v54, 16  ;;  %v9224_v49 = vrot.slane %v9222_v36, 4  ;;  %v15039_v22 = vld [vmem:[#allocation3 + $0x58] sm:$0xf]  ;;  %v7426_v54 = vld [vmem:[#allocation3 + $0x60] sm:$0xf] }
 0x315   : > { %v9215_v18 = vor.u32 %v9214_v52, %v9211_v24  ;;  %v9233_v39 = vshrl.u32 %v9058_v12, 16  ;;  %v9236_v3 = vshll.u32 %v9058_v12, 16  ;;  %v7617_v20 = vsel %vm15241_vm9, %v7612_v2, %v7616_v0 }
 0x316   : > { %14346 = vmatmul.mubr.bf16.gmra.mxu1 %v12684_v32  ;;  %v9230_v33 = vrot.slane %v9228_v17, 5  ;;  %v9242_v16 = vshll.u32 %v9059_v38, 16  ;;  %v9246_v21 = vshrl.u32 %v9059_v38, 16  ;;  %14574 = vmatpush3.bf16.msra.mxu0 %v14937_v42  ;;  %v12685_v27 = vcombine.low %v7607_v4, %v7617_v20  ;;  %v15040_v38 = vld [vmem:[#allocation3 + $0x5c] sm:$0x1] }
 0x317   : > { %v9216_v15 = vrot.slane %v9215_v18, 4  ;;  %v9225_v48 = vor.u32 %v9224_v49, %v9220_v34  ;;  %v9235_v9 = vrot.slane %v9233_v39, 4  ;;  %14575 = vmatprep.subr.bf16.mxu0 %v14942_v62  ;;  %v9238_v53 = vrot.slane %v9236_v3, 5  ;;  %v15041_v18 = vld [vmem:[#allocation3 + $0x64] sm:$0xf]  ;;  %v18876_v39 = vpop.f32.mrf.mxu0 }
 0x318   : > { %v9244_v26 = vrot.slane %v9242_v16, 5  ;;  %v9248_v55 = vrot.slane %v9246_v21, 4  ;;  %v9252_v28 = vshll.u32 %v9060_v45, 16  ;;  %14349 = vmatprep.mubr.bf16.mxu1 %v12685_v27  ;;  %v7619_v58 = vshrl.u32 %v7423_v14, 16  ;;  %v9061_v45 = vld [vmem:[#allocation3 + $0x60] sm:$0xf] }
 0x319   : > { %v9221_v60 = vsel %vm15241_vm9, %v9216_v15, %v9220_v34  ;;  %v9226_v42 = vrot.slane %v9225_v48, 4  ;;  %v7622_v13 = vshll.u32 %v7423_v14, 16  ;;  %v9239_v40 = vor.u32 %v9238_v53, %v9235_v9  ;;  %v9062_v21 = vld [vmem:[#allocation3 + $0x64] sm:$0xf] }
 0x31a   : > { %v9249_v31 = vor.u32 %v9248_v55, %v9244_v26  ;;  %v9254_v47 = vrot.slane %v9252_v28, 5  ;;  %v7628_v10 = vshll.u32 %v15039_v22, 16  ;;  %14576 = vmatpush3.bf16.msra.mxu0 %v14942_v62  ;;  %v7621_v56 = vrot.slane %v7619_v58, 4  ;;  %v9063_v28 = vld [vmem:[#allocation3 + $0x68] sm:$0x1] }
 0x31b   : > { %v9231_v23 = vsel %vm15241_vm9, %v9226_v42, %v9230_v33  ;;  %v7624_v5 = vrot.slane %v7622_v13, 5  ;;  %v7632_v0 = vshrl.u32 %v15039_v22, 16  ;;  %14657 = vmatprep.subr.bf16.mxu0 %v18863_v1  ;;  %v9240_v12 = vrot.slane %v9239_v40, 4 }
 0x31c   : > { %v12820_v24 = vcombine.low %v9221_v60, %v9231_v23  ;;  %v9250_v51 = vrot.slane %v9249_v31, 4  ;;  %v7630_v52 = vrot.slane %v7628_v10, 5  ;;  %v7638_v32 = vshll.u32 %v15040_v38, 16  ;;  %v9064_v31 = vld [vmem:[#allocation3 + $0x6c] sm:$0xf] }
 0x31d   : > { %v7625_v34 = vor.u32 %v7624_v5, %v7621_v56  ;;  %v7634_v36 = vrot.slane %v7632_v0, 4  ;;  %v7643_v4 = vshrl.u32 %v7426_v54, 16  ;;  %v9245_v62 = vsel %vm15241_vm9, %v9240_v12, %v9244_v26  ;;  %v15042_v26 = vld [vmem:[#allocation3 + $0x68] sm:$0x1]  ;;  %v9065_v12 = vld [vmem:[#allocation3 + $0x70] sm:$0xf] }
 0x31e   : > { %14490 = vmatmul.mubr.bf16.gmra.mxu0 %v12820_v24  ;;  %v9255_v2 = vsel %vm15241_vm9, %v9250_v51, %v9254_v47  ;;  %v7646_v17 = vshll.u32 %v7426_v54, 16  ;;  %v7652_v49 = vshll.u32 %v15041_v18, 16  ;;  %v7640_v16 = vrot.slane %v7638_v32, 5  ;;  %v18880_v47 = vpop.f32.mrf.mxu0 }
 0x31f   : > { %v12821_v3 = vcombine.low %v9245_v62, %v9255_v2  ;;  %v7626_v20 = vrot.slane %v7625_v34, 4  ;;  %v7635_v33 = vor.u32 %v7634_v36, %v7630_v52  ;;  %v7645_v14 = vrot.slane %v7643_v4, 4  ;;  %21103 = vst [vmem:[#allocation68_spill] sm:$0xff] %v18880_v47  ;;  %v9066_v62 = vld [vmem:[#allocation3 + $0x74] sm:$0x1] }
 0x320   : > { %v7648_v27 = vrot.slane %v7646_v17, 5  ;;  %v7654_v15 = vrot.slane %v7652_v49, 5  ;;  %v7656_v48 = vshrl.u32 %v15041_v18, 16  ;;  %v7662_v55 = vshll.u32 %v15042_v26, 16  ;;  %v18886_v17 = vpop.f32.mrf.mxu0 }
 0x321   : > { %14493 = vmatprep.mubr.bf16.mxu0 %v12821_v3  ;;  %v7631_v9 = vsel %vm15241_vm9, %v7626_v20, %v7630_v52  ;;  %v7636_v53 = vrot.slane %v7635_v33, 4  ;;  %v9257_v60 = vshrl.u32 %v9061_v45, 16  ;;  %v9260_v13 = vshll.u32 %v9061_v45, 16  ;;  %v7429_v20 = vld [vmem:[#allocation3 + $0x6c] sm:$0xf] }
 0x322   : > { %v7649_v42 = vor.u32 %v7648_v27, %v7645_v14  ;;  %v7658_v58 = vrot.slane %v7656_v48, 4  ;;  %v9266_v40 = vshll.u32 %v9062_v21, 16  ;;  %v7664_v10 = vrot.slane %v7662_v55, 5 }
 0x323   : > { %v7641_v22 = vsel %vm15241_vm9, %v7636_v53, %v7640_v16  ;;  %v9259_v54 = vrot.slane %v9257_v60, 4  ;;  %v9270_v23 = vshrl.u32 %v9062_v21, 16  ;;  %v9262_v24 = vrot.slane %v9260_v13, 5  ;;  %v18892_v60 = vpop.f32.mrf.mxu0 }
 0x324   : > { %v12686_v56 = vcombine.low %v7631_v9, %v7641_v22  ;;  %v7650_v5 = vrot.slane %v7649_v42, 4  ;;  %v7659_v0 = vor.u32 %v7658_v58, %v7654_v15  ;;  %v9268_v51 = vrot.slane %v9266_v40, 5  ;;  %v15043_v40 = vld [vmem:[#allocation3 + $0x70] sm:$0xf]  ;;  %v7432_v22 = vld [vmem:[#allocation3 + $0x78] sm:$0xf] }
 0x325   : > { %v9272_v52 = vrot.slane %v9270_v23, 4  ;;  %v9276_v34 = vshll.u32 %v9063_v28, 16  ;;  %v9281_v36 = vshrl.u32 %v9064_v31, 16  ;;  %v9263_v4 = vor.u32 %v9262_v24, %v9259_v54 }
 0x326   : > { %14350 = vmatmul.mubr.bf16.gmra.mxu1 %v12686_v56  ;;  %v7655_v38 = vsel %vm15241_vm9, %v7650_v5, %v7654_v15  ;;  %v7660_v32 = vrot.slane %v7659_v0, 4  ;;  %v9284_v2 = vshll.u32 %v9064_v31, 16  ;;  %v9290_v3 = vshll.u32 %v9065_v12, 16 }
 0x327   : > { %v9273_v18 = vor.u32 %v9272_v52, %v9268_v51  ;;  %v9278_v49 = vrot.slane %v9276_v34, 5  ;;  %v9283_v45 = vrot.slane %v9281_v36, 4  ;;  %v9264_v16 = vrot.slane %v9263_v4, 4 }
 0x328   : > { %v7665_v33 = vsel %vm15241_vm9, %v7660_v32, %v7664_v10  ;;  %v9286_v21 = vrot.slane %v9284_v2, 5  ;;  %v9294_v14 = vshrl.u32 %v9065_v12, 16  ;;  %v9292_v15 = vrot.slane %v9290_v3, 5  ;;  %v15044_v12 = vld [vmem:[#allocation3 + $0x74] sm:$0x1]  ;;  %v18898_v32 = vpop.f32.mrf.mxu0 }
 0x329   : > { %v12687_v27 = vcombine.low %v7655_v38, %v7665_v33  ;;  %v9274_v48 = vrot.slane %v9273_v18, 4  ;;  %v9300_v9 = vshll.u32 %v9066_v62, 16  ;;  %v9269_v53 = vsel %vm15241_vm9, %v9264_v16, %v9268_v51  ;;  %v15045_v18 = vld [vmem:[#allocation3 + $0x7c] sm:$0xf] }
 0x32a   : > { %v9287_v26 = vor.u32 %v9286_v21, %v9283_v45  ;;  %v9296_v55 = vrot.slane %v9294_v14, 4  ;;  %v7667_v28 = vshrl.u32 %v7429_v20, 16  ;;  %v7670_v13 = vshll.u32 %v7429_v20, 16  ;;  %v9067_v45 = vld [vmem:[#allocation3 + $0x78] sm:$0xf] }
 0x32b   : > { %14353 = vmatprep.mubr.bf16.mxu1 %v12687_v27  ;;  %v9279_v42 = vsel %vm15241_vm9, %v9274_v48, %v9278_v49  ;;  %v9302_v58 = vrot.slane %v9300_v9, 5  ;;  %v7676_v31 = vshll.u32 %v15043_v40, 16  ;;  %v7680_v24 = vshrl.u32 %v15043_v40, 16  ;;  %v9068_v21 = vld [vmem:[#allocation3 + $0x7c] sm:$0xf] }
 0x32c   : > { %v12822_v10 = vcombine.low %v9269_v53, %v9279_v42  ;;  %v9288_v54 = vrot.slane %v9287_v26, 4  ;;  %v9297_v23 = vor.u32 %v9296_v55, %v9292_v15  ;;  %v7669_v56 = vrot.slane %v7667_v28, 4  ;;  %v15046_v26 = vld [vmem:[#allocation3 + $0x80] sm:$0x1]  ;;  %v18902_v42 = vpop.f32.mrf.mxu0 }
 0x32d   : > { %v7672_v5 = vrot.slane %v7670_v13, 5  ;;  %v7678_v0 = vrot.slane %v7676_v31, 5  ;;  %v7686_v51 = vshll.u32 %v15044_v12, 16  ;;  %v7691_v36 = vshrl.u32 %v7432_v22, 16  ;;  %21104 = vst [vmem:[#allocation55_spill] sm:$0xff] %v18902_v42 }
 0x32e   : > { %14494 = vmatmul.mubr.bf16.gmra.mxu0 %v12822_v10  ;;  %v9293_v52 = vsel %vm15241_vm9, %v9288_v54, %v9292_v15  ;;  %v9298_v34 = vrot.slane %v9297_v23, 4  ;;  %v7694_v38 = vshll.u32 %v7432_v22, 16  ;;  %v7682_v62 = vrot.slane %v7680_v24, 4  ;;  %v9069_v40 = vld [vmem:[#allocation3 + $0x80] sm:$0x1] }
 0x32f   : > { %v7673_v4 = vor.u32 %v7672_v5, %v7669_v56  ;;  %v7688_v2 = vrot.slane %v7686_v51, 5  ;;  %v7700_v49 = vshll.u32 %v15045_v18, 16  ;;  %v7693_v20 = vrot.slane %v7691_v36, 4  ;;  %v9070_v5 = vld [vmem:[#allocation3 + $0x84] sm:$0xf] }
 0x330   : > { %v9303_v3 = vsel %vm15241_vm9, %v9298_v34, %v9302_v58  ;;  %v7696_v33 = vrot.slane %v7694_v38, 5  ;;  %v7704_v16 = vshrl.u32 %v15045_v18, 16  ;;  %v7683_v48 = vor.u32 %v7682_v62, %v7678_v0  ;;  %v9071_v34 = vld [vmem:[#allocation3 + $0x88] sm:$0xf]  ;;  %v18910_v62 = vpop.f32.mrf.mxu0 }
 0x331   : > { %v12823_v14 = vcombine.low %v9293_v52, %v9303_v3  ;;  %v7674_v27 = vrot.slane %v7673_v4, 4  ;;  %v7702_v15 = vrot.slane %v7700_v49, 5  ;;  %v7710_v55 = vshll.u32 %v15046_v26, 16  ;;  %21105 = vst [vmem:[#allocation54_spill] sm:$0xff] %v18910_v62  ;;  %v9797_v62 = vld [vmem:[#allocation3 + $0x30] sm:$0xe] }
 0x332   : > { %v7697_v9 = vor.u32 %v7696_v33, %v7693_v20  ;;  %v7706_v53 = vrot.slane %v7704_v16, 4  ;;  %v9305_v28 = vshrl.u32 %v9067_v45, 16  ;;  %v7684_v58 = vrot.slane %v7683_v48, 4 }
 0x333   : > { %14497 = vmatprep.mubr.bf16.mxu0 %v12823_v14  ;;  %v7679_v13 = vsel %vm15241_vm9, %v7674_v27, %v7678_v0  ;;  %v9308_v31 = vshll.u32 %v9067_v45, 16  ;;  %v9314_v22 = vshll.u32 %v9068_v21, 16  ;;  %v7712_v23 = vrot.slane %v7710_v55, 5  ;;  %v9072_v45 = vld [vmem:[#allocation3 + $0x8c] sm:$0x1] }
 0x334   : > { %v7698_v10 = vrot.slane %v7697_v9, 4  ;;  %v7707_v54 = vor.u32 %v7706_v53, %v7702_v15  ;;  %v9307_v56 = vrot.slane %v9305_v28, 4  ;;  %v7689_v24 = vsel %vm15241_vm9, %v7684_v58, %v7688_v2  ;;  %v7435_v14 = vld [vmem:[#allocation3 + $0x84] sm:$0xf] }
 0x335   : > { %v9310_v12 = vrot.slane %v9308_v31, 5  ;;  %v9316_v51 = vrot.slane %v9314_v22, 5  ;;  %v9318_v52 = vshrl.u32 %v9068_v21, 16  ;;  %v12688_v36 = vcombine.low %v7679_v13, %v7689_v24  ;;  %v18914_v13 = vpop.f32.mrf.mxu0  ;;  %v7438_v24 = vld [vmem:[#allocation3 + $0x90] sm:$0xf] }
 0x336   : > { %v7703_v0 = vsel %vm15241_vm9, %v7698_v10, %v7702_v15  ;;  %v7708_v38 = vrot.slane %v7707_v54, 4  ;;  %v9324_v4 = vshll.u32 %v9069_v40, 16  ;;  %v9329_v3 = vshrl.u32 %v9070_v5, 16  ;;  %21106 = vst [vmem:[#allocation71_spill] sm:$0xff] %v18914_v13  ;;  %v9796_v13 = vld [vmem:[#allocation3 + $0x24] sm:$0xe] }
 0x337   : > { %v9311_v18 = vor.u32 %v9310_v12, %v9307_v56  ;;  %v9320_v49 = vrot.slane %v9318_v52, 4  ;;  %v9332_v20 = vshll.u32 %v9070_v5, 16  ;;  %14354 = vmatmul.mubr.bf16.gmra.mxu1 %v12688_v36  ;;  %v9338_v16 = vshll.u32 %v9071_v34, 16  ;;  %v15047_v56 = vld [vmem:[#allocation3 + $0x88] sm:$0xf] }
 0x338   : > { %v7713_v2 = vsel %vm15241_vm9, %v7708_v38, %v7712_v23  ;;  %v9326_v33 = vrot.slane %v9324_v4, 5  ;;  %v9342_v21 = vshrl.u32 %v9071_v34, 16  ;;  %v9331_v9 = vrot.slane %v9329_v3, 4 }
 0x339   : > { %v12689_v27 = vcombine.low %v7703_v0, %v7713_v2  ;;  %v9312_v48 = vrot.slane %v9311_v18, 4  ;;  %v9321_v15 = vor.u32 %v9320_v49, %v9316_v51  ;;  %v9334_v53 = vrot.slane %v9332_v20, 5  ;;  %v15048_v20 = vld [vmem:[#allocation3 + $0x8c] sm:$0x1] }
 0x33a   : > { %v9340_v26 = vrot.slane %v9338_v16, 5  ;;  %v9344_v55 = vrot.slane %v9342_v21, 4  ;;  %v9348_v28 = vshll.u32 %v9072_v45, 16  ;;  %v7715_v31 = vshrl.u32 %v7435_v14, 16 }
 0x33b   : > { %14357 = vmatprep.mubr.bf16.mxu1 %v12689_v27  ;;  %v9317_v58 = vsel %vm15241_vm9, %v9312_v48, %v9316_v51  ;;  %v9322_v40 = vrot.slane %v9321_v15, 4  ;;  %v7718_v22 = vshll.u32 %v7435_v14, 16  ;;  %v9335_v10 = vor.u32 %v9334_v53, %v9331_v9  ;;  %v18920_v51 = vpop.f32.mrf.mxu0  ;;  %v15049_v27 = vld [vmem:[#allocation3 + $0x94] sm:$0xf]  ;;  %v9073_v15 = vld [vmem:[#allocation3 + $0x90] sm:$0xf] }
 0x33c   : > { %v9345_v54 = vor.u32 %v9344_v55, %v9340_v26  ;;  %v9350_v23 = vrot.slane %v9348_v28, 5  ;;  %v7724_v5 = vshll.u32 %v15047_v56, 16  ;;  %v7717_v52 = vrot.slane %v7715_v31, 4  ;;  %21107 = vst [vmem:[#allocation23_spill] sm:$0xff] %v18920_v51  ;;  %v18922_v49 = vpop.f32.mrf.mxu1 }
 0x33d   : > { %v9327_v12 = vsel %vm15241_vm9, %v9322_v40, %v9326_v33  ;;  %v7720_v34 = vrot.slane %v7718_v22, 5  ;;  %v7728_v36 = vshrl.u32 %v15047_v56, 16  ;;  %v9336_v38 = vrot.slane %v9335_v10, 4 }
 0x33e   : > { %v12824_v0 = vcombine.low %v9317_v58, %v9327_v12  ;;  %v9346_v4 = vrot.slane %v9345_v54, 4  ;;  %v7726_v18 = vrot.slane %v7724_v5, 5  ;;  %v7734_v2 = vshll.u32 %v15048_v20, 16  ;;  %v9074_v58 = vld [vmem:[#allocation3 + $0x94] sm:$0xf]  ;;  %v18928_v54 = vpop.f32.mrf.mxu0  ;;  %v18930_v56 = vpop.f32.mrf.mxu1 }
 0x33f   : > { %v7721_v45 = vor.u32 %v7720_v34, %v7717_v52  ;;  %v7730_v3 = vrot.slane %v7728_v36, 4  ;;  %v7739_v16 = vshrl.u32 %v7438_v24, 16  ;;  %v9341_v33 = vsel %vm15241_vm9, %v9336_v38, %v9340_v26  ;;  %21108 = vst [vmem:[#allocation36_spill] sm:$0xff] %v18928_v54  ;;  %v15050_v5 = vld [vmem:[#allocation3 + $0x98] sm:$0x1] }
 0x340   : > { %14498 = vmatmul.mubr.bf16.gmra.mxu0 %v12824_v0  ;;  %v9351_v21 = vsel %vm15241_vm9, %v9346_v4, %v9350_v23  ;;  %v7742_v14 = vshll.u32 %v7438_v24, 16  ;;  %v7748_v48 = vshll.u32 %v15049_v27, 16  ;;  %v7736_v28 = vrot.slane %v7734_v2, 5  ;;  %v9075_v12 = vld [vmem:[#allocation3 + $0x98] sm:$0x1] }
 0x341   : > { %v12825_v9 = vcombine.low %v9341_v33, %v9351_v21  ;;  %v7722_v53 = vrot.slane %v7721_v45, 4  ;;  %v7731_v55 = vor.u32 %v7730_v3, %v7726_v18  ;;  %v7741_v40 = vrot.slane %v7739_v16, 4  ;;  %v9076_v4 = vld [vmem:[#allocation3 + $0x9c] sm:$0xf] }
 0x342   : > { %v7744_v31 = vrot.slane %v7742_v14, 5  ;;  %v7750_v22 = vrot.slane %v7748_v48, 5  ;;  %v7752_v10 = vshrl.u32 %v15049_v27, 16  ;;  %v7758_v24 = vshll.u32 %v15050_v5, 16  ;;  %v9077_v14 = vld [vmem:[#allocation3 + $0xa0] sm:$0xf]  ;;  %v18936_v27 = vpop.f32.mrf.mxu0  ;;  %v18938_v48 = vpop.f32.mrf.mxu1 }
 0x343   : > { %14501 = vmatprep.mubr.bf16.mxu0 %v12825_v9  ;;  %v7727_v26 = vsel %vm15241_vm9, %v7722_v53, %v7726_v18  ;;  %v7732_v23 = vrot.slane %v7731_v55, 4  ;;  %v9353_v52 = vshrl.u32 %v9073_v15, 16  ;;  %v9356_v0 = vshll.u32 %v9073_v15, 16  ;;  %21109 = vst [vmem:[#allocation67_spill] sm:$0xff] %v18936_v27  ;;  %v19128_v27 = vld [vmem:[#allocation3 + $0x34] sm:$0xf] }
 0x344   : > { %v7745_v34 = vor.u32 %v7744_v31, %v7741_v40  ;;  %v7754_v36 = vrot.slane %v7752_v10, 4  ;;  %v9362_v38 = vshll.u32 %v9074_v58, 16  ;;  %v7760_v3 = vrot.slane %v7758_v24, 5  ;;  %21147 = vst [vmem:[#allocation60_spill] sm:$0xff] %v19128_v27 }
 0x345   : > { %v7737_v45 = vsel %vm15241_vm9, %v7732_v23, %v7736_v28  ;;  %v9355_v20 = vrot.slane %v9353_v52, 4  ;;  %v9366_v2 = vshrl.u32 %v9074_v58, 16  ;;  %v9358_v18 = vrot.slane %v9356_v0, 5  ;;  %v9078_v58 = vld [vmem:[#allocation3 + $0xa4] sm:$0x1] }
 0x346   : > { %v12690_v16 = vcombine.low %v7727_v26, %v7737_v45  ;;  %v7746_v33 = vrot.slane %v7745_v34, 4  ;;  %v7755_v21 = vor.u32 %v7754_v36, %v7750_v22  ;;  %v9364_v9 = vrot.slane %v9362_v38, 5  ;;  %v7441_v52 = vld [vmem:[#allocation3 + $0x9c] sm:$0xf]  ;;  %v18944_v38 = vpop.f32.mrf.mxu0  ;;  %v18946_v45 = vpop.f32.mrf.mxu1 }
 0x347   : > { %v9368_v53 = vrot.slane %v9366_v2, 4  ;;  %v9372_v15 = vshll.u32 %v9075_v12, 16  ;;  %v9377_v55 = vshrl.u32 %v9076_v4, 16  ;;  %v9359_v31 = vor.u32 %v9358_v18, %v9355_v20  ;;  %21110 = vst [vmem:[#allocation12_spill] sm:$0xff] %v18944_v38  ;;  %21111 = vst [vmem:[#allocation47_spill] sm:$0xff] %v18946_v45 }
 0x348   : > { %14358 = vmatmul.mubr.bf16.gmra.mxu1 %v12690_v16  ;;  %v7751_v28 = vsel %vm15241_vm9, %v7746_v33, %v7750_v22  ;;  %v7756_v40 = vrot.slane %v7755_v21, 4  ;;  %v9380_v10 = vshll.u32 %v9076_v4, 16  ;;  %v9386_v24 = vshll.u32 %v9077_v14, 16 }
 0x349   : > { %v9369_v26 = vor.u32 %v9368_v53, %v9364_v9  ;;  %v9374_v23 = vrot.slane %v9372_v15, 5  ;;  %v9379_v5 = vrot.slane %v9377_v55, 4  ;;  %v9360_v36 = vrot.slane %v9359_v31, 4  ;;  %v15051_v15 = vld [vmem:[#allocation3 + $0xa0] sm:$0xf] }
 0x34a   : > { %v7761_v34 = vsel %vm15241_vm9, %v7756_v40, %v7760_v3  ;;  %v9382_v0 = vrot.slane %v9380_v10, 5  ;;  %v9390_v12 = vshrl.u32 %v9077_v14, 16  ;;  %v9388_v20 = vrot.slane %v9386_v24, 5  ;;  %v7444_v40 = vld [vmem:[#allocation3 + $0xa8] sm:$0xf] }
 0x34b   : > { %v12691_v22 = vcombine.low %v7751_v28, %v7761_v34  ;;  %v9370_v2 = vrot.slane %v9369_v26, 4  ;;  %v9396_v16 = vshll.u32 %v9078_v58, 16  ;;  %v9365_v4 = vsel %vm15241_vm9, %v9360_v36, %v9364_v9  ;;  %v18952_v58 = vpop.f32.mrf.mxu0  ;;  %v15052_v36 = vld [vmem:[#allocation3 + $0xa4] sm:$0x1] }
 0x34c   : > { %v9383_v33 = vor.u32 %v9382_v0, %v9379_v5  ;;  %v9392_v21 = vrot.slane %v9390_v12, 4  ;;  %v7763_v18 = vshrl.u32 %v7441_v52, 16  ;;  %v7766_v14 = vshll.u32 %v7441_v52, 16  ;;  %21112 = vst [vmem:[#allocation51_spill] sm:$0xff] %v18952_v58 }
 0x34d   : > { %14361 = vmatprep.mubr.bf16.mxu1 %v12691_v22  ;;  %v9375_v3 = vsel %vm15241_vm9, %v9370_v2, %v9374_v23  ;;  %v9398_v53 = vrot.slane %v9396_v16, 5  ;;  %v7772_v55 = vshll.u32 %v15051_v15, 16  ;;  %v18954_v24 = vpop.f32.mrf.mxu1  ;;  %v7776_v34 = vshrl.u32 %v15051_v15, 16  ;;  %v18962_v35 = vpop.f32.mrf.mxu0 }
 0x34e   : > { %v12826_v31 = vcombine.low %v9365_v4, %v9375_v3  ;;  %v9384_v28 = vrot.slane %v9383_v33, 4  ;;  %v9393_v10 = vor.u32 %v9392_v21, %v9388_v20  ;;  %v7765_v26 = vrot.slane %v7763_v18, 4  ;;  %v15053_v21 = vld [vmem:[#allocation3 + $0xac] sm:$0xf]  ;;  %v9079_v3 = vld [vmem:[#allocation3 + $0xa8] sm:$0xf] }
 0x34f   : > { %v7768_v9 = vrot.slane %v7766_v14, 5  ;;  %v7774_v5 = vrot.slane %v7772_v55, 5  ;;  %v7782_v0 = vshll.u32 %v15052_v36, 16  ;;  %v7787_v12 = vshrl.u32 %v7444_v40, 16  ;;  %v18958_v2 = vpop.f32.mrf.mxu1  ;;  %v9080_v36 = vld [vmem:[#allocation3 + $0xac] sm:$0xf] }
 0x350   : > { %14502 = vmatmul.mubr.bf16.gmra.mxu0 %v12826_v31  ;;  %v9389_v23 = vsel %vm15241_vm9, %v9384_v28, %v9388_v20  ;;  %v9394_v52 = vrot.slane %v9393_v10, 4  ;;  %v7790_v22 = vshll.u32 %v7444_v40, 16  ;;  %v7778_v4 = vrot.slane %v7776_v34, 4  ;;  %21113 = vst [vmem:[#allocation56_spill] sm:$0xff] %v18962_v35 }
 0x351   : > { %v7769_v16 = vor.u32 %v7768_v9, %v7765_v26  ;;  %v7784_v33 = vrot.slane %v7782_v0, 5  ;;  %v7796_v18 = vshll.u32 %v15053_v21, 16  ;;  %v7789_v15 = vrot.slane %v7787_v12, 4  ;;  %v18964_v20 = vpop.f32.mrf.mxu1  ;;  %v15054_v0 = vld [vmem:[#allocation3 + $0xb0] sm:$0x1] }
 0x352   : > { %v9399_v14 = vsel %vm15241_vm9, %v9394_v52, %v9398_v53  ;;  %v7792_v55 = vrot.slane %v7790_v22, 5  ;;  %v7800_v31 = vshrl.u32 %v15053_v21, 16  ;;  %v7779_v10 = vor.u32 %v7778_v4, %v7774_v5  ;;  %v9081_v12 = vld [vmem:[#allocation3 + $0xb0] sm:$0x1] }
 0x353   : > { %v12827_v40 = vcombine.low %v9389_v23, %v9399_v14  ;;  %v7770_v28 = vrot.slane %v7769_v16, 4  ;;  %v7798_v26 = vrot.slane %v7796_v18, 5  ;;  %v7806_v6 = vshll.u32 %v15054_v0, 16  ;;  %v18966_v45 = vpop.f32.mrf.mxu1  ;;  %v9082_v18 = vld [vmem:[#allocation3 + $0xb4] sm:$0xf]  ;;  %v18970_v14 = vpop.f32.mrf.mxu0 }
 0x354   : > { %v7793_v9 = vor.u32 %v7792_v55, %v7789_v15  ;;  %v7802_v34 = vrot.slane %v7800_v31, 4  ;;  %v9401_v46 = vshrl.u32 %v9079_v3, 16  ;;  %21114 = vst [vmem:[#allocation57_spill] sm:$0xff] %v18966_v45  ;;  %v7780_v52 = vrot.slane %v7779_v10, 4  ;;  %21115 = vst [vmem:[#allocation70_spill] sm:$0xff] %v18970_v14 }
 0x355   : > { %14505 = vmatprep.mubr.bf16.mxu0 %v12827_v40  ;;  %v7775_v53 = vsel %vm15241_vm9, %v7770_v28, %v7774_v5  ;;  %v9404_v22 = vshll.u32 %v9079_v3, 16  ;;  %v9410_v21 = vshll.u32 %v9080_v36, 16  ;;  %v7808_v16 = vrot.slane %v7806_v6, 5  ;;  %v9083_v0 = vld [vmem:[#allocation3 + $0xb8] sm:$0xf]  ;;  %v18974_v45 = vpop.f32.mrf.mxu1  ;;  %v18980_v42 = vpop.f32.mrf.mxu0 }
 0x356   : > { %v7794_v35 = vrot.slane %v7793_v9, 4  ;;  %v7803_v23 = vor.u32 %v7802_v34, %v7798_v26  ;;  %v9403_v4 = vrot.slane %v9401_v46, 4  ;;  %v7785_v15 = vsel %vm15241_vm9, %v7780_v52, %v7784_v33  ;;  %v9084_v9 = vld [vmem:[#allocation3 + $0xbc] sm:$0x1]  ;;  %21116 = vst [vmem:[#allocation52_spill] sm:$0xff] %v18980_v42 }
 0x357   : > { %v9406_v55 = vrot.slane %v9404_v22, 5  ;;  %v9412_v31 = vrot.slane %v9410_v21, 5  ;;  %v9414_v40 = vshrl.u32 %v9080_v36, 16  ;;  %v12692_v5 = vcombine.low %v7775_v53, %v7785_v15  ;;  %v7447_v21 = vld [vmem:[#allocation3 + $0xb4] sm:$0xf] }
 0x358   : > { %v7799_v3 = vsel %vm15241_vm9, %v7794_v35, %v7798_v26  ;;  %v7804_v28 = vrot.slane %v7803_v23, 4  ;;  %v9420_v10 = vshll.u32 %v9081_v12, 16  ;;  %v9425_v34 = vshrl.u32 %v9082_v18, 16  ;;  %v18982_v12 = vpop.f32.mrf.mxu1 }
 0x359   : > { %v9407_v6 = vor.u32 %v9406_v55, %v9403_v4  ;;  %v9416_v46 = vrot.slane %v9414_v40, 4  ;;  %v9428_v54 = vshll.u32 %v9082_v18, 16  ;;  %14362 = vmatmul.mubr.bf16.gmra.mxu1 %v12692_v5  ;;  %v9434_v36 = vshll.u32 %v9083_v0, 16 }
 0x35a   : > { %v7809_v33 = vsel %vm15241_vm9, %v7804_v28, %v7808_v16  ;;  %v9422_v52 = vrot.slane %v9420_v10, 5  ;;  %v9438_v22 = vshrl.u32 %v9083_v0, 16  ;;  %v9427_v26 = vrot.slane %v9425_v34, 4  ;;  %v18986_v34 = vpop.f32.mrf.mxu0 }
 0x35b   : > { %v12693_v53 = vcombine.low %v7799_v3, %v7809_v33  ;;  %v9408_v15 = vrot.slane %v9407_v6, 4  ;;  %v9417_v35 = vor.u32 %v9416_v46, %v9412_v31  ;;  %v9430_v23 = vrot.slane %v9428_v54, 5  ;;  %v15055_v3 = vld [vmem:[#allocation3 + $0xb8] sm:$0xf]  ;;  %v9085_v46 = vld [vmem:[#allocation3 + $0xc0] sm:$0xf] }
 0x35c   : > { %v9436_v4 = vrot.slane %v9434_v36, 5  ;;  %v9440_v55 = vrot.slane %v9438_v22, 4  ;;  %v9444_v18 = vshll.u32 %v9084_v9, 16  ;;  %v7811_v5 = vshrl.u32 %v7447_v21, 16  ;;  %21117 = vst [vmem:[#allocation30_spill] sm:$0xff] %v18986_v34 }
 0x35d   : > { %14365 = vmatprep.mubr.bf16.mxu1 %v12693_v53  ;;  %v9413_v16 = vsel %vm15241_vm9, %v9408_v15, %v9412_v31  ;;  %v9418_v40 = vrot.slane %v9417_v35, 4  ;;  %v7814_v0 = vshll.u32 %v7447_v21, 16  ;;  %v9431_v28 = vor.u32 %v9430_v23, %v9427_v26  ;;  %v9086_v22 = vld [vmem:[#allocation3 + $0xc4] sm:$0xf]  ;;  %v18990_v53 = vpop.f32.mrf.mxu1 }
 0x35e   : > { %v9441_v10 = vor.u32 %v9440_v55, %v9436_v4  ;;  %v9446_v47 = vrot.slane %v9444_v18, 5  ;;  %v7820_v6 = vshll.u32 %v15055_v3, 16  ;;  %v7813_v33 = vrot.slane %v7811_v5, 4  ;;  %v15056_v55 = vld [vmem:[#allocation3 + $0xbc] sm:$0x1] }
 0x35f   : > { %v9423_v54 = vsel %vm15241_vm9, %v9418_v40, %v9422_v52  ;;  %v7816_v9 = vrot.slane %v7814_v0, 5  ;;  %v7824_v36 = vshrl.u32 %v15055_v3, 16  ;;  %v9432_v15 = vrot.slane %v9431_v28, 4  ;;  %v18996_v0 = vpop.f32.mrf.mxu0  ;;  %v9087_v3 = vld [vmem:[#allocation3 + $0xc8] sm:$0x1] }
 0x360   : > { %v12828_v31 = vcombine.low %v9413_v16, %v9423_v54  ;;  %v9442_v21 = vrot.slane %v9441_v10, 4  ;;  %v7822_v35 = vrot.slane %v7820_v6, 5  ;;  %v7830_v18 = vshll.u32 %v15056_v55, 16  ;;  %21118 = vst [vmem:[#allocation31_spill] sm:$0xff] %v18996_v0  ;;  %v18998_v6 = vpop.f32.mrf.mxu1  ;;  %v14986_v0 = vld [vmem:[%s20621_s2 + $0x200] sm:$0xff]  }
 0x361   : > { %v7817_v26 = vor.u32 %v7816_v9, %v7813_v33  ;;  %v7826_v23 = vrot.slane %v7824_v36, 4  ;;  %v9449_v42 = vshrl.u32 %v9085_v46, 16  ;;  %v9437_v34 = vsel %vm15241_vm9, %v9432_v15, %v9436_v4  ;;  %21119 = vst [vmem:[#allocation33_spill] sm:$0xff] %v18998_v6 }
 0x362   : > { %14506 = vmatmul.mubr.bf16.gmra.mxu0 %v12828_v31  ;;  %v9447_v52 = vsel %vm15241_vm9, %v9442_v21, %v9446_v47  ;;  %v9452_v40 = vshll.u32 %v9085_v46, 16  ;;  %v9458_v5 = vshll.u32 %v9086_v22, 16  ;;  %v9462_v36 = vshrl.u32 %v9086_v22, 16  ;;  %v489_v31 = vld [vmem:[#allocation3 + $0xcc] sm:$0x1] }
 0x363   : > { %v12829_v16 = vcombine.low %v9437_v34, %v9447_v52  ;;  %v7818_v28 = vrot.slane %v7817_v26, 4  ;;  %v7827_v10 = vor.u32 %v7826_v23, %v7822_v35  ;;  %v9451_v54 = vrot.slane %v9449_v42, 4 }
 0x364   : > { %v9454_v33 = vrot.slane %v9452_v40, 5  ;;  %v9460_v9 = vrot.slane %v9458_v5, 5  ;;  %v7832_v15 = vrot.slane %v7830_v18, 5  ;;  %v9464_v47 = vrot.slane %v9462_v36, 4  ;;  %v14935_v5 = vld [vmem:[#allocation3 + $0xc] sm:$0xff]   ;;  %v14938_v36 = vld [vmem:[#allocation3 + $0x18] sm:$0xff]  }
 0x365   : > { %14509 = vmatprep.mubr.bf16.mxu0 %v12829_v16  ;;  %v7828_v4 = vrot.slane %v7827_v10, 4  ;;  %v9468_v46 = vshll.u32 %v9087_v3, 16  ;;  %v7823_v34 = vsel %vm15241_vm9, %v7818_v28, %v7822_v35  ;;  %v490_v42 = vsel %vm15175_vm3, 0, %v489_v31 }
 0x366   : > { %v9455_v55 = vor.u32 %v9454_v33, %v9451_v54  ;;  %v19000_v21 = vpop.f32.mrf.mxu0  ;;  %v19008_v23 = vpop.f32.mrf.mxu1  ;;  %v9465_v40 = vor.u32 %v9464_v47, %v9460_v9  ;;  %491 = vst [vmem:[#allocation3 + $0xcc] sm:$0x1] %v490_v42  ;;  %v14941_v47 = vld [vmem:[#allocation3 + $0x24] sm:$0xff]   ;;  %v14944_v42 = vld [vmem:[#allocation3 + $0x30] sm:$0xff]  }
 0x367   : > { %21120 = vst [vmem:[#allocation39_spill] sm:$0xff] %v19000_v21  ;;  %v7833_v26 = vsel %vm15241_vm9, %v7828_v4, %v7832_v15  ;;  %v9470_v35 = vrot.slane %v9468_v46, 5  ;;  %v14940_v4 = vld [vmem:[#allocation3 + $0x18] sm:$0xff]   ;;  %v14950_v46 = vld [vmem:[%s20621_s2 + $0x168] sm:$0xff]   ;;  %v15059_v21 = vld [vmem:[#allocation3 + $0x28] sm:$0xf] }
 0x368   : > { %v12694_v22 = vcombine.low %v7823_v34, %v7833_v26  ;;  %v9456_v52 = vrot.slane %v9455_v55, 4  ;;  %v19010_v18 = vpop.f32.mrf.mxu0  ;;  %v19012_v16 = vpop.f32.mrf.mxu1  ;;  %v9466_v10 = vrot.slane %v9465_v40, 4  ;;  %v14945_v15 = vld [vmem:[%s20621_s2 + $0x170] sm:$0xff]   ;;  %v14943_v26 = vld [vmem:[#allocation3 + $0x24] sm:$0xff]   ;;  %v9874_v14 = vrot.slane %v15059_v21, 5 }
 0x369   : > { %21121 = vst [vmem:[#allocation72_spill] sm:$0xff] %v19010_v18  ;;  %v14955_v40 = vld [vmem:[%s20621_s2 + $0x160] sm:$0xff]  }
 0x36a   : > { %14366 = vmatmul.mubr.bf16.gmra.mxu1 %v12694_v22  ;;  %v19014_v28 = vpop.f32.mrf.mxu0  ;;  %v9461_v63 = vsel %vm15241_vm9, %v9456_v52, %v9460_v9  ;;  %v9471_v3 = vsel %vm15241_vm9, %v9466_v10, %v9470_v35  ;;  %v19020_v54 = vpop.f32.mrf.mxu1  ;;  %v14969_v22 = vld [vmem:[%s20621_s2 + $0x230] sm:$0xff]   ;;  %v14971_v35 = vld [vmem:[%s20621_s2 + $0x228] sm:$0xff]  }
 0x36b   : > { %21122 = vst [vmem:[#allocation43_spill] sm:$0xff] %v19014_v28  ;;  %14433 = vmatprep.mubr.bf16.mxu1 %v14935_v5  ;;  %v12830_v33 = vcombine.low %v9461_v63, %v9471_v3  ;;  %v14947_v10 = vld [vmem:[#allocation3 + $0x3c] sm:$0xff]  }
 0x36c   : > { %v19022_v31 = vpop.f32.mrf.mxu0  ;;  %v19027_v55 = vpop.f32.mrf.mxu1  ;;  %v14960_v3 = vld [vmem:[%s20621_s2 + $0x158] sm:$0xff]  }
 0x36d   : > { %21123 = vst [vmem:[#allocation48_spill] sm:$0xff] %v19022_v31  ;;  %14510 = vmatmul.mubr.bf16.gmra.mxu0 %v12830_v33  ;;  %21124 = vst [vmem:[#allocation11_spill] sm:$0xff] %v19027_v55  ;;  %v14958_v31 = vld [vmem:[#allocation3 + $0x6c] sm:$0xff]   ;;  %v14962_v55 = vld [vmem:[#allocation3 + $0x84] sm:$0xff]  }
 0x36e   : > { %14577 = vmatprep.mubr.bf16.mxu0 %v14938_v36  ;;  %v19035_v34 = vpop.f32.mrf.mxu1  ;;  %v14948_v36 = vld [vmem:[#allocation3 + $0x3c] sm:$0xff]  }
 0x370   : > { %v19029_v9 = vpop.f32.mrf.mxu0  ;;  %v19045_v5 = vpop.f32.mrf.mxu1 }
 0x371   : > { %21125 = vst [vmem:[#allocation13_spill] sm:$0xff] %v19029_v9 }
 0x372   : > { %14434 = vmatmul.mubr.bf16.vlgmr.msra.gmra.mxu1 %v14940_v4  ;;  %v19040_v52 = vpop.f32.mrf.mxu0  ;;  %v19056_v33 = vpop.f32.mrf.mxu1  ;;  %v14976_v4 = vld [vmem:[%s20621_s2 + $0x220] sm:$0xff]  }
 0x373   : > { %14514 = vmatpush3.bf16.msra.mxu1 %v18837_v61  ;;  %14437 = vmatprep.mubr.bf16.mxu1 %v14941_v47  ;;  %21126 = vst [vmem:[#allocation15_spill] sm:$0xff] %v19040_v52  ;;  %v14946_v61 = vld [vmem:[#allocation3 + $0x30] sm:$0xff]   ;;  %v14951_v47 = vld [vmem:[#allocation3 + $0x48] sm:$0xff]   ;;  %v19119_v52 = vld [vmem:[#allocation3 + $0x20] sm:$0x1] }
 0x374   : > { %14515 = vmatprep.subr.bf16.mxu1 %v14945_v15  ;;  %v19051_v63 = vpop.f32.mrf.mxu0  ;;  %21143 = vst [vmem:[#allocation21_spill] sm:$0xff] %v19119_v52  ;;  %v11502_v38 = vrot.slane %v19119_v52, 5 }
 0x375   : > { %14578 = vmatmul.mubr.bf16.vlgmr.msra.gmra.mxu0 %v14943_v26  ;;  %21127 = vst [vmem:[#allocation37_spill] sm:$0xff] %v19051_v63  ;;  %v19066_v26 = vpop.f32.mrf.mxu1  ;;  %v14963_v63 = vld [vmem:[#allocation3 + $0x84] sm:$0xff]  }
 0x376   : > { %14581 = vmatprep.mubr.bf16.mxu0 %v14944_v42  ;;  %14658 = vmatpush3.bf16.msra.mxu0 %v18863_v1  ;;  %v14949_v1 = vld [vmem:[#allocation3 + $0x48] sm:$0xff]   ;;  %21129 = vst [vmem:[#allocation65_spill] sm:$0xff] %v19066_v26  ;;  %v14952_v42 = vld [vmem:[#allocation3 + $0x54] sm:$0xff]  }
 0x377   : > { %14516 = vmatpush3.bf16.msra.mxu1 %v14945_v15  ;;  %14659 = vmatprep.subr.bf16.mxu0 %v14969_v22  ;;  %v19061_v15 = vpop.f32.mrf.mxu0 }
 0x378   : > { %14517 = vmatprep.subr.bf16.mxu1 %v14950_v46  ;;  %21128 = vst [vmem:[#allocation62_spill] sm:$0xff] %v19061_v15 }
 0x37a   : > { %14438 = vmatmul.mubr.bf16.gmra.mxu1 %v14946_v61  ;;  %14660 = vmatpush3.bf16.msra.mxu0 %v14969_v22  ;;  %v14978_v22 = vld [vmem:[%s20621_s2 + $0x218] sm:$0xff]  }
 0x37b   : > { %14441 = vmatprep.mubr.bf16.mxu1 %v14947_v10  ;;  %14518 = vmatpush3.bf16.msra.mxu1 %v14950_v46  ;;  %v14966_v46 = vld [vmem:[%s20621_s2 + $0x150] sm:$0xff]  }
 0x37c   : > { %14519 = vmatprep.subr.bf16.mxu1 %v14955_v40  ;;  %14661 = vmatprep.subr.bf16.mxu0 %v14971_v35 }
 0x37d   : > { %14582 = vmatmul.mubr.bf16.gmra.mxu0 %v14948_v36  ;;  %v14953_v36 = vld [vmem:[#allocation3 + $0x54] sm:$0xff]  }
 0x37e   : > { %14585 = vmatprep.mubr.bf16.mxu0 %v14949_v1  ;;  %14662 = vmatpush3.bf16.msra.mxu0 %v14971_v35  ;;  %v14954_v1 = vld [vmem:[#allocation3 + $0x60] sm:$0xff]  }
 0x37f   : > { %14520 = vmatpush3.bf16.msra.mxu1 %v14955_v40  ;;  %14663 = vmatprep.subr.bf16.mxu0 %v14976_v4  ;;  %v14973_v40 = vld [vmem:[%s20621_s2 + $0x148] sm:$0xff]  }
 0x380   : > { %14521 = vmatprep.subr.bf16.mxu1 %v14960_v3 }
 0x381   : > { %v19076_v10 = vpop.f32.mrf.mxu1 }
 0x382   : > { %14442 = vmatmul.mubr.bf16.gmra.mxu1 %v14951_v47  ;;  %v19071_v61 = vpop.f32.mrf.mxu0  ;;  %21131 = vst [vmem:[#allocation50_spill] sm:$0xff] %v19076_v10  ;;  %14664 = vmatpush3.bf16.msra.mxu0 %v14976_v4  ;;  %v14982_v47 = vld [vmem:[%s20621_s2 + $0x210] sm:$0xff]   ;;  %v14957_v4 = vld [vmem:[#allocation3 + $0x6c] sm:$0xff]  }
 0x383   : > { %21130 = vst [vmem:[#allocation45_spill] sm:$0xff] %v19071_v61  ;;  %14445 = vmatprep.mubr.bf16.mxu1 %v14952_v42  ;;  %14522 = vmatpush3.bf16.msra.mxu1 %v14960_v3  ;;  %v14956_v3 = vld [vmem:[#allocation3 + $0x60] sm:$0xff]   ;;  %v14980_v42 = vld [vmem:[%s20621_s2 + $0x140] sm:$0xff]   ;;  %v19086_v6 = vpop.f32.mrf.mxu1 }
 0x384   : > { %14523 = vmatprep.subr.bf16.mxu1 %v14966_v46  ;;  %v19078_v35 = vpop.f32.mrf.mxu0  ;;  %14665 = vmatprep.subr.bf16.mxu0 %v14978_v22  ;;  %21133 = vst [vmem:[#allocation4_spill] sm:$0xff] %v19086_v6 }
 0x385   : > { %21132 = vst [vmem:[#allocation46_spill] sm:$0xff] %v19078_v35  ;;  %14586 = vmatmul.mubr.bf16.gmra.mxu0 %v14953_v36  ;;  %v14984_v36 = vld [vmem:[%s20621_s2 + $0x208] sm:$0xff]  }
 0x386   : > { %14589 = vmatprep.mubr.bf16.mxu0 %v14954_v1  ;;  %14666 = vmatpush3.bf16.msra.mxu0 %v14978_v22  ;;  %v19088_v15 = vpop.f32.mrf.mxu0  ;;  %v19098_v1 = vpop.f32.mrf.mxu1 }
 0x387   : > { %14524 = vmatpush3.bf16.msra.mxu1 %v14966_v46  ;;  %21134 = vst [vmem:[#allocation58_spill] sm:$0xff] %v19088_v15  ;;  %14667 = vmatprep.subr.bf16.mxu0 %v14982_v47  ;;  %v19096_v46 = vld [vmem:[%s20621_s2 + $0x1f8] sm:$0xff]   ;;  %21135 = vst [vmem:[#allocation16_spill] sm:$0xff] %v19098_v1 }
 0x388   : > { %14525 = vmatprep.subr.bf16.mxu1 %v14973_v40  ;;  %v19100_v22 = vpop.f32.mrf.mxu0  ;;  %v19108_v26 = vpop.f32.mrf.mxu1 }
 0x389   : > { %21136 = vst [vmem:[#allocation41_spill] sm:$0xff] %v19100_v22  ;;  %21138 = vst [vmem:[#allocation22_spill] sm:$0xff] %v19108_v26  ;;  %v15057_v22 = vld [vmem:[#allocation3 + $0x10] sm:$0xf] }
 0x38a   : > { %14446 = vmatmul.mubr.bf16.gmra.mxu1 %v14956_v3  ;;  %14668 = vmatpush3.bf16.msra.mxu0 %v14982_v47  ;;  %v14959_v3 = vld [vmem:[#allocation3 + $0x78] sm:$0xff]   ;;  %v9860_v15 = vrot.slane %v15057_v22, 5 }
 0x38b   : > { %14449 = vmatprep.mubr.bf16.mxu1 %v14957_v4  ;;  %14526 = vmatpush3.bf16.msra.mxu1 %v14973_v40  ;;  %v14961_v40 = vld [vmem:[#allocation3 + $0x78] sm:$0xff]  }
 0x38c   : > { %14527 = vmatprep.subr.bf16.mxu1 %v14980_v42  ;;  %14669 = vmatprep.subr.bf16.mxu0 %v14984_v36  ;;  %v19105_v4 = vld [vmem:[#allocation3 + $0x1c] sm:$0xf]  ;;  %v9862_v22 = vrot.slane %v9860_v15, 4 }
 0x38d   : > { %14590 = vmatmul.mubr.bf16.gmra.mxu0 %v14958_v31  ;;  %21137 = vst [vmem:[#allocation29_spill] sm:$0xff] %v19105_v4  ;;  %v11499_v31 = vrot.slane %v19105_v4, 5 }
 0x38e   : > { %14593 = vmatprep.mubr.bf16.mxu0 %v14959_v3  ;;  %14670 = vmatpush3.bf16.msra.mxu0 %v14984_v36  ;;  %v15058_v3 = vld [vmem:[#allocation3 + $0x1c] sm:$0xf]  ;;  %v14965_v36 = vld [vmem:[#allocation3 + $0x90] sm:$0xff]  }
 0x38f   : > { %14528 = vmatpush3.bf16.msra.mxu1 %v14980_v42  ;;  %14671 = vmatprep.subr.bf16.mxu0 %v14986_v0  ;;  %v9867_v35 = vrot.slane %v15058_v3, 5  ;;  %v11501_v9 = vrot.slane %v11499_v31, 4  ;;  %v9795_v3 = vld [vmem:[#allocation3 + $0x18] sm:$0xe] }
 0x390   : > { %14609 = vmatprep.subr.bf16.mxu1 %v19096_v46  ;;  %v12840_v1 = vrot.slane %v9795_v3, 9 }
 0x391   : > { %v19110_v47 = vpop.f32.mrf.mxu0  ;;  %v9869_v18 = vrot.slane %v9867_v35, 4 }
 0x392   : > { %21139 = vst [vmem:[#allocation25_spill] sm:$0xff] %v19110_v47  ;;  %14450 = vmatmul.mubr.bf16.gmra.mxu1 %v14961_v40  ;;  %v19115_v61 = vpop.f32.mrf.mxu1  ;;  %14672 = vmatpush3.bf16.msra.mxu0 %v14986_v0  ;;  %v14967_v40 = vld [vmem:[#allocation3 + $0x90] sm:$0xff]   ;;  %v9794_v47 = vld [vmem:[#allocation3 + $0xc] sm:$0xe] }
 0x393   : > { %14453 = vmatprep.mubr.bf16.mxu1 %v14962_v55  ;;  %v19113_v42 = vpop.f32.mrf.mxu0  ;;  %21141 = vst [vmem:[#allocation14_spill] sm:$0xff] %v19115_v61  ;;  %v14968_v55 = vld [vmem:[#allocation3 + $0x9c] sm:$0xff]  }
 0x394   : > { %21140 = vst [vmem:[#allocation28_spill] sm:$0xff] %v19113_v42  ;;  %v11433_v42 = vld [vmem:[#allocation3 + $0x18] sm:$0xe]  ;;  %v19123_v0 = vpop.f32.mrf.mxu1 }
 0x395   : > { %v19117_v26 = vpop.f32.mrf.mxu0  ;;  %14594 = vmatmul.mubr.bf16.gmra.mxu0 %v14963_v63  ;;  %21145 = vst [vmem:[#allocation32_spill] sm:$0xff] %v19123_v0  ;;  %v19126_v63 = vld [vmem:[#allocation3 + $0x28] sm:$0xf]  ;;  %v12975_v0 = vrot.slane %v11433_v42, 9  ;;  %v14970_v42 = vld [vmem:[#allocation3 + $0x9c] sm:$0xff]  }
 0x396   : > { %21142 = vst [vmem:[#allocation24_spill] sm:$0xff] %v19117_v26  ;;  %14597 = vmatprep.mubr.bf16.mxu0 %v14965_v36  ;;  %v15060_v26 = vld [vmem:[#allocation3 + $0x14] sm:$0x1]  ;;  %21146 = vst [vmem:[#allocation17_spill] sm:$0xff] %v19126_v63  ;;  %v15061_v36 = vld [vmem:[#allocation3 + $0x20] sm:$0x1] }
 0x397   : > { %v19121_v28 = vpop.f32.mrf.mxu0  ;;  %v9863_v58 = vrot.slane %v15060_v26, 5  ;;  %v9870_v51 = vrot.slane %v15061_v36, 5  ;;  %v19138_v26 = vsel %vm15689_vm14, %v11501_v9, %v11502_v38  ;;  %v19156_v9 = vsel %vm15689_vm14, %v12975_v0, %v11499_v31  ;;  %v19171_v0 = vld [vmem:[#allocation3 + $0x2c] sm:$0x1] }
 0x398   : > { %21144 = vst [vmem:[#allocation26_spill] sm:$0xff] %v19121_v28  ;;  %v12839_v28 = vrot.slane %v9794_v47, 9  ;;  %v9876_v47 = vrot.slane %v9874_v14, 4  ;;  %21152 = vst [vmem:[#allocation20_spill] sm:$0xff] %v19171_v0 }
 0x399   : > { %v19130_v61 = vpop.f32.mrf.mxu0  ;;  %v19134_v21 = vsel %vm15689_vm14, %v9862_v22, %v9863_v58  ;;  %v19148_v58 = vpop.f32.mrf.mxu1  ;;  %v19162_v22 = vld [vmem:[#allocation3 + $0x34] sm:$0xf] }
 0x39a   : > { %21148 = vst [vmem:[#allocation27_spill] sm:$0xff] %v19130_v61  ;;  %14454 = vmatmul.mubr.bf16.gmra.mxu1 %v14967_v40  ;;  %v19144_v40 = vsel %vm15689_vm14, %v9869_v18, %v9870_v51  ;;  %21150 = vst [vmem:[#allocation35_spill] sm:$0xff] %v19148_v58  ;;  %v19152_v38 = vsel %vm15689_vm14, %v12839_v28, %v9860_v15  ;;  %v19160_v51 = vadd.f32 %v18748_v50, %v18922_v49  ;;  %v11434_v18 = vld [vmem:[#allocation3 + $0x24] sm:$0xe]  ;;  %v15063_v61 = vld [vmem:[#allocation3 + $0x2c] sm:$0x1] }
 0x39b   : > { %14457 = vmatprep.mubr.bf16.mxu1 %v14968_v55  ;;  %v19140_v6 = vpop.f32.mrf.mxu0  ;;  %v11506_v55 = vrot.slane %v19126_v63, 5  ;;  %v19169_v28 = vsel %vm15689_vm14, %v12840_v1, %v9867_v35  ;;  %v12841_v15 = vrot.slane %v9796_v13, 9  ;;  %v9877_v31 = vrot.slane %v15063_v61, 5  ;;  %v19173_v58 = vld [vmem:[#allocation3 + $0x40] sm:$0xf]  ;;  %v19202_v10 = vpop.f32.mrf.mxu1 }
 0x39c   : > { %21149 = vst [vmem:[#allocation38_spill] sm:$0xff] %v19140_v6  ;;  %v14972_v6 = vld [vmem:[#allocation3 + $0xa8] sm:$0xff]   ;;  %v19184_v13 = vadd.f32 %v18758_v30, %v18930_v56  ;;  %v19186_v61 = vld [vmem:[#allocation3 + $0x38] sm:$0x1]  ;;  %v11435_v1 = vld [vmem:[#allocation3 + $0x30] sm:$0xe] }
 0x39d   : > { %v19165_v36 = vpop.f32.mrf.mxu0  ;;  %14598 = vmatmul.mubr.bf16.gmra.mxu0 %v14970_v42  ;;  %21153 = vst [vmem:[#allocation42_spill] sm:$0xff] %v19186_v61  ;;  %v14974_v42 = vld [vmem:[#allocation3 + $0xa8] sm:$0xff]   ;;  %v19194_v49 = vsel %vm15689_vm14, %v12841_v15, %v9874_v14  ;;  %v19198_v35 = vsel %vm15689_vm14, %v9876_v47, %v9877_v31  ;;  %v11508_v3 = vrot.slane %v11506_v55, 4  ;;  %v21156_v30 = vrot.slane %v19128_v27, 5  ;;  %21157 = vst [vmem:[#allocation66_spill] sm:$0xff] %v19202_v10 }
 0x39e   : > { %21151 = vst [vmem:[#allocation40_spill] sm:$0xff] %v19165_v36  ;;  %v19188_v36 = vld [vmem:[#allocation3 + $0x40] sm:$0xf]  ;;  %14601 = vmatprep.mubr.bf16.mxu0 %v14972_v6  ;;  %v19206_v6 = vadd.f32 %v18768_v57, %v18938_v48  ;;  %v11509_v14 = vrot.slane %v19171_v0, 5  ;;  %v21158_v15 = vrot.slane %v19162_v22, 5  ;;  %v11516_v52 = vrot.slane %v19186_v61, 5 }
 0x39f   : > { %21154 = vst [vmem:[#allocation7_spill] sm:$0xff] %v19188_v36  ;;  %v19190_v50 = vpop.f32.mrf.mxu0  ;;  %v11515_v56 = vrot.slane %v21156_v30, 4  ;;  %v19211_v47 = vld [vmem:[#allocation3 + $0x4c] sm:$0xf]  ;;  %v12977_v30 = vrot.slane %v11435_v1, 9  ;;  %v21161_v63 = vrot.slane %v19173_v58, 5 }
 0x3a0   : > { %21155 = vst [vmem:[#allocation8_spill] sm:$0xff] %v19190_v50  ;;  %v12976_v50 = vrot.slane %v11434_v18, 9  ;;  %v9883_v25 = vrot.slane %v21158_v15, 4  ;;  %21159 = vst [vmem:[#allocation44_spill] sm:$0xff] %v19211_v47  ;;  %v9798_v10 = vld [vmem:[#allocation3 + $0x3c] sm:$0xe] }
 0x3a1   : > { %v19213_v31 = vpop.f32.mrf.mxu0  ;;  %v9890_v4 = vrot.slane %v21161_v63, 4  ;;  %v11520_v57 = vrot.slane %v19188_v36, 5  ;;  %v15065_v1 = vld [vmem:[#allocation3 + $0x38] sm:$0x1]  ;;  %v19233_v63 = vsel %vm15689_vm14, %v11508_v3, %v11509_v14  ;;  %v15066_v48 = vld [vmem:[#allocation3 + $0x44] sm:$0x1]  ;;  %v19240_v36 = vpop.f32.mrf.mxu1 }
 0x3a2   : > { %21160 = vst [vmem:[#allocation59_spill] sm:$0xff] %v19213_v31  ;;  %14458 = vmatmul.mubr.bf16.gmra.mxu1 %v14974_v42  ;;  %v19223_v18 = vsel %vm15689_vm14, %v12976_v50, %v11506_v55  ;;  %v19227_v42 = vadd.f32 %v18785_v43, %v18954_v24  ;;  %v9884_v15 = vrot.slane %v15065_v1, 5  ;;  %v14977_v61 = vld [vmem:[#allocation3 + $0xb4] sm:$0xff]   ;;  %v9891_v55 = vrot.slane %v15066_v48, 5  ;;  %21164 = vst [vmem:[#allocation49_spill] sm:$0xff] %v19240_v36 }
 0x3a3   : > { %14461 = vmatprep.mubr.bf16.mxu1 %v14975_v41  ;;  %v19229_v31 = vpop.f32.mrf.mxu0  ;;  %v19237_v41 = vsel %vm15689_vm14, %v11515_v56, %v11516_v52  ;;  %v11527_v50 = vrot.slane %v19211_v47, 5  ;;  %v21165_v43 = vrot.slane %v19128_v27, 5  ;;  %v12842_v1 = vrot.slane %v9797_v62, 9  ;;  %v19252_v52 = vld [vmem:[#allocation3 + $0x44] sm:$0x1] }
 0x3a4   : > { %21162 = vst [vmem:[#allocation64_spill] sm:$0xff] %v19227_v42  ;;  %21163 = vst [vmem:[#allocation19_spill] sm:$0xff] %v19229_v31  ;;  %v19250_v3 = vsel %vm15689_vm14, %v9883_v25, %v9884_v15  ;;  %v12843_v14 = vrot.slane %v9798_v10, 9  ;;  %v11436_v56 = vld [vmem:[#allocation3 + $0x3c] sm:$0xe]  ;;  %v14979_v31 = vld [vmem:[#allocation3 + $0xc0] sm:$0xff]   ;;  %v19258_v36 = vsel %vm15689_vm14, %v9890_v4, %v9891_v55  ;;  %v19284_v15 = vadd.f32 %v18789_v11, %v18958_v2 }
 0x3a5   : > { %v19246_v24 = vsel %vm15689_vm14, %v12977_v30, %v21165_v43  ;;  %21166 = vst [vmem:[#allocation18_spill] sm:$0xff] %v19252_v52  ;;  %v19254_v48 = vpop.f32.mrf.mxu0  ;;  %v11522_v47 = vrot.slane %v11520_v57, 4  ;;  %v19260_v0 = vld [vmem:[#allocation3 + $0x50] sm:$0x1]  ;;  %v15067_v30 = vld [vmem:[#allocation3 + $0x4c] sm:$0xf]  ;;  %14602 = vmatmul.mubr.bf16.gmra.mxu0 %v14977_v61  ;;  %v21178_v10 = vcombine.low %v19152_v38, %v19134_v21 }
 0x3a6   : > { %21167 = vst [vmem:[#allocation63_spill] sm:$0xff] %v19254_v48  ;;  %21168 = vst [vmem:[#allocation9_spill] sm:$0xff] %v19260_v0  ;;  %v9895_v62 = vrot.slane %v15067_v30, 5  ;;  %v15068_v43 = vld [vmem:[#allocation3 + $0x58] sm:$0xf]  ;;  %v14981_v25 = vld [vmem:[#allocation3 + $0xc0] sm:$0xff]   ;;  %14605 = vmatprep.mubr.bf16.mxu0 %v14979_v31 }
 0x3a7   : > { %v9902_v27 = vrot.slane %v15068_v43, 5  ;;  %v21169_v48 = vrot.slane %v19162_v22, 5  ;;  %v21170_v55 = vrot.slane %v19173_v58, 5  ;;  %v11437_v61 = vld [vmem:[#allocation3 + $0x48] sm:$0xe]  ;;  %v19280_v42 = vpop.f32.mrf.mxu0  ;;  %21173 = vst [vmem:[#allocation73_spill] sm:$0xff] %v19284_v15  ;;  %v19288_v22 = vadd.f32 %v18800_v37, %v18964_v20 }
 0x3a8   : > { %v19278_v43 = vld [vmem:[#allocation3 + $0x58] sm:$0xf]  ;;  %21172 = vst [vmem:[#allocation10_spill] sm:$0xff] %v19280_v42  ;;  %v11523_v58 = vrot.slane %v19252_v52, 5  ;;  %v12978_v11 = vrot.slane %v11436_v56, 9  ;;  %v11530_v2 = vrot.slane %v19260_v0, 5 }
 0x3a9   : > { %v19270_v4 = vsel %vm15689_vm14, %v12842_v1, %v21169_v48  ;;  %v19276_v30 = vsel %vm15689_vm14, %v12843_v14, %v21170_v55  ;;  %21171 = vst [vmem:[#allocation61_spill] sm:$0xff] %v19278_v43  ;;  %21174 = vst [vmem:[#allocation74_spill] sm:$0xff] %v19288_v22  ;;  %v11529_v1 = vrot.slane %v11527_v50, 4  ;;  %v9799_v48 = vld [vmem:[#allocation3 + $0x48] sm:$0xe]  ;;  %v19293_v55 = vpop.f32.mrf.mxu1  ;;  %v19300_v42 = vpop.f32.mrf.mxu0  ;;  %v9897_v20 = vrot.slane %v9895_v62, 4 }
 0x3aa   : > { %v19291_v14 = vld [vmem:[#allocation3 + $0x64] sm:$0xf]  ;;  %21176 = vst [vmem:[#allocation76_spill] sm:$0xff] %v19293_v55  ;;  %21177 = vst [vmem:[#allocation77_spill] sm:$0xff] %v19300_v42  ;;  %14462 = vmatmul.mubr.bf16.gmra.mxu1 %v14981_v25  ;;  %v19304_v37 = vsel %vm15689_vm14, %v11522_v47, %v11523_v58  ;;  %v9800_v52 = vld [vmem:[#allocation3 + $0x54] sm:$0xe]  ;;  %v19312_v56 = vsel %vm15689_vm14, %v12978_v11, %v11520_v57 }
 0x3ab   : > { %21175 = vst [vmem:[#allocation75_spill] sm:$0xff] %v19291_v14  ;;  %v9904_v22 = vrot.slane %v9902_v27, 4  ;;  %v11534_v55 = vrot.slane %v19278_v43, 5  ;;  %14529 = vmatprep.mubr.bf16.mxu1 %v21178_v10  ;;  %v14983_v31 = vld [vmem:[#allocation3 + $0xcc] sm:$0xff]   ;;  %v12979_v42 = vrot.slane %v11437_v61, 9  ;;  %v12844_v25 = vrot.slane %v9799_v48, 9  ;;  %v19315_v47 = vpop.f32.mrf.mxu0  ;;  %v19325_v57 = vpop.f32.mrf.mxu1 }
 0x3ac   : > { %v11541_v0 = vrot.slane %v19291_v14, 5  ;;  %21179 = vst [vmem:[#allocation78_spill] sm:$0xff] %v19315_v47  ;;  %v19319_v58 = vsel %vm15689_vm14, %v11529_v1, %v11530_v2  ;;  %v19323_v43 = vadd.f32 %v18812_v7, %v18974_v45  ;;  %v15069_v21 = vld [vmem:[#allocation3 + $0x50] sm:$0x1]  ;;  %v15070_v10 = vld [vmem:[#allocation3 + $0x5c] sm:$0x1] }
 0x3ad   : > { %v9898_v38 = vrot.slane %v15069_v21, 5  ;;  %v9905_v15 = vrot.slane %v15070_v10, 5  ;;  %21180 = vst [vmem:[#allocation79_spill] sm:$0xff] %v19325_v57  ;;  %v19331_v48 = vsel %vm15689_vm14, %v12979_v42, %v11527_v50  ;;  %v19335_v1 = vsel %vm15689_vm14, %v12844_v25, %v9895_v62  ;;  %v19337_v7 = vld [vmem:[#allocation3 + $0x5c] sm:$0x1]  ;;  %v19339_v2 = vpop.f32.mrf.mxu0  ;;  %14606 = vmatmul.mubr.bf16.gmra.mxu0 %v14983_v31  ;;  %v19381_v14 = vpop.f32.mrf.mxu1 }
 0x3ae   : > { %v12845_v11 = vrot.slane %v9800_v52, 9  ;;  %v11438_v45 = vld [vmem:[#allocation3 + $0x54] sm:$0xe]  ;;  %21181 = vst [vmem:[#allocation80_spill] sm:$0xff] %v19339_v2  ;;  %v11536_v42 = vrot.slane %v11534_v55, 4  ;;  %v21183_v31 = vcombine.low %v19156_v9, %v19138_v26  ;;  %21184 = vst [vmem:[#allocation82_spill] sm:$0xff] %v19381_v14 }
 0x3af   : > { %v19343_v21 = vsel %vm15689_vm14, %v9897_v20, %v9898_v38  ;;  %v19347_v10 = vsel %vm15689_vm14, %v9904_v22, %v9905_v15  ;;  %v19349_v50 = vld [vmem:[#allocation3 + $0x68] sm:$0x1]  ;;  %v11439_v61 = vld [vmem:[#allocation3 + $0x60] sm:$0xe]  ;;  %v15071_v62 = vld [vmem:[#allocation3 + $0x64] sm:$0xf]  ;;  %v19362_v57 = vpop.f32.mrf.mxu0 }
 0x3b0   : > { %v9909_v25 = vrot.slane %v15071_v62, 5  ;;  %v19355_v2 = vsel %vm15689_vm14, %v12845_v11, %v9902_v27  ;;  %v11543_v20 = vrot.slane %v11541_v0, 4  ;;  %v9801_v38 = vld [vmem:[#allocation3 + $0x60] sm:$0xe]  ;;  %v19357_v47 = vld [vmem:[#allocation3 + $0x70] sm:$0xf]  ;;  %14673 = vmatprep.mubr.bf16.mxu0 %v21183_v31  ;;  %v19372_v27 = vadd.f32 %v18824_v8, %v18982_v12 }
 0x3b1   : > { %v19360_v22 = vld [vmem:[#allocation3 + $0x70] sm:$0xf]  ;;  %21182 = vst [vmem:[#allocation81_spill] sm:$0xff] %v19362_v57  ;;  %v14987_v62 = vld [vmem:[%s20621_s2 + $0x1f0] sm:$0xff]   ;;  %v19376_v11 = vadd.f32 %v18839_v44, %v18990_v53  ;;  %v12980_v52 = vrot.slane %v11438_v45, 9  ;;  %v11537_v15 = vrot.slane %v19337_v7, 5  ;;  %v21185_v44 = vcombine.low %v19169_v28, %v19144_v40  ;;  %v19400_v9 = vpop.f32.mrf.mxu0 }
 0x3b2   : > { %v19379_v57 = vld [vmem:[#allocation3 + $0x7c] sm:$0xf]  ;;  %v12981_v31 = vrot.slane %v11439_v61, 9  ;;  %v11544_v8 = vrot.slane %v19349_v50, 5  ;;  %v9802_v12 = vld [vmem:[#allocation3 + $0x6c] sm:$0xe]  ;;  %v21187_v61 = vcombine.low %v19194_v49, %v19198_v35  ;;  %v19422_v49 = vadd.f32 %v18858_v59, %v19008_v23 }
 0x3b3   : > { %14530 = vmatmul.mubr.bf16.vlgmr.msra.gmra.mxu1 %v21185_v44  ;;  %v19393_v53 = vsel %vm15689_vm14, %v12980_v52, %v11534_v55  ;;  %v19397_v45 = vsel %vm15689_vm14, %v11536_v42, %v11537_v15  ;;  %v9911_v26 = vrot.slane %v9909_v25, 4  ;;  %21186 = vst [vmem:[#allocation83_spill] sm:$0xff] %v19400_v9  ;;  %v12846_v28 = vrot.slane %v9801_v38, 9  ;;  %v14988_v15 = vld [vmem:[%s20621_s2 + $0x1e8] sm:$0xff]   ;;  %v15073_v35 = vld [vmem:[#allocation3 + $0x68] sm:$0x1]  ;;  %v19445_v44 = vpop.f32.mrf.mxu0 }
 0x3b4   : > { %14610 = vmatpush3.bf16.msra.mxu1 %v19096_v46  ;;  %14533 = vmatprep.mubr.bf16.mxu1 %v21187_v61  ;;  %v19408_v40 = vsel %vm15689_vm14, %v11543_v20, %v11544_v8  ;;  %v21188_v55 = vrot.slane %v19357_v47, 5  ;;  %v19418_v46 = vsel %vm15689_vm14, %v12981_v31, %v11541_v0  ;;  %v9912_v20 = vrot.slane %v15073_v35, 5  ;;  %v14339_v8 = vpop.f32.mrf.mxu1  ;;  %v19430_v14 = vld [vmem:[#allocation3 + $0x74] sm:$0x1]  ;;  %v11440_v31 = vld [vmem:[#allocation3 + $0x6c] sm:$0xe] }
 0x3b5   : > { %14611 = vmatprep.subr.bf16.mxu1 %v14987_v62  ;;  %v12847_v38 = vrot.slane %v9802_v12, 9  ;;  %v19428_v61 = vsel %vm15689_vm14, %v12846_v28, %v9909_v25  ;;  %v19433_v0 = vadd.f32 %v14339_v8, %v19160_v51  ;;  %v21190_v12 = vrot.slane %v19360_v22, 5  ;;  %v19443_v25 = vld [vmem:[#allocation3 + $0x80] sm:$0x1]  ;;  %v15075_v28 = vld [vmem:[#allocation3 + $0x7c] sm:$0xf] }
 0x3b6   : > { %v9918_v42 = vrot.slane %v21188_v55, 4  ;;  %v15074_v55 = vld [vmem:[#allocation3 + $0x74] sm:$0x1]  ;;  %v19439_v23 = vsel %vm15689_vm14, %v9911_v26, %v9912_v20  ;;  %21191 = vst [vmem:[#allocation85_spill] sm:$0xff] %v19443_v25  ;;  %21192 = vst [vmem:[#allocation86_spill] sm:$0xff] %v19445_v44  ;;  %v7997_v9 = vpop.f32.mrf.mxu1  ;;  %v21193_v51 = vcombine.low %v19223_v18, %v19233_v63  ;;  %v21194_v20 = vrot.slane %v19379_v57, 5 }
 0x3b7   : > { %v9919_v52 = vrot.slane %v15074_v55, 5  ;;  %21189 = vst [vmem:[#allocation84_spill] sm:$0xff] %v19433_v0  ;;  %v11550_v35 = vrot.slane %v21190_v12, 4  ;;  %v9923_v55 = vrot.slane %v15075_v28, 5  ;;  %v15076_v12 = vld [vmem:[#allocation3 + $0x88] sm:$0xf]  ;;  %v19459_v28 = vadd.f32 %v7997_v9, %v19184_v13 }
 0x3b8   : > { %14674 = vmatmul.mubr.bf16.vlgmr.msra.gmra.mxu0 %v21193_v51  ;;  %14612 = vmatpush3.bf16.msra.mxu1 %v14987_v62  ;;  %v11557_v8 = vrot.slane %v21194_v20, 4  ;;  %v9930_v59 = vrot.slane %v15076_v12, 5  ;;  %v19456_v0 = vld [vmem:[#allocation3 + $0x88] sm:$0xf]  ;;  %v21196_v44 = vcombine.low %v19246_v24, %v19237_v41  ;;  %v21197_v63 = vrot.slane %v19357_v47, 5  ;;  %v14340_v9 = vpop.f32.mrf.mxu1 }
 0x3b9   : > { %v19452_v26 = vsel %vm15689_vm14, %v9918_v42, %v9919_v52  ;;  %21195 = vst [vmem:[#allocation87_spill] sm:$0xff] %v19459_v28  ;;  %14613 = vmatprep.subr.bf16.mxu1 %v14988_v15  ;;  %v14989_v18 = vld [vmem:[%s20621_s2 + $0x1e0] sm:$0xff]   ;;  %v19475_v42 = vadd.f32 %v18867_v19, %v19012_v16  ;;  %v19479_v13 = vadd.f32 %v18876_v39, %v19020_v54  ;;  %v11551_v41 = vrot.slane %v19430_v14, 5  ;;  %v11441_v24 = vld [vmem:[#allocation3 + $0x78] sm:$0xe] }
 0x3ba   : > { %14677 = vmatprep.mubr.bf16.mxu0 %v21196_v44  ;;  %v19471_v62 = vsel %vm15689_vm14, %v12847_v38, %v21197_v63  ;;  %v12982_v47 = vrot.slane %v11440_v31, 9  ;;  %v11558_v44 = vrot.slane %v19443_v25, 5  ;;  %v9803_v38 = vld [vmem:[#allocation3 + $0x78] sm:$0xe]  ;;  %v19485_v51 = vld [vmem:[#allocation3 + $0x94] sm:$0xf]  ;;  %v19488_v19 = vadd.f32 %v14340_v9, %v19206_v6  ;;  %v19500_v63 = vpop.f32.mrf.mxu0 }
 0x3bb   : > { %v21199_v39 = vcombine.low %v19270_v4, %v19250_v3  ;;  %v19497_v54 = vsel %vm15689_vm14, %v11550_v35, %v11551_v41  ;;  %v9925_v31 = vrot.slane %v9923_v55, 4  ;;  %v9804_v20 = vld [vmem:[#allocation3 + $0x84] sm:$0xe]  ;;  %v11562_v12 = vrot.slane %v19456_v0, 5  ;;  %21200 = vst [vmem:[#allocation89_spill] sm:$0xff] %v19500_v63 }
 0x3bc   : > { %21198 = vst [vmem:[#allocation88_spill] sm:$0xff] %v19488_v19  ;;  %v21201_v6 = vcombine.low %v19276_v30, %v19258_v36  ;;  %14614 = vmatpush3.bf16.msra.mxu1 %v14988_v15  ;;  %v21202_v3 = vrot.slane %v19360_v22, 5  ;;  %v12983_v9 = vrot.slane %v11441_v24, 9  ;;  %v19513_v35 = vsel %vm15689_vm14, %v11557_v8, %v11558_v44  ;;  %v15077_v15 = vld [vmem:[#allocation3 + $0x80] sm:$0x1] }
 0x3bd   : > { %14534 = vmatmul.mubr.bf16.gmra.mxu1 %v21199_v39  ;;  %v9932_v41 = vrot.slane %v9930_v59, 4  ;;  %14615 = vmatprep.subr.bf16.mxu1 %v14989_v18  ;;  %v14990_v39 = vld [vmem:[%s20621_s2 + $0x1d8] sm:$0xff]   ;;  %v19520_v36 = vadd.f32 %v18886_v17, %v19035_v34  ;;  %v12848_v30 = vrot.slane %v9803_v38, 9  ;;  %v21203_v8 = vrot.slane %v19379_v57, 5  ;;  %v15078_v16 = vld [vmem:[#allocation3 + $0x8c] sm:$0x1] }
 0x3be   : > { %14537 = vmatprep.mubr.bf16.mxu1 %v21201_v6  ;;  %v19509_v4 = vsel %vm15689_vm14, %v12982_v47, %v21202_v3  ;;  %v9926_v6 = vrot.slane %v15077_v15, 5  ;;  %v11569_v47 = vrot.slane %v19485_v51, 5  ;;  %v12849_v3 = vrot.slane %v9804_v20, 9  ;;  %v19531_v63 = vld [vmem:[#allocation3 + $0x8c] sm:$0x1] }
 0x3bf   : > { %v19529_v44 = vsel %vm15689_vm14, %v12983_v9, %v21203_v8  ;;  %v9933_v52 = vrot.slane %v15078_v16, 5  ;;  %21204 = vst [vmem:[#allocation90_spill] sm:$0xff] %v19531_v63  ;;  %v19537_v34 = vsel %vm15689_vm14, %v12848_v30, %v9923_v55  ;;  %v11442_v15 = vld [vmem:[#allocation3 + $0x84] sm:$0xe]  ;;  %v11564_v24 = vrot.slane %v11562_v12, 4  ;;  %v19543_v8 = vpop.f32.mrf.mxu0 }
 0x3c0   : > { %v19541_v38 = vsel %vm15689_vm14, %v9925_v31, %v9926_v6  ;;  %v11443_v9 = vld [vmem:[#allocation3 + $0x90] sm:$0xe]  ;;  %21205 = vst [vmem:[#allocation91_spill] sm:$0xff] %v19543_v8  ;;  %v21206_v16 = vcombine.low %v19312_v56, %v19304_v37  ;;  %14616 = vmatpush3.bf16.msra.mxu1 %v14989_v18  ;;  %v19550_v20 = vsel %vm15689_vm14, %v12849_v3, %v9930_v59  ;;  %v19560_v30 = vld [vmem:[#allocation3 + $0x98] sm:$0x1]  ;;  %v11565_v56 = vrot.slane %v19531_v63, 5  ;;  %v19573_v3 = vpop.f32.mrf.mxu1 }
 0x3c1   : > { %v19554_v55 = vsel %vm15689_vm14, %v9932_v41, %v9933_v52  ;;  %v19558_v31 = vadd.f32 %v18892_v60, %v19045_v5  ;;  %21208 = vst [vmem:[#allocation93_spill] sm:$0xff] %v19560_v30  ;;  %v19562_v6 = vld [vmem:[#allocation3 + $0xa0] sm:$0xf]  ;;  %v19564_v17 = vld [vmem:[#allocation3 + $0xac] sm:$0xf]  ;;  %v21210_v37 = vcombine.low %v19331_v48, %v19319_v58  ;;  %14617 = vmatprep.subr.bf16.mxu1 %v14990_v39  ;;  %v11571_v59 = vrot.slane %v11569_v47, 4  ;;  %v19591_v28 = vpop.f32.mrf.mxu0 }
 0x3c2   : > { %14678 = vmatmul.mubr.bf16.gmra.mxu0 %v21206_v16  ;;  %21209 = vst [vmem:[#allocation94_spill] sm:$0xff] %v19564_v17  ;;  %v14991_v18 = vld [vmem:[%s20621_s2 + $0x1d0] sm:$0xff]   ;;  %v15079_v60 = vld [vmem:[#allocation3 + $0x94] sm:$0xf]  ;;  %v15080_v52 = vld [vmem:[#allocation3 + $0xa0] sm:$0xf]  ;;  %v19579_v58 = vadd.f32 %v18898_v32, %v19056_v33  ;;  %v21213_v19 = vcombine.low %v19335_v1, %v19343_v21  ;;  %v21215_v32 = vcombine.low %v19355_v2, %v19347_v10 }
 0x3c3   : > { %21207 = vst [vmem:[#allocation92_spill] sm:$0xff] %v19558_v31  ;;  %14681 = vmatprep.mubr.bf16.mxu0 %v21210_v37  ;;  %v9937_v5 = vrot.slane %v15079_v60, 5  ;;  %v9944_v41 = vrot.slane %v15080_v52, 5  ;;  %21211 = vst [vmem:[#allocation95_spill] sm:$0xff] %v19573_v3  ;;  %v12984_v48 = vrot.slane %v11442_v15, 9  ;;  %v12985_v37 = vrot.slane %v11443_v9, 9  ;;  %v14343_v9 = vpop.f32.mrf.mxu1 }
 0x3c4   : > { %21212 = vst [vmem:[#allocation96_spill] sm:$0xff] %v19579_v58  ;;  %v9805_v8 = vld [vmem:[#allocation3 + $0x90] sm:$0xe]  ;;  %v19586_v60 = vsel %vm15689_vm14, %v11564_v24, %v11565_v56  ;;  %v11572_v52 = vrot.slane %v19560_v30, 5  ;;  %21214 = vst [vmem:[#allocation97_spill] sm:$0xff] %v19591_v28  ;;  %14618 = vmatpush3.bf16.msra.mxu1 %v14990_v39  ;;  %v21220_v28 = vrot.slane %v19562_v6, 5  ;;  %v19626_v58 = vpop.f32.mrf.mxu0 }
 0x3c5   : > { %14538 = vmatmul.mubr.bf16.gmra.mxu1 %v21213_v19  ;;  %v19600_v1 = vsel %vm15689_vm14, %v12984_v48, %v11562_v12  ;;  %v19604_v21 = vsel %vm15689_vm14, %v12985_v37, %v11569_v47  ;;  %14619 = vmatprep.subr.bf16.mxu1 %v14991_v18  ;;  %v12850_v24 = vrot.slane %v9805_v8, 9  ;;  %v9939_v2 = vrot.slane %v9937_v5, 4  ;;  %v9806_v10 = vld [vmem:[#allocation3 + $0x9c] sm:$0xe]  ;;  %v14992_v15 = vld [vmem:[%s20621_s2 + $0x1c8] sm:$0xff]   ;;  %21222 = vst [vmem:[#allocation100_spill] sm:$0xff] %v19626_v58  ;;  %v8013_v31 = vpop.f32.mrf.mxu1 }
 0x3c6   : > { %14541 = vmatprep.mubr.bf16.mxu1 %v21215_v32  ;;  %v19608_v19 = vsel %vm15689_vm14, %v11571_v59, %v11572_v52  ;;  %v9946_v39 = vrot.slane %v9944_v41, 4  ;;  %v15081_v56 = vld [vmem:[#allocation3 + $0x98] sm:$0x1]  ;;  %v19615_v48 = vld [vmem:[#allocation3 + $0xa4] sm:$0x1]  ;;  %v11578_v30 = vrot.slane %v21220_v28, 4 }
 0x3c7   : > { %v9940_v47 = vrot.slane %v15081_v56, 5  ;;  %21216 = vst [vmem:[#allocation98_spill] sm:$0xff] %v19615_v48  ;;  %v19617_v37 = vld [vmem:[#allocation3 + $0xb0] sm:$0x1]  ;;  %v15082_v59 = vld [vmem:[#allocation3 + $0xac] sm:$0xf] }
 0x3c8   : > { %21217 = vst [vmem:[#allocation99_spill] sm:$0xff] %v19617_v37  ;;  %v9951_v52 = vrot.slane %v15082_v59, 5  ;;  %v21218_v8 = vld [vmem:[#allocation64_spill] sm:$0xff]  ;;  %v15083_v33 = vld [vmem:[#allocation3 + $0xa4] sm:$0x1]  ;;  %v21221_v63 = vrot.slane %v19564_v17, 5  ;;  %v21223_v59 = vcombine.low %v19393_v53, %v19397_v45  ;;  %14620 = vmatpush3.bf16.msra.mxu1 %v14991_v18 }
 0x3c9   : > { %v19620_v32 = vadd.f32 %v14343_v9, %v21218_v8  ;;  %v9947_v16 = vrot.slane %v15083_v33, 5  ;;  %v11444_v3 = vld [vmem:[#allocation3 + $0x9c] sm:$0xe]  ;;  %v15084_v25 = vld [vmem:[#allocation3 + $0xb8] sm:$0xf]  ;;  %v19635_v33 = vsel %vm15689_vm14, %v12850_v24, %v9937_v5  ;;  %v12851_v28 = vrot.slane %v9806_v10, 9  ;;  %14621 = vmatprep.subr.bf16.mxu1 %v14992_v15 }
 0x3ca   : > { %v11585_v12 = vrot.slane %v21221_v63, 4  ;;  %v9958_v56 = vrot.slane %v15084_v25, 5  ;;  %14682 = vmatmul.mubr.bf16.gmra.mxu0 %v21223_v59  ;;  %v11445_v8 = vld [vmem:[#allocation3 + $0xa8] sm:$0xe]  ;;  %v21224_v63 = vld [vmem:[#allocation73_spill] sm:$0xff]  ;;  %v21226_v25 = vcombine.low %v19418_v46, %v19408_v40  ;;  %v19645_v53 = vsel %vm15689_vm14, %v9939_v2, %v9940_v47  ;;  %v14344_v40 = vpop.f32.mrf.mxu1 }
 0x3cb   : > { %21219 = vst [vmem:[#allocation64_spill] sm:$0xff] %v19620_v32  ;;  %v19638_v32 = vadd.f32 %v8013_v31, %v21224_v63  ;;  %v19649_v45 = vsel %vm15689_vm14, %v9946_v39, %v9947_v16  ;;  %v11579_v5 = vrot.slane %v19615_v48, 5  ;;  %v11586_v18 = vrot.slane %v19617_v37, 5  ;;  %v9807_v24 = vld [vmem:[#allocation3 + $0xa8] sm:$0xe] }
 0x3cc   : > { %14685 = vmatprep.mubr.bf16.mxu0 %v21226_v25  ;;  %v14993_v31 = vld [vmem:[%s20621_s2 + $0x1c0] sm:$0xff]   ;;  %v19658_v46 = vsel %vm15689_vm14, %v12851_v28, %v9944_v41  ;;  %v12986_v2 = vrot.slane %v11444_v3, 9  ;;  %v9953_v10 = vrot.slane %v9951_v52, 4  ;;  %v9808_v47 = vld [vmem:[#allocation3 + $0xb4] sm:$0xe]  ;;  %v21229_v59 = vcombine.low %v19428_v61, %v19439_v23  ;;  %v19674_v3 = vpop.f32.mrf.mxu0  ;;  %14622 = vmatpush3.bf16.msra.mxu1 %v14992_v15 }
 0x3cd   : > { %21225 = vst [vmem:[#allocation73_spill] sm:$0xff] %v19638_v32  ;;  %v21227_v16 = vld [vmem:[#allocation74_spill] sm:$0xff]  ;;  %v19668_v63 = vsel %vm15689_vm14, %v11578_v30, %v11579_v5  ;;  %v12987_v25 = vrot.slane %v11445_v8, 9  ;;  %v19672_v9 = vsel %vm15689_vm14, %v11585_v12, %v11586_v18  ;;  %v9960_v41 = vrot.slane %v9958_v56, 4  ;;  %21230 = vst [vmem:[#allocation101_spill] sm:$0xff] %v19674_v3  ;;  %14623 = vmatprep.subr.bf16.mxu1 %v14993_v31 }
 0x3ce   : > { %v19661_v39 = vadd.f32 %v14344_v40, %v21227_v16  ;;  %14542 = vmatmul.mubr.bf16.gmra.mxu1 %v21229_v59  ;;  %v21231_v28 = vcombine.low %v19471_v62, %v19452_v26  ;;  %v12852_v30 = vrot.slane %v9807_v24, 9  ;;  %v15085_v5 = vld [vmem:[#allocation3 + $0xb0] sm:$0x1]  ;;  %v19683_v40 = vld [vmem:[#allocation3 + $0xb8] sm:$0xf]  ;;  %v21233_v12 = vrot.slane %v19562_v6, 5  ;;  %v19720_v61 = vpop.f32.mrf.mxu0 }
 0x3cf   : > { %v9954_v8 = vrot.slane %v15085_v5, 5  ;;  %21232 = vst [vmem:[#allocation102_spill] sm:$0xff] %v19683_v40  ;;  %v21234_v26 = vrot.slane %v19564_v17, 5  ;;  %v12853_v16 = vrot.slane %v9808_v47, 9  ;;  %v15086_v59 = vld [vmem:[#allocation3 + $0xbc] sm:$0x1] }
 0x3d0   : > { %21228 = vst [vmem:[#allocation74_spill] sm:$0xff] %v19661_v39  ;;  %14545 = vmatprep.mubr.bf16.mxu1 %v21231_v28  ;;  %v19689_v18 = vsel %vm15689_vm14, %v12986_v2, %v21233_v12  ;;  %v9961_v24 = vrot.slane %v15086_v59, 5  ;;  %v11446_v28 = vld [vmem:[#allocation3 + $0xb4] sm:$0xe]  ;;  %v19703_v2 = vsel %vm15689_vm14, %v12852_v30, %v9951_v52  ;;  %v19711_v47 = vld [vmem:[#allocation3 + $0xc4] sm:$0xf]  ;;  %14624 = vmatpush3.bf16.msra.mxu1 %v14993_v31 }
 0x3d1   : > { %v19695_v62 = vsel %vm15689_vm14, %v12987_v25, %v21234_v26  ;;  %v19707_v12 = vsel %vm15689_vm14, %v9953_v10, %v9954_v8  ;;  %v19709_v25 = vld [vmem:[#allocation3 + $0xbc] sm:$0x1]  ;;  %21236 = vst [vmem:[#allocation104_spill] sm:$0xff] %v19711_v47  ;;  %v10679_v26 = vld [vmem:[#allocation3 + $0x18] sm:$0xf]  ;;  %v11590_v15 = vrot.slane %v19683_v40, 5  ;;  %v21239_v10 = vcombine.low %v19509_v4, %v19497_v54 }
 0x3d2   : > { %21235 = vst [vmem:[#allocation103_spill] sm:$0xff] %v19709_v25  ;;  %v19715_v59 = vsel %vm15689_vm14, %v9960_v41, %v9961_v24  ;;  %v21237_v5 = vld [vmem:[#allocation29_spill] sm:$0xff]  ;;  %v19727_v8 = vsel %vm15689_vm14, %v12853_v16, %v9958_v56  ;;  %v12988_v3 = vrot.slane %v11446_v28, 9  ;;  %v19736_v54 = vld [vmem:[#allocation3 + $0xc8] sm:$0x1]  ;;  %v11597_v4 = vrot.slane %v19711_v47, 5  ;;  %v19747_v47 = vpop.f32.mrf.mxu0 }
 0x3d3   : > { %v10737_v23 = vshll.u32 %v21237_v5, 16  ;;  %v10741_v52 = vshrl.u32 %v21237_v5, 16  ;;  %v10682_v30 = vld [vmem:[#allocation3 + $0x24] sm:$0xf]  ;;  %21238 = vst [vmem:[#allocation29_spill] sm:$0xff] %v19720_v61  ;;  %14686 = vmatmul.mubr.bf16.gmra.mxu0 %v21239_v10  ;;  %v21241_v5 = vcombine.low %v19529_v44, %v19513_v35  ;;  %v10728_v56 = vshrl.u32 %v10679_v26, 16 }
 0x3d4   : > { %v11447_v41 = vld [vmem:[#allocation3 + $0xc0] sm:$0xe]  ;;  %v10731_v16 = vshll.u32 %v10679_v26, 16  ;;  %v11593_v28 = vrot.slane %v19709_v25, 5  ;;  %v10752_v10 = vshrl.u32 %v10682_v30, 16  ;;  %v21243_v35 = vcombine.low %v19537_v34, %v19541_v38  ;;  %21244 = vst [vmem:[#allocation105_spill] sm:$0xff] %v19747_v47  ;;  %v19749_v26 = vpop.f32.mrf.mxu1 }
 0x3d5   : > { %v21240_v24 = vld [vmem:[#allocation17_spill] sm:$0xff]  ;;  %14689 = vmatprep.mubr.bf16.mxu0 %v21241_v5  ;;  %v11592_v44 = vrot.slane %v11590_v15, 4  ;;  %v12989_v5 = vrot.slane %v11447_v41, 9  ;;  %v19745_v61 = vrot.slane %v10737_v23, 5  ;;  %v10743_v32 = vrot.slane %v10741_v52, 4  ;;  %21245 = vst [vmem:[#allocation106_spill] sm:$0xff] %v19749_v26 }
 0x3d6   : > { %v10761_v58 = vshll.u32 %v21240_v24, 16  ;;  %v10765_v39 = vshrl.u32 %v21240_v24, 16  ;;  %21242 = vst [vmem:[#allocation17_spill] sm:$0xff] %v19736_v54  ;;  %v10755_v24 = vshll.u32 %v10682_v30, 16  ;;  %14546 = vmatmul.mubr.bf16.gmra.mxu1 %v21243_v35  ;;  %v10685_v37 = vld [vmem:[#allocation3 + $0x30] sm:$0xf]  ;;  %v21246_v31 = vcombine.low %v19550_v20, %v19554_v55 }
 0x3d7   : > { %v19756_v30 = vsel %vm15689_vm14, %v12988_v3, %v11590_v15  ;;  %v11600_v34 = vrot.slane %v19736_v54, 5  ;;  %v9809_v38 = vld [vmem:[#allocation3 + $0xc0] sm:$0xe]  ;;  %v19763_v52 = vsel %vm15689_vm14, %v12989_v5, %v11597_v4  ;;  %v15087_v35 = vld [vmem:[#allocation3 + $0xc4] sm:$0xf]  ;;  %v10730_v47 = vrot.slane %v10728_v56, 4  ;;  %v19770_v54 = vpop.f32.mrf.mxu0  ;;  %v14347_v5 = vpop.f32.mrf.mxu1 }
 0x3d8   : > { %14549 = vmatprep.mubr.bf16.mxu1 %v21246_v31  ;;  %v19759_v41 = vrot.slane %v10761_v58, 5  ;;  %v10767_v23 = vrot.slane %v10765_v39, 4  ;;  %v9965_v26 = vrot.slane %v15087_v35, 5  ;;  %v10733_v25 = vrot.slane %v10731_v16, 5  ;;  %21247 = vst [vmem:[#allocation107_spill] sm:$0xff] %v19770_v54  ;;  %v21249_v16 = vld [vmem:[#allocation60_spill] sm:$0xff] }
 0x3d9   : > { %v10754_v20 = vrot.slane %v10752_v10, 4  ;;  %v10757_v55 = vrot.slane %v10755_v24, 5  ;;  %v10776_v31 = vshrl.u32 %v10685_v37, 16  ;;  %v10779_v40 = vshll.u32 %v10685_v37, 16  ;;  %v21252_v54 = vld [vmem:[#allocation20_spill] sm:$0xff] }
 0x3da   : > { %v19767_v3 = vsel %vm15689_vm14, %v11592_v44, %v11593_v28  ;;  %v11599_v15 = vrot.slane %v11597_v4, 4  ;;  %v12854_v58 = vrot.slane %v9809_v38, 9  ;;  %v10744_v39 = vor.u32 %v10743_v32, %v19745_v61  ;;  %v21251_v44 = vld [vmem:[#allocation21_spill] sm:$0xff] }
 0x3db   : > { %v21248_v35 = vcombine.low %v19600_v1, %v19586_v60  ;;  %v10768_v56 = vor.u32 %v10767_v23, %v19759_v41  ;;  %v10785_v10 = vshll.u32 %v21249_v16, 16  ;;  %v10789_v37 = vshrl.u32 %v21249_v16, 16  ;;  %v8029_v1 = vpop.f32.mrf.mxu1 }
 0x3dc   : > { %v19779_v28 = vadd.f32 %v14347_v5, %v19323_v43  ;;  %v21250_v4 = vcombine.low %v19604_v21, %v19608_v19  ;;  %v9967_v32 = vrot.slane %v9965_v26, 4  ;;  %v10734_v24 = vor.u32 %v10733_v25, %v10730_v47  ;;  %v15088_v25 = vld [vmem:[#allocation3 + $0xc8] sm:$0x1] }
 0x3dd   : > { %14690 = vmatmul.mubr.bf16.gmra.mxu0 %v21248_v35  ;;  %v10747_v38 = vshll.u32 %v21251_v44, 16  ;;  %v10771_v60 = vshll.u32 %v21252_v54, 16  ;;  %v10758_v35 = vor.u32 %v10757_v55, %v10754_v20  ;;  %v10778_v23 = vrot.slane %v10776_v31, 4  ;;  %v19798_v20 = vpop.f32.mrf.mxu0  ;;  %v10688_v31 = vld [vmem:[#allocation3 + $0x3c] sm:$0xf] }
 0x3de   : > { %14693 = vmatprep.mubr.bf16.mxu0 %v21250_v4  ;;  %v10781_v48 = vrot.slane %v10779_v40, 5  ;;  %v19787_v17 = vadd.f32 %v8029_v1, %v19372_v27  ;;  %v21253_v43 = vcombine.low %v19635_v33, %v19645_v53  ;;  %v13020_v21 = vcombine.low %v19756_v30, %v19767_v3  ;;  %21254 = vst [vmem:[#allocation60_spill] sm:$0xff] %v19798_v20  ;;  %v14348_v40 = vpop.f32.mrf.mxu1  ;;  %v19881_v3 = vld [vmem:[#allocation3 + $0xd0] sm:$0xf] }
 0x3df   : > { %v19796_v19 = vsel %vm15689_vm14, %v11599_v15, %v11600_v34  ;;  %v9968_v47 = vrot.slane %v15088_v25, 5  ;;  %v10745_v54 = vrot.slane %v10744_v39, 4  ;;  %v21255_v27 = vcombine.low %v19658_v46, %v19649_v45 }
 0x3e0   : > { %14550 = vmatmul.mubr.bf16.gmra.mxu1 %v21253_v43  ;;  %v10769_v55 = vrot.slane %v10768_v56, 4  ;;  %v19803_v33 = vrot.slane %v10785_v10, 5  ;;  %v10791_v53 = vrot.slane %v10789_v37, 4  ;;  %v19806_v5 = vadd.f32 %v14348_v40, %v19376_v11  ;;  %v21256_v10 = vld [vmem:[#allocation42_spill] sm:$0xff] }
 0x3e1   : > { %14553 = vmatprep.mubr.bf16.mxu1 %v21255_v27  ;;  %v19810_v34 = vsel %vm15689_vm14, %v12854_v58, %v9965_v26  ;;  %v19814_v15 = vsel %vm15689_vm14, %v9967_v32, %v9968_v47  ;;  %v10735_v39 = vrot.slane %v10734_v24, 4  ;;  %v10749_v16 = vrot.slane %v10747_v38, 5  ;;  %v19821_v58 = vpop.f32.mrf.mxu0  ;;  %v21260_v38 = vld [vmem:[#allocation7_spill] sm:$0xff] }
 0x3e2   : > { %v10759_v45 = vrot.slane %v10758_v35, 4  ;;  %v10773_v46 = vrot.slane %v10771_v60, 5  ;;  %v10782_v56 = vor.u32 %v10781_v48, %v10778_v23  ;;  %v10795_v4 = vshll.u32 %v21256_v10, 16  ;;  %21258 = vst [vmem:[#allocation21_spill] sm:$0xff] %v19821_v58  ;;  %v10691_v35 = vld [vmem:[#allocation3 + $0x48] sm:$0xf] }
 0x3e3   : > { %v13021_v37 = vcombine.low %v19763_v52, %v19796_v19  ;;  %v10750_v44 = vsel %vm15241_vm9, %v10745_v54, %v10749_v16  ;;  %v10800_v1 = vshrl.u32 %v10688_v31, 16  ;;  %v10803_v26 = vshll.u32 %v10688_v31, 16  ;;  %v21329_v58 = vld [vmem:[#allocation46_spill] sm:$0xff] }
 0x3e4   : > { %v21259_v32 = vcombine.low %v19689_v18, %v19668_v63  ;;  %v10774_v24 = vsel %vm15241_vm9, %v10769_v55, %v10773_v46  ;;  %v10792_v48 = vor.u32 %v10791_v53, %v19803_v33  ;;  %v10809_v60 = vshll.u32 %v21260_v38, 16  ;;  %v21262_v18 = vld [vmem:[#allocation44_spill] sm:$0xff] }
 0x3e5   : > { %v10813_v52 = vshrl.u32 %v21260_v38, 16  ;;  %v21261_v23 = vcombine.low %v19695_v62, %v19672_v9  ;;  %v12886_v43 = vcombine.low %v19810_v34, %v19814_v15  ;;  %v10740_v63 = vsel %vm15241_vm9, %v10735_v39, %v19745_v61  ;;  %v10694_v9 = vld [vmem:[#allocation3 + $0x54] sm:$0xf]  ;;  %v19849_v34 = vpop.f32.mrf.mxu0  ;;  %v19851_v15 = vpop.f32.mrf.mxu1 }
 0x3e6   : > { %14694 = vmatmul.mubr.bf16.gmra.mxu0 %v21259_v32  ;;  %v10833_v19 = vshll.u32 %v21262_v18, 16  ;;  %v10837_v25 = vshrl.u32 %v21262_v18, 16  ;;  %v12951_v47 = vcombine.low %v10740_v63, %v10750_v44  ;;  %v10764_v54 = vsel %vm15241_vm9, %v10759_v45, %v19759_v41  ;;  %21264 = vst [vmem:[#allocation20_spill] sm:$0xff] %v19851_v15  ;;  %v21267_v32 = vld [vmem:[#allocation61_spill] sm:$0xff] }
 0x3e7   : > { %14697 = vmatprep.mubr.bf16.mxu0 %v21261_v23  ;;  %v10783_v40 = vrot.slane %v10782_v56, 4  ;;  %v10797_v27 = vrot.slane %v10795_v4, 5  ;;  %v21263_v62 = vcombine.low %v19703_v2, %v19707_v12  ;;  %v19847_v55 = vcombine.low %v10764_v54, %v10774_v24  ;;  %v10697_v2 = vld [vmem:[#allocation3 + $0x60] sm:$0xf]  ;;  %v21266_v12 = vld [vmem:[#allocation18_spill] sm:$0xff]  ;;  %v14351_v23 = vpop.f32.mrf.mxu1 }
 0x3e8   : > { %v10802_v53 = vrot.slane %v10800_v1, 4  ;;  %v10805_v61 = vrot.slane %v10803_v26, 5  ;;  %v10824_v31 = vshrl.u32 %v10691_v35, 16  ;;  %v21265_v39 = vcombine.low %v19727_v8, %v19715_v59  ;;  %v543_v24 = vld [vmem:[#allocation3 + $0xd4] sm:$0x1]  ;;  %v21268_v54 = vld [vmem:[#allocation9_spill] sm:$0xff] }
 0x3e9   : > { %14554 = vmatmul.mubr.bf16.gmra.mxu1 %v21263_v62  ;;  %v10793_v41 = vrot.slane %v10792_v48, 4  ;;  %v19856_v16 = vrot.slane %v10809_v60, 5  ;;  %v10815_v45 = vrot.slane %v10813_v52, 4  ;;  %v10827_v46 = vshll.u32 %v10691_v35, 16  ;;  %v19866_v35 = vpop.f32.mrf.mxu0  ;;  %v8045_v62 = vpop.f32.mrf.mxu1 }
 0x3ea   : > { %14557 = vmatprep.mubr.bf16.mxu1 %v21265_v39  ;;  %v10819_v56 = vshll.u32 %v21266_v12, 16  ;;  %v19859_v10 = vrot.slane %v10833_v19, 5  ;;  %v10839_v4 = vrot.slane %v10837_v25, 4  ;;  %v10848_v44 = vshrl.u32 %v10694_v9, 16  ;;  %v21270_v39 = vld [vmem:[#allocation75_spill] sm:$0xff] }
 0x3eb   : > { %v10788_v1 = vsel %vm15241_vm9, %v10783_v40, %v19803_v33  ;;  %v10851_v26 = vshll.u32 %v10694_v9, 16  ;;  %v10857_v59 = vshll.u32 %v21267_v32, 16  ;;  %v10861_v8 = vshrl.u32 %v21267_v32, 16  ;;  %v11448_v12 = vld [vmem:[#allocation3 + $0xcc] sm:$0xe] }
 0x3ec   : > { %v10806_v48 = vor.u32 %v10805_v61, %v10802_v53  ;;  %v10826_v38 = vrot.slane %v10824_v31, 4  ;;  %v10872_v60 = vshrl.u32 %v10697_v2, 16  ;;  %v10875_v52 = vshll.u32 %v10697_v2, 16  ;;  %v14352_v2 = vpop.f32.mrf.mxu1 }
 0x3ed   : > { %v10798_v33 = vsel %vm15241_vm9, %v10793_v41, %v10797_v27  ;;  %v10816_v63 = vor.u32 %v10815_v45, %v19856_v16  ;;  %v10829_v18 = vrot.slane %v10827_v46, 5  ;;  %v19875_v19 = vadd.f32 %v14351_v23, %v19422_v49  ;;  %v19890_v46 = vpop.f32.mrf.mxu0 }
 0x3ee   : > { %14698 = vmatmul.mubr.bf16.gmra.mxu0 %v13020_v21  ;;  %v10840_v25 = vor.u32 %v10839_v4, %v19859_v10  ;;  %v10843_v40 = vshll.u32 %v21268_v54, 16  ;;  %v10850_v9 = vrot.slane %v10848_v44, 4  ;;  %v544_v30 = vsel %vm15183_vm4, 0, %v543_v24  ;;  %21271 = vst [vmem:[#allocation42_spill] sm:$0xff] %v19890_v46 }
 0x3ef   : > { %14701 = vmatprep.mubr.bf16.mxu0 %v13021_v37  ;;  %v10853_v21 = vrot.slane %v10851_v26, 5  ;;  %v19883_v27 = vrot.slane %v10857_v59, 5  ;;  %v10863_v61 = vrot.slane %v10861_v8, 4  ;;  %v19886_v31 = vadd.f32 %v8045_v62, %v19475_v42  ;;  %545 = vst [vmem:[#allocation3 + $0xd4] sm:$0x1] %v544_v30 }
 0x3f0   : > { %v10874_v49 = vrot.slane %v10872_v60, 4  ;;  %v10877_v37 = vrot.slane %v10875_v52, 5  ;;  %v10881_v41 = vshll.u32 %v21270_v39, 16  ;;  %v10885_v45 = vshrl.u32 %v21270_v39, 16  ;;  %v10700_v26 = vld [vmem:[#allocation3 + $0x6c] sm:$0xf] }
 0x3f1   : > { %14558 = vmatmul.mubr.bf16.gmra.mxu1 %v12886_v43  ;;  %v12953_v4 = vcombine.low %v10788_v1, %v10798_v33  ;;  %v10821_v44 = vrot.slane %v10819_v56, 5  ;;  %v19893_v32 = vadd.f32 %v14352_v2, %v19479_v13  ;;  %v11604_v42 = vrot.slane %v19881_v3, 5  ;;  %v19899_v1 = vpop.f32.mrf.mxu0 }
 0x3f2   : > { %14625 = vmatprep.mubr.bf16.mxu1 %v12951_v47  ;;  %v10807_v43 = vrot.slane %v10806_v48, 4  ;;  %v10817_v59 = vrot.slane %v10816_v63, 4  ;;  %v10830_v8 = vor.u32 %v10829_v18, %v10826_v38  ;;  %v10841_v24 = vrot.slane %v10840_v25, 4  ;;  %21272 = vst [vmem:[#allocation6_spill] sm:$0xff] %v19899_v1 }
 0x3f3   : > { %v10845_v60 = vrot.slane %v10843_v40, 5  ;;  %v10854_v52 = vor.u32 %v10853_v21, %v10850_v9  ;;  %v10864_v23 = vor.u32 %v10863_v61, %v19883_v27  ;;  %v12990_v54 = vrot.slane %v11448_v12, 9  ;;  %v10703_v61 = vld [vmem:[#allocation3 + $0x78] sm:$0xf] }
 0x3f4   : > { %v10878_v62 = vor.u32 %v10877_v37, %v10874_v49  ;;  %v19897_v53 = vrot.slane %v10881_v41, 5  ;;  %v10887_v47 = vrot.slane %v10885_v45, 4  ;;  %v10896_v56 = vshrl.u32 %v10700_v26, 16  ;;  %v19922_v45 = vpop.f32.mrf.mxu0 }
 0x3f5   : > { %v10899_v13 = vshll.u32 %v10700_v26, 16  ;;  %v10905_v33 = vshll.u32 %v19360_v22, 16  ;;  %v10909_v48 = vshrl.u32 %v19360_v22, 16  ;;  %v11606_v63 = vrot.slane %v11604_v42, 4 }
 0x3f6   : > { %v10822_v38 = vsel %vm15241_vm9, %v10817_v59, %v10821_v44  ;;  %v10831_v18 = vrot.slane %v10830_v8, 4  ;;  %v10846_v25 = vsel %vm15241_vm9, %v10841_v24, %v10845_v60  ;;  %v10867_v40 = vshll.u32 %v19337_v7, 16  ;;  %v19908_v9 = vld [vmem:[#allocation3 + $0xd4] sm:$0x1]  ;;  %v19929_v59 = vpop.f32.mrf.mxu1 }
 0x3f7   : > { %v19910_v30 = vrot.slane %v10854_v52, 4  ;;  %v10891_v21 = vshll.u32 %v19349_v50, 16  ;;  %v11605_v22 = vsel %vm15689_vm14, %v12990_v54, %v11604_v42  ;;  %v11607_v49 = vrot.slane %v19908_v9, 5 }
 0x3f8   : > { %v19917_v37 = vrot.slane %v10864_v23, 4  ;;  %v19919_v39 = vrot.slane %v10878_v62, 4  ;;  %v10888_v7 = vor.u32 %v10887_v47, %v19897_v53  ;;  %v10898_v41 = vrot.slane %v10896_v56, 4  ;;  %v19942_v47 = vpop.f32.mrf.mxu0  ;;  %v10706_v56 = vld [vmem:[#allocation3 + $0x84] sm:$0xf] }
 0x3f9   : > { %14626 = vmatmul.mubr.bf16.vlgmr.msra.gmra.mxu1 %v19847_v55  ;;  %v10901_v2 = vrot.slane %v10899_v13, 5  ;;  %v19924_v50 = vrot.slane %v10905_v33, 5  ;;  %v10911_v12 = vrot.slane %v10909_v48, 4  ;;  %v11608_v44 = vsel %vm15689_vm14, %v11606_v63, %v11607_v49  ;;  %v10709_v13 = vld [vmem:[#allocation3 + $0x90] sm:$0xf] }
 0x3fa   : > { %14629 = vmatprep.mubr.bf16.mxu1 %v12953_v4  ;;  %v10920_v26 = vshrl.u32 %v10703_v61, 16  ;;  %v10923_v42 = vshll.u32 %v10703_v61, 16  ;;  %v10929_v55 = vshll.u32 %v19379_v57, 16  ;;  %v13022_v8 = vcombine.low %v11605_v22, %v11608_v44  ;;  %v19960_v22 = vpop.f32.mrf.mxu0 }
 0x3fb   : > { %v10812_v24 = vsel %vm15241_vm9, %v10807_v43, %v19856_v16  ;;  %v10836_v4 = vsel %vm15241_vm9, %v10831_v18, %v19859_v10  ;;  %v10869_v60 = vrot.slane %v10867_v40, 5  ;;  %v10933_v52 = vshrl.u32 %v19379_v57, 16  ;;  %21273 = vst [vmem:[#allocation7_spill] sm:$0xff] %v19960_v22 }
 0x3fc   : > { %v12954_v29 = vcombine.low %v10812_v24, %v10822_v38  ;;  %v12955_v23 = vcombine.low %v10836_v4, %v10846_v25  ;;  %v10860_v54 = vsel %vm15241_vm9, %v19910_v30, %v19883_v27  ;;  %v10893_v62 = vrot.slane %v10891_v21, 5  ;;  %14702 = vmatmul.mubr.bf16.gmra.mxu0 %v13022_v8  ;;  %v14355_v38 = vpop.f32.mrf.mxu1  ;;  %v21275_v24 = vld [vmem:[#allocation96_spill] sm:$0xff] }
 0x3fd   : > { %v10870_v16 = vsel %vm15241_vm9, %v19917_v37, %v10869_v60  ;;  %v10884_v57 = vsel %vm15241_vm9, %v19919_v39, %v19897_v53  ;;  %v10889_v10 = vrot.slane %v10888_v7, 4  ;;  %v10902_v43 = vor.u32 %v10901_v2, %v10898_v41  ;;  %v21274_v41 = vld [vmem:[#allocation92_spill] sm:$0xff] }
 0x3fe   : > { %v10912_v33 = vor.u32 %v10911_v12, %v19924_v50  ;;  %v10922_v27 = vrot.slane %v10920_v26, 4  ;;  %v10925_v48 = vrot.slane %v10923_v42, 5  ;;  %v19952_v63 = vrot.slane %v10929_v55, 5  ;;  %v8061_v37 = vpop.f32.mrf.mxu1 }
 0x3ff   : > { %v10935_v18 = vrot.slane %v10933_v52, 4  ;;  %v19955_v25 = vadd.f32 %v14355_v38, %v19520_v36  ;;  %v10944_v40 = vshrl.u32 %v10706_v56, 16  ;;  %v10947_v30 = vshll.u32 %v10706_v56, 16  ;;  %v21276_v52 = vld [vmem:[#allocation85_spill] sm:$0xff]  ;;  %v19976_v56 = vpop.f32.mrf.mxu0  ;;  %v10712_v38 = vld [vmem:[#allocation3 + $0x9c] sm:$0xf] }
 0x400   : > { %v10915_v21 = vshll.u32 %v19430_v14, 16  ;;  %v10953_v53 = vshll.u32 %v19456_v0, 16  ;;  %v10957_v61 = vshrl.u32 %v19456_v0, 16  ;;  %v10968_v49 = vshrl.u32 %v10709_v13, 16  ;;  %v14356_v0 = vpop.f32.mrf.mxu1  ;;  %21277 = vst [vmem:[#allocation44_spill] sm:$0xff] %v19976_v56 }
 0x401   : > { %14630 = vmatmul.mubr.bf16.gmra.mxu1 %v12954_v29  ;;  %v10971_v39 = vshll.u32 %v10709_v13, 16  ;;  %v10977_v7 = vshll.u32 %v19485_v51, 16  ;;  %v10981_v36 = vshrl.u32 %v19485_v51, 16  ;;  %v19965_v2 = vadd.f32 %v8061_v37, %v21274_v41  ;;  %v21279_v37 = vld [vmem:[#allocation50_spill] sm:$0xff] }
 0x402   : > { %14633 = vmatprep.mubr.bf16.mxu1 %v12955_v23  ;;  %v10894_v14 = vsel %vm15241_vm9, %v10889_v10, %v10893_v62  ;;  %v10903_v12 = vrot.slane %v10902_v43, 4  ;;  %v10913_v44 = vrot.slane %v10912_v33, 4  ;;  %v10926_v26 = vor.u32 %v10925_v48, %v10922_v27 }
 0x403   : > { %v10936_v42 = vor.u32 %v10935_v18, %v19952_v63  ;;  %v10946_v55 = vrot.slane %v10944_v40, 4  ;;  %v10949_v8 = vrot.slane %v10947_v30, 5  ;;  %v19971_v4 = vadd.f32 %v14356_v0, %v21275_v24 }
 0x404   : > { %v10917_v60 = vrot.slane %v10915_v21, 5  ;;  %v10939_v51 = vshll.u32 %v21276_v52, 16  ;;  %v19974_v29 = vrot.slane %v10953_v53, 5  ;;  %v10959_v23 = vrot.slane %v10957_v61, 4  ;;  %v21278_v21 = vld [vmem:[#allocation90_spill] sm:$0xff] }
 0x405   : > { %v10970_v62 = vrot.slane %v10968_v49, 4  ;;  %v10973_v10 = vrot.slane %v10971_v39, 5  ;;  %v19978_v43 = vrot.slane %v10977_v7, 5  ;;  %v10983_v13 = vrot.slane %v10981_v36, 4  ;;  %v21280_v61 = vld [vmem:[#allocation54_spill] sm:$0xff] }
 0x406   : > { %v12956_v33 = vcombine.low %v10860_v54, %v10870_v16  ;;  %v12957_v27 = vcombine.low %v10884_v57, %v10894_v14  ;;  %v10918_v48 = vsel %vm15241_vm9, %v10913_v44, %v10917_v60  ;;  %v10927_v18 = vrot.slane %v10926_v26, 4  ;;  %v19989_v16 = vpop.f32.mrf.mxu0  ;;  %v21281_v44 = vld [vmem:[#allocation4_spill] sm:$0xff]  ;;  %v21282_v26 = vld [vmem:[#allocation71_spill] sm:$0xff] }
 0x407   : > { %v10937_v40 = vrot.slane %v10936_v42, 4  ;;  %v10950_v30 = vor.u32 %v10949_v8, %v10946_v55  ;;  %v10963_v53 = vshll.u32 %v21278_v21, 16  ;;  %v7364_v41 = vadd.f32 %v21280_v61, %v21279_v37  ;;  %v19994_v55 = vpop.f32.mrf.mxu1  ;;  %v21285_v61 = vld [vmem:[#allocation16_spill] sm:$0xff] }
 0x408   : > { %v10908_v49 = vsel %vm15241_vm9, %v10903_v12, %v19924_v50  ;;  %v10941_v39 = vrot.slane %v10939_v51, 5  ;;  %v10960_v54 = vor.u32 %v10959_v23, %v19974_v29  ;;  %v10974_v57 = vor.u32 %v10973_v10, %v10970_v62  ;;  %v10715_v51 = vld [vmem:[#allocation3 + $0xa8] sm:$0xf]  ;;  %v21283_v62 = vld [vmem:[#allocation93_spill] sm:$0xff] }
 0x409   : > { %14634 = vmatmul.mubr.bf16.gmra.mxu1 %v12956_v33  ;;  %v10984_v7 = vor.u32 %v10983_v13, %v19978_v43  ;;  %v10992_v36 = vshrl.u32 %v10712_v38, 16  ;;  %v10995_v14 = vshll.u32 %v10712_v38, 16  ;;  %v7356_v0 = vadd.f32 %v21282_v26, %v21281_v44  ;;  %v20004_v13 = vpop.f32.mrf.mxu0  ;;  %v21284_v33 = vld [vmem:[#allocation94_spill] sm:$0xff] }
 0x40a   : > { %14637 = vmatprep.mubr.bf16.mxu1 %v12957_v27  ;;  %v12958_v42 = vcombine.low %v10908_v49, %v10918_v48  ;;  %v11001_v8 = vshll.u32 %v19562_v6, 16  ;;  %v11005_v50 = vshrl.u32 %v19562_v6, 16  ;;  %v10932_v12 = vsel %vm15241_vm9, %v10927_v18, %v19952_v63  ;;  %v14359_v63 = vpop.f32.mrf.mxu1  ;;  %v21286_v49 = vld [vmem:[#allocation23_spill] sm:$0xff] }
 0x40b   : > { %v10942_v24 = vsel %vm15241_vm9, %v10937_v40, %v10941_v39  ;;  %v10951_v60 = vrot.slane %v10950_v30, 4  ;;  %v10965_v52 = vrot.slane %v10963_v53, 5  ;;  %v10961_v23 = vrot.slane %v10960_v54, 4 }
 0x40c   : > { %v10987_v10 = vshll.u32 %v21283_v62, 16  ;;  %v11025_v27 = vshll.u32 %v21284_v33, 16  ;;  %v11029_v48 = vshrl.u32 %v21284_v33, 16  ;;  %v10975_v6 = vrot.slane %v10974_v57, 4 }
 0x40d   : > { %v10985_v38 = vrot.slane %v10984_v7, 4  ;;  %v10994_v21 = vrot.slane %v10992_v36, 4  ;;  %v10997_v37 = vrot.slane %v10995_v14, 5  ;;  %v20008_v18 = vrot.slane %v11001_v8, 5  ;;  %v20019_v36 = vpop.f32.mrf.mxu0 }
 0x40e   : > { %v11007_v40 = vrot.slane %v11005_v50, 4  ;;  %v11016_v30 = vshrl.u32 %v10715_v51, 16  ;;  %v11019_v53 = vshll.u32 %v10715_v51, 16  ;;  %v7367_v39 = vadd.f32 %v21286_v49, %v21285_v61  ;;  %21287 = vst [vmem:[#allocation18_spill] sm:$0xff] %v20019_v36  ;;  %v8077_v50 = vpop.f32.mrf.mxu1  ;;  %v10718_v51 = vld [vmem:[#allocation3 + $0xb4] sm:$0xf] }
 0x40f   : > { %v12959_v54 = vcombine.low %v10932_v12, %v10942_v24  ;;  %v10956_v44 = vsel %vm15241_vm9, %v10951_v60, %v19974_v29  ;;  %v20015_v26 = vadd.f32 %v14359_v63, %v7364_v41  ;;  %v10966_v57 = vsel %vm15241_vm9, %v10961_v23, %v10965_v52  ;;  %v21288_v41 = vld [vmem:[#allocation98_spill] sm:$0xff]  ;;  %v21291_v61 = vld [vmem:[#allocation104_spill] sm:$0xff] }
 0x410   : > { %v10989_v7 = vrot.slane %v10987_v10, 5  ;;  %v20021_v14 = vrot.slane %v11025_v27, 5  ;;  %v11031_v8 = vrot.slane %v11029_v48, 4  ;;  %v10980_v12 = vsel %vm15241_vm9, %v10975_v6, %v19978_v43  ;;  %v14360_v10 = vpop.f32.mrf.mxu1  ;;  %v21289_v48 = vld [vmem:[#allocation102_spill] sm:$0xff]  ;;  %v10721_v6 = vld [vmem:[#allocation3 + $0xc0] sm:$0xf] }
 0x411   : > { %14638 = vmatmul.mubr.bf16.gmra.mxu1 %v12958_v42  ;;  %v10998_v29 = vor.u32 %v10997_v37, %v10994_v21  ;;  %v11011_v24 = vshll.u32 %v21288_v41, 16  ;;  %v20027_v42 = vadd.f32 %v8077_v50, %v7356_v0  ;;  %v11008_v52 = vor.u32 %v11007_v40, %v20008_v18  ;;  %v20037_v0 = vpop.f32.mrf.mxu0 }
 0x412   : > { %14641 = vmatprep.mubr.bf16.mxu1 %v12959_v54  ;;  %v10990_v60 = vsel %vm15241_vm9, %v10985_v38, %v10989_v7  ;;  %v11018_v23 = vrot.slane %v11016_v30, 4  ;;  %v11021_v62 = vrot.slane %v11019_v53, 5  ;;  %v20032_v33 = vadd.f32 %v14360_v10, %v7367_v39  ;;  %21290 = vst [vmem:[#allocation61_spill] sm:$0xff] %v20037_v0  ;;  %v21292_v7 = vld [vmem:[#allocation99_spill] sm:$0xff] }
 0x413   : > { %v11040_v27 = vshrl.u32 %v10718_v51, 16  ;;  %v11049_v63 = vshll.u32 %v21289_v48, 16  ;;  %v11053_v43 = vshrl.u32 %v21289_v48, 16  ;;  %v11032_v21 = vor.u32 %v11031_v8, %v20021_v14  ;;  %v10724_v48 = vld [vmem:[#allocation3 + $0xcc] sm:$0xf]  ;;  %v20044_v22 = vpop.f32.mrf.mxu0 }
 0x414   : > { %v11043_v37 = vshll.u32 %v10718_v51, 16  ;;  %v11073_v38 = vshll.u32 %v21291_v61, 16  ;;  %v11077_v40 = vshrl.u32 %v21291_v61, 16  ;;  %v12960_v30 = vcombine.low %v10956_v44, %v10966_v57 }
 0x415   : > { %v12961_v53 = vcombine.low %v10980_v12, %v10990_v60  ;;  %v10999_v49 = vrot.slane %v10998_v29, 4  ;;  %v11013_v39 = vrot.slane %v11011_v24, 5  ;;  %v11022_v54 = vor.u32 %v11021_v62, %v11018_v23 }
 0x416   : > { %v11035_v50 = vshll.u32 %v21292_v7, 16  ;;  %v11064_v41 = vshrl.u32 %v10721_v6, 16  ;;  %v11067_v10 = vshll.u32 %v10721_v6, 16  ;;  %v11009_v36 = vrot.slane %v11008_v52, 4 }
 0x417   : > { %v11042_v56 = vrot.slane %v11040_v27, 4  ;;  %v20042_v8 = vrot.slane %v11049_v63, 5  ;;  %v11055_v0 = vrot.slane %v11053_v43, 4  ;;  %v11033_v51 = vrot.slane %v11032_v21, 4 }
 0x418   : > { %v11045_v61 = vrot.slane %v11043_v37, 5  ;;  %v11075_v44 = vrot.slane %v11073_v38, 5  ;;  %v11079_v57 = vrot.slane %v11077_v40, 4  ;;  %v11088_v12 = vshrl.u32 %v10724_v48, 16  ;;  %v20056_v37 = vpop.f32.mrf.mxu1  ;;  %v20058_v38 = vpop.f32.mrf.mxu0  ;;  %v21293_v40 = vld [vmem:[#allocation103_spill] sm:$0xff] }
 0x419   : > { %14642 = vmatmul.mubr.bf16.gmra.mxu1 %v12960_v30  ;;  %v11091_v29 = vshll.u32 %v10724_v48, 16  ;;  %v11097_v24 = vshll.u32 %v19881_v3, 16  ;;  %v11101_v60 = vshrl.u32 %v19881_v3, 16  ;;  %v11023_v23 = vrot.slane %v11022_v54, 4  ;;  %v21296_v48 = vld [vmem:[#allocation67_spill] sm:$0xff] }
 0x41a   : > { %14645 = vmatprep.mubr.bf16.mxu1 %v12961_v53  ;;  %v11037_v52 = vrot.slane %v11035_v50, 5  ;;  %v11066_v62 = vrot.slane %v11064_v41, 4  ;;  %v11069_v27 = vrot.slane %v11067_v10, 5  ;;  %v11004_v63 = vsel %vm15241_vm9, %v10999_v49, %v20008_v18  ;;  %v21295_v10 = vld [vmem:[#allocation14_spill] sm:$0xff] }
 0x41b   : > { %v11014_v43 = vsel %vm15241_vm9, %v11009_v36, %v11013_v39  ;;  %v11056_v6 = vor.u32 %v11055_v0, %v20042_v8  ;;  %v11046_v3 = vor.u32 %v11045_v61, %v11042_v56  ;;  %v11059_v30 = vshll.u32 %v21293_v40, 16  ;;  %v21294_v39 = vld [vmem:[#allocation17_spill] sm:$0xff]  ;;  %v21297_v61 = vld [vmem:[#allocation32_spill] sm:$0xff] }
 0x41c   : > { %v11038_v21 = vsel %vm15241_vm9, %v11033_v51, %v11037_v52  ;;  %v11080_v53 = vor.u32 %v11079_v57, %v11075_v44  ;;  %v11090_v54 = vrot.slane %v11088_v12, 4  ;;  %v11093_v7 = vrot.slane %v11091_v29, 5  ;;  %v21298_v40 = vld [vmem:[#allocation12_spill] sm:$0xff]  ;;  %v14363_v12 = vpop.f32.mrf.mxu1 }
 0x41d   : > { %v11099_v50 = vrot.slane %v11097_v24, 5  ;;  %v11103_v18 = vrot.slane %v11101_v60, 4  ;;  %v12962_v49 = vcombine.low %v11004_v63, %v11014_v43  ;;  %v11028_v36 = vsel %vm15241_vm9, %v11023_v23, %v20021_v14  ;;  %v20069_v60 = vpop.f32.mrf.mxu0 }
 0x41e   : > { %v11070_v0 = vor.u32 %v11069_v27, %v11066_v62  ;;  %v11083_v41 = vshll.u32 %v21294_v39, 16  ;;  %v7380_v51 = vadd.f32 %v21296_v48, %v21295_v10  ;;  %v12963_v52 = vcombine.low %v11028_v36, %v11038_v21  ;;  %21299 = vst [vmem:[#allocation9_spill] sm:$0xff] %v20069_v60  ;;  %v21300_v36 = vld [vmem:[#allocation35_spill] sm:$0xff] }
 0x41f   : > { %v11057_v56 = vrot.slane %v11056_v6, 4  ;;  %v7372_v57 = vadd.f32 %v21298_v40, %v21297_v61  ;;  %v11047_v29 = vrot.slane %v11046_v3, 4  ;;  %v11061_v24 = vrot.slane %v11059_v30, 5  ;;  %v8093_v6 = vpop.f32.mrf.mxu1  ;;  %v21301_v39 = vld [vmem:[#allocation51_spill] sm:$0xff] }
 0x420   : > { %v11081_v63 = vrot.slane %v11080_v53, 4  ;;  %v20071_v14 = vadd.f32 %v14363_v12, %v7380_v51  ;;  %v11094_v23 = vor.u32 %v11093_v7, %v11090_v54  ;;  %v11104_v62 = vor.u32 %v11103_v18, %v11099_v50  ;;  %v20085_v7 = vpop.f32.mrf.mxu0 }
 0x421   : > { %14646 = vmatmul.mubr.bf16.gmra.mxu1 %v12962_v49  ;;  %v11107_v27 = vshll.u32 %v19908_v9, 16  ;;  %v11071_v43 = vrot.slane %v11070_v0, 4  ;;  %v11085_v21 = vrot.slane %v11083_v41, 5  ;;  %v7383_v10 = vadd.f32 %v21301_v39, %v21300_v36  ;;  %21302 = vst [vmem:[#allocation5_spill] sm:$0xff] %v20085_v7  ;;  %v14364_v9 = vpop.f32.mrf.mxu1  ;;  %v21309_v36 = vld [vmem:[#allocation30_spill] sm:$0xff]  ;;  %v21324_v7 = vld [vmem:[#allocation37_spill] sm:$0xff] }
 0x422   : > { %14649 = vmatprep.mubr.bf16.mxu1 %v12963_v52  ;;  %v11062_v3 = vsel %vm15241_vm9, %v11057_v56, %v11061_v24  ;;  %v20078_v30 = vadd.f32 %v8093_v6, %v7372_v57  ;;  %v11052_v53 = vsel %vm15241_vm9, %v11047_v29, %v20042_v8  ;;  %v11095_v49 = vrot.slane %v11094_v23, 4  ;;  %v20091_v56 = vpop.f32.mrf.mxu0  ;;  %v21304_v24 = vld [vmem:[#allocation49_spill] sm:$0xff]  ;;  %v21308_v6 = vld [vmem:[#allocation79_spill] sm:$0xff] }
 0x423   : > { %v11086_v54 = vsel %vm15241_vm9, %v11081_v63, %v11085_v21  ;;  %v20087_v18 = vadd.f32 %v14364_v9, %v7383_v10  ;;  %v11105_v0 = vrot.slane %v11104_v62, 4  ;;  %v11109_v41 = vrot.slane %v11107_v27, 5  ;;  %v20099_v57 = vpop.f32.mrf.mxu1  ;;  %v21306_v62 = vld [vmem:[#allocation76_spill] sm:$0xff] }
 0x424   : > { %v12964_v48 = vcombine.low %v11052_v53, %v11062_v3  ;;  %v11076_v51 = vsel %vm15241_vm9, %v11071_v43, %v11075_v44  ;;  %v11100_v8 = vsel %vm15241_vm9, %v11095_v49, %v11099_v50  ;;  %v20097_v40 = vpop.f32.mrf.mxu0  ;;  %v21305_v44 = vld [vmem:[#allocation70_spill] sm:$0xff]  ;;  %v21307_v27 = vld [vmem:[#allocation52_spill] sm:$0xff]  ;;  %v7399_v39 = vadd.f32 %v21309_v36, %v21308_v6 }
 0x425   : > { %v12965_v52 = vcombine.low %v11076_v51, %v11086_v54  ;;  %v11110_v61 = vsel %vm15241_vm9, %v11105_v0, %v11109_v41  ;;  %v7396_v63 = vadd.f32 %v21305_v44, %v21304_v24  ;;  %v7388_v43 = vadd.f32 %v21307_v27, %v21306_v62  ;;  %v21310_v0 = vld [vmem:[#allocation84_spill] sm:$0xff]  ;;  %v21311_v41 = vld [vmem:[#allocation39_spill] sm:$0xff] }
 0x426   : > { %v12966_v12 = vcombine.low %v11100_v8, %v11110_v61  ;;  %v20101_v29 = vpop.f32.mrf.mxu0  ;;  %v21312_v61 = vld [vmem:[#allocation87_spill] sm:$0xff]  ;;  %v21314_v62 = vld [vmem:[#allocation88_spill] sm:$0xff] }
 0x427   : > { %21303 = vst [vmem:[#allocation75_spill] sm:$0xff] %v20101_v29  ;;  %v21315_v27 = vld [vmem:[#allocation43_spill] sm:$0xff]  ;;  %v21323_v29 = vld [vmem:[#allocation74_spill] sm:$0xff] }
 0x428   : > { %v20109_v50 = vpop.f32.mrf.mxu0  ;;  %v8629_v60 = vadd.f32 %v21324_v7, %v21323_v29  ;;  %v8630_v7 = vadd.f32 %v21329_v58, %v19787_v17  ;;  %v21336_v17 = vld [vmem:[#allocation25_spill] sm:$0xff] }
 0x429   : > { %14650 = vmatmul.mubr.bf16.gmra.mxu1 %v12964_v48  ;;  %v8624_v48 = vadd.f32 %v21311_v41, %v21310_v0  ;;  %v21317_v0 = vld [vmem:[#allocation64_spill] sm:$0xff]  ;;  %v21318_v41 = vld [vmem:[#allocation13_spill] sm:$0xff]  ;;  %v8636_v58 = vadd.f32 %v21336_v17, %v19875_v19 }
 0x42a   : > { %14653 = vmatprep.mubr.bf16.mxu1 %v12965_v52  ;;  %v14367_v23 = vpop.f32.mrf.mxu1 }
 0x42b   : > { %v20107_v21 = vadd.f32 %v14367_v23, %v7396_v63 }
 0x42c   : > { %v8109_v11 = vpop.f32.mrf.mxu1 }
 0x42d   : > { %v20113_v10 = vadd.f32 %v8109_v11, %v7388_v43  ;;  %v20117_v54 = vpop.f32.mrf.mxu0  ;;  %v8625_v43 = vadd.f32 %v21315_v27, %v21314_v62 }
 0x42e   : > { %v14368_v3 = vpop.f32.mrf.mxu1 }
 0x42f   : > { %v20115_v53 = vadd.f32 %v14368_v3, %v7399_v39  ;;  %v20121_v49 = vpop.f32.mrf.mxu0 }
 0x430   : > { %v20119_v9 = vpop.f32.mrf.mxu1 }
 0x431   : > { %14654 = vmatmul.mubr.bf16.gmra.mxu1 %v12966_v12  ;;  %v20127_v8 = vpop.f32.mrf.mxu0  ;;  %v21313_v12 = vld [vmem:[#allocation72_spill] sm:$0xff] }
 0x432   : > { %v14435_v51 = vpop.f32.mrf.mxu1  ;;  %v8622_v24 = vadd.f32 %v21313_v12, %v21312_v61 }
 0x433   : > { %v20125_v52 = vadd.f32 %v14435_v51, %v8624_v48  ;;  %v20133_v23 = vpop.f32.mrf.mxu0  ;;  %v8628_v48 = vadd.f32 %v21318_v41, %v21317_v0 }
 0x434   : > { %v8881_v44 = vpop.f32.mrf.mxu1 }
 0x435   : > { %v20131_v63 = vadd.f32 %v8881_v44, %v8622_v24  ;;  %v20139_v36 = vpop.f32.mrf.mxu0  ;;  %v21320_v24 = vld [vmem:[#allocation73_spill] sm:$0xff]  ;;  %v21321_v44 = vld [vmem:[#allocation15_spill] sm:$0xff] }
 0x436   : > { %v14436_v11 = vpop.f32.mrf.mxu1  ;;  %v8626_v62 = vadd.f32 %v21321_v44, %v21320_v24 }
 0x437   : > { %v20137_v6 = vadd.f32 %v14436_v11, %v8625_v43  ;;  %v20143_v3 = vpop.f32.mrf.mxu0 }
 0x438   : > { %v20141_v39 = vpop.f32.mrf.mxu1 }
 0x439   : > { %21316 = vst [vmem:[#allocation92_spill] sm:$0xff] %v20137_v6  ;;  %v20149_v12 = vpop.f32.mrf.mxu0 }
 0x43a   : > { %v14439_v51 = vpop.f32.mrf.mxu1  ;;  %21319 = vst [vmem:[#allocation96_spill] sm:$0xff] %v20149_v12 }
 0x43b   : > { %v20147_v61 = vadd.f32 %v14439_v51, %v8628_v48  ;;  %v20155_v11 = vpop.f32.mrf.mxu0  ;;  %v21327_v51 = vld [vmem:[#allocation45_spill] sm:$0xff] }
 0x43c   : > { %v8897_v27 = vpop.f32.mrf.mxu1  ;;  %21322 = vst [vmem:[#allocation85_spill] sm:$0xff] %v20155_v11  ;;  %v8632_v24 = vadd.f32 %v21327_v51, %v19779_v28  ;;  %v21331_v11 = vld [vmem:[#allocation58_spill] sm:$0xff] }
 0x43d   : > { %v20153_v43 = vadd.f32 %v8897_v27, %v8626_v62  ;;  %v20161_v0 = vpop.f32.mrf.mxu0  ;;  %v8633_v20 = vadd.f32 %v21331_v11, %v19806_v5 }
 0x43e   : > { %v14440_v1 = vpop.f32.mrf.mxu1 }
 0x43f   : > { %v20159_v46 = vadd.f32 %v14440_v1, %v8629_v60  ;;  %v20165_v48 = vpop.f32.mrf.mxu0 }
 0x440   : > { %v20163_v41 = vpop.f32.mrf.mxu1 }
 0x441   : > { %21325 = vst [vmem:[#allocation90_spill] sm:$0xff] %v20159_v46  ;;  %21326 = vst [vmem:[#allocation50_spill] sm:$0xff] %v20163_v41  ;;  %v20171_v27 = vpop.f32.mrf.mxu0 }
 0x442   : > { %v14443_v44 = vpop.f32.mrf.mxu1  ;;  %21328 = vst [vmem:[#allocation54_spill] sm:$0xff] %v20171_v27 }
 0x443   : > { %v20169_v62 = vadd.f32 %v14443_v44, %v8632_v24  ;;  %v20177_v60 = vpop.f32.mrf.mxu0  ;;  %v21334_v24 = vld [vmem:[#allocation11_spill] sm:$0xff]  ;;  %v21335_v44 = vld [vmem:[#allocation68_spill] sm:$0xff] }
 0x444   : > { %v8913_v29 = vpop.f32.mrf.mxu1  ;;  %21330 = vst [vmem:[#allocation4_spill] sm:$0xff] %v20177_v60  ;;  %v7327_v27 = vadd.f32 %v21335_v44, %v21334_v24  ;;  %v21340_v24 = vld [vmem:[#allocation24_spill] sm:$0xff] }
 0x445   : > { %v20175_v1 = vadd.f32 %v8913_v29, %v8630_v7  ;;  %v20183_v28 = vpop.f32.mrf.mxu0  ;;  %v8637_v44 = vadd.f32 %v21340_v24, %v19893_v32 }
 0x446   : > { %v14444_v46 = vpop.f32.mrf.mxu1  ;;  %v8137_v29 = vadd.f32 %v19929_v59, %v7327_v27  ;;  %v21342_v59 = vld [vmem:[#allocation26_spill] sm:$0xff] }
 0x447   : > { %v20181_v15 = vadd.f32 %v14444_v46, %v8633_v20  ;;  %v20189_v12 = vpop.f32.mrf.mxu0  ;;  %v21338_v20 = vld [vmem:[#allocation28_spill] sm:$0xff] }
 0x448   : > { %v20185_v51 = vpop.f32.mrf.mxu1  ;;  %v8634_v46 = vadd.f32 %v21338_v20, %v19886_v31  ;;  %v8635_v27 = vadd.f32 %v21342_v59, %v8137_v29  ;;  %v21348_v29 = vld [vmem:[#allocation38_spill] sm:$0xff] }
 0x449   : > { %21332 = vst [vmem:[#allocation71_spill] sm:$0xff] %v20181_v15  ;;  %21333 = vst [vmem:[#allocation93_spill] sm:$0xff] %v20185_v51  ;;  %v20196_v5 = vpop.f32.mrf.mxu0 }
 0x44a   : > { %v14447_v7 = vpop.f32.mrf.mxu1  ;;  %21337 = vst [vmem:[#allocation94_spill] sm:$0xff] %v20196_v5  ;;  %v21344_v5 = vld [vmem:[#allocation55_spill] sm:$0xff] }
 0x44b   : > { %v20194_v60 = vadd.f32 %v14447_v7, %v8636_v58  ;;  %v20202_v51 = vpop.f32.mrf.mxu0  ;;  %v21343_v7 = vld [vmem:[#allocation65_spill] sm:$0xff] }
 0x44c   : > { %v8929_v11 = vpop.f32.mrf.mxu1  ;;  %21339 = vst [vmem:[#allocation16_spill] sm:$0xff] %v20202_v51  ;;  %v7343_v6 = vadd.f32 %v21344_v5, %v21343_v7 }
 0x44d   : > { %v20200_v15 = vadd.f32 %v8929_v11, %v8634_v46  ;;  %v20208_v17 = vpop.f32.mrf.mxu0  ;;  %v21346_v46 = vld [vmem:[#allocation27_spill] sm:$0xff] }
 0x44e   : > { %v14448_v41 = vpop.f32.mrf.mxu1  ;;  %v8640_v11 = vadd.f32 %v21346_v46, %v19955_v25  ;;  %v8141_v32 = vadd.f32 %v19994_v55, %v7343_v6  ;;  %v21352_v55 = vld [vmem:[#allocation8_spill] sm:$0xff] }
 0x44f   : > { %v20206_v19 = vadd.f32 %v14448_v41, %v8637_v44  ;;  %v20215_v20 = vpop.f32.mrf.mxu0  ;;  %v8638_v44 = vadd.f32 %v21348_v29, %v19965_v2 }
 0x450   : > { %v8932_v58 = vpop.f32.mrf.mxu1  ;;  %v8639_v6 = vadd.f32 %v21352_v55, %v8141_v32  ;;  %v21358_v32 = vld [vmem:[#allocation19_spill] sm:$0xff] }
 0x451   : > { %21341 = vst [vmem:[#allocation23_spill] sm:$0xff] %v20206_v19  ;;  %v20213_v31 = vadd.f32 %v8932_v58, %v8635_v27  ;;  %v20222_v24 = vpop.f32.mrf.mxu0  ;;  %v21350_v27 = vld [vmem:[#allocation40_spill] sm:$0xff] }
 0x452   : > { %v14451_v51 = vpop.f32.mrf.mxu1  ;;  %21347 = vst [vmem:[#allocation102_spill] sm:$0xff] %v20222_v24  ;;  %v8641_v58 = vadd.f32 %v21350_v27, %v19971_v4  ;;  %v21354_v24 = vld [vmem:[#allocation36_spill] sm:$0xff] }
 0x453   : > { %21345 = vst [vmem:[#allocation98_spill] sm:$0xff] %v20213_v31  ;;  %v20220_v41 = vadd.f32 %v14451_v51, %v8640_v11  ;;  %v20228_v5 = vpop.f32.mrf.mxu0  ;;  %v21353_v11 = vld [vmem:[#allocation22_spill] sm:$0xff] }
 0x454   : > { %v8945_v59 = vpop.f32.mrf.mxu1  ;;  %21349 = vst [vmem:[#allocation104_spill] sm:$0xff] %v20228_v5  ;;  %v7359_v31 = vadd.f32 %v21354_v24, %v21353_v11 }
 0x455   : > { %v20226_v19 = vadd.f32 %v8945_v59, %v8638_v44  ;;  %v20234_v46 = vpop.f32.mrf.mxu0  ;;  %v21356_v44 = vld [vmem:[#allocation59_spill] sm:$0xff] }
 0x456   : > { %v14452_v7 = vpop.f32.mrf.mxu1  ;;  %v8644_v59 = vadd.f32 %v21356_v44, %v20015_v26  ;;  %v8145_v4 = vadd.f32 %v20056_v37, %v7359_v31  ;;  %v21362_v37 = vld [vmem:[#allocation10_spill] sm:$0xff] }
 0x457   : > { %v20232_v25 = vadd.f32 %v14452_v7, %v8641_v58  ;;  %v20241_v29 = vpop.f32.mrf.mxu0  ;;  %v8642_v7 = vadd.f32 %v21358_v32, %v20027_v42 }
 0x458   : > { %v8948_v51 = vpop.f32.mrf.mxu1  ;;  %v8643_v31 = vadd.f32 %v21362_v37, %v8145_v4  ;;  %v21368_v4 = vld [vmem:[#allocation78_spill] sm:$0xff] }
 0x459   : > { %21351 = vst [vmem:[#allocation99_spill] sm:$0xff] %v20232_v25  ;;  %v20239_v2 = vadd.f32 %v8948_v51, %v8639_v6  ;;  %v20248_v58 = vpop.f32.mrf.mxu0  ;;  %v21360_v6 = vld [vmem:[#allocation63_spill] sm:$0xff] }
 0x45a   : > { %v14455_v5 = vpop.f32.mrf.mxu1  ;;  %21357 = vst [vmem:[#allocation17_spill] sm:$0xff] %v20248_v58  ;;  %v8645_v51 = vadd.f32 %v21360_v6, %v20032_v33  ;;  %v21364_v58 = vld [vmem:[#allocation56_spill] sm:$0xff] }
 0x45b   : > { %21355 = vst [vmem:[#allocation103_spill] sm:$0xff] %v20239_v2  ;;  %v20246_v27 = vadd.f32 %v14455_v5, %v8644_v59  ;;  %v20254_v24 = vpop.f32.mrf.mxu0  ;;  %v21363_v59 = vld [vmem:[#allocation66_spill] sm:$0xff] }
 0x45c   : > { %v8961_v55 = vpop.f32.mrf.mxu1  ;;  %21359 = vst [vmem:[#allocation14_spill] sm:$0xff] %v20254_v24  ;;  %v7375_v2 = vadd.f32 %v21364_v58, %v21363_v59 }
 0x45d   : > { %v20252_v25 = vadd.f32 %v8961_v55, %v8642_v7  ;;  %v20260_v44 = vpop.f32.mrf.mxu0  ;;  %v21366_v7 = vld [vmem:[#allocation77_spill] sm:$0xff] }
 0x45e   : > { %v14456_v11 = vpop.f32.mrf.mxu1  ;;  %v8648_v55 = vadd.f32 %v21366_v7, %v20071_v14  ;;  %v8149_v33 = vadd.f32 %v20099_v57, %v7375_v2  ;;  %v21372_v57 = vld [vmem:[#allocation81_spill] sm:$0xff] }
 0x45f   : > { %v20258_v26 = vadd.f32 %v14456_v11, %v8645_v51  ;;  %v20267_v32 = vpop.f32.mrf.mxu0  ;;  %v8646_v11 = vadd.f32 %v21368_v4, %v20078_v30 }
 0x460   : > { %v8964_v5 = vpop.f32.mrf.mxu1  ;;  %v8647_v2 = vadd.f32 %v21372_v57, %v8149_v33 }
 0x461   : > { %21361 = vst [vmem:[#allocation67_spill] sm:$0xff] %v20258_v26  ;;  %v20265_v42 = vadd.f32 %v8964_v5, %v8643_v31  ;;  %v20274_v51 = vpop.f32.mrf.mxu0  ;;  %v21370_v31 = vld [vmem:[#allocation80_spill] sm:$0xff] }
 0x462   : > { %v14459_v24 = vpop.f32.mrf.mxu1  ;;  %21367 = vst [vmem:[#allocation12_spill] sm:$0xff] %v20274_v51  ;;  %v8649_v5 = vadd.f32 %v21370_v31, %v20087_v18  ;;  %v21374_v51 = vld [vmem:[#allocation31_spill] sm:$0xff] }
 0x463   : > { %21365 = vst [vmem:[#allocation32_spill] sm:$0xff] %v20265_v42  ;;  %v20272_v6 = vadd.f32 %v14459_v24, %v8648_v55  ;;  %v20280_v58 = vpop.f32.mrf.mxu0  ;;  %v21373_v55 = vld [vmem:[#allocation82_spill] sm:$0xff] }
 0x464   : > { %v8977_v37 = vpop.f32.mrf.mxu1  ;;  %21369 = vst [vmem:[#allocation35_spill] sm:$0xff] %v20280_v58  ;;  %v7391_v42 = vadd.f32 %v21374_v51, %v21373_v55 }
 0x465   : > { %v20278_v26 = vadd.f32 %v8977_v37, %v8646_v11  ;;  %v20286_v7 = vpop.f32.mrf.mxu0  ;;  %v21375_v11 = vld [vmem:[#allocation83_spill] sm:$0xff] }
 0x466   : > { %v14460_v59 = vpop.f32.mrf.mxu1  ;;  %v8652_v37 = vadd.f32 %v21375_v11, %v20107_v21  ;;  %v8153_v18 = vadd.f32 %v20119_v9, %v7391_v42  ;;  %v21380_v11 = vld [vmem:[#allocation91_spill] sm:$0xff] }
 0x467   : > { %v20284_v14 = vadd.f32 %v14460_v59, %v8649_v5  ;;  %v20291_v4 = vpop.f32.mrf.mxu0  ;;  %v21377_v59 = vld [vmem:[#allocation86_spill] sm:$0xff] }
 0x468   : > { %v8980_v24 = vpop.f32.mrf.mxu1 }
 0x469   : > { %21371 = vst [vmem:[#allocation51_spill] sm:$0xff] %v20284_v14  ;;  %v9033_v30 = vadd.f32 %v8980_v24, %v8647_v2  ;;  %v20296_v5 = vpop.f32.mrf.mxu0  ;;  %v8650_v14 = vadd.f32 %v21377_v59, %v20113_v10  ;;  %v21379_v24 = vld [vmem:[#allocation89_spill] sm:$0xff] }
 0x46a   : > { %v14463_v58 = vpop.f32.mrf.mxu1  ;;  %21376 = vst [vmem:[#allocation49_spill] sm:$0xff] %v20296_v5  ;;  %v8653_v55 = vadd.f32 %v21379_v24, %v20115_v53  ;;  %v21381_v59 = vld [vmem:[#allocation97_spill] sm:$0xff] }
 0x46b   : > { %v9038_v31 = vadd.f32 %v14463_v58, %v8652_v37  ;;  %v20301_v33 = vadd.f32 %v20109_v50, %v9033_v30  ;;  %v20303_v2 = vpop.f32.mrf.mxu0  ;;  %v8651_v37 = vadd.f32 %v21380_v11, %v8153_v18 }
 0x46c   : > { %v8993_v57 = vpop.f32.mrf.mxu1  ;;  %21378 = vst [vmem:[#allocation70_spill] sm:$0xff] %v20303_v2 }
 0x46d   : > { %v9036_v51 = vadd.f32 %v8993_v57, %v8650_v14  ;;  %v20308_v21 = vadd.f32 %v20117_v54, %v9038_v31  ;;  %v20310_v58 = vpop.f32.mrf.mxu0  ;;  %v9764_v57 = vadd.f32 %v21381_v59, %v20125_v52 }
 0x46e   : > { %v14464_v9 = vpop.f32.mrf.mxu1 }
 0x46f   : > { %v9039_v42 = vadd.f32 %v14464_v9, %v8653_v55  ;;  %v20314_v10 = vadd.f32 %v20121_v49, %v9036_v51  ;;  %v20316_v14 = vpop.f32.mrf.mxu0  ;;  %v21384_v55 = vld [vmem:[#allocation100_spill] sm:$0xff] }
 0x470   : > { %v8996_v50 = vpop.f32.mrf.mxu1  ;;  %v9762_v18 = vadd.f32 %v21384_v55, %v20131_v63  ;;  %v21387_v63 = vld [vmem:[#allocation105_spill] sm:$0xff] }
 0x471   : > { %v9037_v30 = vadd.f32 %v8996_v50, %v8651_v37  ;;  %v20321_v53 = vadd.f32 %v20127_v8, %v9039_v42  ;;  %v20323_v24 = vpop.f32.mrf.mxu0 }
 0x472   : > { %21383 = vst [vmem:[#allocation52_spill] sm:$0xff] %v20323_v24  ;;  %v21392_v24 = vld [vmem:[#allocation95_spill] sm:$0xff] }
 0x473   : > { %21382 = vst [vmem:[#allocation76_spill] sm:$0xff] %v20321_v53  ;;  %v14531_v54 = vpop.f32.mrf.mxu1  ;;  %v20328_v49 = vadd.f32 %v20133_v23, %v9037_v30  ;;  %v20330_v11 = vpop.f32.mrf.mxu0  ;;  %v9768_v23 = vadd.f32 %v21387_v63, %v20147_v61  ;;  %v9772_v63 = vadd.f32 %v19849_v34, %v20169_v62  ;;  %v9776_v62 = vadd.f32 %v19922_v45, %v20194_v60 }
 0x474   : > { %v10262_v31 = vadd.f32 %v14531_v54, %v9764_v57  ;;  %21386 = vst [vmem:[#allocation30_spill] sm:$0xff] %v20330_v11  ;;  %v21388_v57 = vld [vmem:[#allocation107_spill] sm:$0xff]  ;;  %v9780_v60 = vadd.f32 %v19989_v16, %v20220_v41  ;;  %v9784_v41 = vadd.f32 %v20044_v22, %v20246_v27  ;;  %v9788_v27 = vadd.f32 %v20091_v56, %v20272_v6 }
 0x475   : > { %21385 = vst [vmem:[#allocation79_spill] sm:$0xff] %v20328_v49  ;;  %v10133_v51 = vpop.f32.mrf.mxu1  ;;  %v9766_v54 = vadd.f32 %v21388_v57, %v20153_v43 }
 0x476   : > { %v10260_v9 = vadd.f32 %v10133_v51, %v9762_v18  ;;  %v20333_v37 = vadd.f32 %v20139_v36, %v10262_v31 }
 0x477   : > { %v20335_v52 = vpop.f32.mrf.mxu1 }
 0x478   : > { %v20338_v8 = vadd.f32 %v20143_v3, %v10260_v9  ;;  %v20340_v42 = vpop.f32.mrf.mxu0 }
 0x479   : > { %v20342_v50 = vpop.f32.mrf.mxu1 }
 0x47a   : > { %v20348_v55 = vpop.f32.mrf.mxu0 }
 0x47c   : > { %v20358_v9 = vpop.f32.mrf.mxu0 }
 0x47d   : > { %v14535_v30 = vpop.f32.mrf.mxu1 }
 0x47e   : > { %v10266_v59 = vadd.f32 %v14535_v30, %v9768_v23  ;;  %v9770_v30 = vadd.f32 %v19866_v35, %v20175_v1  ;;  %v20366_v57 = vpop.f32.mrf.mxu0 }
 0x47f   : > { %v10149_v36 = vpop.f32.mrf.mxu1 }
 0x480   : > { %v10264_v31 = vadd.f32 %v10149_v36, %v9766_v54  ;;  %v20351_v18 = vadd.f32 %v20161_v0, %v10266_v59 }
 0x481   : > { %v20353_v3 = vpop.f32.mrf.mxu1 }
 0x482   : > { %v20356_v51 = vadd.f32 %v20165_v48, %v10264_v31  ;;  %v20376_v31 = vpop.f32.mrf.mxu0 }
 0x483   : > { %v20360_v61 = vpop.f32.mrf.mxu1 }
 0x485   : > { %v14539_v43 = vpop.f32.mrf.mxu1 }
 0x486   : > { %v10270_v23 = vadd.f32 %v14539_v43, %v9772_v63  ;;  %v9774_v63 = vadd.f32 %v19942_v47, %v20200_v15  ;;  %v20384_v43 = vpop.f32.mrf.mxu0 }
 0x487   : > { %v10165_v0 = vpop.f32.mrf.mxu1 }
 0x488   : > { %v10268_v59 = vadd.f32 %v10165_v0, %v9770_v30  ;;  %v20369_v54 = vadd.f32 %v20183_v28, %v10270_v23 }
 0x489   : > { %v20371_v48 = vpop.f32.mrf.mxu1 }
 0x48a   : > { %v20374_v36 = vadd.f32 %v20189_v12, %v10268_v59  ;;  %v20394_v59 = vpop.f32.mrf.mxu0 }
 0x48b   : > { %v20378_v34 = vpop.f32.mrf.mxu1 }
 0x48e   : > { %v14543_v35 = vpop.f32.mrf.mxu1 }
 0x48f   : > { %v10274_v1 = vadd.f32 %v14543_v35, %v9776_v62  ;;  %v9778_v62 = vadd.f32 %v20004_v13, %v20226_v19  ;;  %v20402_v35 = vpop.f32.mrf.mxu0 }
 0x490   : > { %v10181_v28 = vpop.f32.mrf.mxu1 }
 0x491   : > { %v10272_v23 = vadd.f32 %v10181_v28, %v9774_v63  ;;  %v20387_v30 = vadd.f32 %v20208_v17, %v10274_v1 }
 0x492   : > { %v20389_v12 = vpop.f32.mrf.mxu1 }
 0x493   : > { %v20392_v0 = vadd.f32 %v20215_v20, %v10272_v23  ;;  %v20412_v23 = vpop.f32.mrf.mxu0 }
 0x494   : > { %v20396_v45 = vpop.f32.mrf.mxu1 }
 0x496   : > { %v14547_v15 = vpop.f32.mrf.mxu1 }
 0x497   : > { %v10278_v47 = vadd.f32 %v14547_v15, %v9780_v60  ;;  %v9782_v60 = vadd.f32 %v20058_v38, %v20252_v25  ;;  %v20420_v15 = vpop.f32.mrf.mxu0 }
 0x498   : > { %v10197_v17 = vpop.f32.mrf.mxu1 }
 0x499   : > { %v10276_v1 = vadd.f32 %v10197_v17, %v9778_v62  ;;  %v20405_v63 = vadd.f32 %v20234_v46, %v10278_v47 }
 0x49a   : > { %v20407_v20 = vpop.f32.mrf.mxu1 }
 0x49b   : > { %v20410_v28 = vadd.f32 %v20241_v29, %v10276_v1  ;;  %v20430_v1 = vpop.f32.mrf.mxu0 }
 0x49c   : > { %v20414_v16 = vpop.f32.mrf.mxu1 }
 0x4a0   : > { %v14551_v13 = vpop.f32.mrf.mxu1 }
 0x4a1   : > { %v10282_v19 = vadd.f32 %v14551_v13, %v9784_v41  ;;  %v9786_v41 = vadd.f32 %v20097_v40, %v20278_v26  ;;  %v20438_v13 = vpop.f32.mrf.mxu0 }
 0x4a2   : > { %v10213_v46 = vpop.f32.mrf.mxu1 }
 0x4a3   : > { %v10280_v47 = vadd.f32 %v10213_v46, %v9782_v60  ;;  %v20423_v62 = vadd.f32 %v20260_v44, %v10282_v19  ;;  %v21389_v19 = vld [vmem:[#allocation47_spill] sm:$0xff]  ;;  %v21390_v60 = vld [vmem:[#allocation53_spill] sm:$0xff]  ;;  %v20451_v6 = vpop.f32.mrf.mxu0 }
 0x4a4   : > { %v20425_v29 = vpop.f32.mrf.mxu1  ;;  %v7279_v46 = vadd.f32 %v21390_v60, %v21389_v19 }
 0x4a5   : > { %v20428_v17 = vadd.f32 %v20267_v32, %v10280_v47 }
 0x4a6   : > { %v20432_v22 = vpop.f32.mrf.mxu1  ;;  %v8125_v49 = vadd.f32 %v21392_v24, %v7279_v46 }
 0x4a9   : > { %v14555_v38 = vpop.f32.mrf.mxu1 }
 0x4aa   : > { %v10286_v25 = vadd.f32 %v14555_v38, %v9788_v27  ;;  %v21394_v27 = vld [vmem:[#allocation48_spill] sm:$0xff] }
 0x4ab   : > { %v10229_v44 = vpop.f32.mrf.mxu1  ;;  %v8623_v38 = vadd.f32 %v21394_v27, %v8125_v49  ;;  %v21400_v49 = vld [vmem:[#allocation92_spill] sm:$0xff]  ;;  %v21401_v27 = vld [vmem:[#allocation101_spill] sm:$0xff] }
 0x4ac   : > { %v10284_v32 = vadd.f32 %v10229_v44, %v9786_v41  ;;  %v20443_v47 = vadd.f32 %v20286_v7, %v10286_v25  ;;  %v21395_v41 = vld [vmem:[#allocation57_spill] sm:$0xff]  ;;  %v21396_v44 = vld [vmem:[#allocation34_spill] sm:$0xff]  ;;  %v20459_v25 = vpop.f32.mrf.mxu0 }
 0x4ad   : > { %v20445_v11 = vpop.f32.mrf.mxu1  ;;  %v7295_v7 = vadd.f32 %v21396_v44, %v21395_v41  ;;  %v9009_v24 = vadd.f32 %v20141_v39, %v8623_v38 }
 0x4ae   : > { %21391 = vst [vmem:[#allocation84_spill] sm:$0xff] %v20443_v47  ;;  %v20449_v56 = vadd.f32 %v20291_v4, %v10284_v32  ;;  %v21398_v32 = vld [vmem:[#allocation106_spill] sm:$0xff]  ;;  %v20474_v41 = vpop.f32.mrf.mxu0 }
 0x4af   : > { %v20453_v40 = vpop.f32.mrf.mxu1  ;;  %v8129_v53 = vadd.f32 %v21398_v32, %v7295_v7  ;;  %v21406_v32 = vld [vmem:[#allocation33_spill] sm:$0xff] }
 0x4b0   : > { %21393 = vst [vmem:[#allocation39_spill] sm:$0xff] %v20449_v56 }
 0x4b1   : > { %v14559_v26 = vpop.f32.mrf.mxu1 }
 0x4b2   : > { %v10290_v19 = vadd.f32 %v14559_v26, %v20308_v21  ;;  %v9765_v21 = vadd.f32 %v21401_v27, %v21400_v49  ;;  %v21408_v49 = vld [vmem:[#allocation50_spill] sm:$0xff] }
 0x4b3   : > { %v10245_v60 = vpop.f32.mrf.mxu1 }
 0x4b4   : > { %v10288_v4 = vadd.f32 %v10245_v60, %v20314_v10  ;;  %v20464_v46 = vadd.f32 %v20310_v58, %v10290_v19  ;;  %v10263_v39 = vadd.f32 %v20335_v52, %v9765_v21  ;;  %v21404_v10 = vld [vmem:[#allocation29_spill] sm:$0xff]  ;;  %v21405_v58 = vld [vmem:[#allocation62_spill] sm:$0xff]  ;;  %v21410_v21 = vld [vmem:[#allocation20_spill] sm:$0xff] }
 0x4b5   : > { %v20467_v2 = vpop.f32.mrf.mxu1  ;;  %v9763_v38 = vadd.f32 %v21404_v10, %v9009_v24  ;;  %v8627_v19 = vadd.f32 %v21405_v58, %v8129_v53  ;;  %v21411_v53 = vld [vmem:[#allocation90_spill] sm:$0xff]  ;;  %v21412_v58 = vld [vmem:[#allocation60_spill] sm:$0xff] }
 0x4b6   : > { %21397 = vst [vmem:[#allocation87_spill] sm:$0xff] %v20464_v46  ;;  %21399 = vst [vmem:[#allocation72_spill] sm:$0xff] %v20467_v2  ;;  %v20472_v26 = vadd.f32 %v20316_v14, %v10288_v4  ;;  %v21407_v46 = vld [vmem:[#allocation69_spill] sm:$0xff]  ;;  %v20485_v14 = vpop.f32.mrf.mxu0  ;;  %v9769_v56 = vadd.f32 %v21412_v58, %v21411_v53  ;;  %v21418_v58 = vld [vmem:[#allocation71_spill] sm:$0xff] }
 0x4b7   : > { %v20476_v44 = vpop.f32.mrf.mxu1  ;;  %v10261_v7 = vadd.f32 %v20342_v50, %v9763_v38  ;;  %v7311_v2 = vadd.f32 %v21407_v46, %v21406_v32  ;;  %v9013_v27 = vadd.f32 %v21408_v49, %v8627_v19  ;;  %v21413_v46 = vld [vmem:[#allocation85_spill] sm:$0xff] }
 0x4b8   : > { %21402 = vst [vmem:[#allocation88_spill] sm:$0xff] %v20472_v26  ;;  %21403 = vst [vmem:[#allocation43_spill] sm:$0xff] %v20476_v44  ;;  %v21409_v44 = vld [vmem:[#allocation96_spill] sm:$0xff]  ;;  %v21414_v19 = vld [vmem:[#allocation21_spill] sm:$0xff]  ;;  %v20495_v5 = vpop.f32.mrf.mxu0 }
 0x4b9   : > { %v14627_v60 = vpop.f32.mrf.mxu1  ;;  %v10650_v52 = vadd.f32 %v21409_v44, %v10263_v39  ;;  %v8133_v24 = vadd.f32 %v21410_v21, %v7311_v2  ;;  %v10648_v32 = vadd.f32 %v21413_v46, %v10261_v7  ;;  %v9767_v49 = vadd.f32 %v21414_v19, %v9013_v27 }
 0x4ba   : > { %v11403_v26 = vadd.f32 %v14627_v60, %v20333_v37  ;;  %v10267_v37 = vadd.f32 %v20353_v3, %v9769_v56  ;;  %v21415_v60 = vld [vmem:[#allocation41_spill] sm:$0xff] }
 0x4bb   : > { %v11274_v4 = vpop.f32.mrf.mxu1  ;;  %v8631_v21 = vadd.f32 %v21415_v60, %v8133_v24  ;;  %v10265_v7 = vadd.f32 %v20360_v61, %v9767_v49  ;;  %v21417_v24 = vld [vmem:[#allocation54_spill] sm:$0xff] }
 0x4bc   : > { %v11401_v50 = vadd.f32 %v11274_v4, %v20338_v8  ;;  %v11901_v44 = vadd.f32 %v20340_v42, %v11403_v26  ;;  %v20512_v26 = vpop.f32.mrf.mxu0 }
 0x4bd   : > { %v14628_v10 = vpop.f32.mrf.mxu1 }
 0x4be   : > { %v11404_v38 = vadd.f32 %v14628_v10, %v10650_v52  ;;  %v11899_v3 = vadd.f32 %v20348_v55, %v11401_v50  ;;  %v10654_v10 = vadd.f32 %v21417_v24, %v10267_v37  ;;  %v20523_v49 = vpop.f32.mrf.mxu0  ;;  %v21426_v24 = vld [vmem:[#allocation98_spill] sm:$0xff] }
 0x4bf   : > { %v11277_v47 = vpop.f32.mrf.mxu1 }
 0x4c0   : > { %v11902_v2 = vadd.f32 %v20358_v9, %v11404_v38  ;;  %v11402_v39 = vadd.f32 %v11277_v47, %v10648_v32  ;;  %v21416_v9 = vld [vmem:[#allocation93_spill] sm:$0xff]  ;;  %v21419_v38 = vld [vmem:[#allocation42_spill] sm:$0xff] }
 0x4c1   : > { %v14631_v8 = vpop.f32.mrf.mxu1  ;;  %v9017_v47 = vadd.f32 %v21416_v9, %v8631_v21  ;;  %v9773_v61 = vadd.f32 %v21419_v38, %v21418_v58  ;;  %v21421_v32 = vld [vmem:[#allocation6_spill] sm:$0xff] }
 0x4c2   : > { %v13235_v56 = vpack.c.bf16 %v11902_v2, %v11901_v44  ;;  %v11900_v42 = vadd.f32 %v20366_v57, %v11402_v39  ;;  %v11407_v52 = vadd.f32 %v14631_v8, %v20351_v18  ;;  %v21420_v57 = vld [vmem:[#allocation4_spill] sm:$0xff] }
 0x4c3   : > { %v11290_v27 = vpop.f32.mrf.mxu1  ;;  %v10652_v46 = vadd.f32 %v21420_v57, %v10265_v7  ;;  %v9771_v19 = vadd.f32 %v21421_v32, %v9017_v47  ;;  %v10271_v18 = vadd.f32 %v20371_v48, %v9773_v61 }
 0x4c4   : > { %13322 = vst [vmem:[%s20506_s10 + $0x8] sm:$0xff] %v13235_v56   ;;  %v13230_v4 = vpack.c.bf16 %v11900_v42, %v11899_v3  ;;  %v11405_v55 = vadd.f32 %v11290_v27, %v20356_v51  ;;  %v11905_v37 = vadd.f32 %v20376_v31, %v11407_v52  ;;  %v20531_v3 = vpop.f32.mrf.mxu0  ;;  %v21422_v31 = vld [vmem:[#allocation94_spill] sm:$0xff]  ;;  %v21424_v27 = vld [vmem:[#allocation7_spill] sm:$0xff]  ;;  %v21425_v52 = vld [vmem:[#allocation16_spill] sm:$0xff] }
 0x4c5   : > { %v14632_v53 = vpop.f32.mrf.mxu1  ;;  %v10269_v51 = vadd.f32 %v20378_v34, %v9771_v19  ;;  %v10658_v9 = vadd.f32 %v21422_v31, %v10271_v18 }
 0x4c6   : > { %13231 = vst [vmem:[%s20506_s10] sm:$0xff] %v13230_v4   ;;  %v11408_v50 = vadd.f32 %v14632_v53, %v10654_v10  ;;  %v11903_v21 = vadd.f32 %v20384_v43, %v11405_v55  ;;  %v21427_v10 = vld [vmem:[#allocation44_spill] sm:$0xff]  ;;  %v20543_v58 = vpop.f32.mrf.mxu0 }
 0x4c7   : > { %v11293_v44 = vpop.f32.mrf.mxu1  ;;  %v9775_v53 = vadd.f32 %v21427_v10, %v21426_v24  ;;  %v21434_v24 = vld [vmem:[#allocation17_spill] sm:$0xff] }
 0x4c8   : > { %v11906_v2 = vadd.f32 %v20394_v59, %v11408_v50  ;;  %v11406_v39 = vadd.f32 %v11293_v44, %v10652_v46  ;;  %v21423_v59 = vld [vmem:[#allocation23_spill] sm:$0xff]  ;;  %v20551_v44 = vpop.f32.mrf.mxu0 }
 0x4c9   : > { %v14635_v60 = vpop.f32.mrf.mxu1  ;;  %v9777_v4 = vadd.f32 %v21424_v27, %v21423_v59 }
 0x4ca   : > { %v13245_v8 = vpack.c.bf16 %v11906_v2, %v11905_v37  ;;  %v11904_v7 = vadd.f32 %v20402_v35, %v11406_v39  ;;  %v11411_v48 = vadd.f32 %v14635_v60, %v20369_v54  ;;  %v10656_v35 = vadd.f32 %v21425_v52, %v10269_v51  ;;  %v21430_v60 = vld [vmem:[#allocation18_spill] sm:$0xff] }
 0x4cb   : > { %v11306_v56 = vpop.f32.mrf.mxu1  ;;  %v10275_v54 = vadd.f32 %v20389_v12, %v9777_v4 }
 0x4cc   : > { %13324 = vst [vmem:[%s20506_s10 + $0x18] sm:$0xff] %v13245_v8   ;;  %v13240_v42 = vpack.c.bf16 %v11904_v7, %v11903_v21  ;;  %v11409_v34 = vadd.f32 %v11306_v56, %v20374_v36  ;;  %v11909_v61 = vadd.f32 %v20412_v23, %v11411_v48  ;;  %v10273_v36 = vadd.f32 %v20396_v45, %v9775_v53  ;;  %v21428_v23 = vld [vmem:[#allocation102_spill] sm:$0xff]  ;;  %v21431_v21 = vld [vmem:[#allocation104_spill] sm:$0xff]  ;;  %v21432_v8 = vld [vmem:[#allocation103_spill] sm:$0xff] }
 0x4cd   : > { %v14636_v47 = vpop.f32.mrf.mxu1  ;;  %v10662_v2 = vadd.f32 %v21428_v23, %v10275_v54  ;;  %v21433_v7 = vld [vmem:[#allocation61_spill] sm:$0xff]  ;;  %v21435_v53 = vld [vmem:[#allocation67_spill] sm:$0xff] }
 0x4ce   : > { %13323 = vst [vmem:[%s20506_s10 + $0x10] sm:$0xff] %v13240_v42   ;;  %v11412_v43 = vadd.f32 %v14636_v47, %v10658_v9  ;;  %v11907_v46 = vadd.f32 %v20420_v15, %v11409_v34  ;;  %v9779_v56 = vadd.f32 %v21433_v7, %v21432_v8  ;;  %v14696_v42 = vpop.f32.mrf.mxu0 }
 0x4cf   : > { %v11309_v38 = vpop.f32.mrf.mxu1 }
 0x4d0   : > { %v11910_v55 = vadd.f32 %v20430_v1, %v11412_v43  ;;  %v11410_v50 = vadd.f32 %v11309_v38, %v10656_v35  ;;  %v21429_v1 = vld [vmem:[#allocation99_spill] sm:$0xff]  ;;  %v11855_v43 = vpop.f32.mrf.mxu0 }
 0x4d1   : > { %v14639_v57 = vpop.f32.mrf.mxu1  ;;  %v9781_v51 = vadd.f32 %v21430_v60, %v21429_v1  ;;  %v21440_v60 = vld [vmem:[#allocation12_spill] sm:$0xff] }
 0x4d2   : > { %v13255_v32 = vpack.c.bf16 %v11910_v55, %v11909_v61  ;;  %v11908_v19 = vadd.f32 %v20438_v13, %v11410_v50  ;;  %v11415_v12 = vadd.f32 %v14639_v57, %v20387_v30  ;;  %v10660_v13 = vadd.f32 %v21431_v21, %v10273_v36  ;;  %v21439_v55 = vld [vmem:[#allocation5_spill] sm:$0xff]  ;;  %v14699_v57 = vpop.f32.mrf.mxu0  ;;  %v21443_v21 = vld [vmem:[#allocation35_spill] sm:$0xff] }
 0x4d3   : > { %v11322_v18 = vpop.f32.mrf.mxu1  ;;  %v10279_v30 = vadd.f32 %v20407_v20, %v9781_v51 }
 0x4d4   : > { %13326 = vst [vmem:[%s20506_s10 + $0x28] sm:$0xff] %v13255_v32   ;;  %v13250_v37 = vpack.c.bf16 %v11908_v19, %v11907_v46  ;;  %v11413_v45 = vadd.f32 %v11322_v18, %v20392_v0  ;;  %v11913_v31 = vadd.f32 %v20451_v6, %v11415_v12  ;;  %v10277_v0 = vadd.f32 %v20414_v16, %v9779_v56 }
 0x4d5   : > { %v14640_v39 = vpop.f32.mrf.mxu1  ;;  %v10666_v6 = vadd.f32 %v21434_v24, %v10279_v30 }
 0x4d6   : > { %13325 = vst [vmem:[%s20506_s10 + $0x20] sm:$0xff] %v13250_v37   ;;  %v11416_v15 = vadd.f32 %v14640_v39, %v10662_v2  ;;  %v11911_v27 = vadd.f32 %v20459_v25, %v11413_v45  ;;  %v21437_v25 = vld [vmem:[#allocation14_spill] sm:$0xff]  ;;  %v11868_v2 = vpop.f32.mrf.mxu0  ;;  %v21441_v45 = vld [vmem:[#allocation51_spill] sm:$0xff] }
 0x4d7   : > { %v11325_v48 = vpop.f32.mrf.mxu1  ;;  %v10664_v61 = vadd.f32 %v21437_v25, %v10277_v0  ;;  %v21450_v25 = vld [vmem:[#allocation79_spill] sm:$0xff] }
 0x4d8   : > { %v11914_v9 = vadd.f32 %v20474_v41, %v11416_v15  ;;  %v11414_v47 = vadd.f32 %v11325_v48, %v10660_v13  ;;  %v21436_v41 = vld [vmem:[#allocation9_spill] sm:$0xff] }
 0x4d9   : > { %v14643_v59 = vpop.f32.mrf.mxu1  ;;  %v9785_v38 = vadd.f32 %v21436_v41, %v21435_v53 }
 0x4da   : > { %v13265_v4 = vpack.c.bf16 %v11914_v9, %v11913_v31  ;;  %v11912_v34 = vadd.f32 %v20485_v14, %v11414_v47  ;;  %v11419_v20 = vadd.f32 %v14643_v59, %v20405_v63  ;;  %v21438_v14 = vld [vmem:[#allocation32_spill] sm:$0xff]  ;;  %v10285_v31 = vadd.f32 %v20453_v40, %v20301_v33  ;;  %v21447_v33 = vld [vmem:[#allocation70_spill] sm:$0xff] }
 0x4db   : > { %v11338_v52 = vpop.f32.mrf.mxu1  ;;  %v9783_v50 = vadd.f32 %v21439_v55, %v21438_v14  ;;  %v10283_v63 = vadd.f32 %v20425_v29, %v9785_v38 }
 0x4dc   : > { %13328 = vst [vmem:[%s20506_s10 + $0x38] sm:$0xff] %v13265_v4   ;;  %v13260_v35 = vpack.c.bf16 %v11912_v34, %v11911_v27  ;;  %v11417_v16 = vadd.f32 %v11338_v52, %v20410_v28  ;;  %v11917_v46 = vadd.f32 %v20495_v5, %v11419_v20  ;;  %v21444_v4 = vld [vmem:[#allocation84_spill] sm:$0xff]  ;;  %v10672_v40 = vadd.f32 %v21447_v33, %v10285_v31 }
 0x4dd   : > { %v14644_v10 = vpop.f32.mrf.mxu1  ;;  %v10281_v28 = vadd.f32 %v20432_v22, %v9783_v50  ;;  %v10670_v5 = vadd.f32 %v21440_v60, %v10283_v63 }
 0x4de   : > { %13327 = vst [vmem:[%s20506_s10 + $0x30] sm:$0xff] %v13260_v35   ;;  %v11420_v54 = vadd.f32 %v14644_v10, %v10666_v6  ;;  %v11915_v37 = vadd.f32 %v20512_v26, %v11417_v16  ;;  %v21448_v6 = vld [vmem:[#allocation76_spill] sm:$0xff] }
 0x4df   : > { %v11341_v36 = vpop.f32.mrf.mxu1  ;;  %v10668_v13 = vadd.f32 %v21443_v21, %v10281_v28 }
 0x4e0   : > { %v11918_v32 = vadd.f32 %v20523_v49, %v11420_v54  ;;  %v11418_v19 = vadd.f32 %v11341_v36, %v10664_v61  ;;  %v21442_v49 = vld [vmem:[#allocation75_spill] sm:$0xff] }
 0x4e1   : > { %v14647_v18 = vpop.f32.mrf.mxu1  ;;  %v9789_v15 = vadd.f32 %v21442_v49, %v21441_v45  ;;  %v21451_v61 = vld [vmem:[#allocation43_spill] sm:$0xff] }
 0x4e2   : > { %v13275_v12 = vpack.c.bf16 %v11918_v32, %v11917_v46  ;;  %v11916_v23 = vadd.f32 %v20531_v3, %v11418_v19  ;;  %v11423_v29 = vadd.f32 %v14647_v18, %v20423_v62  ;;  %v14700_v3 = vpop.f32.mrf.mxu0  ;;  %v10289_v14 = vadd.f32 %v21451_v61, %v21450_v25  ;;  %v21452_v32 = vld [vmem:[#allocation87_spill] sm:$0xff]  ;;  %v21453_v18 = vld [vmem:[#allocation52_spill] sm:$0xff] }
 0x4e3   : > { %v11354_v39 = vpop.f32.mrf.mxu1  ;;  %v10287_v7 = vadd.f32 %v20445_v11, %v9789_v15  ;;  %v21445_v11 = vld [vmem:[#allocation49_spill] sm:$0xff] }
 0x4e4   : > { %13330 = vst [vmem:[%s20506_s10 + $0x48] sm:$0xff] %v13275_v12   ;;  %v13270_v1 = vpack.c.bf16 %v11916_v23, %v11915_v37  ;;  %v11421_v22 = vadd.f32 %v11354_v39, %v20428_v17  ;;  %v11921_v56 = vadd.f32 %v20543_v58, %v11423_v29  ;;  %v11871_v59 = vpop.f32.mrf.mxu0  ;;  %v21454_v12 = vld [vmem:[#allocation88_spill] sm:$0xff] }
 0x4e5   : > { %v14648_v51 = vpop.f32.mrf.mxu1  ;;  %v10674_v52 = vadd.f32 %v21445_v11, %v10287_v7 }
 0x4e6   : > { %13329 = vst [vmem:[%s20506_s10 + $0x40] sm:$0xff] %v13270_v1   ;;  %v11424_v26 = vadd.f32 %v14648_v51, %v10670_v5  ;;  %v11919_v9 = vadd.f32 %v20551_v44, %v11421_v22  ;;  %v14703_v35 = vpop.f32.mrf.mxu0  ;;  %v21455_v1 = vld [vmem:[#allocation30_spill] sm:$0xff] }
 0x4e7   : > { %v11357_v8 = vpop.f32.mrf.mxu1  ;;  %v10676_v29 = vadd.f32 %v21455_v1, %v10289_v14 }
 0x4e8   : > { %v11922_v62 = vadd.f32 %v14696_v42, %v11424_v26  ;;  %v11422_v48 = vadd.f32 %v11357_v8, %v10668_v13  ;;  %v21446_v42 = vld [vmem:[#allocation39_spill] sm:$0xff]  ;;  %v11884_v16 = vpop.f32.mrf.mxu0 }
 0x4e9   : > { %v14651_v30 = vpop.f32.mrf.mxu1 }
 0x4ea   : > { %v13285_v17 = vpack.c.bf16 %v11922_v62, %v11921_v56  ;;  %v11920_v47 = vadd.f32 %v11855_v43, %v11422_v48  ;;  %v11427_v34 = vadd.f32 %v14651_v30, %v21444_v4  ;;  %v21449_v43 = vld [vmem:[#allocation72_spill] sm:$0xff] }
 0x4eb   : > { %v11370_v0 = vpop.f32.mrf.mxu1  ;;  %v10291_v10 = vadd.f32 %v21449_v43, %v21448_v6 }
 0x4ec   : > { %13332 = vst [vmem:[%s20506_s10 + $0x58] sm:$0xff] %v13285_v17   ;;  %v13280_v27 = vpack.c.bf16 %v11920_v47, %v11919_v9  ;;  %v11425_v20 = vadd.f32 %v11370_v0, %v21446_v42  ;;  %v11925_v53 = vadd.f32 %v14699_v57, %v11427_v34  ;;  %v14704_v57 = vpop.f32.mrf.mxu0 }
 0x4ed   : > { %v14652_v58 = vpop.f32.mrf.mxu1  ;;  %v10678_v28 = vadd.f32 %v21453_v18, %v10291_v10 }
 0x4ee   : > { %13331 = vst [vmem:[%s20506_s10 + $0x50] sm:$0xff] %v13280_v27   ;;  %v11428_v24 = vadd.f32 %v14652_v58, %v10674_v52  ;;  %v11923_v55 = vadd.f32 %v11868_v2, %v11425_v20  ;;  %v11887_v45 = vpop.f32.mrf.mxu0 }
 0x4ef   : > { %v11373_v44 = vpop.f32.mrf.mxu1 }
 0x4f0   : > { %v11926_v41 = vadd.f32 %v14700_v3, %v11428_v24  ;;  %v11426_v38 = vadd.f32 %v11373_v44, %v10672_v40 }
 0x4f1   : > { %v14655_v54 = vpop.f32.mrf.mxu1 }
 0x4f2   : > { %v13295_v50 = vpack.c.bf16 %v11926_v41, %v11925_v53  ;;  %v11924_v36 = vadd.f32 %v11871_v59, %v11426_v38  ;;  %v11431_v19 = vadd.f32 %v14655_v54, %v21452_v32 }
 0x4f3   : > { %v11386_v63 = vpop.f32.mrf.mxu1 }
 0x4f4   : > { %13334 = vst [vmem:[%s20506_s10 + $0x68] sm:$0xff] %v13295_v50   ;;  %v13290_v46 = vpack.c.bf16 %v11924_v36, %v11923_v55  ;;  %v11429_v23 = vadd.f32 %v11386_v63, %v21454_v12  ;;  %v11929_v60 = vadd.f32 %v14703_v35, %v11431_v19 }
 0x4f5   : > { %v14656_v37 = vpop.f32.mrf.mxu1 }
 0x4f6   : > { %13333 = vst [vmem:[%s20506_s10 + $0x60] sm:$0xff] %v13290_v46   ;;  %v11432_v39 = vadd.f32 %v14656_v37, %v10678_v28  ;;  %v11927_v49 = vadd.f32 %v11884_v16, %v11429_v23 }
 0x4f7   : > { %v11389_v2 = vpop.f32.mrf.mxu1 }
 0x4f8   : > { %v11930_v5 = vadd.f32 %v14704_v57, %v11432_v39  ;;  %v11430_v51 = vadd.f32 %v11389_v2, %v10676_v29 }
 0x4fa   : > { %v13305_v15 = vpack.c.bf16 %v11930_v5, %v11929_v60  ;;  %v11928_v22 = vadd.f32 %v11887_v45, %v11430_v51 }
 0x4fc   : > { %13336 = vst [vmem:[%s20506_s10 + $0x78] sm:$0xff] %v13305_v15   ;;  %v13300_v26 = vpack.c.bf16 %v11928_v22, %v11927_v49 }
 0x4fe   : > { %13335 = vst [vmem:[%s20506_s10 + $0x70] sm:$0xff] %v13300_v26  }
 0x4ff PF: > { %s18_s27 = sadd.s32 1, %s15095_s27  }
 0x500   : > { %p15_p4 = scmp.ge.s32.totalorder %s18_s27, 4  }
 0x502   :  { %17 = sbr.rel (!%p15_p4) target bundleno = 1 (0x1), region = 104 }

</bundles_post_ra>
